<compile_context>
chip_gen: v5e
topology: v5e:2x2
jax: 0.10.0
libtpu: 0.0.40
codegen_flags: <defaults>
</compile_context>

<pallas_src>
import jax
import jax.numpy as jnp
from jax.experimental import pallas as pl
from jax.experimental.pallas import tpu as pltpu

BN_EPS = 1e-5


def _vmem_budget():
    """VMEM request with headroom for compiler-internal scratch / double buffers:
    ~100 MiB on the 128 MiB parts (v5e/v6e), ~48 MiB on v7x (64 MiB physical)."""
    cap = 128 * 1024 * 1024
    try:
        cap = int(pltpu.get_tpu_info().vmem_capacity_bytes)
    except Exception:
        pass
    return max(32 * 1024 * 1024, min(cap - 16 * 1024 * 1024, 100 * 1024 * 1024))


# --------------------------- kernel 1 : upconv -------------------------------

def _upconv_kernel(x_ref, w_ref, b_ref, o_ref):
    # ConvTranspose2d(k=2, s=2): acc = x @ W(C1, 4*cs) + b (4 phases per pixel),
    # then regroup to a lane-dense (rows, W1*4*cs) tile for the HBM store.
    w1 = x_ref.shape[0] // o_ref.shape[0]
    n4 = w_ref.shape[1]
    acc = jnp.dot(x_ref[...], w_ref[...],
                  preferred_element_type=jnp.float32) + b_ref[...]
    acc = acc.reshape(o_ref.shape[0], w1, n4)           # safe reshape (leading dims)
    # lane-concat (proven to lower) instead of a minor-dim-changing reshape
    dense = jnp.concatenate([acc[:, w, :] for w in range(w1)], axis=-1)
    o_ref[...] = dense.astype(o_ref.dtype)


def _pick_upconv_rows(rows, w1):
    # image rows per grid step: aim at <= ~2048 matmul-M rows per step; the tile
    # must divide `rows` and be a multiple of 8 (or the full extent).
    if rows * w1 <= 2048:
        return rows
    best = rows
    for d in range(8, rows, 8):
        if rows % d == 0 and d * w1 <= 2048:
            best = d
    return best


def upconv_matmul(x_flat, w, b4, w1, vmem_budget):
    """x_flat: (N*H1*W1, C1) bf16, w: (C1, 4*cs) bf16, b4: (1, 4*cs) f32.
    Returns (N*H1, W1*4*cs) bf16 -- lane-dense, pixel-shuffle-friendly layout."""
    M, C1 = x_flat.shape
    N4 = w.shape[1]
    rows = M // w1
    tr = _pick_upconv_rows(rows, w1)
    return pl.pallas_call(
        _upconv_kernel,
        grid=(rows // tr,),
        in_specs=[
            pl.BlockSpec((tr * w1, C1), lambda i: (i, 0)),
            pl.BlockSpec((C1, N4), lambda i: (0, 0)),     # weights resident
            pl.BlockSpec((1, N4), lambda i: (0, 0)),
        ],
        out_specs=pl.BlockSpec((tr, w1 * N4), lambda i: (i, 0)),
        out_shape=jax.ShapeDtypeStruct((rows, w1 * N4), jnp.bfloat16),
        compiler_params=pltpu.CompilerParams(
            dimension_semantics=("parallel",),
            vmem_limit_bytes=vmem_budget),
    )(x_flat, w, b4)


# ------------------ kernel 2 : fused gate + DoubleConv -----------------------

def _gate_doubleconv_kernel(y_ref, x2_ref, wl_ref, bl_ref, wg_ref, bg_ref,
                            wc1_ref, t1_ref, wc2_ref, t2_ref,
                            o_ref, gpad_ref, hpad_ref):
    H2, W2, cs = y_ref.shape[1], y_ref.shape[2], y_ref.shape[3]
    C2 = x2_ref.shape[3]
    TS = o_ref.shape[1]
    s = pl.program_id(1)

    # ---- gate: three 1x1 convs + BN folded into TWO dense MXU dots; computed
    #      once per batch element (s == 0) into a border-zeroed bf16 VMEM
    #      scratch.  Correctness relies on the s axis being innermost and
    #      sequential ("arbitrary") so the scratch persists across strips. ----
    @pl.when(s == 0)
    def _():
        # zero only the pad borders; the interior is fully overwritten below.
        gpad_ref[pl.ds(0, 2)] = jnp.zeros((2, W2 + 2, cs), jnp.bfloat16)
        gpad_ref[pl.ds(H2 + 2, 2)] = jnp.zeros((2, W2 + 2, cs), jnp.bfloat16)
        gpad_ref[:, pl.ds(0, 1), :] = jnp.zeros((H2 + 4, 1, cs), jnp.bfloat16)
        gpad_ref[:, pl.ds(W2 + 1, 1), :] = jnp.zeros((H2 + 4, 1, cs), jnp.bfloat16)
        hpad_ref[:, pl.ds(0, 1), :] = jnp.zeros((TS + 2, 1, cs), jnp.bfloat16)
        hpad_ref[:, pl.ds(W2 + 1, 1), :] = jnp.zeros((TS + 2, 1, cs), jnp.bfloat16)

        yv = y_ref[0].reshape(H2 * W2, cs)                           # bf16
        xv = x2_ref[0].reshape(H2 * W2, C2)                          # bf16
        loc = jnp.dot(yv, wl_ref[...],
                      preferred_element_type=jnp.float32) + bl_ref[...]      # BN(conv1x1(y))
        zg = jnp.dot(xv, wg_ref[...],
                     preferred_element_type=jnp.float32) + bg_ref[...]       # two x2 branches
        # f32 epilogue (sigmoid/mul/add); cast to bf16 only at the scratch store
        gate = jax.nn.sigmoid(zg[:, :cs]) * loc + zg[:, cs:]
        gpad_ref[pl.ds(2, H2), pl.ds(1, W2), :] = (
            gate.reshape(H2, W2, cs).astype(jnp.bfloat16))

    r0 = pl.multiple_of(s * TS, TS)

    # ---- conv1 (+1-row halo for conv2): im2col, one bf16 MXU dot ----
    cols = []
    for dh in range(3):
        rows = gpad_ref[pl.ds(r0 + dh, TS + 2), :, :]                # (TS+2, W2+2, cs) bf16
        for dw in range(3):
            cols.append(rows[:, dw:dw + W2, :].reshape((TS + 2) * W2, cs))
    xcol = jnp.concatenate(cols, axis=-1)                            # bf16 (.., 9*cs)
    h = jnp.dot(xcol, wc1_ref[...],
                preferred_element_type=jnp.float32) + t1_ref[...]
    h = jnp.maximum(h, 0.0)                                          # f32 ReLU
    hpad_ref[:, pl.ds(1, W2), :] = h.reshape(TS + 2, W2, cs).astype(jnp.bfloat16)

    # halo rows falling outside the image are conv2's zero padding
    @pl.when(s == 0)
    def _():
        hpad_ref[0] = jnp.zeros((W2 + 2, cs), jnp.bfloat16)

    @pl.when(s == pl.num_programs(1) - 1)
    def _():
        hpad_ref[TS + 1] = jnp.zeros((W2 + 2, cs), jnp.bfloat16)

    # ---- conv2: im2col, one bf16 MXU dot, LANE-DENSE (1, TS, W2*cs) store ----
    cols2 = []
    for dh in range(3):
        rows = hpad_ref[pl.ds(dh, TS), :, :]                         # (TS, W2+2, cs) bf16
        for dw in range(3):
            cols2.append(rows[:, dw:dw + W2, :].reshape(TS * W2, cs))
    xcol2 = jnp.concatenate(cols2, axis=-1)
    o = jnp.dot(xcol2, wc2_ref[...],
                preferred_element_type=jnp.float32) + t2_ref[...]
    o = jnp.maximum(o, 0.0).reshape(TS, W2, cs)
    dense = jnp.concatenate([o[:, w, :] for w in range(W2)], axis=-1)  # (TS, W2*cs)
    o_ref[...] = dense.reshape(1, TS, W2 * cs).astype(o_ref.dtype)


def _pick_strip(h2, w2, cs, c2, vmem_budget):
    """Strip height TS: divides H2, is a multiple of 8 (or == H2) for the
    lane-dense out spec, fits the VMEM budget, and targets TS*W2 >= ~512
    matmul-M rows per strip (fewer, fatter strips => less grid-step overhead)."""
    fixed = (2 * h2 * w2 * cs * 2 + 2 * h2 * w2 * c2 * 2     # resident y/x2 (2 bufs)
             + (h2 + 4) * (w2 + 2) * cs * 2)                 # bf16 gate scratch
    avail = max(vmem_budget - fixed, 1)
    cands = [d for d in range(1, h2 + 1)
             if h2 % d == 0 and (d % 8 == 0 or d == h2)]

    def per_strip(ts):  # bf16 hpad scratch + double-buffered f32 output block
        return (ts + 2) * (w2 + 2) * cs * 2 + 2 * ts * w2 * cs * 4

    best = cands[0]
    for d in cands:
        if per_strip(d) <= avail:
            best = d
            if d * w2 >= 512:
                break
    return best


def gate_doubleconv(y_bf16, x2_bf16, wl, bl, wg, bg, wc1, t1, wc2, t2, vmem_budget):
    N, H2, W2, cs = y_bf16.shape
    C2 = x2_bf16.shape[-1]
    TS = _pick_strip(H2, W2, cs, C2, vmem_budget)
    S = H2 // TS
    out = pl.pallas_call(
        _gate_doubleconv_kernel,
        grid=(N, S),
        in_specs=[
            pl.BlockSpec((1, H2, W2, cs), lambda n, s: (n, 0, 0, 0)),  # y, resident over s
            pl.BlockSpec((1, H2, W2, C2), lambda n, s: (n, 0, 0, 0)),  # x2, resident over s
            pl.BlockSpec((cs, cs), lambda n, s: (0, 0)),               # wl  (resident)
            pl.BlockSpec((1, cs), lambda n, s: (0, 0)),                # bl
            pl.BlockSpec((C2, 2 * cs), lambda n, s: (0, 0)),           # [wg1|wg2]
            pl.BlockSpec((1, 2 * cs), lambda n, s: (0, 0)),            # [bg1|bg2]
            pl.BlockSpec((9 * cs, cs), lambda n, s: (0, 0)),           # wc1 (bf16)
            pl.BlockSpec((1, cs), lambda n, s: (0, 0)),                # t1
            pl.BlockSpec((9 * cs, cs), lambda n, s: (0, 0)),           # wc2 (bf16)
            pl.BlockSpec((1, cs), lambda n, s: (0, 0)),                # t2
        ],
        # lane-dense output: last dim is W2*cs (>=128 at real sizes)
        out_specs=pl.BlockSpec((1, TS, W2 * cs), lambda n, s: (n, s, 0)),
        # keep f32 output dtype to match the PyTorch module's output
        out_shape=jax.ShapeDtypeStruct((N, H2, W2 * cs), jnp.float32),
        scratch_shapes=[
            pltpu.VMEM((H2 + 4, W2 + 2, cs), jnp.bfloat16),   # border-zeroed gate image
            pltpu.VMEM((TS + 2, W2 + 2, cs), jnp.bfloat16),   # border-zeroed conv1 strip
        ],
        compiler_params=pltpu.CompilerParams(
            # s must stay sequential/innermost: the gate scratch written at s==0
            # is read by every later strip of the same batch element.
            dimension_semantics=("parallel", "arbitrary"),
            vmem_limit_bytes=vmem_budget),
    )(y_bf16, x2_bf16, wl, bl, wg, bg, wc1, t1, wc2, t2)
    return out.reshape(N, H2, W2, cs)


# ----------------------------- parameter setup -------------------------------

def _bn_fold(gamma, beta, mean, var):
    s = gamma / jnp.sqrt(var + BN_EPS)
    t = beta - mean * s
    return s, t


def init_sim_params(key, c1, c2):
    cs = c2  # sem_channels = out_channels = in_channels2
    ks = jax.random.split(key, 15)

    def nrm(k, shape, scale=0.2):
        return scale * jax.random.normal(k, shape, jnp.float32)

    def bn(k, c):
        ka, kb, kc, kd = jax.random.split(k, 4)
        gamma = 1.0 + 0.1 * jax.random.normal(ka, (c,), jnp.float32)
        beta = 0.1 * jax.random.normal(kb, (c,), jnp.float32)
        mean = 0.1 * jax.random.normal(kc, (c,), jnp.float32)
        var = jnp.abs(1.0 + 0.1 * jax.random.normal(kd, (c,), jnp.float32))
        return gamma, beta, mean, var

    p = {}
    # ConvTranspose2d(in1, cs, k=2, s=2): weight (Cin, Cout, kH, kW), bias (Cout,)
    p['up_w'] = nrm(ks[0], (c1, cs, 2, 2))
    p['up_b'] = nrm(ks[1], (cs,))
    # local_cv: Conv2d(cs, cs, 1) + BN
    p['l_w'] = nrm(ks[2], (cs, cs, 1, 1)); p['l_b'] = nrm(ks[3], (cs,)); p['l_bn'] = bn(ks[4], cs)
    # global_cv1: Conv2d(c2, cs, 1) + BN + Sigmoid
    p['g1_w'] = nrm(ks[5], (cs, c2, 1, 1)); p['g1_b'] = nrm(ks[6], (cs,)); p['g1_bn'] = bn(ks[7], cs)
    # global_cv2: Conv2d(c2, cs, 1) + BN
    p['g2_w'] = nrm(ks[8], (cs, c2, 1, 1)); p['g2_b'] = nrm(ks[9], (cs,)); p['g2_bn'] = bn(ks[10], cs)
    # DoubleConv: two 3x3 convs (no bias) + BN + ReLU
    p['c1_w'] = nrm(ks[11], (cs, cs, 3, 3)); p['c1_bn'] = bn(ks[12], cs)
    p['c2_w'] = nrm(ks[13], (cs, cs, 3, 3)); p['c2_bn'] = bn(ks[14], cs)
    return p


# ------------------------------- forward pass --------------------------------

def sim_forward(params, x1_nchw, x2_nchw):
    vmem_budget = _vmem_budget()

    # NCHW (PyTorch convention) -> NHWC kernel layout
    x1 = jnp.transpose(x1_nchw, (0, 2, 3, 1))
    x2 = jnp.transpose(x2_nchw, (0, 2, 3, 1))
    N, H1, W1, C1 = x1.shape
    _, H2, W2, C2 = x2.shape
    cs = C2

    # --- self.up : ConvTranspose2d(k=2, s=2) as one tiled bf16 Pallas matmul ---
    # out[n, 2h+dh, 2w+dw, co] = sum_ci x[n,h,w,ci] * W[ci,co,dh,dw] + b[co]
    w_up = jnp.transpose(params['up_w'], (0, 2, 3, 1)).reshape(C1, 4 * cs)
    b_up4 = jnp.tile(params['up_b'], 4).reshape(1, 4 * cs)
    y4 = upconv_matmul(x1.reshape(N * H1 * W1, C1).astype(jnp.bfloat16),
                       w_up.astype(jnp.bfloat16), b_up4, W1, vmem_budget)

    # pixel shuffle (bf16, done by XLA) + F.pad alignment
    # TODO(synk): negative diff (F.pad cropping when x2 < 2*x1) is not supported.
    y = y4.reshape(N, H1, W1, 2, 2, cs)
    y = jnp.transpose(y, (0, 1, 3, 2, 4, 5)).reshape(N, 2 * H1, 2 * W1, cs)
    dy, dx = H2 - 2 * H1, W2 - 2 * W1
    if dy or dx:
        y = jnp.pad(y, ((0, 0), (dy // 2, dy - dy // 2),
                        (dx // 2, dx - dx // 2), (0, 0)))

    # --- fold the three 1x1-conv+BN branches into TWO dense gate matmuls ---
    def fold_1x1(w, b, bnp):
        sc, sh = _bn_fold(*bnp)
        return w[:, :, 0, 0].T * sc[None, :], b * sc + sh

    wl, bl = fold_1x1(params['l_w'], params['l_b'], params['l_bn'])        # y branch
    wg1, bg1 = fold_1x1(params['g1_w'], params['g1_b'], params['g1_bn'])   # sigmoid branch
    wg2, bg2 = fold_1x1(params['g2_w'], params['g2_b'], params['g2_bn'])   # additive branch
    wg = jnp.concatenate([wg1, wg2], axis=1)                               # (C2, 2*cs)
    bg = jnp.concatenate([bg1, bg2]).reshape(1, 2 * cs)
    bl = bl.reshape(1, cs)

    # --- fold the two 3x3 conv + BN (DoubleConv) into bf16 im2col weights ---
    def fold_3x3(w, bnp):
        sc, sh = _bn_fold(*bnp)
        w9 = jnp.transpose(w, (2, 3, 1, 0)).reshape(9 * w.shape[1], w.shape[0])
        return (w9 * sc[None, :]).astype(jnp.bfloat16), sh.reshape(1, -1)

    wc1, t1 = fold_3x3(params['c1_w'], params['c1_bn'])
    wc2, t2 = fold_3x3(params['c2_w'], params['c2_bn'])

    out = gate_doubleconv(y.astype(jnp.bfloat16), x2.astype(jnp.bfloat16),
                          wl.astype(jnp.bfloat16), bl,
                          wg.astype(jnp.bfloat16), bg,
                          wc1, t1, wc2, t2, vmem_budget)

    # back to NCHW
    return jnp.transpose(out, (0, 3, 1, 2))


# ----------------------------------- main ------------------------------------

if __name__ == "__main__":
    key = jax.random.PRNGKey(0)
    kp, k1, k2 = jax.random.split(key, 3)

    # Small shapes consistent with the module (U-Net skip connection):
    # x1 is the low-res deep feature, x2 the high-res skip feature.
    N, C1, C2 = 2, 16, 8
    H1 = W1 = 8
    H2 = W2 = 16

    params = init_sim_params(kp, C1, C2)
    x1 = jax.random.normal(k1, (N, C1, H1, W1), jnp.float32)
    x2 = jax.random.normal(k2, (N, C2, H2, W2), jnp.float32)

    out = jax.jit(sim_forward)(params, x1, x2)
    out = jax.block_until_ready(out)

    assert out.shape == (N, C2, H2, W2), out.shape
    assert bool(jnp.all(jnp.isfinite(out)))
    print("KERNEL_OK")
</pallas_src>

<mosaic_0001>
module attributes {stable_mosaic.version = 11 : i64} {
  func.func @_upconv_kernel(%arg0: i32, %arg1: memref<128x16xbf16, #tpu.memory_space<vmem>>, %arg2: memref<16x32xbf16, #tpu.memory_space<vmem>>, %arg3: memref<1x32xf32, #tpu.memory_space<vmem>>, %arg4: memref<16x256xbf16, #tpu.memory_space<vmem>>) attributes {dimension_semantics = [#tpu.dimension_semantics<parallel>], iteration_bounds = array<i64: 1>, scalar_prefetch = 0 : i64, scratch_operands = 0 : i64, tpu.core_type = #tpu.core_type<tc>, window_params = [{transform_indices = @transform_0, window_bounds = array<i64: 128, 16>}, {pipeline_mode = #tpu.pipeline_mode<synchronous>, transform_indices = @transform_1, window_bounds = array<i64: 16, 32>}, {pipeline_mode = #tpu.pipeline_mode<synchronous>, transform_indices = @transform_2, window_bounds = array<i64: 1, 32>}, {transform_indices = @transform_3, window_bounds = array<i64: 16, 256>}]} {
    %c0 = arith.constant 0 : index
    %c0_0 = arith.constant 0 : index
    %0 = vector.load %arg1[%c0, %c0_0] : memref<128x16xbf16, #tpu.memory_space<vmem>>, vector<128x16xbf16>
    %c0_1 = arith.constant 0 : index
    %c0_2 = arith.constant 0 : index
    %1 = vector.load %arg2[%c0_1, %c0_2] : memref<16x32xbf16, #tpu.memory_space<vmem>>, vector<16x32xbf16>
    %cst = arith.constant dense<0.000000e+00> : vector<128x32xf32>
    %2 = tpu.matmul %0, %1, %cst {dimension_numbers = #tpu.dot_dimension_numbers<[1], [0], [0], [1], [0, 0, 1, 1], [], []>} : vector<128x16xbf16>, vector<16x32xbf16>, vector<128x32xf32> -> vector<128x32xf32>
    %c0_3 = arith.constant 0 : index
    %c0_4 = arith.constant 0 : index
    %3 = vector.load %arg3[%c0_3, %c0_4] : memref<1x32xf32, #tpu.memory_space<vmem>>, vector<1x32xf32>
    %4 = vector.broadcast %3 : vector<1x32xf32> to vector<128x32xf32>
    %5 = arith.addf %2, %4 : vector<128x32xf32>
    %6 = vector.shape_cast %5 : vector<128x32xf32> to vector<16x8x32xf32>
    %7 = vector.extract_strided_slice %6 {offsets = [0, 0, 0], sizes = [16, 1, 32], strides = [1, 1, 1]} : vector<16x8x32xf32> to vector<16x1x32xf32>
    %8 = vector.shape_cast %7 : vector<16x1x32xf32> to vector<16x32xf32>
    %9 = vector.extract_strided_slice %6 {offsets = [0, 1, 0], sizes = [16, 1, 32], strides = [1, 1, 1]} : vector<16x8x32xf32> to vector<16x1x32xf32>
    %10 = vector.shape_cast %9 : vector<16x1x32xf32> to vector<16x32xf32>
    %11 = vector.extract_strided_slice %6 {offsets = [0, 2, 0], sizes = [16, 1, 32], strides = [1, 1, 1]} : vector<16x8x32xf32> to vector<16x1x32xf32>
    %12 = vector.shape_cast %11 : vector<16x1x32xf32> to vector<16x32xf32>
    %13 = vector.extract_strided_slice %6 {offsets = [0, 3, 0], sizes = [16, 1, 32], strides = [1, 1, 1]} : vector<16x8x32xf32> to vector<16x1x32xf32>
    %14 = vector.shape_cast %13 : vector<16x1x32xf32> to vector<16x32xf32>
    %15 = vector.extract_strided_slice %6 {offsets = [0, 4, 0], sizes = [16, 1, 32], strides = [1, 1, 1]} : vector<16x8x32xf32> to vector<16x1x32xf32>
    %16 = vector.shape_cast %15 : vector<16x1x32xf32> to vector<16x32xf32>
    %17 = vector.extract_strided_slice %6 {offsets = [0, 5, 0], sizes = [16, 1, 32], strides = [1, 1, 1]} : vector<16x8x32xf32> to vector<16x1x32xf32>
    %18 = vector.shape_cast %17 : vector<16x1x32xf32> to vector<16x32xf32>
    %19 = vector.extract_strided_slice %6 {offsets = [0, 6, 0], sizes = [16, 1, 32], strides = [1, 1, 1]} : vector<16x8x32xf32> to vector<16x1x32xf32>
    %20 = vector.shape_cast %19 : vector<16x1x32xf32> to vector<16x32xf32>
    %21 = vector.extract_strided_slice %6 {offsets = [0, 7, 0], sizes = [16, 1, 32], strides = [1, 1, 1]} : vector<16x8x32xf32> to vector<16x1x32xf32>
    %22 = vector.shape_cast %21 : vector<16x1x32xf32> to vector<16x32xf32>
    %23 = tpu.concatenate %8, %10, %12, %14, %16, %18, %20, %22 in 1 : vector<16x32xf32>, vector<16x32xf32>, vector<16x32xf32>, vector<16x32xf32>, vector<16x32xf32>, vector<16x32xf32>, vector<16x32xf32>, vector<16x32xf32> -> vector<16x256xf32>
    %24 = arith.truncf %23 : vector<16x256xf32> to vector<16x256xbf16>
    %c0_5 = arith.constant 0 : index
    %c0_6 = arith.constant 0 : index
    %25 = vector.load %arg4[%c0_5, %c0_6] : memref<16x256xbf16, #tpu.memory_space<vmem>>, vector<16x256xbf16>
    tpu.vector_store %arg4[%c0_5, %c0_6], %24 {strides = array<i32>} : memref<16x256xbf16, #tpu.memory_space<vmem>>, vector<16x256xbf16>,
    return
  }
  func.func @transform_0(%arg0: i32) -> (i32, i32) {
    %c0_i32 = arith.constant 0 : i32
    %c0_i32_0 = arith.constant 0 : i32
    return %arg0, %c0_i32 : i32, i32
  }
  func.func @transform_1(%arg0: i32) -> (i32, i32) {
    %c0_i32 = arith.constant 0 : i32
    %c0_i32_0 = arith.constant 0 : i32
    %c0_i32_1 = arith.constant 0 : i32
    return %c0_i32, %c0_i32_0 : i32, i32
  }
  func.func @transform_2(%arg0: i32) -> (i32, i32) {
    %c0_i32 = arith.constant 0 : i32
    %c0_i32_0 = arith.constant 0 : i32
    %c0_i32_1 = arith.constant 0 : i32
    return %c0_i32, %c0_i32_0 : i32, i32
  }
  func.func @transform_3(%arg0: i32) -> (i32, i32) {
    %c0_i32 = arith.constant 0 : i32
    %c0_i32_0 = arith.constant 0 : i32
    return %arg0, %c0_i32 : i32, i32
  }
}

module attributes {stable_mosaic.version = 11 : i64} {
  func.func @_gate_doubleconv_kernel(%arg0: i32, %arg1: i32, %arg2: memref<1x16x16x8xbf16, #tpu.memory_space<vmem>>, %arg3: memref<1x16x16x8xbf16, #tpu.memory_space<vmem>>, %arg4: memref<8x8xbf16, #tpu.memory_space<vmem>>, %arg5: memref<1x8xf32, #tpu.memory_space<vmem>>, %arg6: memref<8x16xbf16, #tpu.memory_space<vmem>>, %arg7: memref<1x16xf32, #tpu.memory_space<vmem>>, %arg8: memref<72x8xbf16, #tpu.memory_space<vmem>>, %arg9: memref<1x8xf32, #tpu.memory_space<vmem>>, %arg10: memref<72x8xbf16, #tpu.memory_space<vmem>>, %arg11: memref<1x8xf32, #tpu.memory_space<vmem>>, %arg12: memref<1x16x128xf32, #tpu.memory_space<vmem>>, %arg13: memref<20x18x8xbf16, #tpu.memory_space<vmem>>, %arg14: memref<18x18x8xbf16, #tpu.memory_space<vmem>>) attributes {dimension_semantics = [#tpu.dimension_semantics<parallel>, #tpu.dimension_semantics<arbitrary>], iteration_bounds = array<i64: 2, 1>, scalar_prefetch = 0 : i64, scratch_operands = 2 : i64, tpu.core_type = #tpu.core_type<tc>, window_params = [{transform_indices = @transform_0, window_bounds = array<i64: 1, 16, 16, 8>}, {transform_indices = @transform_1, window_bounds = array<i64: 1, 16, 16, 8>}, {pipeline_mode = #tpu.pipeline_mode<synchronous>, transform_indices = @transform_2, window_bounds = array<i64: 8, 8>}, {pipeline_mode = #tpu.pipeline_mode<synchronous>, transform_indices = @transform_3, window_bounds = array<i64: 1, 8>}, {pipeline_mode = #tpu.pipeline_mode<synchronous>, transform_indices = @transform_4, window_bounds = array<i64: 8, 16>}, {pipeline_mode = #tpu.pipeline_mode<synchronous>, transform_indices = @transform_5, window_bounds = array<i64: 1, 16>}, {pipeline_mode = #tpu.pipeline_mode<synchronous>, transform_indices = @transform_6, window_bounds = array<i64: 72, 8>}, {pipeline_mode = #tpu.pipeline_mode<synchronous>, transform_indices = @transform_7, window_bounds = array<i64: 1, 8>}, {pipeline_mode = #tpu.pipeline_mode<synchronous>, transform_indices = @transform_8, window_bounds = array<i64: 72, 8>}, {pipeline_mode = #tpu.pipeline_mode<synchronous>, transform_indices = @transform_9, window_bounds = array<i64: 1, 8>}, {transform_indices = @transform_10, window_bounds = array<i64: 1, 16, 128>}]} {
    %c0_i32 = arith.constant 0 : i32
    %0 = arith.cmpi eq, %arg1, %c0_i32 : i32
    %1 = arith.extui %0 : i1 to i32
    %c0_i32_0 = arith.constant 0 : i32
    %2 = arith.cmpi ne, %1, %c0_i32_0 : i32
    scf.if %2 {
      %cst_35 = arith.constant 0.000000e+00 : bf16
      %114 = vector.broadcast %cst_35 : bf16 to vector<2x18x8xbf16>
      %c0_36 = arith.constant 0 : index
      %c0_37 = arith.constant 0 : index
      %c0_38 = arith.constant 0 : index
      %115 = vector.load %arg13[%c0_36, %c0_37, %c0_38] : memref<20x18x8xbf16, #tpu.memory_space<vmem>>, vector<2x18x8xbf16>
      tpu.vector_store %arg13[%c0_36, %c0_37, %c0_38], %114 {strides = array<i32>} : memref<20x18x8xbf16, #tpu.memory_space<vmem>>, vector<2x18x8xbf16>,
      %cst_39 = arith.constant 0.000000e+00 : bf16
      %116 = vector.broadcast %cst_39 : bf16 to vector<2x18x8xbf16>
      %c18 = arith.constant 18 : index
      %c0_40 = arith.constant 0 : index
      %c0_41 = arith.constant 0 : index
      %117 = vector.load %arg13[%c18, %c0_40, %c0_41] : memref<20x18x8xbf16, #tpu.memory_space<vmem>>, vector<2x18x8xbf16>
      tpu.vector_store %arg13[%c18, %c0_40, %c0_41], %116 {strides = array<i32>} : memref<20x18x8xbf16, #tpu.memory_space<vmem>>, vector<2x18x8xbf16>,
      %cst_42 = arith.constant 0.000000e+00 : bf16
      %118 = vector.broadcast %cst_42 : bf16 to vector<20x1x8xbf16>
      %c0_43 = arith.constant 0 : index
      %c0_44 = arith.constant 0 : index
      %c0_45 = arith.constant 0 : index
      %119 = vector.load %arg13[%c0_43, %c0_44, %c0_45] : memref<20x18x8xbf16, #tpu.memory_space<vmem>>, vector<20x1x8xbf16>
      tpu.vector_store %arg13[%c0_43, %c0_44, %c0_45], %118 {strides = array<i32>} : memref<20x18x8xbf16, #tpu.memory_space<vmem>>, vector<20x1x8xbf16>,
      %cst_46 = arith.constant 0.000000e+00 : bf16
      %120 = vector.broadcast %cst_46 : bf16 to vector<20x1x8xbf16>
      %c0_47 = arith.constant 0 : index
      %c17 = arith.constant 17 : index
      %c0_48 = arith.constant 0 : index
      %121 = vector.load %arg13[%c0_47, %c17, %c0_48] : memref<20x18x8xbf16, #tpu.memory_space<vmem>>, vector<20x1x8xbf16>
      tpu.vector_store %arg13[%c0_47, %c17, %c0_48], %120 {strides = array<i32>} : memref<20x18x8xbf16, #tpu.memory_space<vmem>>, vector<20x1x8xbf16>,
      %cst_49 = arith.constant 0.000000e+00 : bf16
      %122 = vector.broadcast %cst_49 : bf16 to vector<18x1x8xbf16>
      %c0_50 = arith.constant 0 : index
      %c0_51 = arith.constant 0 : index
      %c0_52 = arith.constant 0 : index
      %123 = vector.load %arg14[%c0_50, %c0_51, %c0_52] : memref<18x18x8xbf16, #tpu.memory_space<vmem>>, vector<18x1x8xbf16>
      tpu.vector_store %arg14[%c0_50, %c0_51, %c0_52], %122 {strides = array<i32>} : memref<18x18x8xbf16, #tpu.memory_space<vmem>>, vector<18x1x8xbf16>,
      %cst_53 = arith.constant 0.000000e+00 : bf16
      %124 = vector.broadcast %cst_53 : bf16 to vector<18x1x8xbf16>
      %c0_54 = arith.constant 0 : index
      %c17_55 = arith.constant 17 : index
      %c0_56 = arith.constant 0 : index
      %125 = vector.load %arg14[%c0_54, %c17_55, %c0_56] : memref<18x18x8xbf16, #tpu.memory_space<vmem>>, vector<18x1x8xbf16>
      tpu.vector_store %arg14[%c0_54, %c17_55, %c0_56], %124 {strides = array<i32>} : memref<18x18x8xbf16, #tpu.memory_space<vmem>>, vector<18x1x8xbf16>,
      %c0_57 = arith.constant 0 : index
      %c0_58 = arith.constant 0 : index
      %c0_59 = arith.constant 0 : index
      %c0_60 = arith.constant 0 : index
      %126 = vector.load %arg2[%c0_57, %c0_58, %c0_59, %c0_60] : memref<1x16x16x8xbf16, #tpu.memory_space<vmem>>, vector<1x16x16x8xbf16>
      %127 = vector.shape_cast %126 : vector<1x16x16x8xbf16> to vector<16x16x8xbf16>
      %128 = vector.shape_cast %127 : vector<16x16x8xbf16> to vector<256x8xbf16>
      %c0_61 = arith.constant 0 : index
      %c0_62 = arith.constant 0 : index
      %c0_63 = arith.constant 0 : index
      %c0_64 = arith.constant 0 : index
      %129 = vector.load %arg3[%c0_61, %c0_62, %c0_63, %c0_64] : memref<1x16x16x8xbf16, #tpu.memory_space<vmem>>, vector<1x16x16x8xbf16>
      %130 = vector.shape_cast %129 : vector<1x16x16x8xbf16> to vector<16x16x8xbf16>
      %131 = vector.shape_cast %130 : vector<16x16x8xbf16> to vector<256x8xbf16>
      %c0_65 = arith.constant 0 : index
      %c0_66 = arith.constant 0 : index
      %132 = vector.load %arg4[%c0_65, %c0_66] : memref<8x8xbf16, #tpu.memory_space<vmem>>, vector<8x8xbf16>
      %cst_67 = arith.constant dense<0.000000e+00> : vector<256x8xf32>
      %133 = tpu.matmul %128, %132, %cst_67 {dimension_numbers = #tpu.dot_dimension_numbers<[1], [0], [0], [1], [0, 0, 1, 1], [], []>} : vector<256x8xbf16>, vector<8x8xbf16>, vector<256x8xf32> -> vector<256x8xf32>
      %c0_68 = arith.constant 0 : index
      %c0_69 = arith.constant 0 : index
      %134 = vector.load %arg5[%c0_68, %c0_69] : memref<1x8xf32, #tpu.memory_space<vmem>>, vector<1x8xf32>
      %135 = vector.broadcast %134 : vector<1x8xf32> to vector<256x8xf32>
      %136 = arith.addf %133, %135 : vector<256x8xf32>
      %c0_70 = arith.constant 0 : index
      %c0_71 = arith.constant 0 : index
      %137 = vector.load %arg6[%c0_70, %c0_71] : memref<8x16xbf16, #tpu.memory_space<vmem>>, vector<8x16xbf16>
      %cst_72 = arith.constant dense<0.000000e+00> : vector<256x16xf32>
      %138 = tpu.matmul %131, %137, %cst_72 {dimension_numbers = #tpu.dot_dimension_numbers<[1], [0], [0], [1], [0, 0, 1, 1], [], []>} : vector<256x8xbf16>, vector<8x16xbf16>, vector<256x16xf32> -> vector<256x16xf32>
      %c0_73 = arith.constant 0 : index
      %c0_74 = arith.constant 0 : index
      %139 = vector.load %arg7[%c0_73, %c0_74] : memref<1x16xf32, #tpu.memory_space<vmem>>, vector<1x16xf32>
      %140 = vector.broadcast %139 : vector<1x16xf32> to vector<256x16xf32>
      %141 = arith.addf %138, %140 : vector<256x16xf32>
      %142 = vector.extract_strided_slice %141 {offsets = [0, 0], sizes = [256, 8], strides = [1, 1]} : vector<256x16xf32> to vector<256x8xf32>
      %143 = arith.negf %142 : vector<256x8xf32>
      %144 = math.exp %143 : vector<256x8xf32>
      %cst_75 = arith.constant 1.000000e+00 : f32
      %145 = vector.broadcast %cst_75 : f32 to vector<256x8xf32>
      %146 = arith.addf %145, %144 : vector<256x8xf32>
      %147 = arith.divf %145, %146 : vector<256x8xf32>
      %148 = arith.mulf %147, %136 : vector<256x8xf32>
      %149 = vector.extract_strided_slice %141 {offsets = [0, 8], sizes = [256, 8], strides = [1, 1]} : vector<256x16xf32> to vector<256x8xf32>
      %150 = arith.addf %148, %149 : vector<256x8xf32>
      %151 = vector.shape_cast %150 : vector<256x8xf32> to vector<16x16x8xf32>
      %152 = arith.truncf %151 : vector<16x16x8xf32> to vector<16x16x8xbf16>
      %c2_76 = arith.constant 2 : index
      %c1_77 = arith.constant 1 : index
      %c0_78 = arith.constant 0 : index
      %153 = vector.load %arg13[%c2_76, %c1_77, %c0_78] : memref<20x18x8xbf16, #tpu.memory_space<vmem>>, vector<16x16x8xbf16>
      tpu.vector_store %arg13[%c2_76, %c1_77, %c0_78], %152 {strides = array<i32>} : memref<20x18x8xbf16, #tpu.memory_space<vmem>>, vector<16x16x8xbf16>,
    } else {
    }
    %c16_i32 = arith.constant 16 : i32
    %3 = arith.muli %arg1, %c16_i32 : i32
    %4 = tpu.assume_multiple %3, 16 : i32
    %c0_i32_1 = arith.constant 0 : i32
    %5 = arith.addi %4, %c0_i32_1 : i32
    %6 = arith.index_cast %5 : i32 to index
    %c0 = arith.constant 0 : index
    %c0_2 = arith.constant 0 : index
    %7 = vector.load %arg13[%6, %c0, %c0_2] : memref<20x18x8xbf16, #tpu.memory_space<vmem>>, vector<18x18x8xbf16>
    %8 = vector.extract_strided_slice %7 {offsets = [0, 0, 0], sizes = [18, 16, 8], strides = [1, 1, 1]} : vector<18x18x8xbf16> to vector<18x16x8xbf16>
    %9 = vector.shape_cast %8 : vector<18x16x8xbf16> to vector<288x8xbf16>
    %10 = vector.extract_strided_slice %7 {offsets = [0, 1, 0], sizes = [18, 16, 8], strides = [1, 1, 1]} : vector<18x18x8xbf16> to vector<18x16x8xbf16>
    %11 = vector.shape_cast %10 : vector<18x16x8xbf16> to vector<288x8xbf16>
    %12 = vector.extract_strided_slice %7 {offsets = [0, 2, 0], sizes = [18, 16, 8], strides = [1, 1, 1]} : vector<18x18x8xbf16> to vector<18x16x8xbf16>
    %13 = vector.shape_cast %12 : vector<18x16x8xbf16> to vector<288x8xbf16>
    %c1_i32 = arith.constant 1 : i32
    %14 = arith.addi %4, %c1_i32 : i32
    %15 = arith.index_cast %14 : i32 to index
    %c0_3 = arith.constant 0 : index
    %c0_4 = arith.constant 0 : index
    %16 = vector.load %arg13[%15, %c0_3, %c0_4] : memref<20x18x8xbf16, #tpu.memory_space<vmem>>, vector<18x18x8xbf16>
    %17 = vector.extract_strided_slice %16 {offsets = [0, 0, 0], sizes = [18, 16, 8], strides = [1, 1, 1]} : vector<18x18x8xbf16> to vector<18x16x8xbf16>
    %18 = vector.shape_cast %17 : vector<18x16x8xbf16> to vector<288x8xbf16>
    %19 = vector.extract_strided_slice %16 {offsets = [0, 1, 0], sizes = [18, 16, 8], strides = [1, 1, 1]} : vector<18x18x8xbf16> to vector<18x16x8xbf16>
    %20 = vector.shape_cast %19 : vector<18x16x8xbf16> to vector<288x8xbf16>
    %21 = vector.extract_strided_slice %16 {offsets = [0, 2, 0], sizes = [18, 16, 8], strides = [1, 1, 1]} : vector<18x18x8xbf16> to vector<18x16x8xbf16>
    %22 = vector.shape_cast %21 : vector<18x16x8xbf16> to vector<288x8xbf16>
    %c2_i32 = arith.constant 2 : i32
    %23 = arith.addi %4, %c2_i32 : i32
    %24 = arith.index_cast %23 : i32 to index
    %c0_5 = arith.constant 0 : index
    %c0_6 = arith.constant 0 : index
    %25 = vector.load %arg13[%24, %c0_5, %c0_6] : memref<20x18x8xbf16, #tpu.memory_space<vmem>>, vector<18x18x8xbf16>
    %26 = vector.extract_strided_slice %25 {offsets = [0, 0, 0], sizes = [18, 16, 8], strides = [1, 1, 1]} : vector<18x18x8xbf16> to vector<18x16x8xbf16>
    %27 = vector.shape_cast %26 : vector<18x16x8xbf16> to vector<288x8xbf16>
    %28 = vector.extract_strided_slice %25 {offsets = [0, 1, 0], sizes = [18, 16, 8], strides = [1, 1, 1]} : vector<18x18x8xbf16> to vector<18x16x8xbf16>
    %29 = vector.shape_cast %28 : vector<18x16x8xbf16> to vector<288x8xbf16>
    %30 = vector.extract_strided_slice %25 {offsets = [0, 2, 0], sizes = [18, 16, 8], strides = [1, 1, 1]} : vector<18x18x8xbf16> to vector<18x16x8xbf16>
    %31 = vector.shape_cast %30 : vector<18x16x8xbf16> to vector<288x8xbf16>
    %32 = tpu.concatenate %9, %11, %13, %18, %20, %22, %27, %29, %31 in 1 : vector<288x8xbf16>, vector<288x8xbf16>, vector<288x8xbf16>, vector<288x8xbf16>, vector<288x8xbf16>, vector<288x8xbf16>, vector<288x8xbf16>, vector<288x8xbf16>, vector<288x8xbf16> -> vector<288x72xbf16>
    %c0_7 = arith.constant 0 : index
    %c0_8 = arith.constant 0 : index
    %33 = vector.load %arg8[%c0_7, %c0_8] : memref<72x8xbf16, #tpu.memory_space<vmem>>, vector<72x8xbf16>
    %cst = arith.constant dense<0.000000e+00> : vector<288x8xf32>
    %34 = tpu.matmul %32, %33, %cst {dimension_numbers = #tpu.dot_dimension_numbers<[1], [0], [0], [1], [0, 0, 1, 1], [], []>} : vector<288x72xbf16>, vector<72x8xbf16>, vector<288x8xf32> -> vector<288x8xf32>
    %c0_9 = arith.constant 0 : index
    %c0_10 = arith.constant 0 : index
    %35 = vector.load %arg9[%c0_9, %c0_10] : memref<1x8xf32, #tpu.memory_space<vmem>>, vector<1x8xf32>
    %36 = vector.broadcast %35 : vector<1x8xf32> to vector<288x8xf32>
    %37 = arith.addf %34, %36 : vector<288x8xf32>
    %cst_11 = arith.constant 0.000000e+00 : f32
    %38 = vector.broadcast %cst_11 : f32 to vector<288x8xf32>
    %39 = arith.maximumf %37, %38 : vector<288x8xf32>
    %40 = vector.shape_cast %39 : vector<288x8xf32> to vector<18x16x8xf32>
    %41 = arith.truncf %40 : vector<18x16x8xf32> to vector<18x16x8xbf16>
    %c0_12 = arith.constant 0 : index
    %c1 = arith.constant 1 : index
    %c0_13 = arith.constant 0 : index
    %42 = vector.load %arg14[%c0_12, %c1, %c0_13] : memref<18x18x8xbf16, #tpu.memory_space<vmem>>, vector<18x16x8xbf16>
    tpu.vector_store %arg14[%c0_12, %c1, %c0_13], %41 {strides = array<i32>} : memref<18x18x8xbf16, #tpu.memory_space<vmem>>, vector<18x16x8xbf16>,
    %c0_i32_14 = arith.constant 0 : i32
    %43 = arith.cmpi eq, %arg1, %c0_i32_14 : i32
    %44 = arith.extui %43 : i1 to i32
    %c0_i32_15 = arith.constant 0 : i32
    %45 = arith.cmpi ne, %44, %c0_i32_15 : i32
    scf.if %45 {
      %cst_35 = arith.constant 0.000000e+00 : bf16
      %114 = vector.broadcast %cst_35 : bf16 to vector<18x8xbf16>
      %c0_36 = arith.constant 0 : index
      %c0_37 = arith.constant 0 : index
      %c0_38 = arith.constant 0 : index
      %115 = vector.load %arg14[%c0_36, %c0_37, %c0_38] : memref<18x18x8xbf16, #tpu.memory_space<vmem>>, vector<1x18x8xbf16>
      %116 = vector.shape_cast %115 : vector<1x18x8xbf16> to vector<18x8xbf16>
      %117 = vector.shape_cast %114 : vector<18x8xbf16> to vector<1x18x8xbf16>
      tpu.vector_store %arg14[%c0_36, %c0_37, %c0_38], %117 {strides = array<i32>} : memref<18x18x8xbf16, #tpu.memory_space<vmem>>, vector<1x18x8xbf16>,
    } else {
    }
    %c0_i32_16 = arith.constant 0 : i32
    %46 = arith.cmpi eq, %arg1, %c0_i32_16 : i32
    %47 = arith.extui %46 : i1 to i32
    %c0_i32_17 = arith.constant 0 : i32
    %48 = arith.cmpi ne, %47, %c0_i32_17 : i32
    scf.if %48 {
      %cst_35 = arith.constant 0.000000e+00 : bf16
      %114 = vector.broadcast %cst_35 : bf16 to vector<18x8xbf16>
      %c17 = arith.constant 17 : index
      %c0_36 = arith.constant 0 : index
      %c0_37 = arith.constant 0 : index
      %115 = vector.load %arg14[%c17, %c0_36, %c0_37] : memref<18x18x8xbf16, #tpu.memory_space<vmem>>, vector<1x18x8xbf16>
      %116 = vector.shape_cast %115 : vector<1x18x8xbf16> to vector<18x8xbf16>
      %117 = vector.shape_cast %114 : vector<18x8xbf16> to vector<1x18x8xbf16>
      tpu.vector_store %arg14[%c17, %c0_36, %c0_37], %117 {strides = array<i32>} : memref<18x18x8xbf16, #tpu.memory_space<vmem>>, vector<1x18x8xbf16>,
    } else {
    }
    %c0_18 = arith.constant 0 : index
    %c0_19 = arith.constant 0 : index
    %c0_20 = arith.constant 0 : index
    %49 = vector.load %arg14[%c0_18, %c0_19, %c0_20] : memref<18x18x8xbf16, #tpu.memory_space<vmem>>, vector<16x18x8xbf16>
    %50 = vector.extract_strided_slice %49 {offsets = [0, 0, 0], sizes = [16, 16, 8], strides = [1, 1, 1]} : vector<16x18x8xbf16> to vector<16x16x8xbf16>
    %51 = vector.shape_cast %50 : vector<16x16x8xbf16> to vector<256x8xbf16>
    %52 = vector.extract_strided_slice %49 {offsets = [0, 1, 0], sizes = [16, 16, 8], strides = [1, 1, 1]} : vector<16x18x8xbf16> to vector<16x16x8xbf16>
    %53 = vector.shape_cast %52 : vector<16x16x8xbf16> to vector<256x8xbf16>
    %54 = vector.extract_strided_slice %49 {offsets = [0, 2, 0], sizes = [16, 16, 8], strides = [1, 1, 1]} : vector<16x18x8xbf16> to vector<16x16x8xbf16>
    %55 = vector.shape_cast %54 : vector<16x16x8xbf16> to vector<256x8xbf16>
    %c1_21 = arith.constant 1 : index
    %c0_22 = arith.constant 0 : index
    %c0_23 = arith.constant 0 : index
    %56 = vector.load %arg14[%c1_21, %c0_22, %c0_23] : memref<18x18x8xbf16, #tpu.memory_space<vmem>>, vector<16x18x8xbf16>
    %57 = vector.extract_strided_slice %56 {offsets = [0, 0, 0], sizes = [16, 16, 8], strides = [1, 1, 1]} : vector<16x18x8xbf16> to vector<16x16x8xbf16>
    %58 = vector.shape_cast %57 : vector<16x16x8xbf16> to vector<256x8xbf16>
    %59 = vector.extract_strided_slice %56 {offsets = [0, 1, 0], sizes = [16, 16, 8], strides = [1, 1, 1]} : vector<16x18x8xbf16> to vector<16x16x8xbf16>
    %60 = vector.shape_cast %59 : vector<16x16x8xbf16> to vector<256x8xbf16>
    %61 = vector.extract_strided_slice %56 {offsets = [0, 2, 0], sizes = [16, 16, 8], strides = [1, 1, 1]} : vector<16x18x8xbf16> to vector<16x16x8xbf16>
    %62 = vector.shape_cast %61 : vector<16x16x8xbf16> to vector<256x8xbf16>
    %c2 = arith.constant 2 : index
    %c0_24 = arith.constant 0 : index
    %c0_25 = arith.constant 0 : index
    %63 = vector.load %arg14[%c2, %c0_24, %c0_25] : memref<18x18x8xbf16, #tpu.memory_space<vmem>>, vector<16x18x8xbf16>
    %64 = vector.extract_strided_slice %63 {offsets = [0, 0, 0], sizes = [16, 16, 8], strides = [1, 1, 1]} : vector<16x18x8xbf16> to vector<16x16x8xbf16>
    %65 = vector.shape_cast %64 : vector<16x16x8xbf16> to vector<256x8xbf16>
    %66 = vector.extract_strided_slice %63 {offsets = [0, 1, 0], sizes = [16, 16, 8], strides = [1, 1, 1]} : vector<16x18x8xbf16> to vector<16x16x8xbf16>
    %67 = vector.shape_cast %66 : vector<16x16x8xbf16> to vector<256x8xbf16>
    %68 = vector.extract_strided_slice %63 {offsets = [0, 2, 0], sizes = [16, 16, 8], strides = [1, 1, 1]} : vector<16x18x8xbf16> to vector<16x16x8xbf16>
    %69 = vector.shape_cast %68 : vector<16x16x8xbf16> to vector<256x8xbf16>
    %70 = tpu.concatenate %51, %53, %55, %58, %60, %62, %65, %67, %69 in 1 : vector<256x8xbf16>, vector<256x8xbf16>, vector<256x8xbf16>, vector<256x8xbf16>, vector<256x8xbf16>, vector<256x8xbf16>, vector<256x8xbf16>, vector<256x8xbf16>, vector<256x8xbf16> -> vector<256x72xbf16>
    %c0_26 = arith.constant 0 : index
    %c0_27 = arith.constant 0 : index
    %71 = vector.load %arg10[%c0_26, %c0_27] : memref<72x8xbf16, #tpu.memory_space<vmem>>, vector<72x8xbf16>
    %cst_28 = arith.constant dense<0.000000e+00> : vector<256x8xf32>
    %72 = tpu.matmul %70, %71, %cst_28 {dimension_numbers = #tpu.dot_dimension_numbers<[1], [0], [0], [1], [0, 0, 1, 1], [], []>} : vector<256x72xbf16>, vector<72x8xbf16>, vector<256x8xf32> -> vector<256x8xf32>
    %c0_29 = arith.constant 0 : index
    %c0_30 = arith.constant 0 : index
    %73 = vector.load %arg11[%c0_29, %c0_30] : memref<1x8xf32, #tpu.memory_space<vmem>>, vector<1x8xf32>
    %74 = vector.broadcast %73 : vector<1x8xf32> to vector<256x8xf32>
    %75 = arith.addf %72, %74 : vector<256x8xf32>
    %cst_31 = arith.constant 0.000000e+00 : f32
    %76 = vector.broadcast %cst_31 : f32 to vector<256x8xf32>
    %77 = arith.maximumf %75, %76 : vector<256x8xf32>
    %78 = vector.shape_cast %77 : vector<256x8xf32> to vector<16x16x8xf32>
    %79 = vector.extract_strided_slice %78 {offsets = [0, 0, 0], sizes = [16, 1, 8], strides = [1, 1, 1]} : vector<16x16x8xf32> to vector<16x1x8xf32>
    %80 = vector.shape_cast %79 : vector<16x1x8xf32> to vector<16x8xf32>
    %81 = vector.extract_strided_slice %78 {offsets = [0, 1, 0], sizes = [16, 1, 8], strides = [1, 1, 1]} : vector<16x16x8xf32> to vector<16x1x8xf32>
    %82 = vector.shape_cast %81 : vector<16x1x8xf32> to vector<16x8xf32>
    %83 = vector.extract_strided_slice %78 {offsets = [0, 2, 0], sizes = [16, 1, 8], strides = [1, 1, 1]} : vector<16x16x8xf32> to vector<16x1x8xf32>
    %84 = vector.shape_cast %83 : vector<16x1x8xf32> to vector<16x8xf32>
    %85 = vector.extract_strided_slice %78 {offsets = [0, 3, 0], sizes = [16, 1, 8], strides = [1, 1, 1]} : vector<16x16x8xf32> to vector<16x1x8xf32>
    %86 = vector.shape_cast %85 : vector<16x1x8xf32> to vector<16x8xf32>
    %87 = vector.extract_strided_slice %78 {offsets = [0, 4, 0], sizes = [16, 1, 8], strides = [1, 1, 1]} : vector<16x16x8xf32> to vector<16x1x8xf32>
    %88 = vector.shape_cast %87 : vector<16x1x8xf32> to vector<16x8xf32>
    %89 = vector.extract_strided_slice %78 {offsets = [0, 5, 0], sizes = [16, 1, 8], strides = [1, 1, 1]} : vector<16x16x8xf32> to vector<16x1x8xf32>
    %90 = vector.shape_cast %89 : vector<16x1x8xf32> to vector<16x8xf32>
    %91 = vector.extract_strided_slice %78 {offsets = [0, 6, 0], sizes = [16, 1, 8], strides = [1, 1, 1]} : vector<16x16x8xf32> to vector<16x1x8xf32>
    %92 = vector.shape_cast %91 : vector<16x1x8xf32> to vector<16x8xf32>
    %93 = vector.extract_strided_slice %78 {offsets = [0, 7, 0], sizes = [16, 1, 8], strides = [1, 1, 1]} : vector<16x16x8xf32> to vector<16x1x8xf32>
    %94 = vector.shape_cast %93 : vector<16x1x8xf32> to vector<16x8xf32>
    %95 = vector.extract_strided_slice %78 {offsets = [0, 8, 0], sizes = [16, 1, 8], strides = [1, 1, 1]} : vector<16x16x8xf32> to vector<16x1x8xf32>
    %96 = vector.shape_cast %95 : vector<16x1x8xf32> to vector<16x8xf32>
    %97 = vector.extract_strided_slice %78 {offsets = [0, 9, 0], sizes = [16, 1, 8], strides = [1, 1, 1]} : vector<16x16x8xf32> to vector<16x1x8xf32>
    %98 = vector.shape_cast %97 : vector<16x1x8xf32> to vector<16x8xf32>
    %99 = vector.extract_strided_slice %78 {offsets = [0, 10, 0], sizes = [16, 1, 8], strides = [1, 1, 1]} : vector<16x16x8xf32> to vector<16x1x8xf32>
    %100 = vector.shape_cast %99 : vector<16x1x8xf32> to vector<16x8xf32>
    %101 = vector.extract_strided_slice %78 {offsets = [0, 11, 0], sizes = [16, 1, 8], strides = [1, 1, 1]} : vector<16x16x8xf32> to vector<16x1x8xf32>
    %102 = vector.shape_cast %101 : vector<16x1x8xf32> to vector<16x8xf32>
    %103 = vector.extract_strided_slice %78 {offsets = [0, 12, 0], sizes = [16, 1, 8], strides = [1, 1, 1]} : vector<16x16x8xf32> to vector<16x1x8xf32>
    %104 = vector.shape_cast %103 : vector<16x1x8xf32> to vector<16x8xf32>
    %105 = vector.extract_strided_slice %78 {offsets = [0, 13, 0], sizes = [16, 1, 8], strides = [1, 1, 1]} : vector<16x16x8xf32> to vector<16x1x8xf32>
    %106 = vector.shape_cast %105 : vector<16x1x8xf32> to vector<16x8xf32>
    %107 = vector.extract_strided_slice %78 {offsets = [0, 14, 0], sizes = [16, 1, 8], strides = [1, 1, 1]} : vector<16x16x8xf32> to vector<16x1x8xf32>
    %108 = vector.shape_cast %107 : vector<16x1x8xf32> to vector<16x8xf32>
    %109 = vector.extract_strided_slice %78 {offsets = [0, 15, 0], sizes = [16, 1, 8], strides = [1, 1, 1]} : vector<16x16x8xf32> to vector<16x1x8xf32>
    %110 = vector.shape_cast %109 : vector<16x1x8xf32> to vector<16x8xf32>
    %111 = tpu.concatenate %80, %82, %84, %86, %88, %90, %92, %94, %96, %98, %100, %102, %104, %106, %108, %110 in 1 : vector<16x8xf32>, vector<16x8xf32>, vector<16x8xf32>, vector<16x8xf32>, vector<16x8xf32>, vector<16x8xf32>, vector<16x8xf32>, vector<16x8xf32>, vector<16x8xf32>, vector<16x8xf32>, vector<16x8xf32>, vector<16x8xf32>, vector<16x8xf32>, vector<16x8xf32>, vector<16x8xf32>, vector<16x8xf32> -> vector<16x128xf32>
    %112 = vector.shape_cast %111 : vector<16x128xf32> to vector<1x16x128xf32>
    %c0_32 = arith.constant 0 : index
    %c0_33 = arith.constant 0 : index
    %c0_34 = arith.constant 0 : index
    %113 = vector.load %arg12[%c0_32, %c0_33, %c0_34] : memref<1x16x128xf32, #tpu.memory_space<vmem>>, vector<1x16x128xf32>
    tpu.vector_store %arg12[%c0_32, %c0_33, %c0_34], %112 {strides = array<i32>} : memref<1x16x128xf32, #tpu.memory_space<vmem>>, vector<1x16x128xf32>,
    return
  }
  func.func @transform_0(%arg0: i32, %arg1: i32) -> (i32, i32, i32, i32) {
    %c0_i32 = arith.constant 0 : i32
    %c0_i32_0 = arith.constant 0 : i32
    %c0_i32_1 = arith.constant 0 : i32
    %c0_i32_2 = arith.constant 0 : i32
    return %arg0, %c0_i32, %c0_i32_0, %c0_i32_1 : i32, i32, i32, i32
  }
  func.func @transform_1(%arg0: i32, %arg1: i32) -> (i32, i32, i32, i32) {
    %c0_i32 = arith.constant 0 : i32
    %c0_i32_0 = arith.constant 0 : i32
    %c0_i32_1 = arith.constant 0 : i32
    %c0_i32_2 = arith.constant 0 : i32
    return %arg0, %c0_i32, %c0_i32_0, %c0_i32_1 : i32, i32, i32, i32
  }
  func.func @transform_2(%arg0: i32, %arg1: i32) -> (i32, i32) {
    %c0_i32 = arith.constant 0 : i32
    %c0_i32_0 = arith.constant 0 : i32
    %c0_i32_1 = arith.constant 0 : i32
    return %c0_i32, %c0_i32_0 : i32, i32
  }
  func.func @transform_3(%arg0: i32, %arg1: i32) -> (i32, i32) {
    %c0_i32 = arith.constant 0 : i32
    %c0_i32_0 = arith.constant 0 : i32
    %c0_i32_1 = arith.constant 0 : i32
    return %c0_i32, %c0_i32_0 : i32, i32
  }
  func.func @transform_4(%arg0: i32, %arg1: i32) -> (i32, i32) {
    %c0_i32 = arith.constant 0 : i32
    %c0_i32_0 = arith.constant 0 : i32
    %c0_i32_1 = arith.constant 0 : i32
    return %c0_i32, %c0_i32_0 : i32, i32
  }
  func.func @transform_5(%arg0: i32, %arg1: i32) -> (i32, i32) {
    %c0_i32 = arith.constant 0 : i32
    %c0_i32_0 = arith.constant 0 : i32
    %c0_i32_1 = arith.constant 0 : i32
    return %c0_i32, %c0_i32_0 : i32, i32
  }
  func.func @transform_6(%arg0: i32, %arg1: i32) -> (i32, i32) {
    %c0_i32 = arith.constant 0 : i32
    %c0_i32_0 = arith.constant 0 : i32
    %c0_i32_1 = arith.constant 0 : i32
    return %c0_i32, %c0_i32_0 : i32, i32
  }
  func.func @transform_7(%arg0: i32, %arg1: i32) -> (i32, i32) {
    %c0_i32 = arith.constant 0 : i32
    %c0_i32_0 = arith.constant 0 : i32
    %c0_i32_1 = arith.constant 0 : i32
    return %c0_i32, %c0_i32_0 : i32, i32
  }
  func.func @transform_8(%arg0: i32, %arg1: i32) -> (i32, i32) {
    %c0_i32 = arith.constant 0 : i32
    %c0_i32_0 = arith.constant 0 : i32
    %c0_i32_1 = arith.constant 0 : i32
    return %c0_i32, %c0_i32_0 : i32, i32
  }
  func.func @transform_9(%arg0: i32, %arg1: i32) -> (i32, i32) {
    %c0_i32 = arith.constant 0 : i32
    %c0_i32_0 = arith.constant 0 : i32
    %c0_i32_1 = arith.constant 0 : i32
    return %c0_i32, %c0_i32_0 : i32, i32
  }
  func.func @transform_10(%arg0: i32, %arg1: i32) -> (i32, i32, i32) {
    %c0_i32 = arith.constant 0 : i32
    %c0_i32_0 = arith.constant 0 : i32
    return %arg0, %arg1, %c0_i32 : i32, i32, i32
  }
}

</mosaic_0001>

<bundles_post_ra>
// kernel: tile.8
= control target key start
LH: loop header
LB: loop body
LE: loop exit
PB: predicated region body
PF: predicated region fallthrough
CT: control target
= control target key end

     0   :  { %s22_s0 = inlined_call_operand.vmem [shape: f32[8], index: 0, kind: input, shape index: {}]   ;;  %s23_s1 = inlined_call_operand.vmem [shape: f32[4,8], index: 1, kind: output, shape index: {}]  }
   0x1   :  { %v4_v0 = vld [vmem:[%s22_s0] ss:$0 sm:$0xff] }
   0x2   :  { %5 = vst [vmem:[%s23_s1] sm:$0xf] %v4_v0 }

// kernel: tile.9
= control target key start
LH: loop header
LB: loop body
LE: loop exit
PB: predicated region body
PF: predicated region fallthrough
CT: control target
= control target key end

     0   :  { %s37_s8 = smov 8   ;;  %s38_s9 = smov 16   ;;  %vm7_vm0 = vcmask 64512   ;;  %vm13_vm1 = vcmask 261312   ;;  %vm19_vm2 = vcmask 195712   ;;  %vm25_vm3 = vcmask 130112   ;;  %s55_s0 = inlined_call_operand.vmem [shape: f32[4,8], index: 0, kind: input, shape index: {}]   ;;  %s56_s1 = inlined_call_operand.vmem [shape: f32[1,32], index: 1, kind: output, shape index: {}]  }
   0x1   :  { %v4_v0 = vld [vmem:[%s55_s0] sm:$0xf]  ;;  %s36_s0 = smov 24  }
   0x2   :  { %5 = vst [vmem:[#allocation1] sm:$0xf] %v4_v0 }
   0x9   :  { %v10_v1 = vld [vmem:[#allocation1 + $0x3] sm:$0x1]   ;;  %v22_v2 = vld [vmem:[#allocation1 + $0x1] sm:$0x1]   ;;  %v16_v3 = vld [vmem:[#allocation1 + $0x2] sm:$0x1]  }
   0xa   :  { %11 = vrot.lane.b32.xlu0 %v10_v1, %s36_s0  ;;  %23 = vrot.lane.b32.xlu1 %v22_v2, %s37_s8  ;;  %v6_v4 = vld [vmem:[#allocation1] sm:$0x1]  }
   0xb   :  { %8 = vst.msk [vmem:[#allocation0] sm:$0x1] %vm7_vm0, %v6_v4  }
  0x12   :  { %17 = vrot.lane.b32.xlu0 %v16_v3, %s38_s9 }
  0x7c   :  { %v12_v5 = vpop.permute.xlu0 %11   ;;  %v24_v6 = vpop.permute.xlu1 %23  }
  0x7d   :  { %14 = vst.msk [vmem:[#allocation0] sm:$0x1] %vm13_vm1, %v12_v5  }
  0x84   :  { %v18_v7 = vpop.permute.xlu0 %17  }
  0x85   :  { %20 = vst.msk [vmem:[#allocation0] sm:$0x1] %vm19_vm2, %v18_v7  }
  0x86   :  { %26 = vst.msk [vmem:[#allocation0] sm:$0x1] %vm25_vm3, %v24_v6  }
  0x8d   :  { %v29_v8 = vld [vmem:[#allocation0] sm:$0x1] }
  0x8e   :  { %32 = vst [vmem:[%s56_s1] sm:$0x1] %v29_v8 }

// kernel: sim_forward.2
= control target key start
LH: loop header
LB: loop body
LE: loop exit
PB: predicated region body
PF: predicated region fallthrough
CT: control target
= control target key end

     0   :  { %vm83_vm0 = vcmask 130048   ;;  %vm174_vm1 = vcmask 1041409   ;;  %vm177_vm2 = vcmask 1042434   ;;  %vm180_vm3 = vcmask 1043459   ;;  %s559_s4 = smov 32   ;;  %s994_s1 = inlined_call_operand.vmem [shape: bf16[16,32], index: 1, kind: input, shape index: {}]   ;;  %s995_s0 = inlined_call_operand.vmem [shape: bf16[128,16], index: 0, kind: input, shape index: {}]   ;;  %s996_s2 = inlined_call_operand.vmem [shape: f32[1,32], index: 2, kind: input, shape index: {}]   ;;  %s997_s3 = inlined_call_operand.vmem [shape: bf16[16,256], index: 3, kind: output, shape index: {}]  }
   0x1   :  { %v519_v0 = vld [vmem:[%s994_s1] sm:$0xff]  ;;  %v517_v3 = vld [vmem:[%s995_s0 + $0x30] sm:$0xff]  ;;  %v512_v5 = vld [vmem:[%s995_s0 + $0x8] sm:$0xff]  ;;  %vm183_vm4 = vcmask 1044484   ;;  %vm186_vm5 = vcmask 1045509   ;;  %vm189_vm6 = vcmask 1046534  }
   0x2   :  { %v511_v1 = vld [vmem:[%s995_s0] sm:$0xff]  ;;  %115 = vmatpush.bf16.msra.mxu0 %v519_v0  ;;  %521 = vmatpush.bf16.msra.mxu2 %v519_v0  ;;  %v513_v4 = vld [vmem:[%s995_s0 + $0x10] sm:$0xff]  ;;  %v516_v6 = vld [vmem:[%s995_s0 + $0x28] sm:$0xff]  ;;  %vm192_vm7 = vcmask 1047559   ;;  %vm444_vm8 = vcmask 261120   ;;  %vm447_vm9 = vcmask 523264  }
   0x3   :  { %v515_v2 = vld [vmem:[%s995_s0 + $0x20] sm:$0xff]  ;;  %522 = vmatpush.bf16.msra.mxu3 %v519_v0  ;;  %520 = vmatpush.bf16.msra.mxu1 %v519_v0  ;;  %v518_v7 = vld [vmem:[%s995_s0 + $0x38] sm:$0xff]  ;;  %vm450_vm10 = vcmask 785408  }
   0x4   :  { %v514_v8 = vld [vmem:[%s995_s0 + $0x18] sm:$0xff]  ;;  %v618_v9 = vld [vmem:[%s996_s2] ss:$0 sm:$0xff]  ;;  %s557_s0 = smov 96   ;;  %s558_s2 = smov 64  }
   0x5   :  { %503 = vmatmul.msk.bf16.vlgmr.msra.gmra.mxu0 %vm83_vm0, %v511_v1  ;;  %507 = vmatmul.msk.bf16.vlgmr.msra.gmra.mxu2 %vm83_vm0, %v515_v2 }
   0x6   :  { %509 = vmatmul.msk.bf16.vlgmr.msra.gmra.mxu3 %vm83_vm0, %v517_v3  ;;  %505 = vmatmul.msk.bf16.vlgmr.msra.gmra.mxu1 %vm83_vm0, %v513_v4 }
  0x15   :  { %504 = vmatmul.msk.bf16.gmra.mxu0 %vm83_vm0, %v512_v5  ;;  %508 = vmatmul.msk.bf16.gmra.mxu2 %vm83_vm0, %v516_v6 }
  0x16   :  { %510 = vmatmul.msk.bf16.gmra.mxu3 %vm83_vm0, %v518_v7  ;;  %506 = vmatmul.msk.bf16.gmra.mxu1 %vm83_vm0, %v514_v8 }
  0x82   :  { %v117_v10 = vpop.f32.mrf.mxu0 }
  0x83   :  { %v621_v11 = vadd.f32 %v618_v9, %v117_v10  ;;  %v127_v12 = vpop.f32.mrf.mxu1 }
  0x84   :  { %v624_v13 = vadd.f32 %v618_v9, %v127_v12 }
  0x85   :  { %v278_v14 = vrot.slane %v621_v11, 3  ;;  %v244_v17 = vrot.slane %v621_v11, 2  ;;  %v210_v18 = vrot.slane %v621_v11, 1  ;;  %v410_v19 = vrot.slane %v621_v11, 7 }
  0x86   :  { %v284_v16 = vrot.slane %v624_v13, 7  ;;  %v250_v22 = vrot.slane %v624_v13, 6  ;;  %v216_v23 = vrot.slane %v624_v13, 5  ;;  %v417_v24 = vrot.slane %v624_v13, 3 }
  0x87   :  { %v376_v27 = vrot.slane %v621_v11, 6  ;;  %v383_v28 = vrot.slane %v624_v13, 2  ;;  %v342_v29 = vrot.slane %v621_v11, 5 }
  0x88   :  { %v137_v15 = vpop.f32.mrf.mxu2 }
  0x89   :  { %v632_v20 = vadd.f32 %v618_v9, %v137_v15  ;;  %v147_v21 = vpop.f32.mrf.mxu3 }
  0x8a   :  { %v638_v25 = vadd.f32 %v618_v9, %v147_v21  ;;  %v119_v26 = vpop.f32.mrf.mxu0 }
  0x8b   :  { %v644_v30 = vadd.f32 %v618_v9, %v119_v26  ;;  %v129_v31 = vpop.f32.mrf.mxu1  ;;  %v292_v32 = vrot.slane %v632_v20, 3  ;;  %v258_v33 = vrot.slane %v632_v20, 2  ;;  %v224_v38 = vrot.slane %v632_v20, 1 }
  0x8c   :  { %v650_v35 = vadd.f32 %v618_v9, %v129_v31  ;;  %v298_v36 = vrot.slane %v638_v25, 7  ;;  %v264_v37 = vrot.slane %v638_v25, 6  ;;  %v230_v41 = vrot.slane %v638_v25, 5 }
  0x8d   :  { %v279_v39 = vrot.slane %v644_v30, 2  ;;  %v245_v40 = vrot.slane %v644_v30, 1  ;;  %v411_v42 = vrot.slane %v644_v30, 6  ;;  %v211_v45 = vsel %vm174_vm1, %v644_v30, %v210_v18 }
  0x8e   :  { %v286_v43 = vrot.slane %v650_v35, 6  ;;  %v252_v44 = vrot.slane %v650_v35, 5  ;;  %v218_v46 = vrot.slane %v650_v35, 4  ;;  %v419_v50 = vrot.slane %v650_v35, 2 }
  0x8f   :  { %v280_v47 = vsel %vm174_vm1, %v279_v39, %v278_v14  ;;  %v246_v48 = vsel %vm174_vm1, %v245_v40, %v244_v17  ;;  %v412_v49 = vsel %vm174_vm1, %v411_v42, %v410_v19  ;;  %v424_v52 = vrot.slane %v632_v20, 7 }
  0x90   :  { %v139_v51 = vpop.f32.mrf.mxu2  ;;  %v431_v53 = vrot.slane %v638_v25, 3  ;;  %v377_v54 = vrot.slane %v644_v30, 5  ;;  %v390_v58 = vrot.slane %v632_v20, 6  ;;  %v343_v60 = vrot.slane %v644_v30, 4 }
  0x91   :  { %v673_v56 = vadd.f32 %v618_v9, %v139_v51  ;;  %v149_v57 = vpop.f32.mrf.mxu3 }
  0x92   :  { %v679_v61 = vadd.f32 %v618_v9, %v149_v57  ;;  %v122_v62 = vpop.f32.mrf.mxu0  ;;  %v378_v63 = vsel %vm174_vm1, %v377_v54, %v376_v27 }
  0x93   :  { %v685_v2 = vadd.f32 %v618_v9, %v122_v62  ;;  %v132_v3 = vpop.f32.mrf.mxu1  ;;  %v293_v4 = vrot.slane %v673_v56, 2  ;;  %v259_v5 = vrot.slane %v673_v56, 1  ;;  %v225_v6 = vsel %vm174_vm1, %v673_v56, %v224_v38 }
  0x94   :  { %v692_v7 = vadd.f32 %v618_v9, %v132_v3  ;;  %v300_v8 = vrot.slane %v679_v61, 6  ;;  %v266_v10 = vrot.slane %v679_v61, 5  ;;  %v232_v12 = vrot.slane %v679_v61, 4 }
  0x95   :  { %v281_v14 = vrot.slane %v685_v2, 1  ;;  %v294_v15 = vsel %vm174_vm1, %v293_v4, %v292_v32  ;;  %v247_v17 = vsel %vm177_vm2, %v685_v2, %v246_v48  ;;  %v260_v18 = vsel %vm174_vm1, %v259_v5, %v258_v33 }
  0x96   :  { %v288_v19 = vrot.slane %v692_v7, 5  ;;  %v254_v21 = vrot.slane %v692_v7, 4  ;;  %v212_v26 = vrot.slane %v685_v2, 7  ;;  %v220_v27 = vrot.slane %v692_v7, 3 }
  0x97   :  { %v282_v31 = vsel %vm177_vm2, %v281_v14, %v280_v47  ;;  %v413_v38 = vrot.slane %v685_v2, 5  ;;  %v421_v32 = vrot.slane %v692_v7, 1  ;;  %v425_v39 = vrot.slane %v673_v56, 6 }
  0x98   :  { %v142_v40 = vpop.f32.mrf.mxu2  ;;  %v213_v33 = vsel %vm177_vm2, %v212_v26, %v211_v45  ;;  %v433_v42 = vrot.slane %v679_v61, 2  ;;  %v379_v48 = vrot.slane %v685_v2, 4  ;;  %v391_v51 = vrot.slane %v673_v56, 5 }
  0x99   :  { %v715_v54 = vadd.f32 %v618_v9, %v142_v40  ;;  %v152_v57 = vpop.f32.mrf.mxu3  ;;  %v414_v47 = vsel %vm177_vm2, %v413_v38, %v412_v49  ;;  %v719_v62 = vsel %vm174_vm1, %v425_v39, %v424_v52  ;;  %v734_v26 = vsel %vm174_vm1, %v343_v60, %v342_v29 }
  0x9a   :  { %v723_v4 = vadd.f32 %v618_v9, %v152_v57  ;;  %v124_v45 = vpop.f32.mrf.mxu0  ;;  %v726_v5 = vsel %vm177_vm2, %v379_v48, %v378_v63  ;;  %v729_v14 = vsel %vm174_vm1, %v391_v51, %v390_v58 }
  0x9b   :  { %v737_v49 = vadd.f32 %v618_v9, %v124_v45  ;;  %v134_v52 = vpop.f32.mrf.mxu1  ;;  %v295_v38 = vrot.slane %v715_v54, 1  ;;  %v261_v39 = vsel %vm177_vm2, %v715_v54, %v260_v18  ;;  %v226_v63 = vrot.slane %v715_v54, 7 }
  0x9c   :  { %v744_v40 = vadd.f32 %v618_v9, %v134_v52  ;;  %v302_v58 = vrot.slane %v723_v4, 5  ;;  %v268_v48 = vrot.slane %v723_v4, 4  ;;  %v234_v29 = vrot.slane %v723_v4, 3 }
  0x9d   :  { %v283_v60 = vsel %vm180_vm3, %v737_v49, %v282_v31  ;;  %v296_v51 = vsel %vm177_vm2, %v295_v38, %v294_v15  ;;  %v248_v57 = vrot.slane %v737_v49, 7  ;;  %v214_v18 = vrot.slane %v737_v49, 6 }
  0x9e   :  { %v285_v45 = vsel %vm183_vm4, %v284_v16, %v283_v60  ;;  %v290_v52 = vrot.slane %v744_v40, 4  ;;  %v256_v1 = vrot.slane %v744_v40, 3  ;;  %v222_v0 = vrot.slane %v744_v40, 2 }
  0x9f   :  { %v287_v31 = vsel %vm186_vm5, %v286_v43, %v285_v45  ;;  %v249_v15 = vsel %vm180_vm3, %v248_v57, %v247_v17  ;;  %v215_v38 = vsel %vm180_vm3, %v214_v18, %v213_v33  ;;  %v227_v34 = vsel %vm177_vm2, %v226_v63, %v225_v6 }
  0xa0   :  { %v144_v3 = vpop.f32.mrf.mxu2  ;;  %v289_v59 = vsel %vm189_vm6, %v288_v19, %v287_v31  ;;  %v251_v16 = vsel %vm183_vm4, %v250_v22, %v249_v15  ;;  %v217_v60 = vsel %vm183_vm4, %v216_v23, %v215_v38  ;;  %v415_v55 = vrot.slane %v737_v49, 4 }
  0xa1   :  { %v775_v43 = vadd.f32 %v618_v9, %v144_v3  ;;  %v154_v17 = vpop.f32.mrf.mxu3  ;;  %v291_v33 = vsel %vm192_vm7, %v290_v52, %v289_v59  ;;  %v253_v6 = vsel %vm186_vm5, %v252_v44, %v251_v16  ;;  %v219_v22 = vsel %vm186_vm5, %v218_v46, %v217_v60 }
  0xa2   :  { %v785_v19 = vadd.f32 %v618_v9, %v154_v17  ;;  %v255_v23 = vsel %vm189_vm6, %v254_v21, %v253_v6  ;;  %v221_v63 = vsel %vm189_vm6, %v220_v27, %v219_v22  ;;  %v416_v3 = vsel %vm180_vm3, %v415_v55, %v414_v47 }
  0xa3   :  { %v297_v59 = vsel %vm180_vm3, %v775_v43, %v296_v51  ;;  %v257_v57 = vsel %vm192_vm7, %v256_v1, %v255_v23  ;;  %v262_v44 = vrot.slane %v775_v43, 7  ;;  %v223_v18 = vsel %vm192_vm7, %v222_v0, %v221_v63 }
  0xa4   :  { %v299_v9 = vsel %vm183_vm4, %v298_v36, %v297_v59  ;;  %v304_v46 = vrot.slane %v785_v19, 4  ;;  %v270_v21 = vrot.slane %v785_v19, 3  ;;  %v228_v27 = vrot.slane %v775_v43, 6 }
  0xa5   :  { %v301_v55 = vsel %vm186_vm5, %v300_v8, %v299_v9  ;;  %v263_v1 = vsel %vm180_vm3, %v262_v44, %v261_v39  ;;  %v236_v47 = vrot.slane %v785_v19, 2  ;;  %v418_v0 = vsel %vm183_vm4, %v417_v24, %v416_v3 }
  0xa6   :  { %v303_v36 = vsel %vm189_vm6, %v302_v58, %v301_v55  ;;  %v265_v51 = vsel %vm183_vm4, %v264_v37, %v263_v1  ;;  %v229_v45 = vsel %vm180_vm3, %v228_v27, %v227_v34  ;;  %v420_v8 = vsel %vm186_vm5, %v419_v50, %v418_v0 }
  0xa7   :  { %v305_v39 = vsel %vm192_vm7, %v304_v46, %v303_v36  ;;  %v267_v52 = vsel %vm186_vm5, %v266_v10, %v265_v51  ;;  %v231_v24 = vsel %vm183_vm4, %v230_v41, %v229_v45  ;;  %v422_v37 = vsel %vm189_vm6, %v421_v32, %v420_v8 }
  0xa8   :  { %v546_v58 = vpack.i.bf16 %v305_v39, %v291_v33  ;;  %v269_v34 = vsel %vm189_vm6, %v268_v48, %v267_v52  ;;  %v233_v50 = vsel %vm186_vm5, %v232_v12, %v231_v24  ;;  %v423_v31 = vsel %vm192_vm7, %v744_v40, %v422_v37 }
  0xa9   :  { %v271_v10 = vsel %vm192_vm7, %v270_v21, %v269_v34  ;;  %v235_v15 = vsel %vm189_vm6, %v234_v29, %v233_v50  ;;  %v427_v41 = vrot.slane %v715_v54, 5  ;;  %v429_v38 = vrot.slane %v775_v43, 4 }
  0xaa   :  { %547 = vrot.lane.b32.xlu2 %v546_v58, %s557_s0  ;;  %v536_v32 = vpack.i.bf16 %v271_v10, %v257_v57  ;;  %v237_v48 = vsel %vm192_vm7, %v236_v47, %v235_v15  ;;  %v435_v16 = vrot.slane %v723_v4, 1  ;;  %v381_v12 = vrot.slane %v737_v49, 3 }
  0xab   :  { %v526_v60 = vpack.i.bf16 %v237_v48, %v223_v18  ;;  %v428_v17 = vsel %vm177_vm2, %v427_v41, %v719_v62  ;;  %v388_v29 = vrot.slane %v744_v40, 7  ;;  %v393_v33 = vrot.slane %v715_v54, 4 }
  0xac   :  { %537 = vrot.lane.b32.xlu1 %v536_v32, %s558_s2  ;;  %v430_v6 = vsel %vm180_vm3, %v429_v38, %v428_v17  ;;  %v382_v22 = vsel %vm180_vm3, %v381_v12, %v726_v5  ;;  %v395_v23 = vrot.slane %v775_v43, 3  ;;  %v402_v63 = vrot.slane %v785_v19, 7 }
  0xad   :  { %527 = vrot.lane.b32.xlu0 %v526_v60, %s559_s4  ;;  %v432_v62 = vsel %vm183_vm4, %v431_v53, %v430_v6  ;;  %v384_v3 = vsel %vm183_vm4, %v383_v28, %v382_v22  ;;  %v394_v59 = vsel %vm177_vm2, %v393_v33, %v729_v14  ;;  %v345_v5 = vrot.slane %v685_v2, 3 }
  0xae   :  { %v434_v57 = vsel %vm186_vm5, %v433_v42, %v432_v62  ;;  %v998_v44 = vrot.slane %v650_v35, 1  ;;  %v396_v9 = vsel %vm180_vm3, %v395_v23, %v394_v59  ;;  %v347_v53 = vrot.slane %v737_v49, 2 }
  0xaf   :  { %v436_v46 = vsel %vm189_vm6, %v435_v16, %v434_v57  ;;  %v999_v14 = vrot.slane %v638_v25, 2  ;;  %v346_v42 = vsel %vm177_vm2, %v345_v5, %v734_v26  ;;  %v1000_v1 = vrot.slane %v679_v61, 1 }
  0xb0   :  { %v386_v18 = vsel %vm186_vm5, %v998_v44, %v384_v3  ;;  %v437_v27 = vsel %vm192_vm7, %v785_v19, %v436_v46  ;;  %v348_v0 = vsel %vm180_vm3, %v347_v53, %v346_v42  ;;  %v1001_v45 = vrot.slane %v624_v13, 1 }
  0xb1   :  { %v387_v28 = vsel %vm189_vm6, %v692_v7, %v386_v18  ;;  %v398_v21 = vsel %vm183_vm4, %v999_v14, %v396_v9  ;;  %v551_v36 = vpack.i.bf16 %v437_v27, %v423_v31  ;;  %v352_v26 = vrot.slane %v692_v7, 7 }
  0xb2   :  { %v389_v55 = vsel %vm192_vm7, %v388_v29, %v387_v28  ;;  %v400_v47 = vsel %vm186_vm5, %v1000_v1, %v398_v21  ;;  %v350_v8 = vsel %vm183_vm4, %v1001_v45, %v348_v0  ;;  %v354_v24 = vrot.slane %v744_v40, 6 }
  0xb3   :  { %v401_v51 = vsel %vm189_vm6, %v723_v4, %v400_v47  ;;  %v351_v52 = vsel %vm186_vm5, %v650_v35, %v350_v8  ;;  %v357_v37 = vrot.slane %v673_v56, 4  ;;  %552 = vrot.lane.b32.xlu2 %v551_v36, %s557_s0  ;;  %v359_v50 = vrot.slane %v715_v54, 3 }
  0xb4   :  { %v403_v39 = vsel %vm192_vm7, %v402_v63, %v401_v51  ;;  %v353_v34 = vsel %vm189_vm6, %v352_v26, %v351_v52  ;;  %v361_v31 = vrot.slane %v775_v43, 2  ;;  %v1002_v15 = vrot.slane %v632_v20, 5 }
  0xb5   :  { %v541_v58 = vpack.i.bf16 %v403_v39, %v389_v55  ;;  %v355_v10 = vsel %vm192_vm7, %v354_v24, %v353_v34  ;;  %v366_v38 = vrot.slane %v723_v4, 7  ;;  %v173_v32 = vrot.slane %v644_v30, 7 }
  0xb6   :  { %v358_v41 = vsel %vm174_vm1, %v357_v37, %v1002_v15  ;;  %v368_v16 = vrot.slane %v785_v19, 6  ;;  %v176_v12 = vrot.slane %v685_v2, 6  ;;  %v179_v60 = vrot.slane %v737_v49, 5 }
  0xb7   :  { %542 = vrot.lane.b32.xlu1 %v541_v58, %s558_s2  ;;  %v360_v48 = vsel %vm177_vm2, %v359_v50, %v358_v41  ;;  %v182_v29 = vrot.slane %v624_v13, 4  ;;  %v185_v33 = vrot.slane %v650_v35, 3  ;;  %v188_v6 = vrot.slane %v692_v7, 2 }
  0xb8   :  { %v362_v17 = vsel %vm180_vm3, %v361_v31, %v360_v48  ;;  %v1003_v22 = vrot.slane %v638_v25, 1  ;;  %v194_v63 = vrot.slane %v673_v56, 7  ;;  %v196_v62 = vrot.slane %v715_v54, 6 }
  0xb9   :  { %v198_v3 = vrot.slane %v775_v43, 5  ;;  %v191_v5 = vrot.slane %v744_v40, 1  ;;  %v200_v57 = vrot.slane %v638_v25, 4  ;;  %v202_v44 = vrot.slane %v679_v61, 3 }
  0xba   :  { %v364_v23 = vsel %vm183_vm4, %v1003_v22, %v362_v17  ;;  %v195_v9 = vsel %vm174_vm1, %v194_v63, %v632_v20  ;;  %v204_v53 = vrot.slane %v723_v4, 2  ;;  %v175_v46 = vsel %vm174_vm1, %v173_v32, %v621_v11 }
  0xbb   :  { %v365_v59 = vsel %vm186_vm5, %v679_v61, %v364_v23  ;;  %v197_v14 = vsel %vm177_vm2, %v196_v62, %v195_v9  ;;  %v178_v21 = vsel %vm177_vm2, %v176_v12, %v175_v46  ;;  %v312_v42 = vrot.slane %v621_v11, 4 }
  0xbc   :  { %v367_v18 = vsel %vm189_vm6, %v366_v38, %v365_v59  ;;  %v199_v55 = vsel %vm180_vm3, %v198_v3, %v197_v14  ;;  %v181_v1 = vsel %vm180_vm3, %v179_v60, %v178_v21  ;;  %v313_v47 = vrot.slane %v644_v30, 3 }
  0xbd   :  { %v369_v28 = vsel %vm192_vm7, %v368_v16, %v367_v18  ;;  %v201_v0 = vsel %vm183_vm4, %v200_v57, %v199_v55  ;;  %v184_v36 = vsel %vm183_vm4, %v182_v29, %v181_v1  ;;  %v315_v51 = vrot.slane %v685_v2, 2 }
  0xbe   :  { %v531_v27 = vpack.i.bf16 %v369_v28, %v355_v10  ;;  %v317_v45 = vrot.slane %v737_v49, 1  ;;  %v203_v8 = vsel %vm186_vm5, %v202_v44, %v201_v0  ;;  %v206_v11 = vrot.slane %v785_v19, 1 }
  0xbf   :  { %v187_v26 = vsel %vm186_vm5, %v185_v33, %v184_v36  ;;  %v314_v39 = vsel %vm174_vm1, %v313_v47, %v312_v42  ;;  %v205_v30 = vsel %vm189_vm6, %v204_v53, %v203_v8  ;;  %v322_v2 = vrot.slane %v692_v7, 6 }
  0xc0   :  { %532 = vrot.lane.b32.xlu0 %v531_v27, %s559_s4  ;;  %v190_v52 = vsel %vm189_vm6, %v188_v6, %v187_v26  ;;  %v316_v24 = vsel %vm177_vm2, %v315_v51, %v314_v39  ;;  %v207_v49 = vsel %vm192_vm7, %v206_v11, %v205_v30  ;;  %v320_v34 = vrot.slane %v650_v35, 7 }
  0xc1   :  { %v193_v37 = vsel %vm192_vm7, %v191_v5, %v190_v52  ;;  %v318_v58 = vsel %vm180_vm3, %v317_v45, %v316_v24  ;;  %v326_v31 = vrot.slane %v632_v20, 4  ;;  %v327_v10 = vrot.slane %v673_v56, 3 }
  0xc2   :  { %v319_v50 = vsel %vm183_vm4, %v624_v13, %v318_v58  ;;  %v329_v15 = vrot.slane %v715_v54, 2  ;;  %v324_v7 = vrot.slane %v744_v40, 5  ;;  %v331_v38 = vrot.slane %v775_v43, 1 }
  0xc3   :  { %v321_v41 = vsel %vm186_vm5, %v320_v34, %v319_v50  ;;  %v328_v48 = vsel %vm174_vm1, %v327_v10, %v326_v31  ;;  %v334_v56 = vrot.slane %v679_v61, 7  ;;  %v336_v16 = vrot.slane %v723_v4, 6 }
  0xc4   :  { %v323_v32 = vsel %vm189_vm6, %v322_v2, %v321_v41  ;;  %v330_v13 = vsel %vm177_vm2, %v329_v15, %v328_v48  ;;  %v338_v43 = vrot.slane %v785_v19, 5 }
  0xc5   :  { %v325_v35 = vsel %vm192_vm7, %v324_v7, %v323_v32  ;;  %v332_v20 = vsel %vm180_vm3, %v331_v38, %v330_v13 }
  0xc6   :  { %v333_v54 = vsel %vm183_vm4, %v638_v25, %v332_v20 }
  0xc7   :  { %v335_v40 = vsel %vm186_vm5, %v334_v56, %v333_v54 }
  0xc8   :  { %v337_v12 = vsel %vm189_vm6, %v336_v16, %v335_v40 }
  0xc9   :  { %v339_v60 = vsel %vm192_vm7, %v338_v43, %v337_v12 }
 0x104   :  { %v548_v29 = vpop.permute.xlu2 %547 }
 0x105   :  { %v550_v44 = vunpack.i.h.bf16 %v548_v29  ;;  %v549_v18 = vunpack.i.l.bf16 %v548_v29 }
 0x10d   :  { %v553_v62 = vpop.permute.xlu2 %552 }
 0x10e   :  { %v555_v46 = vunpack.i.h.bf16 %v553_v62  ;;  %v554_v28 = vunpack.i.l.bf16 %v553_v62 }
 0x11e   :  { %v538_v17 = vpop.permute.xlu1 %537 }
 0x11f   :  { %v528_v33 = vpop.permute.xlu0 %527  ;;  %v540_v23 = vunpack.i.h.bf16 %v538_v17  ;;  %v539_v63 = vunpack.i.l.bf16 %v538_v17 }
 0x120   :  { %v530_v6 = vunpack.i.h.bf16 %v528_v33  ;;  %v529_v22 = vunpack.i.l.bf16 %v528_v33 }
 0x122   :  { %v446_v25 = vsel %vm444_vm8, %v207_v49, %v530_v6  ;;  %v445_v4 = vsel %vm444_vm8, %v193_v37, %v529_v22 }
 0x123   :  { %v449_v9 = vsel %vm447_vm9, %v446_v25, %v540_v23  ;;  %v448_v53 = vsel %vm447_vm9, %v445_v4, %v539_v63 }
 0x124   :  { %v452_v55 = vsel %vm450_vm10, %v449_v9, %v550_v44  ;;  %v451_v1 = vsel %vm450_vm10, %v448_v53, %v549_v18 }
 0x129   :  { %v543_v61 = vpop.permute.xlu1 %542 }
 0x12a   :  { %v545_v19 = vunpack.i.h.bf16 %v543_v61  ;;  %v544_v3 = vunpack.i.l.bf16 %v543_v61 }
 0x132   :  { %v533_v59 = vpop.permute.xlu0 %532 }
 0x133   :  { %v535_v5 = vunpack.i.h.bf16 %v533_v59  ;;  %v534_v57 = vunpack.i.l.bf16 %v533_v59 }
 0x135   :  { %v454_v14 = vsel %vm444_vm8, %v339_v60, %v535_v5  ;;  %v453_v21 = vsel %vm444_vm8, %v325_v35, %v534_v57 }
 0x136   :  { %v456_v42 = vsel %vm447_vm9, %v454_v14, %v545_v19  ;;  %v455_v27 = vsel %vm447_vm9, %v453_v21, %v544_v3 }
 0x137   :  { %v458_v47 = vsel %vm450_vm10, %v456_v42, %v555_v46  ;;  %v457_v0 = vsel %vm450_vm10, %v455_v27, %v554_v28 }
 0x138   :  { %v459_v36 = vpack.c.bf16 %v457_v0, %v451_v1  ;;  %v460_v51 = vpack.c.bf16 %v458_v47, %v452_v55 }
 0x13a   :  { %461 = vst [vmem:[%s997_s3] sm:$0xff] %v459_v36 }
 0x13b   :  { %462 = vst [vmem:[%s997_s3 + $0x8] sm:$0xff] %v460_v51 }

// kernel: sim_forward.3
= control target key start
LH: loop header
LB: loop body
LE: loop exit
PB: predicated region body
PF: predicated region fallthrough
CT: control target
= control target key end

     0   :  { %s11274_s13 = smov 0   ;;  %s11276_s14 = smov 0   ;;  %s17395_s0 = inlined_call_operand.vmem [shape: bf16[2,16,16,8], index: 0, kind: input, shape index: {}]   ;;  %s17396_s1 = inlined_call_operand.vmem [shape: bf16[2,16,16,8], index: 1, kind: input, shape index: {}]   ;;  %s17397_s2 = inlined_call_operand.vmem [shape: bf16[8,8], index: 2, kind: input, shape index: {}]   ;;  %s17398_s3 = inlined_call_operand.vmem [shape: f32[1,8], index: 3, kind: input, shape index: {}]   ;;  %s17399_s4 = inlined_call_operand.vmem [shape: bf16[8,16], index: 4, kind: input, shape index: {}]   ;;  %s17400_s5 = inlined_call_operand.vmem [shape: f32[1,16], index: 5, kind: input, shape index: {}]   ;;  %s17401_s6 = inlined_call_operand.vmem [shape: bf16[72,8], index: 6, kind: input, shape index: {}]   ;;  %s17402_s7 = inlined_call_operand.vmem [shape: f32[1,8], index: 7, kind: input, shape index: {}]   ;;  %s17403_s8 = inlined_call_operand.vmem [shape: bf16[72,8], index: 8, kind: input, shape index: {}]   ;;  %s17404_s9 = inlined_call_operand.vmem [shape: f32[1,8], index: 9, kind: input, shape index: {}]   ;;  %s17405_s10 = inlined_call_operand.vmem [shape: f32[2,16,128], index: 10, kind: output, shape index: {}]  }
   0x1   :  { %s11278_s15 = smov 0  }
   0x2 LB: > { %s32_s16 = sadd.s32 1, %s11197_s14  ;;  %p9961_p0 = scmp.ge.s32.totalorder %s11201_s15, 1  ;;  %s11201_s15 = sphi %s11278_s15, %s20_s15   ;;  %s11197_s14 = sphi %s11276_s14, %s17732_s14   ;;  %s11193_s13 = sphi %s11274_s13, %s17731_s13  }
   0x3   : > { %p34_p1 = scmp.ge.s32.totalorder %s32_s16, 2  ;;  %p336_p2 = scmp.lt.s32.totalorder %s11201_s15, 3 }
   0x5   : > { %s17734_s16 = smov (%p34_p1, %s32_s16), 0  ;;  %p337_p3 = pnand %p9961_p0, %p336_p2 }
   0x7   : > { %340 = sbr.rel (%p337_p3) target bundleno = 1709 (0x6ad), region = 60 }
   0xc   : > { %v720_v0 = vld [vmem:[%s17397_s2] sm:$0xf]  ;;  %vm17411_vm0 = vcmask 1043456   ;;  %p383_p4 = scmp.lt.s32.totalorder %s11193_s13, 1  ;;  %vm805_vm1 = vcmask 64512   ;;  %vm17409_vm2 = vcmask 60416  }
   0xd   : > { %v856_v1 = vsel %vm17411_vm0, %v720_v0, 0  ;;  %v947_v2 = vld [vmem:[%s17399_s4] sm:$0xf]  ;;  %vm17406_vm3 = vcmask 57344   ;;  %v17414_v12 = vmov 0   ;;  %vm2988_vm8 = vcmask 1042432  }
   0xe   : > { %10991 = vmatpush.bf16.msra.mxu1 %v856_v1  ;;  %s17736_s13 = smov (!%p383_p4, %s11193_s13), 1  ;;  %v1081_v3 = vsel %vm17411_vm0, %v947_v2, 0  ;;  %865 = vmatpush.bf16.msra.mxu0 %v856_v1  ;;  %413 = vst.msk [vmem:[#allocation2 + $0xc] sm:$0xf] %vm17409_vm2, %v17414_v12  ;;  %vm17408_vm4 = vsmask.f32 256 }
   0xf   : > { %s10846_s21 = sshll.u32 %s17736_s13, 7  ;;  %414 = vst.msk [vmem:[#allocation2 + $0x10] sm:$0xf] %vm17409_vm2, %v17414_v12  ;;  %vm17410_vm5 = vsmask.f32 7938  ;;  %vm11346_vm6 = vmand %vm17406_vm3, %vm17408_vm4  ;;  %vm2989_vm9 = vcmask 1046532  }
  0x10   : > { %s11306_s24 = scalar_lea.vmem %s17395_s0, %s10846_s21  ;;  %s11315_s27 = scalar_lea.vmem %s17396_s1, %s10846_s21  ;;  %415 = vst.msk [vmem:[#allocation2 + $0x14] sm:$0x1] %vm17406_vm3, %v17414_v12  ;;  %vm11358_vm7 = vmand %vm17406_vm3, %vm17410_vm5  ;;  %vm2499_vm11 = vsmask.f32 3328  ;;  %vm2500_vm12 = vsmask.f32 7440 }
  0x11   : > { %v10864_v4 = vld [vmem:[%s11306_s24 + $0x78] sm:$0xff]  ;;  %v10849_v5 = vld [vmem:[%s11306_s24] sm:$0xff]  ;;  %v10850_v7 = vld [vmem:[%s11306_s24 + $0x8] sm:$0xff]  ;;  %409 = vst.msk [vmem:[#allocation2] sm:$0xf] %vm17409_vm2, %v17414_v12  ;;  %s11204_s28 = smov 16  }
  0x12   : > { %1090 = vmatpush.bf16.msrb.mxu1 %v1081_v3  ;;  %10032 = vmatmul.msk.bf16.vlgmr.msra.gmra.mxu0 %vm805_vm1, %v10849_v5  ;;  %v10865_v6 = vld [vmem:[%s11315_s27] sm:$0xff]  ;;  %v10866_v8 = vld [vmem:[%s11315_s27 + $0x8] sm:$0xff]  ;;  %v10851_v9 = vld [vmem:[%s11306_s24 + $0x10] sm:$0xff]  ;;  %410 = vst.msk [vmem:[#allocation2 + $0x4] sm:$0xf] %vm17409_vm2, %v17414_v12  ;;  %s11205_s29 = smov 24  }
  0x13   : > { %10047 = vmatmul.msk.bf16.vlgmr.msra.gmra.mxu1 %vm805_vm1, %v10864_v4  ;;  %v10867_v10 = vld [vmem:[%s11315_s27 + $0x10] sm:$0xff]  ;;  %v10852_v11 = vld [vmem:[%s11306_s24 + $0x18] sm:$0xff]  ;;  %412 = vst.msk [vmem:[#allocation2 + $0x8] sm:$0x1] %vm17406_vm3, %v17414_v12  ;;  %v10853_v16 = vld [vmem:[%s11306_s24 + $0x20] sm:$0xff]  ;;  %s11206_s30 = smov 8  }
  0x14   : > { %v10868_v13 = vld [vmem:[%s11315_s27 + $0x18] sm:$0xff]  ;;  %417 = vst.msk [vmem:[#allocation2 + $0xd8] sm:$0xf] %vm17409_vm2, %v17414_v12  ;;  %vm11373_vm10 = vmor %vm2988_vm8, %vm2989_vm9  ;;  %v10869_v34 = vld [vmem:[%s11315_s27 + $0x20] sm:$0xff]  ;;  %s11207_s11 = smov 40   ;;  %s11208_s12 = smov 32  }
  0x15   : > { %v429_v15 = vld [vmem:[#allocation2 + $0xc] sm:$0x1]  ;;  %418 = vst.msk [vmem:[#allocation2 + $0xdc] sm:$0xf] %vm17409_vm2, %v17414_v12  ;;  %vm11386_vm13 = vmor %vm2499_vm11, %vm2500_vm12  ;;  %s11209_s17 = smov 56   ;;  %s11210_s18 = smov 48  }
  0x16   : > { %v430_v17 = vsel %vm11346_vm6, 0, %v429_v15  ;;  %v2449_v21 = vld [vmem:[#allocation2 + $0x10] sm:$0xf]  ;;  %419 = vst.msk [vmem:[#allocation2 + $0xe0] sm:$0x1] %vm17406_vm3, %v17414_v12  ;;  %v10854_v51 = vld [vmem:[%s11306_s24 + $0x28] sm:$0xff] }
  0x17   : > { %431 = vst [vmem:[#allocation2 + $0xc] sm:$0x1] %v430_v17  ;;  %v491_v19 = vld [vmem:[#allocation2 + $0x14] sm:$0x1]  ;;  %v3000_v22 = vrot.slane %v2449_v21, 5  ;;  %v2540_v30 = vshrl.u32 %v2449_v21, 16 }
  0x18   : > { %v492_v20 = vsel %vm11358_vm7, 0, %v491_v19  ;;  %420 = vst.msk [vmem:[#allocation2 + $0xe4] sm:$0xf] %vm17409_vm2, %v17414_v12  ;;  %v2536_v33 = vshll.u32 %v2449_v21, 16  ;;  %v426_v47 = vld [vmem:[#allocation2] sm:$0x1] }
  0x19   : > { %493 = vst [vmem:[#allocation2 + $0x14] sm:$0x1] %v492_v20  ;;  %v3002_v26 = vrot.slane %v3000_v22, 4  ;;  %v2542_v43 = vrot.slane %v2540_v30, 4  ;;  %v427_v56 = vsel %vm11346_vm6, 0, %v426_v47  ;;  %s11211_s21 = smov 64  }
  0x1a   : > { %421 = vst.msk [vmem:[#allocation2 + $0xe8] sm:$0xf] %vm17409_vm2, %v17414_v12  ;;  %v2538_v40 = vrot.slane %v2536_v33, 5  ;;  %v488_v58 = vld [vmem:[#allocation2 + $0x8] sm:$0x1]  ;;  %s11212_s22 = smov 120  }
  0x1b   : > { %422 = vst.msk [vmem:[#allocation2 + $0xec] sm:$0x1] %vm17406_vm3, %v17414_v12  ;;  %v480_v41 = vld [vmem:[#allocation2 + $0xd8] sm:$0x1]  ;;  %v489_v60 = vsel %vm11358_vm7, 0, %v488_v58  ;;  %vm5323_vm3 = vcmask 195584  }
  0x1c   : > { %v481_v44 = vsel %vm11346_vm6, 0, %v480_v41  ;;  %v2543_v49 = vor.u32 %v2542_v43, %v2538_v40  ;;  %428 = vst [vmem:[#allocation2] sm:$0x1] %v427_v56  ;;  %v10230_v1 = vld [vmem:[#allocation2 + $0xdc] sm:$0xf]  ;;  %vm17413_vm5 = vcmask 261120  }
  0x1d   : > { %482 = vst [vmem:[#allocation2 + $0xd8] sm:$0x1] %v481_v44  ;;  %v542_v46 = vld [vmem:[#allocation2 + $0xe0] sm:$0x1]  ;;  %v11403_v2 = vld [vmem:[#allocation2 + $0x10] sm:$0xf] }
  0x1e   : > { %v2448_v23 = vld [vmem:[#allocation2 + $0xc] sm:$0xf]  ;;  %v543_v55 = vsel %vm11358_vm7, 0, %v542_v46  ;;  %v2544_v57 = vrot.slane %v2543_v49, 4  ;;  %490 = vst [vmem:[#allocation2 + $0x8] sm:$0x1] %v489_v60 }
  0x1f   : > { %v10161_v25 = vrot.slane %v2448_v23, 9  ;;  %v2527_v27 = vshrl.u32 %v2448_v23, 16  ;;  %v2530_v28 = vshll.u32 %v2448_v23, 16  ;;  %v10899_v50 = vld [vmem:[#allocation2 + $0xc] sm:$0xff]  ;;  %544 = vst [vmem:[#allocation2 + $0xe0] sm:$0x1] %v543_v55 }
  0x20   : > { %v2450_v29 = vld [vmem:[#allocation2 + $0x14] sm:$0x1]  ;;  %4745 = vrot.lane.b32.xlu2 %v10899_v50, %s11205_s29  ;;  %v3782_v4 = vrot.slane %v10230_v1, 5  ;;  %v3663_v5 = vrot.slane %v11403_v2, 5  ;;  %v3593_v44 = vshll.u32 %v10230_v1, 16  ;;  %s11213_s26 = smov 72  }
  0x21   : > { %v3001_v31 = vsel %vm11373_vm10, %v10161_v25, %v3000_v22  ;;  %v3003_v32 = vrot.slane %v2450_v29, 5  ;;  %v2546_v35 = vshll.u32 %v2450_v29, 16  ;;  %v2529_v38 = vrot.slane %v2527_v27, 4  ;;  %v11436_v46 = vld [vmem:[#allocation2 + $0xdc] sm:$0xf]  ;;  %s11214_s19 = smov 80  }
  0x22   : > { %10033 = vmatmul.msk.bf16.gmra.mxu0 %vm805_vm1, %v10850_v7  ;;  %v4603_v36 = vunpack.c.l.b16 %v3001_v31  ;;  %v2532_v39 = vrot.slane %v2530_v28, 5  ;;  %v10870_v28 = vld [vmem:[%s11315_s27 + $0x28] sm:$0xff]  ;;  %v4239_v60 = vshll.u32 %v11436_v46, 16  ;;  %s11216_s20 = smov 88   ;;  %s11217_s23 = smov 104  }
  0x23   : > { %10112 = vmatmul.msk.bf16.vlgmr.msrb.gmra.mxu1 %vm805_vm1, %v10865_v6  ;;  %v3004_v37 = vsel %vm11373_vm10, %v3002_v26, %v3003_v32  ;;  %v2548_v54 = vrot.slane %v2546_v35, 5  ;;  %v11406_v6 = vld [vmem:[#allocation2 + $0x4] sm:$0xf]  ;;  %v11416_v20 = vld [vmem:[#allocation2] sm:$0xf]  ;;  %s17423_s25 = smov 112  }
  0x24   : > { %v4604_v42 = vunpack.c.l.b16 %v3004_v37  ;;  %v2533_v45 = vor.u32 %v2532_v39, %v2529_v38  ;;  %v10916_v0 = vld [vmem:[#allocation2 + $0xd8] sm:$0xff]  ;;  %v2993_v21 = vrot.slane %v11406_v6, 5  ;;  %v10160_v26 = vrot.slane %v11416_v20, 9 }
  0x25   : > { %v2549_v61 = vsel %vm11386_vm13, %v2544_v57, %v2548_v54  ;;  %4779 = vrot.lane.b32.xlu1 %v10916_v0, %s11205_s29  ;;  %v10229_v7 = vld [vmem:[#allocation2 + $0xd8] sm:$0xf]  ;;  %v11423_v25 = vld [vmem:[#allocation2 + $0x8] sm:$0x1]  ;;  %v4243_v0 = vshrl.u32 %v11436_v46, 16 }
  0x26   : > { %v4638_v48 = vpack.c.b16 %v4604_v42, %v4603_v36  ;;  %v2534_v53 = vrot.slane %v2533_v45, 4  ;;  %v4514_v63 = vunpack.c.l.b16 %v2549_v61  ;;  %v3584_v27 = vshrl.u32 %v10229_v7, 16  ;;  %v11433_v37 = vld [vmem:[#allocation2 + $0xd8] sm:$0xf]  ;;  %v11443_v55 = vld [vmem:[#allocation2 + $0xe0] sm:$0x1] }
  0x27   : > { %v2994_v35 = vsel %vm11373_vm10, %v10160_v26, %v2993_v21  ;;  %v2995_v36 = vrot.slane %v2993_v21, 4  ;;  %v2996_v38 = vrot.slane %v11423_v25, 5  ;;  %v3587_v41 = vshll.u32 %v10229_v7, 16  ;;  %v10855_v21 = vld [vmem:[%s11306_s24 + $0x30] sm:$0xff] }
  0x28   : > { %4657 = vrot.lane.b32.xlu0 %v4638_v48, %s11204_s28  ;;  %v2539_v59 = vsel %vm11386_vm13, %v2534_v53, %v2538_v40  ;;  %v4601_v39 = vunpack.c.l.b16 %v2994_v35  ;;  %v3586_v40 = vrot.slane %v3584_v27, 4  ;;  %v3597_v45 = vshrl.u32 %v10230_v1, 16 }
  0x29   : > { %v4513_v62 = vunpack.c.l.b16 %v2539_v59  ;;  %v2997_v47 = vsel %vm11373_vm10, %v2995_v36, %v2996_v38  ;;  %v3589_v48 = vrot.slane %v3587_v41, 5  ;;  %v4230_v50 = vshrl.u32 %v11433_v37, 16 }
  0x2a   : > { %v3595_v53 = vrot.slane %v3593_v44, 5  ;;  %v3599_v54 = vrot.slane %v3597_v45, 4  ;;  %v4233_v56 = vshll.u32 %v11433_v37, 16  ;;  %v10871_v44 = vld [vmem:[%s11315_s27 + $0x30] sm:$0xff] }
  0x2b   : > { %v4548_v3 = vpack.c.b16 %v4514_v63, %v4513_v62  ;;  %v3590_v57 = vor.u32 %v3589_v48, %v3586_v40  ;;  %v4232_v59 = vrot.slane %v4230_v50, 4  ;;  %v483_v40 = vld [vmem:[#allocation2 + $0xe4] sm:$0x1]  ;;  %v3185_v48 = vshll.u32 %v11403_v2, 16 }
  0x2c   : > { %v3600_v62 = vor.u32 %v3599_v54, %v3595_v53  ;;  %v4235_v63 = vrot.slane %v4233_v56, 5  ;;  %v484_v54 = vsel %vm11346_vm6, 0, %v483_v40  ;;  %v11475_v56 = vld [vmem:[#allocation2 + $0xe8] sm:$0xf] }
  0x2d   : > { %v3591_v1 = vrot.slane %v3590_v57, 4  ;;  %485 = vst [vmem:[#allocation2 + $0xe4] sm:$0x1] %v484_v54 }
  0x30   : > { %4567 = vrot.lane.b32.xlu0 %v4548_v3, %s11206_s30  ;;  %v4241_v3 = vrot.slane %v4239_v60, 5 }
  0x32   : > { %10034 = vmatmul.msk.bf16.gmra.mxu0 %vm805_vm1, %v10851_v9  ;;  %v11411_v9 = vld [vmem:[#allocation2 + $0x14] sm:$0x1] }
  0x33   : > { %10113 = vmatmul.msk.bf16.gmra.mxu1 %vm805_vm1, %v10866_v8  ;;  %v11409_v8 = vld [vmem:[#allocation2 + $0xc] sm:$0xf]  ;;  %v3666_v19 = vrot.slane %v11411_v9, 5 }
  0x34   : > { %v10232_v15 = vrot.slane %v11409_v8, 9 }
  0x36   : > { %v3664_v23 = vsel %vm11373_vm10, %v10232_v15, %v3663_v5  ;;  %v3596_v15 = vsel %vm11386_vm13, %v3591_v1, %v3595_v53  ;;  %v3195_v53 = vshll.u32 %v11411_v9, 16  ;;  %v10933_v9 = vld [vmem:[#allocation2 + $0xd8] sm:$0xff]  ;;  %v4267_v1 = vshrl.u32 %v11475_v56, 16 }
  0x37   : > { %v4871_v32 = vunpack.c.l.b16 %v3664_v23  ;;  %v4815_v23 = vunpack.c.l.b16 %v3596_v15 }
  0x42   : > { %10035 = vmatmul.msk.bf16.gmra.mxu0 %vm805_vm1, %v10852_v11  ;;  %v10249_v11 = vrot.slane %v10229_v7, 9  ;;  %v3601_v7 = vrot.slane %v3600_v62, 4 }
  0x43   : > { %10114 = vmatmul.msk.bf16.gmra.mxu1 %vm805_vm1, %v10867_v10  ;;  %v10231_v10 = vld [vmem:[#allocation2 + $0xe0] sm:$0x1] }
  0x44   : > { %v3785_v17 = vrot.slane %v10231_v10, 5  ;;  %v3783_v22 = vsel %vm11373_vm10, %v10249_v11, %v3782_v4  ;;  %v3603_v49 = vshll.u32 %v10231_v10, 16  ;;  %v4236_v10 = vor.u32 %v4235_v63, %v4232_v59 }
  0x45   : > { %v4905_v30 = vunpack.c.l.b16 %v3783_v22  ;;  %v4245_v11 = vrot.slane %v4243_v0, 4  ;;  %v3187_v59 = vrot.slane %v3185_v48, 5  ;;  %v4263_v0 = vshll.u32 %v11475_v56, 16 }
  0x46   : > { %v3605_v58 = vrot.slane %v3603_v49, 5  ;;  %v4237_v26 = vrot.slane %v4236_v10, 4  ;;  %v545_v49 = vld [vmem:[#allocation2 + $0xec] sm:$0x1] }
  0x47   : > { %v4246_v27 = vor.u32 %v4245_v11, %v4241_v3  ;;  %v546_v63 = vsel %vm11358_vm7, 0, %v545_v49  ;;  %v4265_v10 = vrot.slane %v4263_v0, 5  ;;  %v4269_v11 = vrot.slane %v4267_v1, 4 }
  0x48   : > { %v3606_v22 = vsel %vm11386_vm13, %v3601_v7, %v3605_v58  ;;  %v3197_v7 = vrot.slane %v3195_v53, 5  ;;  %547 = vst [vmem:[#allocation2 + $0xec] sm:$0x1] %v546_v63 }
  0x52   : > { %10036 = vmatmul.msk.bf16.gmra.mxu0 %vm805_vm1, %v10853_v16  ;;  %v3665_v16 = vrot.slane %v3663_v5, 4  ;;  %v2503_v5 = vshrl.u32 %v11416_v20, 16 }
  0x53   : > { %10115 = vmatmul.msk.bf16.gmra.mxu1 %vm805_vm1, %v10868_v13  ;;  %v3784_v13 = vrot.slane %v3782_v4, 4  ;;  %v4249_v4 = vshll.u32 %v11443_v55, 16 }
  0x54   : > { %v3667_v31 = vsel %vm11373_vm10, %v3665_v16, %v3666_v19  ;;  %v2512_v19 = vshll.u32 %v11406_v6, 16 }
  0x55   : > { %v3786_v29 = vsel %vm11373_vm10, %v3784_v13, %v3785_v17  ;;  %v2506_v13 = vshll.u32 %v11416_v20, 16  ;;  %v4251_v16 = vrot.slane %v4249_v4, 5  ;;  %v2505_v17 = vrot.slane %v2503_v5, 4 }
  0x56   : > { %v4906_v33 = vunpack.c.l.b16 %v3786_v29  ;;  %v2516_v20 = vshrl.u32 %v11406_v6, 16 }
  0x57   : > { %v2508_v29 = vrot.slane %v2506_v13, 5 }
  0x58   : > { %v4924_v42 = vpack.c.b16 %v4906_v33, %v4905_v30  ;;  %v2514_v30 = vrot.slane %v2512_v19, 5  ;;  %v2522_v33 = vshll.u32 %v11423_v25, 16 }
  0x59   : > { %v2509_v38 = vor.u32 %v2508_v29, %v2505_v17 }
  0x5a   : > { %4959 = vrot.lane.b32.xlu1 %v4924_v42, %s11207_s11  ;;  %v2524_v42 = vrot.slane %v2522_v33, 5 }
  0x5b   : > { %v2510_v25 = vrot.slane %v2509_v38, 4  ;;  %v10872_v38 = vld [vmem:[%s11315_s27 + $0x38] sm:$0xff] }
  0x5d   : > { %v2515_v57 = vsel %vm11386_vm13, %v2510_v25, %v2514_v30 }
  0x5e   : > { %v4511_v60 = vunpack.c.l.b16 %v2515_v57 }
  0x62   : > { %10037 = vmatmul.msk.bf16.gmra.mxu0 %vm805_vm1, %v10854_v51  ;;  %v4602_v51 = vunpack.c.l.b16 %v2997_v47 }
  0x63   : > { %10116 = vmatmul.msk.bf16.gmra.mxu1 %vm805_vm1, %v10869_v34  ;;  %v4872_v34 = vunpack.c.l.b16 %v3667_v31  ;;  %v4242_v31 = vsel %vm11386_vm13, %v4237_v26, %v4241_v3 }
  0x64   : > { %v4637_v61 = vpack.c.b16 %v4602_v51, %v4601_v39  ;;  %v5083_v36 = vunpack.c.l.b16 %v4242_v31  ;;  %v2518_v39 = vrot.slane %v2516_v20, 4  ;;  %v3189_v51 = vshrl.u32 %v11403_v2, 16 }
  0x65   : > { %v4907_v43 = vpack.c.b16 %v4872_v34, %v4871_v32  ;;  %v4247_v32 = vrot.slane %v4246_v27, 4  ;;  %v3176_v34 = vshrl.u32 %v11409_v8, 16 }
  0x66   : > { %4655 = vrot.lane.b32.xlu2 %v4637_v61, %s11204_s28  ;;  %v2519_v47 = vor.u32 %v2518_v39, %v2514_v30  ;;  %v3191_v62 = vrot.slane %v3189_v51, 4 }
  0x67   : > { %4925 = vrot.lane.b32.xlu0 %v4907_v43, %s11207_s11  ;;  %v4252_v41 = vsel %vm11386_vm13, %v4247_v32, %v4251_v16  ;;  %v3178_v6 = vrot.slane %v3176_v34, 4  ;;  %v3179_v43 = vshll.u32 %v11409_v8, 16  ;;  %v10856_v34 = vld [vmem:[%s11306_s24 + $0x38] sm:$0xff] }
  0x68   : > { %v5084_v45 = vunpack.c.l.b16 %v4252_v41  ;;  %v2520_v58 = vrot.slane %v2519_v47, 4  ;;  %v3192_v5 = vor.u32 %v3191_v62, %v3187_v59  ;;  %v10934_v47 = vld [vmem:[#allocation2 + $0xe4] sm:$0xff] }
  0x69   : > { %v3181_v50 = vrot.slane %v3179_v43, 5  ;;  %v10873_v62 = vld [vmem:[%s11315_s27 + $0x40] sm:$0xff] }
  0x6a   : > { %v5103_v8 = vpack.c.b16 %v5084_v45, %v5083_v36  ;;  %v2525_v2 = vsel %vm11386_vm13, %v2520_v58, %v2524_v42  ;;  %v3193_v16 = vrot.slane %v3192_v5, 4  ;;  %v10320_v42 = vrot.slane %v11433_v37, 9 }
  0x6b   : > { %v3182_v61 = vor.u32 %v3181_v50, %v3178_v6  ;;  %v4512_v3 = vunpack.c.l.b16 %v2525_v2  ;;  %v4452_v37 = vrot.slane %v11475_v56, 5 }
  0x6c   : > { %v3198_v17 = vsel %vm11386_vm13, %v3193_v16, %v3197_v7 }
  0x6d   : > { %v3183_v4 = vrot.slane %v3182_v61, 4  ;;  %v4547_v13 = vpack.c.b16 %v4512_v3, %v4511_v60  ;;  %v4454_v54 = vrot.slane %v4452_v37, 4  ;;  %v10857_v61 = vld [vmem:[%s11306_s24 + $0x40] sm:$0xff] }
  0x6f   : > { %5137 = vrot.lane.b32.xlu0 %v5103_v8, %s11209_s17  ;;  %v3188_v15 = vsel %vm11386_vm13, %v3183_v4, %v3187_v59  ;;  %4565 = vrot.lane.b32.xlu2 %v4547_v13, %s11206_s30  ;;  %v11521_v59 = vld [vmem:[%s17400_s5] ss:$0 sm:$0xff] }
  0x70   : > { %v4781_v19 = vunpack.c.l.b16 %v3188_v15 }
  0x72   : > { %10038 = vmatmul.msk.bf16.gmra.mxu0 %vm805_vm1, %v10855_v21  ;;  %v10301_v21 = vld [vmem:[#allocation2 + $0xe4] sm:$0xf] }
  0x73   : > { %10117 = vmatmul.msk.bf16.gmra.mxu1 %vm805_vm1, %v10870_v28  ;;  %v4816_v28 = vunpack.c.l.b16 %v3606_v22  ;;  %v4270_v22 = vor.u32 %v4269_v11, %v4265_v10  ;;  %v4254_v26 = vshrl.u32 %v10301_v21, 16  ;;  %v4257_v27 = vshll.u32 %v10301_v21, 16  ;;  %v10874_v11 = vld [vmem:[%s11315_s27 + $0x48] sm:$0xff] }
  0x74   : > { %v10321_v53 = vrot.slane %v10301_v21, 9 }
  0x75   : > { %v4834_v35 = vpack.c.b16 %v4816_v28, %v4815_v23  ;;  %v4782_v23 = vunpack.c.l.b16 %v3198_v17  ;;  %v10303_v28 = vld [vmem:[#allocation2 + $0xec] sm:$0x1]  ;;  %v4256_v29 = vrot.slane %v4254_v26, 4  ;;  %v4259_v30 = vrot.slane %v4257_v27, 5  ;;  %v10859_v26 = vld [vmem:[%s11306_s24 + $0x50] sm:$0xff] }
  0x76   : > { %v4271_v31 = vrot.slane %v4270_v22, 4  ;;  %v4273_v32 = vshll.u32 %v10303_v28, 16  ;;  %v4455_v8 = vrot.slane %v10303_v28, 5  ;;  %v4453_v56 = vsel %vm11373_vm10, %v10321_v53, %v4452_v37  ;;  %v10875_v27 = vld [vmem:[%s11315_s27 + $0x50] sm:$0xff] }
  0x77   : > { %4869 = vrot.lane.b32.xlu1 %v4834_v35, %s11208_s12  ;;  %v4817_v20 = vpack.c.b16 %v4782_v23, %v4781_v19  ;;  %v4260_v33 = vor.u32 %v4259_v30, %v4256_v29  ;;  %v4445_v35 = vrot.slane %v11436_v46, 5  ;;  %v4448_v46 = vrot.slane %v11443_v55, 5 }
  0x78   : > { %v4275_v36 = vrot.slane %v4273_v32, 5  ;;  %v4456_v60 = vsel %vm11373_vm10, %v4454_v54, %v4455_v8 }
  0x79   : > { %v4261_v39 = vrot.slane %v4260_v33, 4  ;;  %4835 = vrot.lane.b32.xlu2 %v4817_v20, %s11208_s12  ;;  %v4446_v48 = vsel %vm11373_vm10, %v10320_v42, %v4445_v35  ;;  %v5176_v63 = vunpack.c.l.b16 %v4456_v60 }
  0x7a   : > { %v4276_v41 = vsel %vm11386_vm13, %v4271_v31, %v4275_v36  ;;  %v5173_v55 = vunpack.c.l.b16 %v4446_v48  ;;  %v11588_v54 = vpop.permute.xlu2 %4745 }
  0x7b   : > { %v4266_v6 = vsel %vm11386_vm13, %v4261_v39, %v4265_v10  ;;  %v5086_v43 = vunpack.c.l.b16 %v4276_v41  ;;  %v10858_v10 = vld [vmem:[%s11306_s24 + $0x48] sm:$0xff] }
  0x7c   : > { %v5085_v45 = vunpack.c.l.b16 %v4266_v6  ;;  %v10876_v6 = vld [vmem:[%s11315_s27 + $0x58] sm:$0xff] }
  0x7e   : > { %v5104_v25 = vpack.c.b16 %v5086_v43, %v5085_v45 }
  0x7f   : > { %5047 = vrot.lane.b32.xlu1 %v10933_v9, %s11210_s18  ;;  %v5175_v9 = vunpack.c.l.b16 %v4453_v56 }
  0x81   : > { %5049 = vrot.lane.b32.xlu2 %v10934_v47, %s11210_s18  ;;  %v5194_v1 = vpack.c.b16 %v5176_v63, %v5175_v9 }
  0x82   : > { %10039 = vmatmul.msk.bf16.gmra.mxu0 %vm805_vm1, %v10856_v34 }
  0x83   : > { %10118 = vmatmul.msk.bf16.gmra.mxu1 %vm805_vm1, %v10871_v44  ;;  %v4447_v44 = vrot.slane %v4445_v35, 4 }
  0x85   : > { %v4449_v49 = vsel %vm11373_vm10, %v4447_v44, %v4448_v46 }
  0x86   : > { %v5174_v51 = vunpack.c.l.b16 %v4449_v49 }
  0x87   : > { %5139 = vrot.lane.b32.xlu1 %v5104_v25, %s11209_s17 }
  0x88   : > { %v5193_v57 = vpack.c.b16 %v5174_v51, %v5173_v55 }
  0x8a   : > { %5227 = vrot.lane.b32.xlu2 %v5193_v57, %s11211_s21 }
  0x8f   : > { %v11516_v58 = vpop.f32.mrf.mxu0 }
  0x90   : > { %v11497_v40 = vpop.f32.mrf.mxu1 }
  0x92   : > { %10040 = vmatmul.msk.bf16.gmra.mxu0 %vm805_vm1, %v10857_v61  ;;  %5229 = vrot.lane.b32.xlu2 %v5194_v1, %s11211_s21  ;;  %v10860_v61 = vld [vmem:[%s11306_s24 + $0x58] sm:$0xff] }
  0x93   : > { %10119 = vmatmul.msk.bf16.gmra.mxu1 %vm805_vm1, %v10872_v38 }
  0x97   : > { %v11534_v3 = vpop.f32.mrf.mxu0 }
  0x98   : > { %v11513_v50 = vpop.f32.mrf.mxu1 }
  0x9f   : > { %v11539_v7 = vpop.f32.mrf.mxu0 }
  0xa0   : > { %v1092_v2 = vpop.f32.mrf.mxu1 }
  0xa1   : > { %v1093_v0 = vadd.f32 %v11521_v59, %v1092_v2 }
  0xa2   : > { %10041 = vmatmul.msk.bf16.gmra.mxu0 %vm805_vm1, %v10858_v10 }
  0xa3   : > { %10120 = vmatmul.msk.bf16.gmra.mxu1 %vm805_vm1, %v10873_v62  ;;  %1844 = vrot.lane.b32.xlu0 %v1093_v0, %s11212_s22  ;;  %v10128_v19 = vmul.f32 -1.442695, %v1093_v0 }
  0xa5   : > { %11041 = vpow2.f32 %v10128_v19 }
  0xa7   : > { %v11547_v16 = vpop.f32.mrf.mxu0 }
  0xa8   : > { %v1094_v4 = vpop.f32.mrf.mxu1 }
  0xa9   : > { %v1095_v5 = vadd.f32 %v11521_v59, %v1094_v4 }
  0xab   : > { %1846 = vrot.lane.b32.xlu0 %v1095_v5, %s11212_s22  ;;  %v10129_v23 = vmul.f32 -1.442695, %v1095_v5  ;;  %v11042_v30 = vpop.eup %11041 }
  0xac   : > { %v11561_v32 = vadd.f32 1.0, %v11042_v30 }
  0xad   : > { %11043 = vpow2.f32 %v10129_v23 }
  0xae   : > { %vm1305_vm15 = vweird.f32 %v11561_v32 }
  0xaf   : > { %v11551_v22 = vpop.f32.mrf.mxu0 }
  0xb0   : > { %v1097_v13 = vpop.f32.mrf.mxu1 }
  0xb1   : > { %v1098_v15 = vadd.f32 %v11521_v59, %v1097_v13  ;;  %v10877_v13 = vld [vmem:[%s11315_s27 + $0x60] sm:$0xff] }
  0xb2   : > { %10042 = vmatmul.msk.bf16.gmra.mxu0 %vm805_vm1, %v10859_v26 }
  0xb3   : > { %10121 = vmatmul.msk.bf16.gmra.mxu1 %vm805_vm1, %v10874_v11  ;;  %1848 = vrot.lane.b32.xlu1 %v1098_v15, %s11212_s22  ;;  %v10130_v20 = vmul.f32 -1.442695, %v1098_v15  ;;  %v11044_v34 = vpop.eup %11043  ;;  %v11615_v15 = vld [vmem:[%s17398_s3] ss:$0 sm:$0xff] }
  0xb4   : > { %v11565_v38 = vadd.f32 1.0, %v11044_v34  ;;  %v1309_v34 = vand.u32 2147483647, %v11561_v32 }
  0xb5   : > { %11045 = vpow2.f32 %v10130_v20 }
  0xb6   : > { %11047 = vrcp.f32 %v11561_v32  ;;  %vm1310_vm11 = vcmp.eq.f32.partialorder %v1309_v34, 8.507059e+37  ;;  %vm1320_vm12 = vweird.f32 %v11565_v38 }
  0xb7   : > { %v11559_v31 = vpop.f32.mrf.mxu0 }
  0xb8   : > { %v1099_v17 = vpop.f32.mrf.mxu1 }
  0xb9   : > { %v1100_v21 = vadd.f32 %v11521_v59, %v1099_v17  ;;  %v1311_v17 = vand.u32 2147483648, %v11561_v32 }
  0xbb   : > { %1850 = vrot.lane.b32.xlu1 %v1100_v21, %s11212_s22  ;;  %v10131_v33 = vmul.f32 -1.442695, %v1100_v21  ;;  %v11046_v42 = vpop.eup %11045 }
  0xbc   : > { %v11572_v43 = vpop.eup %11047  ;;  %v11574_v45 = vadd.f32 1.0, %v11046_v42 }
  0xbd   : > { %11049 = vpow2.f32 %v10131_v33  ;;  %v1301_v49 = vmul.f32 %v11572_v43, %v11561_v32  ;;  %vm1306_vm14 = vweird.f32 %v11572_v43  ;;  %v1312_v32 = vor.u32 1.1754944e-38, %v1311_v17 }
  0xbe   : > { %11051 = vrcp.f32 %v11565_v38  ;;  %vm11645_vm8 = vmor %vm1305_vm15, %vm1306_vm14 }
  0xbf   : > { %v11568_v41 = vpop.f32.mrf.mxu0  ;;  %v1302_v8 = vsub.f32 1.0, %v1301_v49  ;;  %v1326_v49 = vand.u32 2147483648, %v11565_v38 }
  0xc0   : > { %v1102_v28 = vpop.f32.mrf.mxu1 }
  0xc1   : > { %v1103_v29 = vadd.f32 %v11521_v59, %v1102_v28  ;;  %v1303_v63 = vmul.f32 %v11572_v43, %v1302_v8  ;;  %v11668_v8 = vadd.f32 %v11615_v15, %v11539_v7 }
  0xc2   : > { %10043 = vmatmul.msk.bf16.gmra.mxu0 %vm805_vm1, %v10860_v61  ;;  %v1341_v61 = vand.u32 2147483648, %v11574_v45 }
  0xc3   : > { %10122 = vmatmul.msk.bf16.gmra.mxu1 %vm805_vm1, %v10875_v27  ;;  %1852 = vrot.lane.b32.xlu2 %v1103_v29, %s11212_s22  ;;  %v10132_v39 = vmul.f32 -1.442695, %v1103_v29  ;;  %v11050_v46 = vpop.eup %11049  ;;  %v1304_v23 = vadd.f32 %v11572_v43, %v1303_v63  ;;  %v11621_v27 = vpop.permute.xlu2 %4655 }
  0xc4   : > { %v11579_v48 = vadd.f32 1.0, %v11050_v46  ;;  %v11583_v37 = vpop.eup %11051 }
  0xc5   : > { %11053 = vpow2.f32 %v10132_v39  ;;  %v1316_v62 = vmul.f32 %v11583_v37, %v11565_v38  ;;  %v11641_v39 = vadd.f32 %v11615_v15, %v11513_v50  ;;  %vm1321_vm9 = vweird.f32 %v11583_v37 }
  0xc6   : > { %11055 = vrcp.f32 %v11574_v45  ;;  %vm11680_vm15 = vmor %vm1320_vm12, %vm1321_vm9 }
  0xc7   : > { %v11586_v51 = vpop.f32.mrf.mxu0  ;;  %v1317_v1 = vsub.f32 1.0, %v1316_v62  ;;  %17433 = vst [vmem:[#allocation5_spill] sm:$0xff] %v11641_v39 }
  0xc8   : > { %v1104_v35 = vpop.f32.mrf.mxu1 }
  0xc9   : > { %v1105_v36 = vadd.f32 %v11521_v59, %v1104_v35  ;;  %v1318_v28 = vmul.f32 %v11583_v37, %v1317_v1 }
  0xcb   : > { %1854 = vrot.lane.b32.xlu2 %v1105_v36, %s11212_s22  ;;  %v10133_v47 = vmul.f32 -1.442695, %v1105_v36  ;;  %v11054_v53 = vpop.eup %11053  ;;  %v11637_v36 = vadd.f32 %v11615_v15, %v11497_v40  ;;  %v1319_v40 = vadd.f32 %v11583_v37, %v1318_v28  ;;  %v11695_v17 = vpop.permute.xlu2 %4565 }
  0xcc   : > { %v11591_v56 = vadd.f32 1.0, %v11054_v53  ;;  %v11597_v2 = vpop.eup %11055  ;;  %v870_v53 = vadd.f32 %v11615_v15, %v11534_v3 }
  0xcd   : > { %11057 = vpow2.f32 %v10133_v47  ;;  %v1331_v5 = vmul.f32 %v11597_v2, %v11574_v45  ;;  %17432 = vst [vmem:[#allocation4_spill] sm:$0xff] %v11637_v36  ;;  %v868_v47 = vadd.f32 %v11615_v15, %v11516_v58  ;;  %vm1336_vm14 = vweird.f32 %v11597_v2 }
  0xce   : > { %11059 = vrcp.f32 %v11579_v48  ;;  %v1339_v58 = vand.u32 2147483647, %v11574_v45  ;;  %v1323_v1 = vsel %vm11680_vm15, %v11583_v37, %v1319_v40  ;;  %v11734_v40 = vadd.f32 %v11615_v15, %v11559_v31 }
  0xcf   : > { %v11603_v0 = vpop.f32.mrf.mxu0  ;;  %v1332_v29 = vsub.f32 1.0, %v1331_v5  ;;  %vm1350_vm15 = vweird.f32 %v11579_v48  ;;  %v1369_v31 = vand.u32 2147483647, %v11591_v56 }
  0xd0   : > { %v1107_v44 = vpop.f32.mrf.mxu1  ;;  %vm11715_vm12 = vcmp.eq.f32.partialorder %v1339_v58, 8.507059e+37 }
  0xd1   : > { %v1108_v25 = vadd.f32 %v11521_v59, %v1107_v44  ;;  %v1333_v50 = vmul.f32 %v11597_v2, %v1332_v29  ;;  %v1342_v29 = vor.u32 1.1754944e-38, %v1341_v61 }
  0xd3   : > { %10123 = vmatmul.msk.bf16.gmra.mxu1 %vm805_vm1, %v10876_v6  ;;  %1856 = vrot.lane.b32.xlu0 %v1108_v25, %s11212_s22  ;;  %v10134_v55 = vmul.f32 -1.442695, %v1108_v25  ;;  %v11058_v9 = vpop.eup %11057  ;;  %v1308_v6 = vsel %vm11645_vm8, %v11572_v43, %v1304_v23  ;;  %v1324_v43 = vand.u32 2147483647, %v11565_v38  ;;  %v1334_v38 = vadd.f32 %v11597_v2, %v1333_v50 }
  0xd4   : > { %v11605_v4 = vpop.eup %11059  ;;  %v11609_v11 = vadd.f32 1.0, %v11058_v9  ;;  %v10861_v9 = vld [vmem:[%s11306_s24 + $0x60] sm:$0xff]  ;;  %vm1335_vm8 = vweird.f32 %v11574_v45  ;;  %v11704_v23 = vadd.f32 %v11615_v15, %v11551_v22  ;;  %v11721_v22 = vpop.permute.xlu0 %4657 }
  0xd5   : > { %11061 = vpow2.f32 %v10134_v55  ;;  %v1346_v20 = vmul.f32 %v11605_v4, %v11579_v48  ;;  %v1313_v55 = vsel %vm1310_vm11, %v1312_v32, %v1308_v6  ;;  %10044 = vmatmul.msk.bf16.gmra.mxu0 %vm805_vm1, %v10861_v9  ;;  %vm1325_vm9 = vcmp.eq.f32.partialorder %v1324_v43, 8.507059e+37  ;;  %vm11711_vm11 = vmor %vm1335_vm8, %vm1336_vm14 }
  0xd6   : > { %11063 = vrcp.f32 %v11591_v56  ;;  %v11700_v37 = vmul.f32 %v1313_v55, %v868_v47  ;;  %v1338_v42 = vsel %vm11711_vm11, %v11597_v2, %v1334_v38  ;;  %vm1351_vm14 = vweird.f32 %v11605_v4  ;;  %v11764_v38 = vpop.permute.xlu1 %4779 }
  0xd7   : > { %11065 = vrcp.f32 %v11609_v11  ;;  %v11652_v44 = vpop.f32.mrf.mxu0  ;;  %v1347_v25 = vsub.f32 1.0, %v1346_v20  ;;  %v1354_v43 = vand.u32 2147483647, %v11579_v48  ;;  %v1343_v55 = vsel %vm11715_vm12, %v1342_v29, %v1338_v42  ;;  %vm11752_vm8 = vmor %vm1350_vm15, %vm1351_vm14  ;;  %17444 = vst [vmem:[#allocation6_spill] sm:$0xff] %v11764_v38 }
  0xd8   : > { %v1109_v57 = vpop.f32.mrf.mxu1  ;;  %vm1365_vm11 = vweird.f32 %v11591_v56  ;;  %vm11789_vm15 = vcmp.eq.f32.partialorder %v1369_v31, 8.507059e+37 }
  0xd9   : > { %v1110_v60 = vadd.f32 %v11521_v59, %v1109_v57  ;;  %v1348_v5 = vmul.f32 %v11605_v4, %v1347_v25  ;;  %vm1355_vm12 = vcmp.eq.f32.partialorder %v1354_v43, 8.507059e+37 }
  0xdb   : > { %1858 = vrot.lane.b32.xlu1 %v1110_v60, %s11212_s22  ;;  %v11062_v10 = vpop.eup %11061  ;;  %v10135_v19 = vmul.f32 -1.442695, %v1110_v60  ;;  %v1349_v6 = vadd.f32 %v11605_v4, %v1348_v5  ;;  %v1386_v5 = vand.u32 2147483648, %v11609_v11 }
  0xdc   : > { %v11624_v30 = vadd.f32 1.0, %v11062_v10  ;;  %v11628_v33 = vpop.eup %11063 }
  0xdd   : > { %11067 = vpow2.f32 %v10135_v19  ;;  %v1361_v46 = vmul.f32 %v11628_v33, %v11591_v56  ;;  %v11671_v60 = vpop.eup %11065  ;;  %v1327_v19 = vor.u32 1.1754944e-38, %v1326_v49  ;;  %v1353_v61 = vsel %vm11752_vm8, %v11605_v4, %v1349_v6 }
  0xde   : > { %v1376_v25 = vmul.f32 %v11671_v60, %v11609_v11  ;;  %vm1380_vm8 = vweird.f32 %v11609_v11  ;;  %v1401_v4 = vand.u32 2147483648, %v11624_v30 }
  0xdf   : > { %v1362_v63 = vsub.f32 1.0, %v1361_v46  ;;  %v11723_v34 = vpop.f32.mrf.mxu0  ;;  %v10878_v46 = vld [vmem:[%s11315_s27 + $0x68] sm:$0xff] }
  0xe0   : > { %v1112_v21 = vpop.f32.mrf.mxu1 }
  0xe1   : > { %v1113_v26 = vadd.f32 %v11521_v59, %v1112_v21  ;;  %v1363_v32 = vmul.f32 %v11628_v33, %v1362_v63  ;;  %v1377_v63 = vsub.f32 1.0, %v1376_v25 }
  0xe3   : > { %v10136_v35 = vmul.f32 -1.442695, %v1113_v26  ;;  %10124 = vmatmul.msk.bf16.gmra.mxu1 %vm805_vm1, %v10877_v13  ;;  %1860 = vrot.lane.b32.xlu2 %v1113_v26, %s11212_s22  ;;  %v11068_v7 = vpop.eup %11067  ;;  %v11692_v13 = vadd.f32 %v11615_v15, %v11547_v16  ;;  %v1356_v16 = vand.u32 2147483648, %v11579_v48  ;;  %v1371_v48 = vand.u32 2147483648, %v11591_v56 }
  0xe4   : > { %v11719_v20 = vadd.f32 1.0, %v11068_v7  ;;  %v1384_v56 = vand.u32 2147483647, %v11609_v11  ;;  %v5553_v11 = vld [vmem:[%s17401_s6 + $0x20] sm:$0xf] }
  0xe5   : > { %11069 = vpow2.f32 %v10136_v35  ;;  %v1328_v35 = vsel %vm1325_vm9, %v1327_v19, %v1323_v1  ;;  %v1357_v49 = vor.u32 1.1754944e-38, %v1356_v16  ;;  %vm1366_vm9 = vweird.f32 %v11628_v33  ;;  %v11783_v19 = vpop.permute.xlu2 %4835 }
  0xe6   : > { %11071 = vrcp.f32 %v11624_v30  ;;  %v11741_v47 = vmul.f32 %v1328_v35, %v870_v53  ;;  %v1364_v53 = vadd.f32 %v11628_v33, %v1363_v32  ;;  %v11767_v1 = vmul.f32 %v1343_v55, %v11668_v8  ;;  %vm11775_vm14 = vmor %vm1365_vm11, %vm1366_vm9  ;;  %v10881_v8 = vld [vmem:[#allocation2] sm:$0xff]  ;;  %v4568_v32 = vpop.permute.xlu0 %4567 }
  0xe7   : > { %v1358_v16 = vsel %vm1355_vm12, %v1357_v49, %v1353_v61  ;;  %v1372_v29 = vor.u32 1.1754944e-38, %v1371_v48  ;;  %v11800_v6 = vpop.f32.mrf.mxu0  ;;  %v5234_v55 = vsel %vm805_vm1, %v10881_v8, %v11695_v17  ;;  %vm1381_vm9 = vweird.f32 %v11671_v60  ;;  %v10882_v8 = vld [vmem:[#allocation2 + $0xc] sm:$0xff] }
  0xe8   : > { %v1114_v57 = vpop.f32.mrf.mxu1  ;;  %v1368_v26 = vsel %vm11775_vm14, %v11628_v33, %v1364_v53  ;;  %v1378_v33 = vmul.f32 %v11671_v60, %v1377_v63  ;;  %v11809_v43 = vmul.f32 %v1358_v16, %v11692_v13  ;;  %vm11817_vm11 = vcmp.eq.f32.partialorder %v1384_v56, 8.507059e+37  ;;  %v11841_v16 = vpop.permute.xlu1 %4959 }
  0xe9   : > { %v1115_v62 = vadd.f32 %v11521_v59, %v1114_v57  ;;  %v1373_v49 = vsel %vm11789_vm15, %v1372_v29, %v1368_v26  ;;  %vm1395_vm12 = vweird.f32 %v11624_v30  ;;  %v1399_v13 = vand.u32 2147483647, %v11624_v30  ;;  %17451 = vst [vmem:[#allocation7_spill] sm:$0xff] %v11841_v16  ;;  %v10879_v29 = vld [vmem:[%s11315_s27 + $0x70] sm:$0xff] }
  0xea   : > { %vm17407_vm14 = vcmask 130048   ;;  %v1379_v61 = vadd.f32 %v11671_v60, %v1378_v33  ;;  %v11839_v56 = vadd.f32 %v11615_v15, %v11603_v0  ;;  %v438_v33 = vld [vmem:[#allocation2 + $0x30] sm:$0x1] }
  0xeb   : > { %v11070_v10 = vpop.eup %11069  ;;  %1862 = vrot.lane.b32.xlu0 %v1115_v62, %s11212_s22  ;;  %v10137_v9 = vmul.f32 -1.442695, %v1115_v62  ;;  %v11781_v62 = vadd.f32 %v11615_v15, %v11568_v41  ;;  %v11795_v41 = vadd.f32 %v11615_v15, %v11586_v51  ;;  %vm11859_vm2 = vcmp.eq.f32.partialorder %v1399_v13, 8.507059e+37 }
  0xec   : > { %v11698_v21 = vpop.eup %11071  ;;  %v11706_v45 = vadd.f32 1.0, %v11070_v10  ;;  %v11886_v13 = vsel %vm805_vm1, %v10882_v8, %v4568_v32  ;;  %v10862_v8 = vld [vmem:[%s11306_s24 + $0x68] sm:$0xff] }
  0xed   : > { %v1391_v50 = vmul.f32 %v11698_v21, %v11624_v30  ;;  %vm1396_vm15 = vweird.f32 %v11698_v21  ;;  %10045 = vmatmul.msk.bf16.gmra.mxu0 %vm805_vm1, %v10862_v8 }
  0xee   : > { %11073 = vrcp.f32 %v11706_v45  ;;  %vm11855_vm4 = vmor %vm1395_vm12, %vm1396_vm15 }
  0xef   : > { %11075 = vrcp.f32 %v11719_v20  ;;  %v1392_v3 = vsub.f32 1.0, %v1391_v50  ;;  %v432_v50 = vld [vmem:[#allocation2 + $0x18] sm:$0x1] }
  0xf0   : > { %v1117_v2 = vpop.f32.mrf.mxu1  ;;  %v433_v51 = vsel %vm11346_vm6, 0, %v432_v50  ;;  %v5575_v50 = vunpack.c.l.b16 %v5553_v11  ;;  %v1416_v11 = vand.u32 2147483648, %v11719_v20 }
  0xf1   : > { %v1118_v57 = vadd.f32 %v11521_v59, %v1117_v2  ;;  %v1393_v42 = vmul.f32 %v11698_v21, %v1392_v3  ;;  %v1387_v2 = vor.u32 1.1754944e-38, %v1386_v5  ;;  %434 = vst [vmem:[#allocation2 + $0x18] sm:$0x1] %v433_v51  ;;  %v5288_v3 = vsel %vm17407_vm14, %v5234_v55, %v11621_v27  ;;  %vm11847_vm14 = vmor %vm1380_vm8, %vm1381_vm9 }
  0xf2   : > { %v11834_v5 = vmul.f32 %v1373_v49, %v11704_v23  ;;  %v5325_v28 = vsel %vm5323_vm3, %v5288_v3, %v11588_v54  ;;  %v1431_v23 = vand.u32 2147483648, %v11706_v45  ;;  %vm1425_vm8 = vweird.f32 %v11706_v45 }
  0xf3   : > { %v10138_v7 = vmul.f32 -1.442695, %v1118_v57  ;;  %10125 = vmatmul.msk.bf16.gmra.mxu1 %vm805_vm1, %v10878_v46  ;;  %1864 = vrot.lane.b32.xlu1 %v1118_v57, %s11212_s22  ;;  %v1394_v17 = vadd.f32 %v11698_v21, %v1393_v42  ;;  %v11873_v42 = vpop.permute.xlu2 %5049 }
  0xf4   : > { %v11771_v10 = vpop.eup %11073  ;;  %17458 = vst [vmem:[#allocation8_spill] sm:$0xff] %v11873_v42 }
  0xf5   : > { %11077 = vpow2.f32 %v10138_v7  ;;  %v11797_v35 = vpop.eup %11075  ;;  %v1421_v25 = vmul.f32 %v11771_v10, %v11706_v45  ;;  %v1398_v30 = vsel %vm11855_vm4, %v11698_v21, %v1394_v17  ;;  %v439_v21 = vsel %vm11346_vm6, 0, %v438_v33  ;;  %v11889_v17 = vpop.f32.mrf.mxu0 }
  0xf6   : > { %11079 = vpow2.f32 %v10137_v9  ;;  %v1406_v58 = vmul.f32 %v11797_v35, %v11719_v20  ;;  %440 = vst [vmem:[#allocation2 + $0x30] sm:$0x1] %v439_v21  ;;  %vm17412_vm4 = vcmask 326656   ;;  %vm1411_vm9 = vweird.f32 %v11797_v35  ;;  %v11930_v33 = vpop.permute.xlu1 %4869 }
  0xf7   : > { %v1422_v7 = vsub.f32 1.0, %v1421_v25  ;;  %v1383_v25 = vsel %vm11847_vm14, %v11671_v60, %v1379_v61  ;;  %v5580_v60 = vpack.c.b16 %v5575_v50, %v5575_v50  ;;  %17461 = vst [vmem:[#allocation9_spill] sm:$0xff] %v11930_v33  ;;  %vm1410_vm14 = vweird.f32 %v11719_v20 }
  0xf8   : > { %v1119_v46 = vpop.f32.mrf.mxu1  ;;  %v1407_v26 = vsub.f32 1.0, %v1406_v58  ;;  %v1388_v61 = vsel %vm11817_vm11, %v1387_v2, %v1383_v25  ;;  %v1432_v21 = vor.u32 1.1754944e-38, %v1431_v23  ;;  %vm11952_vm15 = vmor %vm1410_vm14, %vm1411_vm9  ;;  %v12001_v25 = vadd.f32 %v11615_v15, %v11889_v17 }
  0xf9   : > { %v1120_v31 = vadd.f32 %v11521_v59, %v1119_v46  ;;  %v494_v46 = vld [vmem:[#allocation2 + $0x20] sm:$0x1]  ;;  %v1423_v49 = vmul.f32 %v11771_v10, %v1422_v7 }
  0xfa   : > { %v495_v54 = vsel %vm11358_vm7, 0, %v494_v46  ;;  %v1408_v3 = vmul.f32 %v11797_v35, %v1407_v26 }
  0xfb   : > { %v11078_v53 = vpop.eup %11077  ;;  %v10139_v48 = vmul.f32 -1.442695, %v1120_v31  ;;  %1866 = vrot.lane.b32.xlu2 %v1120_v31, %s11212_s22  ;;  %v1402_v31 = vor.u32 1.1754944e-38, %v1401_v4  ;;  %496 = vst [vmem:[#allocation2 + $0x20] sm:$0x1] %v495_v54  ;;  %v1424_v57 = vadd.f32 %v11771_v10, %v1423_v49  ;;  %v11948_v54 = vpop.permute.xlu2 %5227 }
  0xfc   : > { %v11829_v9 = vadd.f32 1.0, %v11078_v53  ;;  %v11080_v63 = vpop.eup %11079  ;;  %v4926_v53 = vpop.permute.xlu0 %4925  ;;  %v1409_v26 = vadd.f32 %v11797_v35, %v1408_v3  ;;  %17464 = vst [vmem:[#allocation10_spill] sm:$0xff] %v11948_v54 }
  0xfd   : > { %11081 = vpow2.f32 %v10139_v48  ;;  %v11878_v51 = vadd.f32 1.0, %v11080_v63  ;;  %v5362_v48 = vsel %vm17413_vm5, %v5325_v28, %v11783_v19  ;;  %v1403_v7 = vsel %vm11859_vm2, %v1402_v31, %v1398_v30  ;;  %v500_v31 = vld [vmem:[#allocation2 + $0x38] sm:$0x1]  ;;  %v899_v8 = vpop.f32.mrf.mxu0 }
  0xfe   : > { %11083 = vrcp.f32 %v11829_v9  ;;  %v1429_v63 = vand.u32 2147483647, %v11706_v45  ;;  %v5624_v19 = vsel %vm17411_vm0, %v5580_v60, 0  ;;  %vm1426_vm2 = vweird.f32 %v11771_v10 }
  0xff   : > { %11085 = vrcp.f32 %v11878_v51  ;;  %5629 = vmatpush.bf16.msrb.mxu0 %v5624_v19  ;;  %10992 = vmatpush.bf16.msra.mxu2 %v5624_v19  ;;  %vm11919_vm11 = vmor %vm1425_vm8, %vm1426_vm2  ;;  %v11925_v28 = vadd.f32 %v11615_v15, %v11652_v44  ;;  %v11933_v45 = vmul.f32 %v1388_v61, %v11734_v40  ;;  %v1414_v44 = vand.u32 2147483647, %v11719_v20 }
 0x100   : > { %v1122_v55 = vpop.f32.mrf.mxu1  ;;  %v1428_v46 = vsel %vm11919_vm11, %v11771_v10, %v1424_v57  ;;  %vm11938_vm12 = vcmp.eq.f32.partialorder %v1429_v63, 8.507059e+37  ;;  %v1413_v61 = vsel %vm11952_vm15, %v11797_v35, %v1409_v26  ;;  %v11971_v63 = vadd.f32 %v11615_v15, %v11723_v34 }
 0x101   : > { %v1123_v58 = vadd.f32 %v11521_v59, %v1122_v55  ;;  %v11945_v55 = vmul.f32 %v1403_v7, %v11781_v62  ;;  %v501_v62 = vsel %vm11358_vm7, 0, %v500_v31  ;;  %v1461_v23 = vand.u32 2147483648, %v11829_v9 }
 0x102   : > { %502 = vst [vmem:[#allocation2 + $0x38] sm:$0x1] %v501_v62  ;;  %vm1415_vm2 = vcmp.eq.f32.partialorder %v1414_v44, 8.507059e+37  ;;  %vm1455_vm8 = vweird.f32 %v11829_v9  ;;  %v497_v62 = vld [vmem:[#allocation2 + $0x2c] sm:$0x1]  ;;  %vm1440_vm15 = vweird.f32 %v11878_v51 }
 0x103   : > { %v11082_v32 = vpop.eup %11081  ;;  %v10140_v4 = vmul.f32 -1.442695, %v1123_v58  ;;  %10126 = vmatmul.msk.bf16.gmra.mxu1 %vm805_vm1, %v10879_v29  ;;  %1868 = vrot.lane.b32.xlu0 %v1123_v58, %s11212_s22  ;;  %v11928_v29 = vsel %vm17412_vm4, %v5362_v48, %v4926_v53  ;;  %v435_v58 = vld [vmem:[#allocation2 + $0x24] sm:$0x1]  ;;  %v1417_v53 = vor.u32 1.1754944e-38, %v1416_v11 }
 0x104   : > { %v11903_v27 = vpop.eup %11083  ;;  %v11906_v2 = vadd.f32 1.0, %v11082_v32  ;;  %v436_v48 = vsel %vm11346_vm6, 0, %v435_v58  ;;  %v1433_v32 = vsel %vm11938_vm12, %v1432_v21, %v1428_v46  ;;  %v11974_v19 = vpop.permute.xlu0 %5137  ;;  %vm2004_vm0 = vsmask.f32 4368 }
 0x105   : > { %11087 = vpow2.f32 %v10140_v4  ;;  %v1451_v0 = vmul.f32 %v11903_v27, %v11829_v9  ;;  %v11956_v60 = vpop.eup %11085  ;;  %v1459_v4 = vand.u32 2147483647, %v11829_v9  ;;  %17467 = vst [vmem:[#allocation11_spill] sm:$0xff] %v11974_v19  ;;  %v1418_v11 = vsel %vm1415_vm2, %v1417_v53, %v1413_v61  ;;  %v12019_v53 = vpop.permute.xlu1 %5047 }
 0x106   : > { %11089 = vrcp.f32 %v11906_v2  ;;  %437 = vst [vmem:[#allocation2 + $0x24] sm:$0x1] %v436_v48  ;;  %v11989_v26 = vmul.f32 %v1433_v32, %v11839_v56  ;;  %vm1456_vm9 = vweird.f32 %v11903_v27  ;;  %v1436_v56 = vmul.f32 %v11956_v60, %v11878_v51  ;;  %v902_v58 = vpop.f32.mrf.mxu0 }
 0x107   : > { %v1452_v50 = vsub.f32 1.0, %v1451_v0  ;;  %v11983_v0 = vadd.f32 %v11615_v15, %v11800_v6  ;;  %vm11994_vm11 = vcmp.eq.f32.partialorder %v1459_v4, 8.507059e+37  ;;  %v1474_v21 = vand.u32 2147483647, %v11906_v2  ;;  %vm12012_vm12 = vmor %vm1455_vm8, %vm1456_vm9  ;;  %17472 = vst [vmem:[#allocation12_spill] sm:$0xff] %v12019_v53 }
 0x108   : > { %v1124_v49 = vpop.f32.mrf.mxu1  ;;  %v12008_v31 = vmul.f32 %v1418_v11, %v11795_v41  ;;  %vm1470_vm14 = vweird.f32 %v11906_v2  ;;  %v1444_v9 = vand.u32 2147483647, %v11878_v51  ;;  %v1446_v48 = vand.u32 2147483648, %v11878_v51 }
 0x109   : > { %v1125_v40 = vadd.f32 %v11521_v59, %v1124_v49  ;;  %v1453_v20 = vmul.f32 %v11903_v27, %v1452_v50  ;;  %v10880_v50 = vld [vmem:[%s11315_s27 + $0x78] sm:$0xff]  ;;  %v1462_v49 = vor.u32 1.1754944e-38, %v1461_v23  ;;  %vm12039_vm8 = vcmp.eq.f32.partialorder %v1474_v21, 8.507059e+37  ;;  %s11215_s27 = smov 96  }
 0x10b   : > { %v11088_v3 = vpop.eup %11087  ;;  %v10141_v7 = vmul.f32 -1.442695, %v1125_v40  ;;  %1870 = vrot.lane.b32.xlu1 %v1125_v40, %s11212_s22  ;;  %v1454_v30 = vadd.f32 %v11903_v27, %v1453_v20  ;;  %v1476_v40 = vand.u32 2147483648, %v11906_v2  ;;  %v1437_v20 = vsub.f32 1.0, %v1436_v56 }
 0x10c   : > { %v11976_v57 = vpop.eup %11089  ;;  %v11978_v35 = vadd.f32 1.0, %v11088_v3 }
 0x10d   : > { %11091 = vpow2.f32 %v10141_v7  ;;  %v1466_v34 = vmul.f32 %v11976_v57, %v11906_v2  ;;  %v1458_v41 = vsel %vm12012_vm12, %v11903_v27, %v1454_v30  ;;  %vm1471_vm2 = vweird.f32 %v11976_v57  ;;  %v12031_v7 = vpop.permute.xlu2 %5229 }
 0x10e   : > { %11093 = vrcp.f32 %v11978_v35  ;;  %17473 = vst [vmem:[#allocation13_spill] sm:$0xff] %v12031_v7  ;;  %v498_v27 = vsel %vm11358_vm7, 0, %v497_v62  ;;  %v1477_v11 = vor.u32 1.1754944e-38, %v1476_v40  ;;  %v1438_v30 = vmul.f32 %v11956_v60, %v1437_v20  ;;  %vm12056_vm9 = vmor %vm1470_vm14, %vm1471_vm2 }
 0x10f   : > { %v1467_v46 = vsub.f32 1.0, %v1466_v34  ;;  %499 = vst [vmem:[#allocation2 + $0x2c] sm:$0x1] %v498_v27  ;;  %vm1485_vm12 = vweird.f32 %v11978_v35  ;;  %v1447_v2 = vor.u32 1.1754944e-38, %v1446_v48  ;;  %vm1441_vm14 = vweird.f32 %v11956_v60 }
 0x110   : > { %v1127_v44 = vpop.f32.mrf.mxu1 }
 0x111   : > { %v1128_v17 = vadd.f32 %v11521_v59, %v1127_v44  ;;  %v1468_v10 = vmul.f32 %v11976_v57, %v1467_v46  ;;  %v12049_v44 = vadd.f32 %v11615_v15, %v899_v8 }
 0x113   : > { %v11092_v61 = vpop.eup %11091  ;;  %v10142_v3 = vmul.f32 -1.442695, %v1128_v17  ;;  %10127 = vmatmul.msk.bf16.gmra.mxu1 %vm805_vm1, %v10880_v50  ;;  %1872 = vrot.lane.b32.xlu2 %v1128_v17, %s11212_s22  ;;  %v1469_v32 = vadd.f32 %v11976_v57, %v1468_v10  ;;  %v1463_v50 = vsel %vm11994_vm11, %v1462_v49, %v1458_v41  ;;  %v1489_v49 = vand.u32 2147483647, %v11978_v35 }
 0x114   : > { %v12035_v4 = vpop.eup %11093  ;;  %v12037_v23 = vadd.f32 1.0, %v11092_v61  ;;  %vm12062_vm11 = vcmp.eq.f32.partialorder %v1444_v9, 8.507059e+37  ;;  %v12071_v10 = vmul.f32 %v1463_v50, %v11971_v63  ;;  %v12090_v50 = vpop.permute.xlu1 %5139 }
 0x115   : > { %11095 = vpow2.f32 %v10142_v3  ;;  %v1845_v46 = vpop.permute.xlu0 %1844  ;;  %v1481_v56 = vmul.f32 %v12035_v4, %v11978_v35  ;;  %v1473_v8 = vsel %vm12056_vm9, %v11976_v57, %v1469_v32  ;;  %vm1486_vm2 = vweird.f32 %v12035_v4  ;;  %17482 = vst [vmem:[#allocation14_spill] sm:$0xff] %v12090_v50 }
 0x116   : > { %11097 = vrcp.f32 %v12037_v23  ;;  %v1940_v6 = vadd.f32 %v1845_v46, %v11700_v37  ;;  %v1439_v37 = vadd.f32 %v11956_v60, %v1438_v30  ;;  %v1491_v57 = vand.u32 2147483648, %v11978_v35  ;;  %vm12112_vm4 = vmor %vm1485_vm12, %vm1486_vm2 }
 0x117   : > { %v1482_v17 = vsub.f32 1.0, %v1481_v56  ;;  %v1478_v48 = vsel %vm12039_vm8, %v1477_v11, %v1473_v8  ;;  %vm12081_vm9 = vcmp.eq.f32.partialorder %v1489_v49, 8.507059e+37  ;;  %v12086_v3 = vadd.f32 %v11615_v15, %v902_v58  ;;  %vm12098_vm8 = vmor %vm1440_vm15, %vm1441_vm14 }
 0x118   : > { %v1972_v20 = vpack.c.bf16 %v1940_v6, %v1940_v6  ;;  %v1129_v41 = vpop.f32.mrf.mxu1  ;;  %v1504_v34 = vand.u32 2147483647, %v12037_v23  ;;  %v1506_v11 = vand.u32 2147483648, %v12037_v23  ;;  %v1443_v51 = vsel %vm12098_vm8, %v11956_v60, %v1439_v37 }
 0x119   : > { %v1130_v62 = vadd.f32 %v11521_v59, %v1129_v41  ;;  %v1483_v9 = vmul.f32 %v12035_v4, %v1482_v17  ;;  %vm17487_vm15 = vsmask.f32 7938  ;;  %vm17488_vm14 = vcmask 60416   ;;  %v2329_v17 = vld [vmem:[#allocation2 + $0x18] sm:$0xf] }
 0x11a   : > { %v2007_v61 = vshrl.u32 %v1972_v20, 16  ;;  %v2010_v6 = vshll.u32 %v1972_v20, 16  ;;  %vm12121_vm5 = vmand %vm17488_vm14, %vm17487_vm15  ;;  %v1492_v20 = vor.u32 1.1754944e-38, %v1491_v57  ;;  %v12132_v60 = vmul.f32 %v1478_v48, %v11983_v0  ;;  %v904_v57 = vpop.f32.mrf.mxu0 }
 0x11b   : > { %v11096_v32 = vpop.eup %11095  ;;  %v10143_v27 = vmul.f32 -1.442695, %v1130_v62  ;;  %1874 = vrot.lane.b32.xlu0 %v1130_v62, %s11212_s22  ;;  %v1484_v30 = vadd.f32 %v12035_v4, %v1483_v9  ;;  %vm1500_vm12 = vweird.f32 %v12037_v23  ;;  %v12153_v63 = vadd.f32 %v11615_v15, %v904_v57 }
 0x11c   : > { %v12102_v56 = vpop.eup %11097  ;;  %v12104_v58 = vadd.f32 1.0, %v11096_v32  ;;  %v12106_v21 = vrot.slane %v2007_v61, 7 }
 0x11d   : > { %11099 = vpow2.f32 %v10143_v27  ;;  %v1488_v35 = vsel %vm12112_vm4, %v12035_v4, %v1484_v30  ;;  %v1853_v41 = vpop.permute.xlu2 %1852  ;;  %v1847_v62 = vpop.permute.xlu0 %1846  ;;  %v1496_v9 = vmul.f32 %v12102_v56, %v12037_v23  ;;  %v1448_v27 = vsel %vm12062_vm11, %v1447_v2, %v1443_v51 }
 0x11e   : > { %11101 = vrcp.f32 %v12104_v58  ;;  %v2012_v37 = vor.u32 %v2010_v6, %v12106_v21  ;;  %v1944_v61 = vadd.f32 %v1853_v41, %v11834_v5  ;;  %v1941_v32 = vadd.f32 %v1847_v62, %v11741_v47 }
 0x11f   : > { %v1497_v4 = vsub.f32 1.0, %v1496_v9  ;;  %v1493_v0 = vsel %vm12081_vm9, %v1492_v20, %v1488_v35  ;;  %vm12144_vm4 = vcmp.eq.f32.partialorder %v1504_v34, 8.507059e+37  ;;  %v1507_v6 = vor.u32 1.1754944e-38, %v1506_v11 }
 0x120   : > { %v2330_v30 = vsel %vm12121_vm5, %v2012_v37, %v2329_v17  ;;  %v1132_v48 = vpop.f32.mrf.mxu1  ;;  %v1976_v5 = vpack.c.bf16 %v1944_v61, %v1944_v61  ;;  %v1973_v47 = vpack.c.bf16 %v1941_v32, %v1941_v32  ;;  %v2013_v2 = vrot.slane %v12106_v21, 4 }
 0x121   : > { %2331 = vst [vmem:[#allocation2 + $0x18] sm:$0xf] %v2330_v30  ;;  %v1133_v49 = vadd.f32 %v11521_v59, %v1132_v48  ;;  %v1498_v40 = vmul.f32 %v12102_v56, %v1497_v4  ;;  %vm1501_vm11 = vweird.f32 %v12102_v56  ;;  %v12156_v34 = vmul.f32 %v1448_v27, %v11925_v28  ;;  %v2343_v27 = vld [vmem:[#allocation2 + $0x30] sm:$0xf] }
 0x122   : > { %v12159_v11 = vmul.f32 %v1493_v0, %v12001_v25  ;;  %v2041_v17 = vshrl.u32 %v1976_v5, 16  ;;  %v2015_v35 = vshrl.u32 %v1973_v47, 16  ;;  %v1519_v59 = vand.u32 2147483647, %v12104_v58  ;;  %vm12175_vm2 = vmor %vm1500_vm12, %vm1501_vm11  ;;  %v2333_v0 = vld [vmem:[#allocation2 + $0x20] sm:$0x1] }
 0x123   : > { %v11100_v51 = vpop.eup %11099  ;;  %1876 = vrot.lane.b32.xlu1 %v1133_v49, %s11212_s22  ;;  %v10144_v41 = vmul.f32 -1.442695, %v1133_v49  ;;  %v1499_v62 = vadd.f32 %v12102_v56, %v1498_v40  ;;  %v1521_v28 = vand.u32 2147483648, %v12104_v58  ;;  %v2044_v37 = vshll.u32 %v1976_v5, 16 }
 0x124   : > { %v12163_v20 = vpop.eup %11101  ;;  %v12165_v21 = vadd.f32 1.0, %v11100_v51  ;;  %v12169_v9 = vrot.slane %v2041_v17, 7  ;;  %v2017_v25 = vrot.slane %v2015_v35, 7  ;;  %v2018_v61 = vshll.u32 %v1973_v47, 16 }
 0x125   : > { %v1855_v4 = vpop.permute.xlu2 %1854  ;;  %v1849_v57 = vpop.permute.xlu1 %1848  ;;  %vm17495_vm9 = vsmask.f32 256  ;;  %v1503_v23 = vsel %vm12175_vm2, %v12102_v56, %v1499_v62  ;;  %v1511_v51 = vmul.f32 %v12163_v20, %v12104_v58  ;;  %vm12203_vm15 = vcmp.eq.f32.partialorder %v1519_v59, 8.507059e+37  ;;  %v12218_v59 = vld [vmem:[%s17400_s5] ss:$0 sm:$0xff] }
 0x126   : > { %11103 = vrcp.f32 %v12165_v21  ;;  %vm12182_vm8 = vmor %vm17495_vm9, %vm2004_vm0  ;;  %v1945_v48 = vadd.f32 %v1855_v4, %v11933_v45  ;;  %v1942_v5 = vadd.f32 %v1849_v57, %v11767_v1  ;;  %v2046_v47 = vor.u32 %v2044_v37, %v12169_v9  ;;  %v2347_v4 = vld [vmem:[#allocation2 + $0x38] sm:$0x1] }
 0x127   : > { %v2020_v49 = vor.u32 %v2018_v61, %v2017_v25  ;;  %v2022_v40 = vrot.slane %v2017_v25, 4  ;;  %vm1515_vm0 = vweird.f32 %v12104_v58  ;;  %11105 = vpow2.f32 %v10144_v41  ;;  %v12208_v25 = vpop.f32.mrf.mxu0 }
 0x128   : > { %v1508_v17 = vsel %vm12144_vm4, %v1507_v6, %v1503_v23  ;;  %v1977_v35 = vpack.c.bf16 %v1945_v48, %v1945_v48  ;;  %v1974_v32 = vpack.c.bf16 %v1942_v5, %v1942_v5  ;;  %v1134_v56 = vpop.f32.mrf.mxu1  ;;  %v2344_v45 = vsel %vm12121_vm5, %v2046_v47, %v2343_v27 }
 0x129   : > { %v2021_v1 = vsel %vm12182_vm8, %v2013_v2, %v2020_v49  ;;  %v2334_v62 = vsel %vm11346_vm6, %v2022_v40, %v2333_v0  ;;  %2345 = vst [vmem:[#allocation2 + $0x30] sm:$0xf] %v2344_v45  ;;  %vm1516_vm14 = vweird.f32 %v12163_v20  ;;  %v1522_v6 = vor.u32 1.1754944e-38, %v1521_v28 }
 0x12a   : > { %v2049_v41 = vshrl.u32 %v1977_v35, 16  ;;  %v2024_v46 = vshrl.u32 %v1974_v32, 16  ;;  %v2047_v61 = vrot.slane %v12169_v9, 4  ;;  %vm17500_vm12 = vcmask 60416   ;;  %2335 = vst [vmem:[#allocation2 + $0x20] sm:$0x1] %v2334_v62  ;;  %vm1517_vm4 = vmor %vm1515_vm0, %vm1516_vm14 }
 0x12b   : > { %2332 = vst.msk [vmem:[#allocation2 + $0x1c] sm:$0xf] %vm17500_vm12, %v2021_v1  ;;  %v12213_v2 = vmul.f32 %v1508_v17, %v12049_v44  ;;  %v1135_v57 = vadd.f32 %v12218_v59, %v1134_v56  ;;  %v1512_v27 = vsub.f32 1.0, %v1511_v51  ;;  %v2052_v23 = vshll.u32 %v1977_v35, 16  ;;  %v2336_v44 = vld [vmem:[#allocation2 + $0x24] sm:$0xf]  ;;  %vm17501_vm11 = vmmov %vm17500_vm12 }
 0x12c   : > { %v12221_v0 = vpop.eup %11103  ;;  %v2051_v28 = vrot.slane %v2049_v41, 7  ;;  %v12223_v9 = vrot.slane %v2024_v46, 7  ;;  %v2027_v48 = vshll.u32 %v1974_v32, 16  ;;  %v1534_v51 = vand.u32 2147483647, %v12165_v21  ;;  %v10863_v62 = vld [vmem:[%s11306_s24 + $0x70] sm:$0xff]  ;;  %vm17504_vm12 = vmmov %vm17501_vm11 }
 0x12d   : > { %v10145_v5 = vmul.f32 -1.442695, %v1135_v57  ;;  %1878 = vrot.lane.b32.xlu2 %v1135_v57, %s11212_s22  ;;  %v1513_v47 = vmul.f32 %v12163_v20, %v1512_v27  ;;  %v1851_v49 = vpop.permute.xlu1 %1850  ;;  %v1526_v40 = vmul.f32 %v12221_v0, %v12165_v21  ;;  %v11106_v17 = vpop.eup %11105  ;;  %v1536_v1 = vand.u32 2147483648, %v12165_v21  ;;  %v12232_v32 = vld [vmem:[#allocation2 + $0x18] sm:$0xf]  ;;  %10046 = vmatmul.msk.bf16.gmra.mxu0 %vm805_vm1, %v10863_v62 }
 0x12e   : > { %v2054_v56 = vor.u32 %v2052_v23, %v2051_v28  ;;  %v2056_v45 = vrot.slane %v2051_v28, 4  ;;  %v2029_v35 = vor.u32 %v2027_v48, %v12223_v9  ;;  %v10938_v41 = vld [vmem:[%s17401_s6 + $0x18] sm:$0xff]  ;;  %v12238_v46 = vadd.f32 1.0, %v11106_v17 }
 0x12f   : > { %11107 = vpow2.f32 %v10145_v5  ;;  %v1514_v57 = vadd.f32 %v12163_v20, %v1513_v47  ;;  %v1943_v27 = vadd.f32 %v1851_v49, %v11809_v43  ;;  %v1527_v5 = vsub.f32 1.0, %v1526_v40  ;;  %10993 = vmatpush.bf16.msra.mxu2 %v10938_v41  ;;  %5630 = vmatpush.bf16.msrb.mxu0 %v10938_v41  ;;  %v12262_v40 = vld [vmem:[#allocation2 + $0x18] sm:$0xf] }
 0x130   : > { %v2055_v28 = vsel %vm12182_vm8, %v2047_v61, %v2054_v56  ;;  %v2348_v23 = vsel %vm11346_vm6, %v2056_v45, %v2347_v4  ;;  %v2337_v48 = vsel %vm12121_vm5, %v2029_v35, %v2336_v44  ;;  %v1137_v17 = vpop.f32.mrf.mxu1  ;;  %v10233_v47 = vrot.slane %v12232_v32, 9 }
 0x131   : > { %2346 = vst.msk [vmem:[#allocation2 + $0x34] sm:$0xf] %vm17501_vm11, %v2055_v28  ;;  %v1518_v43 = vsel %vm1517_vm4, %v12163_v20, %v1514_v57  ;;  %v1975_v61 = vpack.c.bf16 %v1943_v27, %v1943_v27  ;;  %v1138_v4 = vadd.f32 %v12218_v59, %v1137_v17  ;;  %11109 = vrcp.f32 %v12238_v46  ;;  %v909_v57 = vpop.f32.mrf.mxu0 }
 0x132   : > { %2349 = vst [vmem:[#allocation2 + $0x38] sm:$0x1] %v2348_v23  ;;  %v1523_v58 = vsel %vm12203_vm15, %v1522_v6, %v1518_v43  ;;  %v10917_v44 = vld [vmem:[#allocation2 + $0x18] sm:$0xff]  ;;  %v1528_v49 = vmul.f32 %v12221_v0, %v1527_v5  ;;  %vm1531_vm2 = vweird.f32 %v12221_v0  ;;  %v2030_v20 = vrot.slane %v12223_v9, 4 }
 0x133   : > { %2338 = vst [vmem:[#allocation2 + $0x24] sm:$0xf] %v2337_v48  ;;  %v2032_v56 = vshrl.u32 %v1975_v61, 16  ;;  %v10146_v45 = vmul.f32 -1.442695, %v1138_v4  ;;  %1880 = vrot.lane.b32.xlu0 %v1138_v4, %s11212_s22  ;;  %vm1530_vm9 = vweird.f32 %v12165_v21  ;;  %v12268_v35 = vmul.f32 %v1523_v58, %v12086_v3  ;;  %5015 = vrot.lane.b32.xlu1 %v10917_v44, %s11210_s18 }
 0x134   : > { %v1529_v37 = vadd.f32 %v12221_v0, %v1528_v49  ;;  %vm12272_vm0 = vcmp.eq.f32.partialorder %v1534_v51, 8.507059e+37  ;;  %v1537_v62 = vor.u32 1.1754944e-38, %v1536_v1  ;;  %v12276_v9 = vld [vmem:[#allocation2 + $0x1c] sm:$0xf]  ;;  %v2035_v21 = vshll.u32 %v1975_v61, 16  ;;  %vm1532_vm15 = vmor %vm1530_vm9, %vm1531_vm2 }
 0x135   : > { %v12278_v41 = vld [vmem:[#allocation2 + $0x1c] sm:$0xf]  ;;  %v11108_v27 = vpop.eup %11107  ;;  %v2034_v28 = vrot.slane %v2032_v56, 7  ;;  %11111 = vpow2.f32 %v10146_v45  ;;  %v12282_v3 = vld [vmem:[#allocation2 + $0x20] sm:$0x1]  ;;  %v3670_v51 = vrot.slane %v12276_v9, 5  ;;  %v12291_v5 = vadd.f32 %v11615_v15, %v12208_v25 }
 0x136   : > { %v12285_v23 = vadd.f32 1.0, %v11108_v27  ;;  %v2340_v48 = vld [vmem:[#allocation2 + $0x2c] sm:$0x1]  ;;  %v1533_v1 = vsel %vm1532_vm15, %v12221_v0, %v1529_v37  ;;  %v3007_v17 = vrot.slane %v12278_v41, 5  ;;  %v12293_v4 = vld [vmem:[#allocation2 + $0x20] sm:$0x1]  ;;  %v12297_v44 = vadd.f32 %v11615_v15, %v909_v57 }
 0x137   : > { %v2037_v43 = vor.u32 %v2035_v21, %v2034_v28  ;;  %v2039_v61 = vrot.slane %v2034_v28, 4  ;;  %v10162_v58 = vrot.slane %v12262_v40, 9  ;;  %v12299_v49 = vpop.eup %11109  ;;  %v1538_v0 = vsel %vm12272_vm0, %v1537_v62, %v1533_v1  ;;  %v10900_v57 = vld [vmem:[#allocation2 + $0x18] sm:$0xff] }
 0x138   : > { %v1139_v56 = vpop.f32.mrf.mxu1  ;;  %v3671_v45 = vsel %vm11373_vm10, %v10233_v47, %v3670_v51  ;;  %v3672_v25 = vrot.slane %v3670_v51, 4  ;;  %v3673_v37 = vrot.slane %v12282_v3, 5  ;;  %vm1545_vm14 = vweird.f32 %v12238_v46 }
 0x139   : > { %v2038_v27 = vsel %vm12182_vm8, %v2030_v20, %v2037_v43  ;;  %v2341_v28 = vsel %vm11346_vm6, %v2039_v61, %v2340_v48  ;;  %v12311_v15 = vadd.f32 %v12218_v59, %v1139_v56  ;;  %v3008_v6 = vsel %vm11373_vm10, %v10162_v58, %v3007_v17  ;;  %v444_v61 = vld [vmem:[#allocation2 + $0x48] sm:$0x1] }
 0x13a   : > { %11113 = vrcp.f32 %v12285_v23  ;;  %2339 = vst.msk [vmem:[#allocation2 + $0x28] sm:$0xf] %vm17504_vm12, %v2038_v27  ;;  %v3674_v47 = vsel %vm11373_vm10, %v3672_v25, %v3673_v37  ;;  %v3009_v20 = vrot.slane %v3007_v17, 4  ;;  %v3010_v62 = vrot.slane %v12293_v4, 5  ;;  %v10250_v25 = vld [vmem:[#allocation2 + $0x18] sm:$0xf] }
 0x13b   : > { %v11112_v21 = vpop.eup %11111  ;;  %2342 = vst [vmem:[#allocation2 + $0x2c] sm:$0x1] %v2341_v28  ;;  %v10147_v51 = vmul.f32 -1.442695, %v12311_v15  ;;  %v4873_v48 = vunpack.c.l.b16 %v3671_v45  ;;  %v4874_v1 = vunpack.c.l.b16 %v3674_v47  ;;  %4747 = vrot.lane.b32.xlu0 %v10900_v57, %s11205_s29  ;;  %v1541_v43 = vmul.f32 %v12299_v49, %v12238_v46  ;;  %v10251_v57 = vld [vmem:[#allocation2 + $0x1c] sm:$0xf] }
 0x13c   : > { %v12326_v58 = vmul.f32 %v1538_v0, %v12153_v63  ;;  %v3011_v17 = vsel %vm11373_vm10, %v3009_v20, %v3010_v62  ;;  %v4605_v56 = vunpack.c.l.b16 %v3008_v6  ;;  %vm1546_vm4 = vweird.f32 %v12299_v49  ;;  %v12331_v47 = vld [vmem:[#allocation2 + $0x20] sm:$0x1] }
 0x13d   : > { %11115 = vpow2.f32 %v10147_v51  ;;  %v4908_v37 = vpack.c.b16 %v4874_v1, %v4873_v48  ;;  %v4606_v45 = vunpack.c.l.b16 %v3011_v17  ;;  %v1542_v27 = vsub.f32 1.0, %v1541_v43  ;;  %v1861_v28 = vpop.permute.xlu2 %1860  ;;  %vm12354_vm11 = vmor %vm1545_vm14, %vm1546_vm4 }
 0x13e   : > { %v12333_v12 = vadd.f32 1.0, %v11112_v21  ;;  %v1549_v63 = vand.u32 2147483647, %v12238_v46  ;;  %v1551_v0 = vand.u32 2147483648, %v12238_v46  ;;  %v445_v6 = vsel %vm11346_vm6, 0, %v444_v61 }
 0x13f   : > { %4927 = vrot.lane.b32.xlu2 %v4908_v37, %s11207_s11  ;;  %v4639_v20 = vpack.c.b16 %v4606_v45, %v4605_v56  ;;  %v1543_v62 = vmul.f32 %v12299_v49, %v1542_v27  ;;  %446 = vst [vmem:[#allocation2 + $0x48] sm:$0x1] %v445_v6  ;;  %v1948_v51 = vadd.f32 %v1861_v28, %v11989_v26  ;;  %v3846_v48 = vshrl.u32 %v10250_v25, 16 }
 0x140   : > { %v12342_v1 = vpop.eup %11113  ;;  %v1142_v21 = vpop.f32.mrf.mxu1  ;;  %v3849_v43 = vshll.u32 %v10250_v25, 16  ;;  %v3855_v17 = vshll.u32 %v10251_v57, 16  ;;  %v3859_v7 = vshrl.u32 %v10251_v57, 16  ;;  %v3865_v50 = vshll.u32 %v12331_v47, 16 }
 0x141   : > { %4659 = vrot.lane.b32.xlu1 %v4639_v20, %s11204_s28  ;;  %v1544_v61 = vadd.f32 %v12299_v49, %v1543_v62  ;;  %v1980_v37 = vpack.c.bf16 %v1948_v51, %v1948_v51  ;;  %v12348_v56 = vadd.f32 %v12218_v59, %v1142_v21  ;;  %v3848_v45 = vrot.slane %v3846_v48, 4 }
 0x142   : > { %vm1550_vm2 = vcmp.eq.f32.partialorder %v1549_v63, 8.507059e+37  ;;  %v3851_v27 = vrot.slane %v3849_v43, 5  ;;  %v3857_v28 = vrot.slane %v3855_v17, 5  ;;  %v3861_v6 = vrot.slane %v3859_v7, 4 }
 0x143   : > { %v11116_v20 = vpop.eup %11115  ;;  %v1548_v62 = vsel %vm12354_vm11, %v12299_v49, %v1544_v61  ;;  %v1552_v51 = vor.u32 1.1754944e-38, %v1551_v0  ;;  %v2075_v21 = vshrl.u32 %v1980_v37, 16  ;;  %v10148_v48 = vmul.f32 -1.442695, %v12348_v56 }
 0x144   : > { %v2078_v42 = vshll.u32 %v1980_v37, 16  ;;  %v3852_v16 = vor.u32 %v3851_v27, %v3848_v45  ;;  %v3862_v46 = vor.u32 %v3861_v6, %v3857_v28  ;;  %v3867_v33 = vrot.slane %v3865_v50, 5  ;;  %v441_v27 = vld [vmem:[#allocation2 + $0x3c] sm:$0x1] }
 0x145   : > { %v12362_v54 = vadd.f32 1.0, %v11116_v20  ;;  %v1553_v19 = vsel %vm1550_vm2, %v1552_v51, %v1548_v62  ;;  %v12364_v63 = vrot.slane %v2075_v21, 7  ;;  %11117 = vpow2.f32 %v10148_v48 }
 0x146   : > { %v2357_v7 = vld [vmem:[#allocation2 + $0x48] sm:$0xf]  ;;  %v3853_v43 = vrot.slane %v3852_v16, 4  ;;  %v3863_v17 = vrot.slane %v3862_v46, 4  ;;  %v10304_v53 = vrot.slane %v10250_v25, 9  ;;  %v4333_v26 = vrot.slane %v10251_v57, 5 }
 0x147   : > { %11119 = vrcp.f32 %v12333_v12  ;;  %v2080_v49 = vor.u32 %v2078_v42, %v12364_v63  ;;  %v4336_v0 = vrot.slane %v12331_v47, 5  ;;  %v1556_v50 = vmul.f32 %v12342_v1, %v12285_v23 }
 0x148   : > { %v3858_v61 = vsel %vm11386_vm13, %v3853_v43, %v3857_v28  ;;  %v3868_v37 = vsel %vm11386_vm13, %v3863_v17, %v3867_v33  ;;  %v4334_v16 = vsel %vm11373_vm10, %v10304_v53, %v4333_v26  ;;  %v4335_v25 = vrot.slane %v4333_v26, 4  ;;  %v1857_v28 = vpop.permute.xlu0 %1856 }
 0x149   : > { %v12378_v57 = vmul.f32 %v1553_v19, %v12291_v5  ;;  %v2358_v42 = vsel %vm12121_vm5, %v2080_v49, %v2357_v7  ;;  %v5051_v47 = vunpack.c.l.b16 %v3858_v61  ;;  %v5052_v45 = vunpack.c.l.b16 %v3868_v37  ;;  %1882 = vrot.lane.b32.xlu1 %v12311_v15, %s11212_s22  ;;  %v1144_v5 = vpop.f32.mrf.mxu1 }
 0x14a   : > { %11121 = vrcp.f32 %v12362_v54  ;;  %2359 = vst [vmem:[#allocation2 + $0x48] sm:$0xf] %v2358_v42  ;;  %v4337_v53 = vsel %vm11373_vm10, %v4335_v25, %v4336_v0  ;;  %v1557_v19 = vsub.f32 1.0, %v1556_v50  ;;  %v5141_v62 = vunpack.c.l.b16 %v4334_v16 }
 0x14b   : > { %v11118_v6 = vpop.eup %11117  ;;  %v5087_v20 = vpack.c.b16 %v5052_v45, %v5051_v47  ;;  %v5142_v51 = vunpack.c.l.b16 %v4337_v53  ;;  %v1564_v21 = vand.u32 2147483647, %v12285_v23  ;;  %v1566_v48 = vand.u32 2147483648, %v12285_v23 }
 0x14c   : > { %v1558_v15 = vmul.f32 %v12342_v1, %v1557_v19  ;;  %v442_v46 = vsel %vm11346_vm6, 0, %v441_v27  ;;  %v1946_v7 = vadd.f32 %v1857_v28, %v11945_v55  ;;  %vm1560_vm9 = vweird.f32 %v12285_v23 }
 0x14d   : > { %v12394_v43 = vpop.eup %11119  ;;  %5105 = vrot.lane.b32.xlu2 %v5087_v20, %s11209_s17  ;;  %v5177_v17 = vpack.c.b16 %v5142_v51, %v5141_v62  ;;  %vm1561_vm0 = vweird.f32 %v12342_v1  ;;  %443 = vst [vmem:[#allocation2 + $0x3c] sm:$0x1] %v442_v46  ;;  %v12400_v26 = vadd.f32 %v12218_v59, %v1144_v5  ;;  %v12402_v49 = vadd.f32 1.0, %v11118_v6 }
 0x14e   : > { %v1559_v0 = vadd.f32 %v12342_v1, %v1558_v15  ;;  %v1978_v50 = vpack.c.bf16 %v1946_v7, %v1946_v7  ;;  %v3200_v55 = vshrl.u32 %v12232_v32, 16  ;;  %v3203_v37 = vshll.u32 %v12232_v32, 16  ;;  %vm12413_vm15 = vmor %vm1560_vm9, %vm1561_vm0 }
 0x14f   : > { %5195 = vrot.lane.b32.xlu0 %v5177_v17, %s11211_s21  ;;  %v10149_v61 = vmul.f32 -1.442695, %v12400_v26  ;;  %v3209_v23 = vshll.u32 %v12276_v9, 16  ;;  %v3213_v16 = vshrl.u32 %v12276_v9, 16  ;;  %vm12417_vm14 = vcmp.eq.f32.partialorder %v1564_v21, 8.507059e+37 }
 0x150   : > { %v12411_v25 = vpop.eup %11121  ;;  %v1567_v45 = vor.u32 1.1754944e-38, %v1566_v48  ;;  %v2058_v27 = vshrl.u32 %v1978_v50, 16  ;;  %v3202_v28 = vrot.slane %v3200_v55, 4  ;;  %v1563_v32 = vsel %vm12413_vm15, %v12342_v1, %v1559_v0 }
 0x151   : > { %11123 = vpow2.f32 %v10149_v61  ;;  %v3205_v53 = vrot.slane %v3203_v37, 5  ;;  %v3211_v9 = vrot.slane %v3209_v23, 5  ;;  %v2061_v5 = vshll.u32 %v1978_v50, 16  ;;  %v912_v61 = vpop.f32.mrf.mxu0 }
 0x152   : > { %v12424_v19 = vrot.slane %v2058_v27, 7  ;;  %v3215_v6 = vrot.slane %v3213_v16, 4  ;;  %v3219_v20 = vshll.u32 %v12282_v3, 16  ;;  %v2551_v51 = vshrl.u32 %v12262_v40, 16 }
 0x153   : > { %v3206_v62 = vor.u32 %v3205_v53, %v3202_v28  ;;  %v2554_v21 = vshll.u32 %v12262_v40, 16  ;;  %v2560_v15 = vshll.u32 %v12278_v41, 16  ;;  %v1568_v48 = vsel %vm12417_vm14, %v1567_v45, %v1563_v32 }
 0x154   : > { %v2350_v1 = vld [vmem:[#allocation2 + $0x3c] sm:$0xf]  ;;  %v2063_v46 = vor.u32 %v2061_v5, %v12424_v19  ;;  %v3216_v7 = vor.u32 %v3215_v6, %v3211_v9  ;;  %v3221_v17 = vrot.slane %v3219_v20, 5  ;;  %v2553_v3 = vrot.slane %v2551_v51, 4  ;;  %v503_v20 = vld [vmem:[#allocation2 + $0x44] sm:$0x1] }
 0x155   : > { %1884 = vrot.lane.b32.xlu2 %v12348_v56, %s11212_s22  ;;  %v3207_v0 = vrot.slane %v3206_v62, 4  ;;  %v2556_v50 = vrot.slane %v2554_v21, 5  ;;  %v2562_v55 = vrot.slane %v2560_v15, 5  ;;  %v2564_v23 = vshrl.u32 %v12278_v41, 16  ;;  %v1859_v21 = vpop.permute.xlu1 %1858 }
 0x156   : > { %v2351_v40 = vsel %vm12121_vm5, %v2063_v46, %v2350_v1  ;;  %v3217_v37 = vrot.slane %v3216_v7, 4  ;;  %v2570_v16 = vshll.u32 %v12293_v4, 16  ;;  %11125 = vrcp.f32 %v12402_v49  ;;  %v12452_v4 = vld [vmem:[%s17398_s3] ss:$0 sm:$0xff]  ;;  %v1147_v46 = vpop.f32.mrf.mxu1  ;;  %v12462_v7 = vld [vmem:[#allocation2 + $0x24] sm:$0xf] }
 0x157   : > { %v11124_v42 = vpop.eup %11123  ;;  %2352 = vst [vmem:[#allocation2 + $0x3c] sm:$0xf] %v2351_v40  ;;  %v3212_v56 = vsel %vm11386_vm13, %v3207_v0, %v3211_v9  ;;  %v2557_v47 = vor.u32 %v2556_v50, %v2553_v3  ;;  %v1571_v45 = vmul.f32 %v12394_v43, %v12333_v12  ;;  %v12445_v27 = vmul.f32 %v1568_v48, %v12297_v44 }
 0x158   : > { %v3222_v28 = vsel %vm11386_vm13, %v3217_v37, %v3221_v17  ;;  %v2566_v41 = vrot.slane %v2564_v23, 4  ;;  %v913_v32 = vadd.f32 %v12452_v4, %v912_v61  ;;  %v4783_v53 = vunpack.c.l.b16 %v3212_v56  ;;  %v12464_v17 = vld [vmem:[#allocation2 + $0x28] sm:$0xf] }
 0x159   : > { %v4784_v9 = vunpack.c.l.b16 %v3222_v28  ;;  %v2558_v5 = vrot.slane %v2557_v47, 4  ;;  %v1572_v6 = vsub.f32 1.0, %v1571_v45  ;;  %v12455_v62 = vadd.f32 1.0, %v11124_v42  ;;  %v12478_v42 = vld [vmem:[#allocation2 + $0x2c] sm:$0x1] }
 0x15a   : > { %v2567_v44 = vor.u32 %v2566_v41, %v2562_v55  ;;  %v2572_v51 = vrot.slane %v2570_v16, 5  ;;  %vm1575_vm12 = vweird.f32 %v12333_v12  ;;  %vm1576_vm4 = vweird.f32 %v12394_v43 }
 0x15b   : > { %v4818_v15 = vpack.c.b16 %v4784_v9, %v4783_v53  ;;  %v2563_v48 = vsel %vm11386_vm13, %v2558_v5, %v2562_v55  ;;  %v1573_v1 = vmul.f32 %v12394_v43, %v1572_v6  ;;  %v1579_v3 = vand.u32 2147483647, %v12333_v12  ;;  %vm1577_vm11 = vmor %vm1575_vm12, %vm1576_vm4 }
 0x15c   : > { %v2568_v0 = vrot.slane %v2567_v44, 4  ;;  %v1581_v50 = vand.u32 2147483648, %v12333_v12  ;;  %v504_v61 = vsel %vm11358_vm7, 0, %v503_v20  ;;  %v12470_v40 = vpop.eup %11125  ;;  %v4515_v55 = vunpack.c.l.b16 %v2563_v48 }
 0x15d   : > { %4837 = vrot.lane.b32.xlu0 %v4818_v15, %s11208_s12  ;;  %v1574_v37 = vadd.f32 %v12394_v43, %v1573_v1  ;;  %505 = vst [vmem:[#allocation2 + $0x44] sm:$0x1] %v504_v61  ;;  %v1947_v23 = vadd.f32 %v1859_v21, %v12008_v31  ;;  %v12476_v16 = vadd.f32 %v12218_v59, %v1147_v46  ;;  %v10163_v45 = vrot.slane %v12462_v7, 9  ;;  %v509_v21 = vld [vmem:[#allocation2 + $0x5c] sm:$0x1] }
 0x15e   : > { %v2573_v56 = vsel %vm11386_vm13, %v2568_v0, %v2572_v51  ;;  %v1582_v47 = vor.u32 1.1754944e-38, %v1581_v50  ;;  %v3014_v28 = vrot.slane %v12464_v17, 5  ;;  %vm1580_vm2 = vcmp.eq.f32.partialorder %v1579_v3, 8.507059e+37  ;;  %v10918_v3 = vld [vmem:[#allocation2 + $0x24] sm:$0xff]  ;;  %v914_v50 = vpop.f32.mrf.mxu0 }
 0x15f   : > { %v4516_v41 = vunpack.c.l.b16 %v2573_v56  ;;  %v1578_v31 = vsel %vm1577_vm11, %v12394_v43, %v1574_v37  ;;  %v1979_v53 = vpack.c.bf16 %v1947_v23, %v1947_v23  ;;  %v10150_v9 = vmul.f32 -1.442695, %v12476_v16  ;;  %v12500_v37 = vld [vmem:[#allocation2 + $0x24] sm:$0xf] }
 0x160   : > { %v3015_v5 = vsel %vm11373_vm10, %v10163_v45, %v3014_v28  ;;  %v3016_v6 = vrot.slane %v3014_v28, 4  ;;  %v3017_v20 = vrot.slane %v12478_v42, 5  ;;  %11127 = vrcp.f32 %v12455_v62 }
 0x161   : > { %v4549_v12 = vpack.c.b16 %v4516_v41, %v4515_v55  ;;  %v1583_v44 = vsel %vm1580_vm2, %v1582_v47, %v1578_v31  ;;  %v2066_v51 = vshrl.u32 %v1979_v53, 16  ;;  %v2064_v15 = vrot.slane %v12424_v19, 4  ;;  %v1867_v55 = vpop.permute.xlu2 %1866 }
 0x162   : > { %v2069_v48 = vshll.u32 %v1979_v53, 16  ;;  %11129 = vpow2.f32 %v10150_v9  ;;  %v3018_v43 = vsel %vm11373_vm10, %v3016_v6, %v3017_v20  ;;  %v4607_v46 = vunpack.c.l.b16 %v3015_v5  ;;  %v1149_v9 = vpop.f32.mrf.mxu1  ;;  %v12509_v5 = vld [vmem:[#allocation2 + $0x28] sm:$0xf] }
 0x163   : > { %4569 = vrot.lane.b32.xlu1 %v4549_v12, %s11206_s30  ;;  %v2068_v1 = vrot.slane %v2066_v51, 7  ;;  %v4608_v0 = vunpack.c.l.b16 %v3018_v43  ;;  %v1586_v61 = vmul.f32 %v12411_v25, %v12362_v54  ;;  %v12502_v23 = vmul.f32 %v1583_v44, %v913_v32  ;;  %v12517_v12 = vld [vmem:[#allocation2 + $0x28] sm:$0xf]  ;;  %v12530_v43 = vld [vmem:[#allocation2 + $0x24] sm:$0xf] }
 0x164   : > { %v2354_v19 = vld [vmem:[#allocation2 + $0x44] sm:$0x1]  ;;  %v1594_v56 = vand.u32 2147483647, %v12362_v54  ;;  %v1596_v47 = vand.u32 2147483648, %v12362_v54  ;;  %v510_v45 = vsel %vm11358_vm7, 0, %v509_v21  ;;  %v915_v32 = vadd.f32 %v12452_v4, %v914_v50 }
 0x165   : > { %v2071_v28 = vor.u32 %v2069_v48, %v2068_v1  ;;  %v2073_v41 = vrot.slane %v2068_v1, 4  ;;  %v4640_v31 = vpack.c.b16 %v4608_v0, %v4607_v46  ;;  %5017 = vrot.lane.b32.xlu0 %v10918_v3, %s11210_s18  ;;  %v1587_v53 = vsub.f32 1.0, %v1586_v61  ;;  %511 = vst [vmem:[#allocation2 + $0x5c] sm:$0x1] %v510_v45  ;;  %v10901_v46 = vld [vmem:[#allocation2 + $0x24] sm:$0xff] }
 0x166   : > { %vm1590_vm9 = vweird.f32 %v12362_v54  ;;  %v1951_v6 = vadd.f32 %v1867_v55, %v12132_v60  ;;  %v12515_v20 = vadd.f32 %v12218_v59, %v1149_v9  ;;  %v12519_v44 = vpop.eup %11127  ;;  %vm1591_vm0 = vweird.f32 %v12411_v25  ;;  %v12528_v60 = vld [vmem:[#allocation2 + $0x2c] sm:$0x1] }
 0x167   : > { %v2072_v51 = vsel %vm12182_vm8, %v2064_v15, %v2071_v28  ;;  %v2355_v21 = vsel %vm11346_vm6, %v2073_v41, %v2354_v19  ;;  %4661 = vrot.lane.b32.xlu2 %v4640_v31, %s11204_s28  ;;  %v1588_v48 = vmul.f32 %v12411_v25, %v1587_v53  ;;  %vm17511_vm15 = vcmask 60416   ;;  %vm1592_vm12 = vmor %vm1590_vm9, %vm1591_vm0  ;;  %v12552_v31 = vld [vmem:[#allocation2 + $0x2c] sm:$0x1] }
 0x168   : > { %v11130_v1 = vpop.eup %11129  ;;  %2353 = vst.msk [vmem:[#allocation2 + $0x40] sm:$0xf] %vm17511_vm15, %v2072_v51  ;;  %vm12533_vm14 = vcmp.eq.f32.partialorder %v1594_v56, 8.507059e+37  ;;  %v12537_v15 = vpack.c.bf16 %v1951_v6, %v1951_v6  ;;  %v10305_v3 = vrot.slane %v12500_v37, 9  ;;  %v4340_v50 = vrot.slane %v12509_v5, 5  ;;  %vm17520_vm0 = vmmov %vm17511_vm15 }
 0x169   : > { %2356 = vst [vmem:[#allocation2 + $0x44] sm:$0x1] %v2355_v21  ;;  %v1589_v61 = vadd.f32 %v12411_v25, %v1588_v48  ;;  %v1597_v55 = vor.u32 1.1754944e-38, %v1596_v47  ;;  %v10151_v19 = vmul.f32 -1.442695, %v12515_v20  ;;  %v3677_v45 = vrot.slane %v12517_v12, 5 }
 0x16a   : > { %v2100_v56 = vshrl.u32 %v12537_v15, 16  ;;  %v4341_v28 = vsel %vm11373_vm10, %v10305_v3, %v4340_v50  ;;  %v4343_v41 = vrot.slane %v12528_v60, 5  ;;  %v10234_v47 = vrot.slane %v12530_v43, 9 }
 0x16b   : > { %v12555_v53 = vadd.f32 1.0, %v11130_v1  ;;  %4749 = vrot.lane.b32.xlu1 %v10901_v46, %s11205_s29  ;;  %v1593_v9 = vsel %vm1592_vm12, %v12411_v25, %v1589_v61  ;;  %v4342_v6 = vrot.slane %v4340_v50, 4  ;;  %v3679_v3 = vrot.slane %v3677_v45, 4 }
 0x16c   : > { %v1598_v51 = vsel %vm12533_vm14, %v1597_v55, %v1593_v9  ;;  %v12562_v21 = vrot.slane %v2100_v56, 7  ;;  %v3678_v48 = vsel %vm11373_vm10, %v10234_v47, %v3677_v45  ;;  %v2368_v33 = vld [vmem:[#allocation2 + $0x5c] sm:$0x1]  ;;  %11131 = vpow2.f32 %v10151_v19  ;;  %v917_v56 = vpop.f32.mrf.mxu0  ;;  %v506_v47 = vld [vmem:[#allocation2 + $0x50] sm:$0x1] }
 0x16d   : > { %v4344_v1 = vsel %vm11373_vm10, %v4342_v6, %v4343_v41  ;;  %v5143_v46 = vunpack.c.l.b16 %v4341_v28  ;;  %1886 = vrot.lane.b32.xlu0 %v12400_v26, %s11212_s22  ;;  %v3680_v25 = vrot.slane %v12552_v31, 5  ;;  %v12571_v50 = vmul.f32 %v1598_v51, %v915_v32  ;;  %v1863_v26 = vpop.permute.xlu0 %1862 }
 0x16e   : > { %v2107_v0 = vrot.slane %v12562_v21, 4  ;;  %v5144_v61 = vunpack.c.l.b16 %v4344_v1  ;;  %v4875_v55 = vunpack.c.l.b16 %v3678_v48  ;;  %v12577_v45 = vadd.f32 %v12452_v4, %v917_v56  ;;  %v1152_v1 = vpop.f32.mrf.mxu1 }
 0x16f   : > { %17514 = vst [vmem:[#allocation15_spill] sm:$0xff] %v12571_v50  ;;  %v3681_v19 = vsel %vm11373_vm10, %v3679_v3, %v3680_v25  ;;  %v1601_v28 = vmul.f32 %v12470_v40, %v12402_v49  ;;  %vm1605_vm4 = vweird.f32 %v12402_v49  ;;  %v1609_v6 = vand.u32 2147483647, %v12402_v49 }
 0x170   : > { %v2369_v32 = vsel %vm11346_vm6, %v2107_v0, %v2368_v33  ;;  %v5178_v41 = vpack.c.b16 %v5144_v61, %v5143_v46  ;;  %v4876_v9 = vunpack.c.l.b16 %v3681_v19  ;;  %vm1606_vm11 = vweird.f32 %v12470_v40 }
 0x171   : > { %2370 = vst [vmem:[#allocation2 + $0x5c] sm:$0x1] %v2369_v32  ;;  %v1602_v51 = vsub.f32 1.0, %v1601_v28  ;;  %v1611_v48 = vand.u32 2147483648, %v12402_v49  ;;  %v507_v3 = vsel %vm11358_vm7, 0, %v506_v47  ;;  %11133 = vrcp.f32 %v12555_v53  ;;  %vm12606_vm9 = vmor %vm1605_vm4, %vm1606_vm11 }
 0x172   : > { %5197 = vrot.lane.b32.xlu2 %v5178_v41, %s11211_s21  ;;  %v4909_v25 = vpack.c.b16 %v4876_v9, %v4875_v55  ;;  %508 = vst [vmem:[#allocation2 + $0x50] sm:$0x1] %v507_v3  ;;  %v1949_v33 = vadd.f32 %v1863_v26, %v12156_v34  ;;  %v12593_v46 = vadd.f32 %v12218_v59, %v1152_v1  ;;  %v11132_v0 = vpop.eup %11131  ;;  %vm12596_vm2 = vcmp.eq.f32.partialorder %v1609_v6, 8.507059e+37  ;;  %v12613_v41 = vld [vmem:[#allocation2 + $0x30] sm:$0xf]  ;;  %vm17526_vm11 = vmmov %vm17520_vm0 }
 0x173   : > { %v1603_v61 = vmul.f32 %v12470_v40, %v1602_v51  ;;  %v1612_v47 = vor.u32 1.1754944e-38, %v1611_v48  ;;  %v2575_v19 = vshrl.u32 %v12462_v7, 16  ;;  %v2578_v26 = vshll.u32 %v12462_v7, 16  ;;  %v12618_v48 = vld [vmem:[#allocation2 + $0x34] sm:$0xf] }
 0x174   : > { %4929 = vrot.lane.b32.xlu1 %v4909_v25, %s11207_s11  ;;  %v1981_v55 = vpack.c.bf16 %v1949_v33, %v1949_v33  ;;  %v10152_v28 = vmul.f32 -1.442695, %v12593_v46  ;;  %v2584_v32 = vshll.u32 %v12464_v17, 16  ;;  %v2588_v51 = vshrl.u32 %v12464_v17, 16  ;;  %v12622_v33 = vld [vmem:[#allocation2 + $0x38] sm:$0x1] }
 0x175   : > { %v1604_v9 = vadd.f32 %v12470_v40, %v1603_v61  ;;  %v2577_v6 = vrot.slane %v2575_v19, 4  ;;  %v2594_v49 = vshll.u32 %v12478_v42, 16  ;;  %v12620_v3 = vadd.f32 1.0, %v11132_v0 }
 0x176   : > { %v2083_v1 = vshrl.u32 %v1981_v55, 16  ;;  %11135 = vpow2.f32 %v10152_v28  ;;  %v2580_v25 = vrot.slane %v2578_v26, 5  ;;  %v2086_v54 = vshll.u32 %v1981_v55, 16 }
 0x177   : > { %v1608_v7 = vsel %vm12606_vm9, %v12470_v40, %v1604_v9  ;;  %v2586_v61 = vrot.slane %v2584_v32, 5  ;;  %v2590_v19 = vrot.slane %v2588_v51, 4  ;;  %v12627_v38 = vpop.eup %11133  ;;  %v2596_v39 = vrot.slane %v2594_v49, 5 }
 0x178   : > { %v1613_v17 = vsel %vm12596_vm2, %v1612_v47, %v1608_v7  ;;  %v2085_v42 = vrot.slane %v2083_v1, 7  ;;  %v2581_v0 = vor.u32 %v2580_v25, %v2577_v6  ;;  %v10164_v26 = vrot.slane %v12613_v41, 9 }
 0x179   : > { %v2361_v36 = vld [vmem:[#allocation2 + $0x50] sm:$0x1]  ;;  %v2591_v28 = vor.u32 %v2590_v19, %v2586_v61  ;;  %v3021_v50 = vrot.slane %v12618_v48, 5  ;;  %v3024_v34 = vrot.slane %v12622_v33, 5  ;;  %v3224_v9 = vshrl.u32 %v12530_v43, 16 }
 0x17a   : > { %v2088_v40 = vor.u32 %v2086_v54, %v2085_v42  ;;  %v2090_v55 = vrot.slane %v2085_v42, 4  ;;  %v2582_v32 = vrot.slane %v2581_v0, 4  ;;  %v3227_v6 = vshll.u32 %v12530_v43, 16  ;;  %v10937_v0 = vld [vmem:[%s17401_s6 + $0x10] sm:$0xff] }
 0x17b   : > { %v2592_v51 = vrot.slane %v2591_v28, 4  ;;  %v3022_v56 = vsel %vm11373_vm10, %v10164_v26, %v3021_v50  ;;  %v3023_v47 = vrot.slane %v3021_v50, 4  ;;  %v17519_v1 = vrot.slane %v12364_v63, 4  ;;  %5631 = vmatpush.bf16.msrb.mxu0 %v10937_v0  ;;  %10994 = vmatpush.bf16.msra.mxu2 %v10937_v0 }
 0x17c   : > { %v11136_v49 = vpop.eup %11135  ;;  %v2362_v54 = vsel %vm11346_vm6, %v2090_v55, %v2361_v36  ;;  %v2587_v7 = vsel %vm11386_vm13, %v2582_v32, %v2586_v61  ;;  %v4609_v19 = vunpack.c.l.b16 %v3022_v56  ;;  %v3226_v61 = vrot.slane %v3224_v9, 4 }
 0x17d   : > { %v2089_v25 = vsel %vm12182_vm8, %v17519_v1, %v2088_v40  ;;  %v12647_v42 = vadd.f32 1.0, %v11136_v49  ;;  %v2597_v43 = vsel %vm11386_vm13, %v2592_v51, %v2596_v39  ;;  %v4517_v50 = vunpack.c.l.b16 %v2587_v7  ;;  %2363 = vst [vmem:[#allocation2 + $0x50] sm:$0x1] %v2362_v54  ;;  %v919_v51 = vpop.f32.mrf.mxu0 }
 0x17e   : > { %2360 = vst.msk [vmem:[#allocation2 + $0x4c] sm:$0xf] %vm17520_vm0, %v2089_v25  ;;  %v3025_v63 = vsel %vm11373_vm10, %v3023_v47, %v3024_v34  ;;  %v4518_v36 = vunpack.c.l.b16 %v2597_v43  ;;  %v3229_v26 = vrot.slane %v3227_v6, 5  ;;  %v17521_v40 = vshll.u32 %v12537_v15, 16  ;;  %v447_v6 = vld [vmem:[#allocation2 + $0x54] sm:$0x1]  ;;  %v1154_v43 = vpop.f32.mrf.mxu1 }
 0x17f   : > { %v4610_v28 = vunpack.c.l.b16 %v3025_v63  ;;  %v3233_v39 = vshll.u32 %v12517_v12, 16  ;;  %v3237_v32 = vshrl.u32 %v12517_v12, 16  ;;  %v3243_v34 = vshll.u32 %v12552_v31, 16  ;;  %v1865_v12 = vpop.permute.xlu1 %1864 }
 0x180   : > { %v12659_v55 = vor.u32 %v17521_v40, %v12562_v21  ;;  %11137 = vrcp.f32 %v12620_v3  ;;  %v4550_v56 = vpack.c.b16 %v4518_v36, %v4517_v50  ;;  %v3230_v9 = vor.u32 %v3229_v26, %v3226_v61  ;;  %v12679_v50 = vld [vmem:[#allocation2 + $0x34] sm:$0xf]  ;;  %v12688_v61 = vld [vmem:[#allocation2 + $0x30] sm:$0xf] }
 0x181   : > { %v4641_v47 = vpack.c.b16 %v4610_v28, %v4609_v19  ;;  %v12666_v49 = vmul.f32 %v1613_v17, %v12577_v45  ;;  %v3235_v15 = vrot.slane %v3233_v39, 5  ;;  %v3239_v21 = vrot.slane %v3237_v32, 4 }
 0x182   : > { %v1616_v1 = vmul.f32 %v12519_v44, %v12455_v62  ;;  %11139 = vrcp.f32 %v12647_v42  ;;  %4571 = vrot.lane.b32.xlu2 %v4550_v56, %s11206_s30  ;;  %v3231_v31 = vrot.slane %v3230_v9, 4  ;;  %v12674_v25 = vadd.f32 %v12452_v4, %v919_v51  ;;  %v12700_v51 = vld [vmem:[#allocation2 + $0x38] sm:$0x1] }
 0x183   : > { %4663 = vrot.lane.b32.xlu0 %v4641_v47, %s11204_s28  ;;  %v1624_v54 = vand.u32 2147483647, %v12455_v62  ;;  %v3240_v45 = vor.u32 %v3239_v21, %v3235_v15  ;;  %v3245_v17 = vrot.slane %v3243_v34, 5  ;;  %v448_v19 = vsel %vm11346_vm6, 0, %v447_v6 }
 0x184   : > { %v1617_v7 = vsub.f32 1.0, %v1616_v1  ;;  %v3236_v63 = vsel %vm11386_vm13, %v3231_v31, %v3235_v15  ;;  %v1626_v0 = vand.u32 2147483648, %v12455_v62  ;;  %449 = vst [vmem:[#allocation2 + $0x54] sm:$0x1] %v448_v19  ;;  %v1950_v36 = vadd.f32 %v1865_v12, %v12071_v10 }
 0x185   : > { %v12686_v28 = vadd.f32 %v12218_v59, %v1154_v43  ;;  %v3241_v26 = vrot.slane %v3240_v45, 4  ;;  %vm1620_vm15 = vweird.f32 %v12455_v62  ;;  %vm1621_vm14 = vweird.f32 %v12519_v44 }
 0x186   : > { %v1618_v40 = vmul.f32 %v12519_v44, %v1617_v7  ;;  %v12693_v39 = vpop.eup %11137  ;;  %v4785_v32 = vunpack.c.l.b16 %v3236_v63  ;;  %vm12695_vm12 = vcmp.eq.f32.partialorder %v1624_v54, 8.507059e+37  ;;  %v1982_v10 = vpack.c.bf16 %v1950_v36, %v1950_v36  ;;  %v10902_v54 = vld [vmem:[#allocation2 + $0x30] sm:$0xff]  ;;  %vm12714_vm4 = vmor %vm1620_vm15, %vm1621_vm14 }
 0x187   : > { %v10153_v59 = vmul.f32 -1.442695, %v12686_v28  ;;  %v3684_v56 = vrot.slane %v12679_v50, 5  ;;  %v3246_v47 = vsel %vm11386_vm13, %v3241_v26, %v3245_v17  ;;  %v10235_v6 = vrot.slane %v12688_v61, 9  ;;  %v453_v26 = vld [vmem:[#allocation2 + $0x6c] sm:$0x1] }
 0x188   : > { %v1619_v9 = vadd.f32 %v12519_v44, %v1618_v40  ;;  %v3870_v15 = vshrl.u32 %v12500_v37, 16  ;;  %v12708_v21 = vpop.eup %11139  ;;  %v4786_v1 = vunpack.c.l.b16 %v3246_v47  ;;  %v1627_v12 = vor.u32 1.1754944e-38, %v1626_v0 }
 0x189   : > { %v2092_v31 = vshrl.u32 %v1982_v10, 16  ;;  %11141 = vpow2.f32 %v10153_v59  ;;  %v2095_v17 = vshll.u32 %v1982_v10, 16  ;;  %v3685_v7 = vsel %vm11373_vm10, %v10235_v6, %v3684_v56 }
 0x18a   : > { %v3686_v19 = vrot.slane %v3684_v56, 4  ;;  %v3687_v43 = vrot.slane %v12700_v51, 5  ;;  %v4819_v63 = vpack.c.b16 %v4786_v1, %v4785_v32  ;;  %v1623_v0 = vsel %vm12714_vm4, %v12519_v44, %v1619_v9  ;;  %4751 = vrot.lane.b32.xlu2 %v10902_v54, %s11205_s29  ;;  %v1873_v9 = vpop.permute.xlu2 %1872 }
 0x18b   : > { %v2094_v36 = vrot.slane %v2092_v31, 7  ;;  %v3872_v62 = vrot.slane %v3870_v15, 4  ;;  %v2364_v40 = vld [vmem:[#allocation2 + $0x54] sm:$0xf]  ;;  %v4877_v59 = vunpack.c.l.b16 %v3685_v7  ;;  %v3873_v47 = vshll.u32 %v12500_v37, 16 }
 0x18c   : > { %v3688_v10 = vsel %vm11373_vm10, %v3686_v19, %v3687_v43  ;;  %v3879_v56 = vshll.u32 %v12509_v5, 16  ;;  %4839 = vrot.lane.b32.xlu1 %v4819_v63, %s11208_s12  ;;  %v3883_v44 = vshrl.u32 %v12509_v5, 16  ;;  %v3889_v54 = vshll.u32 %v12528_v60, 16 }
 0x18d   : > { %v2097_v32 = vor.u32 %v2095_v17, %v2094_v36  ;;  %v2098_v6 = vrot.slane %v2094_v36, 4  ;;  %v4878_v1 = vunpack.c.l.b16 %v3688_v10  ;;  %v3875_v31 = vrot.slane %v3873_v47, 5 }
 0x18e   : > { %v3881_v15 = vrot.slane %v3879_v56, 5  ;;  %v454_v45 = vsel %vm11346_vm6, 0, %v453_v26  ;;  %v3885_v43 = vrot.slane %v3883_v44, 4  ;;  %v1628_v5 = vsel %vm12695_vm12, %v1627_v12, %v1623_v0  ;;  %v1157_v26 = vpop.f32.mrf.mxu1  ;;  %v10919_v12 = vld [vmem:[#allocation2 + $0x30] sm:$0xff] }
 0x18f   : > { %v11142_v7 = vpop.eup %11141  ;;  %v2106_v37 = vsel %vm12182_vm8, %v2098_v6, %v12659_v55  ;;  %v2365_v17 = vsel %vm12121_vm5, %v2097_v32, %v2364_v40  ;;  %v4910_v19 = vpack.c.b16 %v4878_v1, %v4877_v59  ;;  %455 = vst [vmem:[#allocation2 + $0x6c] sm:$0x1] %v454_v45  ;;  %v3876_v60 = vor.u32 %v3875_v31, %v3872_v62  ;;  %v12749_v40 = vld [vmem:[%s17400_s5] ss:$0 sm:$0xff] }
 0x190   : > { %2366 = vst [vmem:[#allocation2 + $0x54] sm:$0xf] %v2365_v17  ;;  %v12741_v63 = vadd.f32 1.0, %v11142_v7  ;;  %v1954_v36 = vadd.f32 %v1873_v9, %v12268_v35  ;;  %v3886_v55 = vor.u32 %v3885_v43, %v3881_v15  ;;  %v12752_v34 = vadd.f32 %v12749_v40, %v1157_v26  ;;  %v450_v7 = vld [vmem:[#allocation2 + $0x60] sm:$0x1] }
 0x191   : > { %2367 = vst.msk [vmem:[#allocation2 + $0x58] sm:$0xf] %vm17526_vm11, %v2106_v37  ;;  %4931 = vrot.lane.b32.xlu0 %v4910_v19, %s11207_s11  ;;  %v2599_v0 = vshrl.u32 %v12613_v41, 16  ;;  %v2602_v62 = vshll.u32 %v12613_v41, 16  ;;  %v3877_v35 = vrot.slane %v3876_v60, 4  ;;  %v3891_v10 = vrot.slane %v3889_v54, 5  ;;  %v1869_v41 = vpop.permute.xlu0 %1868 }
 0x192   : > { %v1986_v59 = vpack.c.bf16 %v1954_v36, %v1954_v36  ;;  %v2608_v47 = vshll.u32 %v12618_v48, 16  ;;  %v3887_v56 = vrot.slane %v3886_v55, 4  ;;  %v10154_v32 = vmul.f32 -1.442695, %v12752_v34  ;;  %5019 = vrot.lane.b32.xlu2 %v10919_v12, %s11210_s18 }
 0x193   : > { %v2601_v6 = vrot.slane %v2599_v0, 4  ;;  %v2604_v1 = vrot.slane %v2602_v62, 5  ;;  %v3882_v44 = vsel %vm11386_vm13, %v3877_v35, %v3881_v15  ;;  %v2612_v60 = vshrl.u32 %v12618_v48, 16  ;;  %v922_v48 = vpop.f32.mrf.mxu0 }
 0x194   : > { %v2126_v9 = vshrl.u32 %v1986_v59, 16  ;;  %v2129_v31 = vshll.u32 %v1986_v59, 16  ;;  %v2610_v45 = vrot.slane %v2608_v47, 5  ;;  %v3892_v54 = vsel %vm11386_vm13, %v3887_v56, %v3891_v10 }
 0x195   : > { %v5053_v37 = vunpack.c.l.b16 %v3882_v44  ;;  %11143 = vpow2.f32 %v10154_v32  ;;  %v2605_v17 = vor.u32 %v2604_v1, %v2601_v6  ;;  %v5054_v19 = vunpack.c.l.b16 %v3892_v54  ;;  %v12784_v6 = vld [vmem:[#allocation2 + $0x30] sm:$0xf] }
 0x196   : > { %v12763_v43 = vrot.slane %v2126_v9, 7  ;;  %v2618_v36 = vshll.u32 %v12622_v33, 16  ;;  %v12768_v15 = vmul.f32 %v1628_v5, %v12674_v25  ;;  %11145 = vrcp.f32 %v12741_v63  ;;  %v2378_v26 = vld [vmem:[#allocation2 + $0x6c] sm:$0xf]  ;;  %v1159_v54 = vpop.f32.mrf.mxu1 }
 0x197   : > { %v451_v55 = vsel %vm11346_vm6, 0, %v450_v7  ;;  %v1952_v12 = vadd.f32 %v1869_v41, %v12159_v11  ;;  %v5088_v0 = vpack.c.b16 %v5054_v19, %v5053_v37  ;;  %v2606_v35 = vrot.slane %v2605_v17, 4 }
 0x198   : > { %v2131_v62 = vor.u32 %v2129_v31, %v12763_v43  ;;  %v2614_v10 = vrot.slane %v2612_v60, 4  ;;  %452 = vst [vmem:[#allocation2 + $0x60] sm:$0x1] %v451_v55  ;;  %v2132_v33 = vrot.slane %v12763_v43, 4  ;;  %v923_v25 = vadd.f32 %v12452_v4, %v922_v48 }
 0x199   : > { %v1984_v59 = vpack.c.bf16 %v1952_v12, %v1952_v12  ;;  %v1631_v5 = vmul.f32 %v12627_v38, %v12555_v53  ;;  %5107 = vrot.lane.b32.xlu1 %v5088_v0, %s11209_s17  ;;  %v2611_v47 = vsel %vm11386_vm13, %v2606_v35, %v2610_v45  ;;  %v2620_v32 = vrot.slane %v2618_v36, 5  ;;  %v10257_v36 = vld [vmem:[#allocation2 + $0x34] sm:$0xf] }
 0x19a   : > { %v2379_v11 = vsel %vm12121_vm5, %v2131_v62, %v2378_v26  ;;  %v2615_v56 = vor.u32 %v2614_v10, %v2610_v45  ;;  %vm1635_vm2 = vweird.f32 %v12555_v53  ;;  %vm1636_vm9 = vweird.f32 %v12627_v38  ;;  %1890 = vrot.lane.b32.xlu2 %v12515_v20, %s11212_s22 }
 0x19b   : > { %v11144_v1 = vpop.eup %11143  ;;  %2380 = vst [vmem:[#allocation2 + $0x6c] sm:$0xf] %v2379_v11  ;;  %v2109_v44 = vshrl.u32 %v1984_v59, 16  ;;  %v1632_v9 = vsub.f32 1.0, %v1631_v5  ;;  %v2112_v7 = vshll.u32 %v1984_v59, 16  ;;  %v1641_v45 = vand.u32 2147483648, %v12555_v53  ;;  %vm12809_vm0 = vmor %vm1635_vm2, %vm1636_vm9 }
 0x19c   : > { %v2616_v31 = vrot.slane %v2615_v56, 4  ;;  %v1639_v41 = vand.u32 2147483647, %v12555_v53  ;;  %v12792_v37 = vpop.eup %11145  ;;  %v12798_v60 = vadd.f32 %v12749_v40, %v1159_v54  ;;  %v3894_v26 = vshrl.u32 %v12784_v6, 16  ;;  %v10258_v5 = vld [vmem:[#allocation2 + $0x38] sm:$0x1]  ;;  %v1871_v54 = vpop.permute.xlu1 %1870 }
 0x19d   : > { %v12794_v17 = vrot.slane %v2109_v44, 7  ;;  %v1633_v19 = vmul.f32 %v12627_v38, %v1632_v9  ;;  %v12801_v20 = vadd.f32 1.0, %v11144_v1  ;;  %v4519_v12 = vunpack.c.l.b16 %v2611_v47 }
 0x19e   : > { %v2621_v55 = vsel %vm11386_vm13, %v2616_v31, %v2620_v32  ;;  %v1642_v62 = vor.u32 1.1754944e-38, %v1641_v45  ;;  %vm1640_vm15 = vcmp.eq.f32.partialorder %v1639_v41, 8.507059e+37  ;;  %v10155_v11 = vmul.f32 -1.442695, %v12798_v60  ;;  %v512_v31 = vld [vmem:[#allocation2 + $0x68] sm:$0x1] }
 0x19f   : > { %v4520_v35 = vunpack.c.l.b16 %v2621_v55  ;;  %v2371_v10 = vld [vmem:[#allocation2 + $0x60] sm:$0xf]  ;;  %v2114_v48 = vor.u32 %v2112_v7, %v12794_v17  ;;  %v1634_v59 = vadd.f32 %v12627_v38, %v1633_v19  ;;  %v3896_v47 = vrot.slane %v3894_v26, 4 }
 0x1a0   : > { %v3897_v56 = vshll.u32 %v12784_v6, 16  ;;  %v3903_v32 = vshll.u32 %v10257_v36, 16  ;;  %v3907_v9 = vshrl.u32 %v10257_v36, 16  ;;  %11147 = vpow2.f32 %v10155_v11 }
 0x1a1   : > { %v4551_v53 = vpack.c.b16 %v4520_v35, %v4519_v12  ;;  %v2372_v1 = vsel %vm12121_vm5, %v2114_v48, %v2371_v10  ;;  %v1638_v44 = vsel %vm12809_vm0, %v12627_v38, %v1634_v59  ;;  %1888 = vrot.lane.b32.xlu1 %v12476_v16, %s11212_s22  ;;  %11149 = vrcp.f32 %v12801_v20 }
 0x1a2   : > { %2373 = vst [vmem:[#allocation2 + $0x60] sm:$0xf] %v2372_v1  ;;  %v1643_v7 = vsel %vm1640_vm15, %v1642_v62, %v1638_v44  ;;  %v3899_v41 = vrot.slane %v3897_v56, 5  ;;  %v3905_v45 = vrot.slane %v3903_v32, 5  ;;  %v2115_v19 = vrot.slane %v12794_v17, 4 }
 0x1a3   : > { %4573 = vrot.lane.b32.xlu0 %v4551_v53, %s11206_s30  ;;  %v3909_v26 = vrot.slane %v3907_v9, 4  ;;  %v3913_v55 = vshll.u32 %v10258_v5, 16  ;;  %v10306_v12 = vrot.slane %v12784_v6, 9  ;;  %v4347_v0 = vrot.slane %v10257_v36, 5  ;;  %v924_v53 = vpop.f32.mrf.mxu0 }
 0x1a4   : > { %v3900_v38 = vor.u32 %v3899_v41, %v3896_v47  ;;  %v513_v16 = vsel %vm11358_vm7, 0, %v512_v31  ;;  %v12830_v62 = vmul.f32 %v1643_v7, %v923_v25  ;;  %v4350_v10 = vrot.slane %v10258_v5, 5 }
 0x1a5   : > { %v3910_v35 = vor.u32 %v3909_v26, %v3905_v45  ;;  %514 = vst [vmem:[#allocation2 + $0x68] sm:$0x1] %v513_v16  ;;  %v1953_v48 = vadd.f32 %v1871_v54, %v12213_v2  ;;  %v4348_v11 = vsel %vm11373_vm10, %v10306_v12, %v4347_v0  ;;  %v4349_v56 = vrot.slane %v4347_v0, 4 }
 0x1a6   : > { %v3901_v59 = vrot.slane %v3900_v38, 4  ;;  %v1646_v47 = vmul.f32 %v12693_v39, %v12620_v3  ;;  %v3915_v36 = vrot.slane %v3913_v55, 5  ;;  %vm1650_vm14 = vweird.f32 %v12620_v3  ;;  %v11148_v25 = vpop.eup %11147  ;;  %v1162_v38 = vpop.f32.mrf.mxu1 }
 0x1a7   : > { %v3911_v6 = vrot.slane %v3910_v35, 4  ;;  %v1985_v32 = vpack.c.bf16 %v1953_v48, %v1953_v48  ;;  %v4351_v2 = vsel %vm11373_vm10, %v4349_v56, %v4350_v10  ;;  %vm1651_vm12 = vweird.f32 %v12693_v39  ;;  %v12843_v44 = vpop.eup %11149 }
 0x1a8   : > { %v3906_v5 = vsel %vm11386_vm13, %v3901_v59, %v3905_v45  ;;  %v1647_v1 = vsub.f32 1.0, %v1646_v47  ;;  %v12845_v9 = vadd.f32 1.0, %v11148_v25  ;;  %v5145_v7 = vunpack.c.l.b16 %v4348_v11  ;;  %vm12852_vm4 = vmor %vm1650_vm14, %vm1651_vm12 }
 0x1a9   : > { %v3916_v31 = vsel %vm11386_vm13, %v3911_v6, %v3915_v36  ;;  %v5146_v41 = vunpack.c.l.b16 %v4351_v2  ;;  %v5055_v54 = vunpack.c.l.b16 %v3906_v5  ;;  %v2117_v55 = vshrl.u32 %v1985_v32, 16 }
 0x1aa   : > { %v5056_v26 = vunpack.c.l.b16 %v3916_v31  ;;  %v1648_v45 = vmul.f32 %v12693_v39, %v1647_v1  ;;  %v2120_v0 = vshll.u32 %v1985_v32, 16  ;;  %v1654_v35 = vand.u32 2147483647, %v12620_v3 }
 0x1ab   : > { %v5179_v12 = vpack.c.b16 %v5146_v41, %v5145_v7  ;;  %v1656_v10 = vand.u32 2147483648, %v12620_v3  ;;  %v2119_v59 = vrot.slane %v2117_v55, 7  ;;  %v12860_v56 = vadd.f32 %v12749_v40, %v1162_v38  ;;  %v1879_v55 = vpop.permute.xlu2 %1878  ;;  %v927_v16 = vpop.f32.mrf.mxu0 }
 0x1ac   : > { %v5089_v48 = vpack.c.b16 %v5056_v26, %v5055_v54  ;;  %v1649_v11 = vadd.f32 %v12693_v39, %v1648_v45  ;;  %v2375_v47 = vld [vmem:[#allocation2 + $0x68] sm:$0x1]  ;;  %vm12863_vm11 = vcmp.eq.f32.partialorder %v1654_v35, 8.507059e+37  ;;  %v3248_v32 = vshrl.u32 %v12688_v61, 16  ;;  %v518_v26 = vld [vmem:[#allocation2 + $0x80] sm:$0x1] }
 0x1ad   : > { %5199 = vrot.lane.b32.xlu1 %v5179_v12, %s11211_s21  ;;  %v1657_v36 = vor.u32 1.1754944e-38, %v1656_v10  ;;  %v3251_v25 = vshll.u32 %v12688_v61, 16  ;;  %v2122_v3 = vor.u32 %v2120_v0, %v2119_v59  ;;  %v2124_v5 = vrot.slane %v2119_v59, 4 }
 0x1ae   : > { %5109 = vrot.lane.b32.xlu0 %v5089_v48, %s11209_s17  ;;  %v1653_v2 = vsel %vm12852_vm4, %v12693_v39, %v1649_v11  ;;  %v10156_v1 = vmul.f32 -1.442695, %v12860_v56  ;;  %v925_v31 = vadd.f32 %v12452_v4, %v924_v53  ;;  %v3250_v7 = vrot.slane %v3248_v32, 4  ;;  %v10920_v11 = vld [vmem:[#allocation2 + $0x3c] sm:$0xff] }
 0x1af   : > { %v3253_v41 = vrot.slane %v3251_v25, 5  ;;  %v3257_v54 = vshll.u32 %v12679_v50, 16  ;;  %v2123_v61 = vsel %vm12182_vm8, %v2115_v19, %v2122_v3  ;;  %v2376_v45 = vsel %vm11346_vm6, %v2124_v5, %v2375_v47  ;;  %v12906_v3 = vld [vmem:[#allocation2 + $0x3c] sm:$0xf] }
 0x1b0   : > { %v1658_v39 = vsel %vm12863_vm11, %v1657_v36, %v1653_v2  ;;  %11151 = vpow2.f32 %v10156_v1  ;;  %vm17533_vm2 = vcmask 60416   ;;  %v3261_v12 = vshrl.u32 %v12679_v50, 16  ;;  %2377 = vst [vmem:[#allocation2 + $0x68] sm:$0x1] %v2376_v45 }
 0x1b1   : > { %11153 = vrcp.f32 %v12845_v9  ;;  %2374 = vst.msk [vmem:[#allocation2 + $0x64] sm:$0xf] %vm17533_vm2, %v2123_v61  ;;  %v3254_v53 = vor.u32 %v3253_v41, %v3250_v7  ;;  %v3259_v38 = vrot.slane %v3257_v54, 5  ;;  %v3267_v17 = vshll.u32 %v12700_v51, 16  ;;  %v12913_v7 = vld [vmem:[#allocation2 + $0x40] sm:$0xf] }
 0x1b2   : > { %v519_v19 = vsel %vm11358_vm7, 0, %v518_v26  ;;  %v1957_v0 = vadd.f32 %v1879_v55, %v12445_v27  ;;  %v1661_v35 = vmul.f32 %v12708_v21, %v12647_v42  ;;  %v12893_v10 = vmul.f32 %v1658_v39, %v925_v31  ;;  %v1164_v27 = vpop.f32.mrf.mxu1 }
 0x1b3   : > { %v3255_v48 = vrot.slane %v3254_v53, 4  ;;  %v3263_v59 = vrot.slane %v3261_v12, 4  ;;  %520 = vst [vmem:[#allocation2 + $0x80] sm:$0x1] %v519_v19  ;;  %v12896_v50 = vadd.f32 %v12452_v4, %v927_v16  ;;  %vm1665_vm9 = vweird.f32 %v12647_v42 }
 0x1b4   : > { %v1989_v47 = vpack.c.bf16 %v1957_v0, %v1957_v0  ;;  %v1662_v51 = vsub.f32 1.0, %v1661_v35  ;;  %vm1666_vm0 = vweird.f32 %v12708_v21  ;;  %v1669_v36 = vand.u32 2147483647, %v12647_v42 }
 0x1b5   : > { %v3264_v6 = vor.u32 %v3263_v59, %v3259_v38  ;;  %5021 = vrot.lane.b32.xlu1 %v10920_v11, %s11210_s18  ;;  %v1671_v32 = vand.u32 2147483648, %v12647_v42  ;;  %v12904_v25 = vadd.f32 %v12749_v40, %v1164_v27  ;;  %v3260_v5 = vsel %vm11386_vm13, %v3255_v48, %v3259_v38  ;;  %vm12923_vm15 = vmor %vm1665_vm9, %vm1666_vm0  ;;  %v12936_v42 = vld [vmem:[#allocation2 + $0x44] sm:$0x1] }
 0x1b6   : > { %v11152_v4 = vpop.eup %11151  ;;  %v3269_v2 = vrot.slane %v3267_v17, 5  ;;  %1892 = vrot.lane.b32.xlu0 %v12593_v46, %s11212_s22  ;;  %v2151_v1 = vshrl.u32 %v1989_v47, 16  ;;  %v1663_v31 = vmul.f32 %v12708_v21, %v1662_v51  ;;  %v2154_v55 = vshll.u32 %v1989_v47, 16  ;;  %v12943_v47 = vld [vmem:[#allocation2 + $0x3c] sm:$0xf] }
 0x1b7   : > { %v12915_v41 = vpop.eup %11153  ;;  %v12917_v54 = vadd.f32 1.0, %v11152_v4  ;;  %v3265_v26 = vrot.slane %v3264_v6, 4  ;;  %v1672_v46 = vor.u32 1.1754944e-38, %v1671_v32  ;;  %v10157_v53 = vmul.f32 -1.442695, %v12904_v25  ;;  %v1875_v4 = vpop.permute.xlu0 %1874 }
 0x1b8   : > { %v2153_v45 = vrot.slane %v2151_v1, 7  ;;  %v1664_v39 = vadd.f32 %v12708_v21, %v1663_v31  ;;  %v3918_v38 = vshrl.u32 %v12906_v3, 16  ;;  %vm12932_vm14 = vcmp.eq.f32.partialorder %v1669_v36, 8.507059e+37  ;;  %v12948_v36 = vld [vmem:[#allocation2 + $0x40] sm:$0xf] }
 0x1b9   : > { %v3270_v12 = vsel %vm11386_vm13, %v3265_v26, %v3269_v2  ;;  %v3921_v19 = vshll.u32 %v12906_v3, 16  ;;  %v3927_v0 = vshll.u32 %v12913_v7, 16  ;;  %v4787_v16 = vunpack.c.l.b16 %v3260_v5  ;;  %v515_v32 = vld [vmem:[#allocation2 + $0x74] sm:$0x1]  ;;  %v12954_v31 = vld [vmem:[#allocation2 + $0x44] sm:$0x1] }
 0x1ba   : > { %v4788_v35 = vunpack.c.l.b16 %v3270_v12  ;;  %v2389_v48 = vld [vmem:[#allocation2 + $0x80] sm:$0x1]  ;;  %v2158_v59 = vrot.slane %v2153_v45, 4  ;;  %v1668_v11 = vsel %vm12923_vm15, %v12708_v21, %v1664_v39  ;;  %11155 = vrcp.f32 %v12917_v54  ;;  %v929_v12 = vpop.f32.mrf.mxu0 }
 0x1bb   : > { %v12946_v51 = vor.u32 %v2154_v55, %v2153_v45  ;;  %v3920_v27 = vrot.slane %v3918_v38, 4  ;;  %v3923_v6 = vrot.slane %v3921_v19, 5  ;;  %v1673_v1 = vsel %vm12932_vm14, %v1672_v46, %v1668_v11  ;;  %v10903_v21 = vld [vmem:[#allocation2 + $0x3c] sm:$0xff] }
 0x1bc   : > { %v4820_v5 = vpack.c.b16 %v4788_v35, %v4787_v16  ;;  %v2390_v2 = vsel %vm11346_vm6, %v2158_v59, %v2389_v48  ;;  %11157 = vpow2.f32 %v10157_v53  ;;  %v3929_v55 = vrot.slane %v3927_v0, 5 }
 0x1bd   : > { %2391 = vst [vmem:[#allocation2 + $0x80] sm:$0x1] %v2390_v2  ;;  %v3924_v26 = vor.u32 %v3923_v6, %v3920_v27  ;;  %v3931_v61 = vshrl.u32 %v12913_v7, 16  ;;  %v3937_v45 = vshll.u32 %v12936_v42, 16  ;;  %v10165_v39 = vrot.slane %v12943_v47, 9  ;;  %v1167_v27 = vpop.f32.mrf.mxu1 }
 0x1be   : > { %4841 = vrot.lane.b32.xlu2 %v4820_v5, %s11208_s12  ;;  %4753 = vrot.lane.b32.xlu0 %v10903_v21, %s11205_s29  ;;  %v3028_v38 = vrot.slane %v12948_v36, 5  ;;  %v516_v46 = vsel %vm11358_vm7, 0, %v515_v32  ;;  %v1955_v53 = vadd.f32 %v1875_v4, %v12326_v58  ;;  %v12966_v17 = vmul.f32 %v1673_v1, %v12896_v50  ;;  %v12980_v4 = vld [vmem:[%s17398_s3] ss:$0 sm:$0xff] }
 0x1bf   : > { %v3925_v19 = vrot.slane %v3924_v26, 4  ;;  %v3933_v0 = vrot.slane %v3931_v61, 4  ;;  %v3031_v16 = vrot.slane %v12954_v31, 5  ;;  %517 = vst [vmem:[#allocation2 + $0x74] sm:$0x1] %v516_v46  ;;  %v1676_v11 = vmul.f32 %v12792_v37, %v12741_v63 }
 0x1c0   : > { %v3029_v35 = vsel %vm11373_vm10, %v10165_v39, %v3028_v38  ;;  %v3030_v48 = vrot.slane %v3028_v38, 4  ;;  %v1987_v59 = vpack.c.bf16 %v1955_v53, %v1955_v53  ;;  %v12973_v6 = vpop.eup %11155  ;;  %v3939_v32 = vrot.slane %v3937_v45, 5 }
 0x1c1   : > { %v3930_v58 = vsel %vm11386_vm13, %v3925_v19, %v3929_v55  ;;  %v3934_v50 = vor.u32 %v3933_v0, %v3929_v55  ;;  %v12983_v5 = vadd.f32 %v12980_v4, %v929_v12  ;;  %v4611_v21 = vunpack.c.l.b16 %v3029_v35  ;;  %v10936_v55 = vld [vmem:[%s17401_s6 + $0x8] sm:$0xff] }
 0x1c2   : > { %v11158_v2 = vpop.eup %11157  ;;  %v3032_v1 = vsel %vm11373_vm10, %v3030_v48, %v3031_v16  ;;  %v2134_v26 = vshrl.u32 %v1987_v59, 16  ;;  %vm1680_vm12 = vweird.f32 %v12741_v63  ;;  %v5057_v45 = vunpack.c.l.b16 %v3930_v58  ;;  %5632 = vmatpush.bf16.msrb.mxu0 %v10936_v55  ;;  %10995 = vmatpush.bf16.msra.mxu2 %v10936_v55 }
 0x1c3   : > { %v3935_v61 = vrot.slane %v3934_v50, 4  ;;  %v4612_v39 = vunpack.c.l.b16 %v3032_v1  ;;  %v1677_v38 = vsub.f32 1.0, %v1676_v11  ;;  %v2137_v53 = vshll.u32 %v1987_v59, 16 }
 0x1c4   : > { %v2136_v46 = vrot.slane %v2134_v26, 7  ;;  %vm1681_vm4 = vweird.f32 %v12792_v37  ;;  %v1684_v12 = vand.u32 2147483647, %v12741_v63  ;;  %v1686_v35 = vand.u32 2147483648, %v12741_v63  ;;  %v10191_v63 = vld [vmem:[#allocation2 + $0x40] sm:$0xf] }
 0x1c5   : > { %v3940_v19 = vsel %vm11386_vm13, %v3935_v61, %v3939_v32  ;;  %v4642_v0 = vpack.c.b16 %v4612_v39, %v4611_v21  ;;  %v1678_v16 = vmul.f32 %v12792_v37, %v1677_v38  ;;  %vm12999_vm11 = vmor %vm1680_vm12, %vm1681_vm4  ;;  %v13010_v26 = vadd.f32 %v12749_v40, %v1167_v27  ;;  %v10190_v61 = vld [vmem:[#allocation2 + $0x3c] sm:$0xf]  ;;  %v13013_v39 = vpop.permute.xlu2 %4927  ;;  %v456_v27 = vld [vmem:[#allocation2 + $0x78] sm:$0x1] }
 0x1c6   : > { %v5058_v48 = vunpack.c.l.b16 %v3940_v19  ;;  %v2382_v58 = vld [vmem:[#allocation2 + $0x74] sm:$0x1]  ;;  %v2139_v50 = vor.u32 %v2137_v53, %v2136_v46  ;;  %v2141_v11 = vrot.slane %v2136_v46, 4  ;;  %vm13003_vm2 = vcmp.eq.f32.partialorder %v1684_v12, 8.507059e+37  ;;  %v10192_v19 = vld [vmem:[#allocation2 + $0x44] sm:$0x1] }
 0x1c7   : > { %4665 = vrot.lane.b32.xlu1 %v4642_v0, %s11204_s28  ;;  %v1679_v32 = vadd.f32 %v12792_v37, %v1678_v16  ;;  %v1687_v21 = vor.u32 1.1754944e-38, %v1686_v35  ;;  %v10307_v55 = vrot.slane %v12906_v3, 9  ;;  %v4354_v12 = vrot.slane %v12913_v7, 5  ;;  %v1877_v35 = vpop.permute.xlu1 %1876 }
 0x1c8   : > { %v5090_v38 = vpack.c.b16 %v5058_v48, %v5057_v45  ;;  %v2140_v46 = vsel %vm12182_vm8, %v2132_v33, %v2139_v50  ;;  %v2383_v53 = vsel %vm11346_vm6, %v2141_v11, %v2382_v58  ;;  %v13022_v0 = vadd.f32 1.0, %v11158_v2  ;;  %v1169_v48 = vpop.f32.mrf.mxu1 }
 0x1c9   : > { %vm17542_vm9 = vcmask 60416   ;;  %v1683_v3 = vsel %vm12999_vm11, %v12792_v37, %v1679_v32  ;;  %v10158_v43 = vmul.f32 -1.442695, %v13010_v26  ;;  %v4357_v45 = vrot.slane %v12936_v42, 5  ;;  %2384 = vst [vmem:[#allocation2 + $0x74] sm:$0x1] %v2383_v53 }
 0x1ca   : > { %2381 = vst.msk [vmem:[#allocation2 + $0x70] sm:$0xf] %vm17542_vm9, %v2140_v46  ;;  %5111 = vrot.lane.b32.xlu2 %v5090_v38, %s11209_s17  ;;  %v4355_v33 = vsel %vm11373_vm10, %v10307_v55, %v4354_v12  ;;  %v4356_v7 = vrot.slane %v4354_v12, 4  ;;  %v10236_v16 = vrot.slane %v10190_v61, 9  ;;  %v3691_v2 = vrot.slane %v10191_v63, 5  ;;  %vm17549_vm4 = vmmov %vm17542_vm9 }
 0x1cb   : > { %v1688_v58 = vsel %vm13003_vm2, %v1687_v21, %v1683_v3  ;;  %11159 = vpow2.f32 %v10158_v43  ;;  %v5147_v37 = vunpack.c.l.b16 %v4355_v33  ;;  %v3694_v50 = vrot.slane %v10192_v19, 5 }
 0x1cc   : > { %v4358_v42 = vsel %vm11373_vm10, %v4356_v7, %v4357_v45  ;;  %v3692_v11 = vsel %vm11373_vm10, %v10236_v16, %v3691_v2  ;;  %v3693_v59 = vrot.slane %v3691_v2, 4  ;;  %v457_v32 = vsel %vm11346_vm6, 0, %v456_v27 }
 0x1cd   : > { %v5148_v55 = vunpack.c.l.b16 %v4358_v42  ;;  %v4879_v38 = vunpack.c.l.b16 %v3692_v11  ;;  %458 = vst [vmem:[#allocation2 + $0x78] sm:$0x1] %v457_v32  ;;  %v1956_v46 = vadd.f32 %v1877_v35, %v12378_v57  ;;  %v13043_v1 = vadd.f32 %v12749_v40, %v1169_v48  ;;  %v13053_v35 = vpop.permute.xlu2 %5105 }
 0x1ce   : > { %v3695_v21 = vsel %vm11373_vm10, %v3693_v59, %v3694_v50  ;;  %v3272_v53 = vshrl.u32 %v10190_v61, 16  ;;  %v3275_v12 = vshll.u32 %v10190_v61, 16  ;;  %v3281_v3 = vshll.u32 %v10191_v63, 16 }
 0x1cf   : > { %v5180_v43 = vpack.c.b16 %v5148_v55, %v5147_v37  ;;  %v4880_v45 = vunpack.c.l.b16 %v3695_v21  ;;  %v1988_v33 = vpack.c.bf16 %v1956_v46, %v1956_v46  ;;  %v10159_v7 = vmul.f32 -1.442695, %v13043_v1 }
 0x1d0   : > { %v3274_v27 = vrot.slane %v3272_v53, 4  ;;  %v3277_v16 = vrot.slane %v3275_v12, 5  ;;  %v3283_v2 = vrot.slane %v3281_v3, 5  ;;  %v3285_v42 = vshrl.u32 %v10191_v63, 16 }
 0x1d1   : > { %v11160_v11 = vpop.eup %11159  ;;  %11161 = vrcp.f32 %v13022_v0  ;;  %v13050_v57 = vmul.f32 %v1688_v58, %v12983_v5  ;;  %5201 = vrot.lane.b32.xlu0 %v5180_v43, %s11211_s21  ;;  %v4911_v40 = vpack.c.b16 %v4880_v45, %v4879_v38  ;;  %v2143_v61 = vshrl.u32 %v1988_v33, 16  ;;  %v932_v43 = vpop.f32.mrf.mxu0 }
 0x1d2   : > { %1896 = vrot.lane.b32.xlu2 %v12752_v34, %s11212_s22  ;;  %v2146_v48 = vshll.u32 %v1988_v33, 16  ;;  %v3278_v37 = vor.u32 %v3277_v16, %v3274_v27  ;;  %v3287_v50 = vrot.slane %v3285_v42, 4  ;;  %v3291_v59 = vshll.u32 %v10192_v19, 16  ;;  %v13064_v19 = vld [vmem:[#allocation2 + $0x48] sm:$0xf] }
 0x1d3   : > { %17543 = vst [vmem:[#allocation16_spill] sm:$0xff] %v13050_v57  ;;  %v13057_v63 = vadd.f32 1.0, %v11160_v11  ;;  %4933 = vrot.lane.b32.xlu1 %v4911_v40, %s11207_s11  ;;  %v2145_v32 = vrot.slane %v2143_v61, 7  ;;  %11163 = vpow2.f32 %v10159_v7  ;;  %v1691_v5 = vmul.f32 %v12843_v44, %v12801_v20  ;;  %v13070_v7 = vld [vmem:[#allocation2 + $0x4c] sm:$0xf] }
 0x1d4   : > { %v2385_v58 = vld [vmem:[#allocation2 + $0x78] sm:$0xf]  ;;  %v3279_v55 = vrot.slane %v3278_v37, 4  ;;  %v3288_v38 = vor.u32 %v3287_v50, %v3283_v2  ;;  %v3293_v46 = vrot.slane %v3291_v59, 5  ;;  %vm1695_vm0 = vweird.f32 %v12801_v20  ;;  %v13081_v40 = vld [vmem:[#allocation2 + $0x50] sm:$0x1] }
 0x1d5   : > { %17544 = vst [vmem:[#allocation17_spill] sm:$0xff] %v13057_v63  ;;  %v2148_v34 = vor.u32 %v2146_v48, %v2145_v32  ;;  %v2149_v21 = vrot.slane %v2145_v32, 4  ;;  %v1692_v53 = vsub.f32 1.0, %v1691_v5  ;;  %vm1696_vm15 = vweird.f32 %v12843_v44  ;;  %v10921_v61 = vld [vmem:[#allocation2 + $0x48] sm:$0xff] }
 0x1d6   : > { %v3284_v12 = vsel %vm11386_vm13, %v3279_v55, %v3283_v2  ;;  %v3289_v3 = vrot.slane %v3288_v38, 4  ;;  %v1699_v45 = vand.u32 2147483647, %v12801_v20  ;;  %v1701_v33 = vand.u32 2147483648, %v12801_v20  ;;  %vm13089_vm14 = vmor %vm1695_vm0, %vm1696_vm15 }
 0x1d7   : > { %v13072_v27 = vpop.eup %11161  ;;  %v2157_v16 = vsel %vm12182_vm8, %v2149_v21, %v12946_v51  ;;  %v2386_v42 = vsel %vm12121_vm5, %v2148_v34, %v2385_v58  ;;  %v933_v11 = vadd.f32 %v12980_v4, %v932_v43  ;;  %v1693_v2 = vmul.f32 %v12843_v44, %v1692_v53  ;;  %v13106_v21 = vpop.permute.xlu1 %5015 }
 0x1d8   : > { %2387 = vst [vmem:[#allocation2 + $0x78] sm:$0xf] %v2386_v42  ;;  %v3294_v48 = vsel %vm11386_vm13, %v3289_v3, %v3293_v46  ;;  %v4789_v37 = vunpack.c.l.b16 %v3284_v12  ;;  %vm13093_vm12 = vcmp.eq.f32.partialorder %v1699_v45, 8.507059e+37  ;;  %v1702_v59 = vor.u32 1.1754944e-38, %v1701_v33  ;;  %v462_v45 = vld [vmem:[#allocation2 + $0x90] sm:$0x1]  ;;  %v1885_v33 = vpop.permute.xlu2 %1884 }
 0x1d9   : > { %v11164_v32 = vpop.eup %11163  ;;  %2388 = vst.msk [vmem:[#allocation2 + $0x7c] sm:$0xf] %vm17549_vm4, %v2157_v16  ;;  %v4790_v5 = vunpack.c.l.b16 %v3294_v48  ;;  %v1694_v58 = vadd.f32 %v12843_v44, %v1693_v2  ;;  %v10166_v55 = vrot.slane %v13064_v19, 9  ;;  %v3035_v38 = vrot.slane %v13070_v7, 5  ;;  %v1881_v16 = vpop.permute.xlu0 %1880  ;;  %v459_v48 = vld [vmem:[#allocation2 + $0x84] sm:$0x1] }
 0x1da   : > { %11165 = vrcp.f32 %v13057_v63  ;;  %5023 = vrot.lane.b32.xlu2 %v10921_v61, %s11210_s18  ;;  %v3038_v20 = vrot.slane %v13081_v40, 5  ;;  %v2623_v46 = vshrl.u32 %v12943_v47, 16  ;;  %v2626_v34 = vshll.u32 %v12943_v47, 16 }
 0x1db   : > { %v4821_v53 = vpack.c.b16 %v4790_v5, %v4789_v37  ;;  %1894 = vrot.lane.b32.xlu1 %v12686_v28, %s11212_s22  ;;  %v1698_v12 = vsel %vm13089_vm14, %v12843_v44, %v1694_v58  ;;  %v3036_v3 = vsel %vm11373_vm10, %v10166_v55, %v3035_v38  ;;  %v3037_v43 = vrot.slane %v3035_v38, 4 }
 0x1dc   : > { %v13115_v42 = vadd.f32 1.0, %v11164_v32  ;;  %v1703_v47 = vsel %vm13093_vm12, %v1702_v59, %v1698_v12  ;;  %v2625_v2 = vrot.slane %v2623_v46, 4  ;;  %v2628_v61 = vrot.slane %v2626_v34, 5 }
 0x1dd   : > { %4843 = vrot.lane.b32.xlu0 %v4821_v53, %s11208_s12  ;;  %v3039_v28 = vsel %vm11373_vm10, %v3037_v43, %v3038_v20  ;;  %v4613_v44 = vunpack.c.l.b16 %v3036_v3  ;;  %v2632_v37 = vshll.u32 %v12948_v36, 16  ;;  %v2636_v51 = vshrl.u32 %v12948_v36, 16 }
 0x1de   : > { %17550 = vst [vmem:[#allocation18_spill] sm:$0xff] %v13115_v42  ;;  %v4614_v5 = vunpack.c.l.b16 %v3039_v28  ;;  %v2629_v58 = vor.u32 %v2628_v61, %v2625_v2  ;;  %v2642_v32 = vshll.u32 %v12954_v31, 16  ;;  %v463_v50 = vsel %vm11346_vm6, 0, %v462_v45  ;;  %v10935_v2 = vld [vmem:[%s17401_s6] sm:$0xff]  ;;  %v934_v28 = vpop.f32.mrf.mxu0 }
 0x1df   : > { %v2634_v59 = vrot.slane %v2632_v37, 5  ;;  %v2638_v55 = vrot.slane %v2636_v51, 4  ;;  %464 = vst [vmem:[#allocation2 + $0x90] sm:$0x1] %v463_v50  ;;  %v1960_v38 = vadd.f32 %v1885_v33, %v12666_v49  ;;  %v460_v20 = vsel %vm11346_vm6, 0, %v459_v48  ;;  %v13145_v37 = vpop.permute.xlu1 %4659  ;;  %5633 = vmatpush.bf16.msrb.mxu0 %v10935_v2  ;;  %10996 = vmatpush.bf16.msra.mxu2 %v10935_v2 }
 0x1e0   : > { %v13130_v46 = vpop.eup %11165  ;;  %11167 = vrcp.f32 %v13115_v42  ;;  %v4643_v36 = vpack.c.b16 %v4614_v5, %v4613_v44  ;;  %v2630_v34 = vrot.slane %v2629_v58, 4  ;;  %461 = vst [vmem:[#allocation2 + $0x84] sm:$0x1] %v460_v20  ;;  %v1958_v31 = vadd.f32 %v1881_v16, %v12502_v23  ;;  %v13157_v50 = vpop.permute.xlu2 %4661  ;;  %v13187_v2 = vld [vmem:[#allocation2 + $0x48] sm:$0xf] }
 0x1e1   : > { %17551 = vst [vmem:[#allocation19_spill] sm:$0xff] %v13130_v46  ;;  %v13134_v53 = vmul.f32 %v1703_v47, %v933_v11  ;;  %v2639_v12 = vor.u32 %v2638_v55, %v2634_v59  ;;  %v2644_v3 = vrot.slane %v2642_v32, 5  ;;  %v1992_v43 = vpack.c.bf16 %v1960_v38, %v1960_v38  ;;  %v13155_v32 = vld [vmem:[#allocation2 + $0x48] sm:$0xf] }
 0x1e2   : > { %4667 = vrot.lane.b32.xlu2 %v4643_v36, %s11204_s28  ;;  %v2635_v49 = vsel %vm11386_vm13, %v2630_v34, %v2634_v59  ;;  %v1990_v45 = vpack.c.bf16 %v1958_v31, %v1958_v31  ;;  %vm5434_vm11 = vcmask 392192   ;;  %v1706_v33 = vmul.f32 %v12915_v41, %v12845_v9  ;;  %v13159_v59 = vpop.permute.xlu0 %4747  ;;  %v13167_v31 = vld [vmem:[#allocation2 + $0x4c] sm:$0xf] }
 0x1e3   : > { %v2640_v23 = vrot.slane %v2639_v12, 4  ;;  %v4521_v11 = vunpack.c.l.b16 %v2635_v49  ;;  %v2177_v16 = vshrl.u32 %v1992_v43, 16  ;;  %v2180_v47 = vshll.u32 %v1992_v43, 16 }
 0x1e4   : > { %v2160_v61 = vshrl.u32 %v1990_v45, 16  ;;  %v2163_v48 = vshll.u32 %v1990_v45, 16  ;;  %v1707_v44 = vsub.f32 1.0, %v1706_v33  ;;  %vm1710_vm2 = vweird.f32 %v12845_v9 }
 0x1e5   : > { %1898 = vrot.lane.b32.xlu0 %v12798_v60, %s11212_s22  ;;  %v2645_v51 = vsel %vm11386_vm13, %v2640_v23, %v2644_v3  ;;  %v13151_v5 = vrot.slane %v2177_v16, 7  ;;  %vm1711_vm9 = vweird.f32 %v12915_v41  ;;  %v1714_v58 = vand.u32 2147483647, %v12845_v9 }
 0x1e6   : > { %v13161_v55 = vpop.eup %11167  ;;  %v4522_v38 = vunpack.c.l.b16 %v2645_v51  ;;  %v2399_v20 = vld [vmem:[#allocation2 + $0x90] sm:$0xf]  ;;  %v13163_v60 = vrot.slane %v2160_v61, 7  ;;  %v1708_v36 = vmul.f32 %v12915_v41, %v1707_v44  ;;  %v1716_v34 = vand.u32 2147483648, %v12845_v9  ;;  %vm13183_vm0 = vmor %vm1710_vm2, %vm1711_vm9  ;;  %v10263_v61 = vld [vmem:[#allocation2 + $0x4c] sm:$0xf] }
 0x1e7   : > { %17552 = vst [vmem:[#allocation20_spill] sm:$0xff] %v13161_v55  ;;  %v2182_v12 = vor.u32 %v2180_v47, %v13151_v5  ;;  %v2392_v43 = vld [vmem:[#allocation2 + $0x84] sm:$0xf]  ;;  %v13174_v49 = vsel %vm5434_vm11, %v11928_v29, %v13106_v21  ;;  %v13177_v45 = vadd.f32 %v12980_v4, %v934_v28  ;;  %vm13191_vm15 = vcmp.eq.f32.partialorder %v1714_v58, 8.507059e+37  ;;  %v13195_v21 = vld [vmem:[#allocation2 + $0x50] sm:$0x1]  ;;  %v1883_v46 = vpop.permute.xlu1 %1882 }
 0x1e8   : > { %v4552_v23 = vpack.c.b16 %v4522_v38, %v4521_v11  ;;  %v2165_v16 = vor.u32 %v2163_v48, %v13163_v60  ;;  %v1709_v47 = vadd.f32 %v12915_v41, %v1708_v36  ;;  %v1717_v28 = vor.u32 1.1754944e-38, %v1716_v34  ;;  %v10264_v58 = vld [vmem:[#allocation2 + $0x50] sm:$0x1] }
 0x1e9   : > { %v2400_v9 = vsel %vm12121_vm5, %v2182_v12, %v2399_v20  ;;  %v10237_v44 = vrot.slane %v13155_v32, 9  ;;  %v3698_v51 = vrot.slane %v13167_v31, 5  ;;  %v3942_v38 = vshrl.u32 %v13187_v2, 16 }
 0x1ea   : > { %4575 = vrot.lane.b32.xlu1 %v4552_v23, %s11206_s30  ;;  %2401 = vst [vmem:[#allocation2 + $0x90] sm:$0xf] %v2400_v9  ;;  %v2393_v11 = vsel %vm12121_vm5, %v2165_v16, %v2392_v43  ;;  %v1713_v48 = vsel %vm13183_vm0, %v12915_v41, %v1709_v47  ;;  %v3945_v20 = vshll.u32 %v13187_v2, 16  ;;  %v3701_v12 = vrot.slane %v13195_v21, 5 }
 0x1eb   : > { %2394 = vst [vmem:[#allocation2 + $0x84] sm:$0xf] %v2393_v11  ;;  %v3699_v36 = vsel %vm11373_vm10, %v10237_v44, %v3698_v51  ;;  %v3700_v34 = vrot.slane %v3698_v51, 4  ;;  %v3951_v23 = vshll.u32 %v10263_v61, 16  ;;  %v13215_v43 = vsel %vm13191_vm15, %v1717_v28, %v1713_v48  ;;  %v13226_v48 = vpop.permute.xlu2 %5197 }
 0x1ec   : > { %v3944_v41 = vrot.slane %v3942_v38, 4  ;;  %v3947_v33 = vrot.slane %v3945_v20, 5  ;;  %v3955_v11 = vshrl.u32 %v10263_v61, 16  ;;  %v3961_v3 = vshll.u32 %v10264_v58, 16  ;;  %v5196_v38 = vpop.permute.xlu0 %5195 }
 0x1ed   : > { %v3702_v16 = vsel %vm11373_vm10, %v3700_v34, %v3701_v12  ;;  %v3953_v47 = vrot.slane %v3951_v23, 5  ;;  %v4881_v55 = vunpack.c.l.b16 %v3699_v36  ;;  %v2647_v42 = vshrl.u32 %v13064_v19, 16  ;;  %v10904_v36 = vld [vmem:[#allocation2 + $0x48] sm:$0xff] }
 0x1ee   : > { %v4882_v44 = vunpack.c.l.b16 %v3702_v16  ;;  %v3948_v51 = vor.u32 %v3947_v33, %v3944_v41  ;;  %v3957_v63 = vrot.slane %v3955_v11, 4  ;;  %v3963_v9 = vrot.slane %v3961_v3, 5 }
 0x1ef   : > { %vm17557_vm14 = vcmask 130048   ;;  %v2650_v28 = vshll.u32 %v13064_v19, 16  ;;  %v2649_v12 = vrot.slane %v2647_v42, 4  ;;  %v2656_v23 = vshll.u32 %v13070_v7, 16 }
 0x1f0   : > { %v13223_v29 = vsel %vm17557_vm14, %v11886_v13, %v11721_v22  ;;  %v4912_v20 = vpack.c.b16 %v4882_v44, %v4881_v55  ;;  %v3949_v34 = vrot.slane %v3948_v51, 4  ;;  %v3958_v41 = vor.u32 %v3957_v63, %v3953_v47 }
 0x1f1   : > { %v2652_v33 = vrot.slane %v2650_v28, 5  ;;  %v2660_v3 = vshrl.u32 %v13070_v7, 16  ;;  %v2666_v16 = vshll.u32 %v13081_v40, 16  ;;  %v2658_v13 = vrot.slane %v2656_v23, 5  ;;  %v521_v23 = vld [vmem:[#allocation2 + $0x8c] sm:$0x1] }
 0x1f2   : > { %4935 = vrot.lane.b32.xlu2 %v4912_v20, %s11207_s11  ;;  %v3954_v22 = vsel %vm11386_vm13, %v3949_v34, %v3953_v47  ;;  %4755 = vrot.lane.b32.xlu1 %v10904_v36, %s11205_s29  ;;  %v10308_v19 = vrot.slane %v13187_v2, 9  ;;  %v4361_v55 = vrot.slane %v10263_v61, 5  ;;  %v3959_v42 = vrot.slane %v3958_v41, 4  ;;  %v13242_v61 = vld [vmem:[#allocation2 + $0x54] sm:$0xf] }
 0x1f3   : > { %v5059_v11 = vunpack.c.l.b16 %v3954_v22  ;;  %v2653_v44 = vor.u32 %v2652_v33, %v2649_v12  ;;  %v2662_v63 = vrot.slane %v2660_v3, 4  ;;  %v2668_v51 = vrot.slane %v2666_v16, 5  ;;  %v13249_v33 = vld [vmem:[#allocation2 + $0x58] sm:$0xf]  ;;  %v13251_v3 = vld [vmem:[#allocation2 + $0x5c] sm:$0x1] }
 0x1f4   : > { %v4362_v7 = vsel %vm11373_vm10, %v10308_v19, %v4361_v55  ;;  %v4363_v40 = vrot.slane %v4361_v55, 4  ;;  %v4364_v28 = vrot.slane %v10264_v58, 5  ;;  %v3964_v20 = vsel %vm11386_vm13, %v3959_v42, %v3963_v9  ;;  %v13256_v42 = vpop.permute.xlu1 %4569 }
 0x1f5   : > { %v2654_v47 = vrot.slane %v2653_v44, 4  ;;  %v2663_v34 = vor.u32 %v2662_v63, %v2658_v13  ;;  %v5149_v36 = vunpack.c.l.b16 %v4362_v7  ;;  %v5060_v57 = vunpack.c.l.b16 %v3964_v20  ;;  %v17558_v63 = vld [vmem:[#allocation15_spill] sm:$0xff]  ;;  %v4838_v7 = vpop.permute.xlu0 %4837 }
 0x1f6   : > { %v4365_v2 = vsel %vm11373_vm10, %v4363_v40, %v4364_v28  ;;  %vm5471_vm12 = vcmask 457728   ;;  %vm5508_vm4 = vcmask 523264   ;;  %v522_v55 = vsel %vm11358_vm7, 0, %v521_v23 }
 0x1f7   : > { %v2659_v12 = vsel %vm11386_vm13, %v2654_v47, %v2658_v13  ;;  %v2664_v41 = vrot.slane %v2663_v34, 4  ;;  %v5150_v58 = vunpack.c.l.b16 %v4365_v2  ;;  %v5473_v9 = vsel %vm5471_vm12, %v13174_v49, %v13053_v35  ;;  %523 = vst [vmem:[#allocation2 + $0x8c] sm:$0x1] %v522_v55  ;;  %v4572_v49 = vpop.permute.xlu2 %4571 }
 0x1f8   : > { %v5091_v16 = vpack.c.b16 %v5060_v57, %v5059_v11  ;;  %v4523_v22 = vunpack.c.l.b16 %v2659_v12  ;;  %v5510_v19 = vsel %vm5508_vm4, %v5473_v9, %v5196_v38  ;;  %v1959_v35 = vadd.f32 %v1883_v46, %v17558_v63  ;;  %v10922_v63 = vld [vmem:[#allocation2 + $0x54] sm:$0xff] }
 0x1f9   : > { %v2669_v13 = vsel %vm11386_vm13, %v2664_v41, %v2668_v51  ;;  %v5181_v44 = vpack.c.b16 %v5150_v58, %v5149_v36  ;;  %vm17422_vm2 = vcmask 588800   ;;  %v10167_v38 = vrot.slane %v13242_v61, 9 }
 0x1fa   : > { %5113 = vrot.lane.b32.xlu0 %v5091_v16, %s11209_s17  ;;  %v4524_v57 = vunpack.c.l.b16 %v2669_v13  ;;  %10554 = vmatmul.msk.bf16.vlgmr.msrb.gmra.mxu0 %vm17422_vm2, %v5510_v19  ;;  %v3042_v11 = vrot.slane %v13249_v33, 5  ;;  %v3045_v40 = vrot.slane %v13251_v3, 5  ;;  %v1991_v51 = vpack.c.bf16 %v1959_v35, %v1959_v35  ;;  %v10884_v19 = vld [vmem:[#allocation2 + $0x24] sm:$0xff] }
 0x1fb   : > { %5203 = vrot.lane.b32.xlu1 %v5181_v44, %s11211_s21  ;;  %v3296_v28 = vshrl.u32 %v13155_v32, 16  ;;  %v3299_v46 = vshll.u32 %v13155_v32, 16  ;;  %v3305_v20 = vshll.u32 %v13167_v31, 16  ;;  %v3309_v23 = vshrl.u32 %v13167_v31, 16 }
 0x1fc   : > { %v4553_v47 = vpack.c.b16 %v4524_v57, %v4523_v22  ;;  %v3043_v34 = vsel %vm11373_vm10, %v10167_v38, %v3042_v11  ;;  %v3044_v36 = vrot.slane %v3042_v11, 4  ;;  %v5327_v2 = vsel %vm5323_vm3, %v13223_v29, %v13159_v59 }
 0x1fd   : > { %v2168_v12 = vshrl.u32 %v1991_v51, 16  ;;  %v2171_v41 = vshll.u32 %v1991_v51, 16  ;;  %v3298_v58 = vrot.slane %v3296_v28, 4  ;;  %v3301_v9 = vrot.slane %v3299_v46, 5  ;;  %v937_v46 = vpop.f32.mrf.mxu0 }
 0x1fe   : > { %4577 = vrot.lane.b32.xlu2 %v4553_v47, %s11206_s30  ;;  %v3046_v32 = vsel %vm11373_vm10, %v3044_v36, %v3045_v40  ;;  %v3307_v16 = vrot.slane %v3305_v20, 5  ;;  %v3311_v22 = vrot.slane %v3309_v23, 4  ;;  %v4615_v13 = vunpack.c.l.b16 %v3043_v34  ;;  %v2396_v35 = vld [vmem:[#allocation2 + $0x8c] sm:$0x1]  ;;  %v13290_v36 = vld [vmem:[#allocation2 + $0x54] sm:$0xf] }
 0x1ff   : > { %v2170_v55 = vrot.slane %v2168_v12, 7  ;;  %v4616_v44 = vunpack.c.l.b16 %v3046_v32  ;;  %v3315_v31 = vshll.u32 %v13195_v21, 16  ;;  %v3302_v59 = vor.u32 %v3301_v9, %v3298_v58  ;;  %v13302_v12 = vld [vmem:[#allocation2 + $0x58] sm:$0xf]  ;;  %v4752_v58 = vpop.permute.xlu2 %4751  ;;  %v5018_v32 = vpop.permute.xlu0 %5017 }
 0x200   : > { %v3312_v29 = vor.u32 %v3311_v22, %v3307_v16  ;;  %v13281_v57 = vsel %vm805_vm1, %v10884_v19, %v4572_v49  ;;  %vm17559_vm9 = vcmask 261120   ;;  %v938_v21 = vadd.f32 %v12980_v4, %v937_v46  ;;  %v13292_v49 = vpop.permute.xlu1 %4749  ;;  %v10905_v9 = vld [vmem:[#allocation2 + $0x54] sm:$0xff] }
 0x201   : > { %v13284_v38 = vsel %vm17559_vm9, %v5327_v2, %v4838_v7  ;;  %v2173_v11 = vor.u32 %v2171_v41, %v2170_v55  ;;  %v2175_v40 = vrot.slane %v2170_v55, 4  ;;  %v4644_v51 = vpack.c.b16 %v4616_v44, %v4615_v13  ;;  %v13304_v41 = vld [vmem:[#allocation2 + $0x5c] sm:$0x1] }
 0x202   : > { %v3317_v28 = vrot.slane %v3315_v31, 5  ;;  %5025 = vrot.lane.b32.xlu0 %v10922_v63, %s11210_s18  ;;  %v3303_v20 = vrot.slane %v3302_v59, 4  ;;  %v3313_v47 = vrot.slane %v3312_v29, 4  ;;  %v1721_v34 = vmul.f32 %v12973_v6, %v12917_v54 }
 0x203   : > { %v17560_v7 = vrot.slane %v13163_v60, 4  ;;  %v2397_v2 = vsel %vm11346_vm6, %v2175_v40, %v2396_v35  ;;  %vm1725_vm0 = vweird.f32 %v12917_v54  ;;  %vm1726_vm15 = vweird.f32 %v12973_v6 }
 0x204   : > { %vm17561_vm14 = vcmask 60416   ;;  %v3308_v60 = vsel %vm11386_vm13, %v3303_v20, %v3307_v16  ;;  %v3318_v22 = vsel %vm11386_vm13, %v3313_v47, %v3317_v28  ;;  %v1722_v19 = vsub.f32 1.0, %v1721_v34  ;;  %2398 = vst [vmem:[#allocation2 + $0x8c] sm:$0x1] %v2397_v2 }
 0x205   : > { %v2174_v23 = vsel %vm12182_vm8, %v17560_v7, %v2173_v11  ;;  %v1729_v55 = vand.u32 2147483647, %v12917_v54  ;;  %v4791_v13 = vunpack.c.l.b16 %v3308_v60  ;;  %v4792_v44 = vunpack.c.l.b16 %v3318_v22  ;;  %v10883_v22 = vld [vmem:[#allocation2 + $0x18] sm:$0xff] }
 0x206   : > { %2395 = vst.msk [vmem:[#allocation2 + $0x88] sm:$0xf] %vm17561_vm14, %v2174_v23  ;;  %v1731_v31 = vand.u32 2147483648, %v12917_v54  ;;  %v10309_v63 = vrot.slane %v13290_v36, 9  ;;  %4757 = vrot.lane.b32.xlu2 %v10905_v9, %s11205_s29  ;;  %v1723_v35 = vmul.f32 %v12973_v6, %v1722_v19  ;;  %v4368_v16 = vrot.slane %v13302_v12, 5  ;;  %vm13326_vm14 = vmor %vm1725_vm0, %vm1726_vm15 }
 0x207   : > { %vm13316_vm9 = vcmp.eq.f32.partialorder %v1729_v55, 8.507059e+37  ;;  %v4371_v29 = vrot.slane %v13304_v41, 5  ;;  %v4822_v11 = vpack.c.b16 %v4792_v44, %v4791_v13  ;;  %v2671_v46 = vshrl.u32 %v13242_v61, 16 }
 0x208   : > { %v1732_v28 = vor.u32 1.1754944e-38, %v1731_v31  ;;  %v2674_v20 = vshll.u32 %v13242_v61, 16  ;;  %v1724_v47 = vadd.f32 %v12973_v6, %v1723_v35  ;;  %v4369_v34 = vsel %vm11373_vm10, %v10309_v63, %v4368_v16 }
 0x209   : > { %v4370_v7 = vrot.slane %v4368_v16, 4  ;;  %v2680_v23 = vshll.u32 %v13249_v33, 16  ;;  %4845 = vrot.lane.b32.xlu1 %v4822_v11, %s11208_s12  ;;  %v5151_v54 = vunpack.c.l.b16 %v4369_v34  ;;  %v2673_v2 = vrot.slane %v2671_v46, 4  ;;  %v13375_v46 = vld [vmem:[#allocation2 + $0x58] sm:$0xf] }
 0x20a   : > { %v2676_v9 = vrot.slane %v2674_v20, 5  ;;  %v2684_v60 = vshrl.u32 %v13249_v33, 16  ;;  %4669 = vrot.lane.b32.xlu0 %v4644_v51, %s11204_s28  ;;  %v1728_v61 = vsel %vm13326_vm14, %v12973_v6, %v1724_v47  ;;  %v2690_v13 = vshll.u32 %v13251_v3, 16  ;;  %v13358_v3 = vpop.permute.xlu1 %4929 }
 0x20b   : > { %v4372_v19 = vsel %vm11373_vm10, %v4370_v7, %v4371_v29  ;;  %v2682_v55 = vrot.slane %v2680_v23, 5  ;;  %v1733_v44 = vsel %vm13316_vm9, %v1732_v28, %v1728_v61  ;;  %v13349_v33 = vmul.f32 %v13215_v43, %v13177_v45  ;;  %v13363_v45 = vpop.permute.xlu2 %5019  ;;  %v1887_v43 = vpop.permute.xlu0 %1886  ;;  %v13434_v61 = vld [vmem:[#allocation2 + $0x68] sm:$0x1] }
 0x20c   : > { %v5152_v31 = vunpack.c.l.b16 %v4372_v19  ;;  %v2677_v63 = vor.u32 %v2676_v9, %v2673_v2  ;;  %v2686_v35 = vrot.slane %v2684_v60, 4  ;;  %v5240_v51 = vsel %vm805_vm1, %v10883_v22, %v13256_v42 }
 0x20d   : > { %v13353_v6 = vmul.f32 %v1733_v44, %v938_v21  ;;  %vm17566_vm0 = vcmask 130048   ;;  %vm17567_vm15 = vcmask 326656   ;;  %v2692_v28 = vrot.slane %v2690_v13, 5 }
 0x20e   : > { %v5294_v16 = vsel %vm17566_vm0, %v13281_v57, %v13157_v50  ;;  %v5182_v59 = vpack.c.b16 %v5152_v31, %v5151_v54  ;;  %v2678_v29 = vrot.slane %v2677_v63, 4  ;;  %v2687_v11 = vor.u32 %v2686_v35, %v2682_v55  ;;  %v13373_v57 = vld [vmem:[#allocation2 + $0x54] sm:$0xf]  ;;  %vm17568_vm9 = vmmov %vm17566_vm0  ;;  %v939_v31 = vpop.f32.mrf.mxu0 }
 0x20f   : > { %v5401_v40 = vsel %vm17567_vm15, %v13284_v38, %v13013_v39  ;;  %v13366_v42 = vsel %vm5323_vm3, %v5294_v16, %v4752_v58  ;;  %v1736_v50 = vmul.f32 %v13072_v27, %v13022_v0  ;;  %v5292_v58 = vsel %vm17568_vm9, %v5240_v51, %v13145_v37  ;;  %v524_v16 = vld [vmem:[#allocation2 + $0x98] sm:$0x1] }
 0x210   : > { %v13369_v21 = vsel %vm5434_vm11, %v5401_v40, %v5018_v32  ;;  %5205 = vrot.lane.b32.xlu2 %v5182_v59, %s11211_s21  ;;  %v2683_v39 = vsel %vm11386_vm13, %v2678_v29, %v2682_v55  ;;  %v2688_v38 = vrot.slane %v2687_v11, 4  ;;  %vm1740_vm14 = vweird.f32 %v13022_v0  ;;  %v13383_v32 = vld [vmem:[#allocation2 + $0x5c] sm:$0x1] }
 0x211   : > { %v4525_v20 = vunpack.c.l.b16 %v2683_v39  ;;  %v1737_v47 = vsub.f32 1.0, %v1736_v50  ;;  %vm1741_vm0 = vweird.f32 %v13072_v27  ;;  %v1744_v34 = vand.u32 2147483647, %v13022_v0  ;;  %1900 = vrot.lane.b32.xlu1 %v12860_v56, %s11212_s22 }
 0x212   : > { %v2693_v7 = vsel %vm11386_vm13, %v2688_v38, %v2692_v28  ;;  %v1746_v23 = vand.u32 2147483648, %v13022_v0  ;;  %v10238_v37 = vrot.slane %v13373_v57, 9  ;;  %v3705_v54 = vrot.slane %v13375_v46, 5  ;;  %vm13402_vm9 = vmor %vm1740_vm14, %vm1741_vm0  ;;  %v13422_v38 = vld [vmem:[#allocation2 + $0x64] sm:$0xf] }
 0x213   : > { %v4526_v2 = vunpack.c.l.b16 %v2693_v7  ;;  %v1738_v9 = vmul.f32 %v13072_v27, %v1737_v47  ;;  %vm13395_vm15 = vcmp.eq.f32.partialorder %v1744_v34, 8.507059e+37  ;;  %v3708_v22 = vrot.slane %v13383_v32, 5 }
 0x214   : > { %v1747_v56 = vor.u32 1.1754944e-38, %v1746_v23  ;;  %v3706_v19 = vsel %vm11373_vm10, %v10238_v37, %v3705_v54  ;;  %v3707_v55 = vrot.slane %v3705_v54, 4  ;;  %v3966_v13 = vshrl.u32 %v13290_v36, 16  ;;  %v527_v23 = vld [vmem:[#allocation2 + $0xa4] sm:$0x1]  ;;  %v1891_v37 = vpop.permute.xlu2 %1890  ;;  %v13427_v54 = vpop.permute.xlu0 %4663 }
 0x215   : > { %v4554_v44 = vpack.c.b16 %v4526_v2, %v4525_v20  ;;  %v1739_v63 = vadd.f32 %v13072_v27, %v1738_v9  ;;  %v4883_v35 = vunpack.c.l.b16 %v3706_v19  ;;  %v3969_v51 = vshll.u32 %v13290_v36, 16  ;;  %v13420_v36 = vld [vmem:[#allocation2 + $0x60] sm:$0xf]  ;;  %v4840_v20 = vpop.permute.xlu1 %4839 }
 0x216   : > { %v3709_v0 = vsel %vm11373_vm10, %v3707_v55, %v3708_v22  ;;  %v3968_v59 = vrot.slane %v3966_v13, 4  ;;  %v3975_v29 = vshll.u32 %v13302_v12, 16  ;;  %v3979_v11 = vshrl.u32 %v13302_v12, 16 }
 0x217   : > { %4579 = vrot.lane.b32.xlu0 %v4554_v44, %s11206_s30  ;;  %v1743_v40 = vsel %vm13402_vm9, %v13072_v27, %v1739_v63  ;;  %v4884_v28 = vunpack.c.l.b16 %v3709_v0  ;;  %v3971_v50 = vrot.slane %v3969_v51, 5  ;;  %v3985_v39 = vshll.u32 %v13304_v41, 16 }
 0x218   : > { %v940_v47 = vadd.f32 %v12980_v4, %v939_v31  ;;  %v3977_v34 = vrot.slane %v3975_v29, 5  ;;  %v3981_v7 = vrot.slane %v3979_v11, 4  ;;  %v525_v12 = vsel %vm11358_vm7, 0, %v524_v16 }
 0x219   : > { %v5329_v27 = vsel %vm5323_vm3, %v5292_v58, %v13292_v49  ;;  %v1748_v41 = vsel %vm13395_vm15, %v1747_v56, %v1743_v40  ;;  %v4913_v2 = vpack.c.b16 %v4884_v28, %v4883_v35  ;;  %v3972_v9 = vor.u32 %v3971_v50, %v3968_v59  ;;  %526 = vst [vmem:[#allocation2 + $0x98] sm:$0x1] %v525_v12 }
 0x21a   : > { %v3982_v22 = vor.u32 %v3981_v7, %v3977_v34  ;;  %v1961_v4 = vadd.f32 %v1887_v43, %v12768_v15  ;;  %v10168_v19 = vrot.slane %v13420_v36, 9  ;;  %v3049_v55 = vrot.slane %v13422_v38, 5  ;;  %v13457_v7 = vld [vmem:[#allocation2 + $0x64] sm:$0xf] }
 0x21b   : > { %4937 = vrot.lane.b32.xlu2 %v4913_v2, %s11207_s11  ;;  %v3973_v13 = vrot.slane %v3972_v9, 4  ;;  %v3987_v44 = vrot.slane %v3985_v39, 5  ;;  %v528_v49 = vsel %vm11358_vm7, 0, %v527_v23  ;;  %v1963_v58 = vadd.f32 %v1891_v37, %v12893_v10  ;;  %v13461_v2 = vld [vmem:[#allocation2 + $0x60] sm:$0xf] }
 0x21c   : > { %v3983_v60 = vrot.slane %v3982_v22, 4  ;;  %v1993_v56 = vpack.c.bf16 %v1961_v4, %v1961_v4  ;;  %v3050_v15 = vsel %vm11373_vm10, %v10168_v19, %v3049_v55  ;;  %v3051_v43 = vrot.slane %v3049_v55, 4  ;;  %529 = vst [vmem:[#allocation2 + $0xa4] sm:$0x1] %v528_v49  ;;  %v13463_v19 = vld [vmem:[#allocation2 + $0x68] sm:$0x1]  ;;  %v4932_v55 = vpop.permute.xlu0 %4931 }
 0x21d   : > { %v13444_v31 = vmul.f32 %v1748_v41, %v940_v47  ;;  %v3978_v63 = vsel %vm11386_vm13, %v3973_v13, %v3977_v34  ;;  %v3052_v35 = vrot.slane %v13434_v61, 5  ;;  %v1995_v51 = vpack.c.bf16 %v1963_v58, %v1963_v58  ;;  %v5108_v9 = vpop.permute.xlu1 %5107 }
 0x21e   : > { %v3988_v16 = vsel %vm11386_vm13, %v3983_v60, %v3987_v44  ;;  %v5061_v0 = vunpack.c.l.b16 %v3978_v63  ;;  %v2185_v10 = vshrl.u32 %v1993_v56, 16  ;;  %v4617_v59 = vunpack.c.l.b16 %v3050_v15  ;;  %v4842_v60 = vpop.permute.xlu2 %4841 }
 0x21f   : > { %1904 = vrot.lane.b32.xlu0 %v13010_v26, %s11212_s22  ;;  %v5062_v29 = vunpack.c.l.b16 %v3988_v16  ;;  %v3053_v11 = vsel %vm11373_vm10, %v3051_v43, %v3052_v35  ;;  %v2202_v40 = vshrl.u32 %v1995_v51, 16  ;;  %vm17573_vm14 = vcmask 261120   ;;  %v13480_v35 = vld [vmem:[#allocation2 + $0x60] sm:$0xf] }
 0x220   : > { %v5366_v28 = vsel %vm17573_vm14, %v5329_v27, %v4840_v20  ;;  %v2187_v50 = vrot.slane %v2185_v10, 7  ;;  %v2188_v39 = vshll.u32 %v1993_v56, 16  ;;  %v4618_v47 = vunpack.c.l.b16 %v3053_v11  ;;  %v2403_v23 = vld [vmem:[#allocation2 + $0x98] sm:$0x1]  ;;  %vm17577_vm9 = vmmov %vm17573_vm14 }
 0x221   : > { %v3320_v34 = vshrl.u32 %v13373_v57, 16  ;;  %v5092_v12 = vpack.c.b16 %v5062_v29, %v5061_v0  ;;  %v2204_v37 = vrot.slane %v2202_v40, 7  ;;  %v3323_v41 = vshll.u32 %v13373_v57, 16  ;;  %v13488_v29 = vld [vmem:[#allocation2 + $0x68] sm:$0x1] }
 0x222   : > { %v3329_v26 = vshll.u32 %v13375_v46, 16  ;;  %v2190_v22 = vor.u32 %v2188_v39, %v2187_v50  ;;  %v2192_v4 = vrot.slane %v2187_v50, 4  ;;  %v2205_v20 = vshll.u32 %v1995_v51, 16  ;;  %v13482_v51 = vld [vmem:[#allocation2 + $0x64] sm:$0xf] }
 0x223   : > { %v3322_v27 = vrot.slane %v3320_v34, 4  ;;  %5115 = vrot.lane.b32.xlu1 %v5092_v12, %s11209_s17  ;;  %1902 = vrot.lane.b32.xlu2 %v12904_v25, %s11212_s22  ;;  %v2410_v13 = vld [vmem:[#allocation2 + $0xa4] sm:$0x1]  ;;  %v2209_v44 = vrot.slane %v2204_v37, 4  ;;  %vm17574_vm0 = vcmask 326656   ;;  %v3325_v49 = vrot.slane %v3323_v41, 5 }
 0x224   : > { %v13470_v57 = vsel %vm17574_vm0, %v5366_v28, %v13358_v3  ;;  %v3331_v58 = vrot.slane %v3329_v26, 5  ;;  %v17575_v56 = vrot.slane %v13151_v5, 4  ;;  %v2404_v43 = vsel %vm11346_vm6, %v2192_v4, %v2403_v23  ;;  %v10906_v3 = vld [vmem:[#allocation2 + $0x60] sm:$0xff]  ;;  %vm17578_vm14 = vmmov %vm17574_vm0 }
 0x225   : > { %v3333_v63 = vshrl.u32 %v13375_v46, 16  ;;  %v3339_v25 = vshll.u32 %v13383_v32, 16  ;;  %vm17576_vm15 = vcmask 60416   ;;  %v4645_v16 = vpack.c.b16 %v4618_v47, %v4617_v59  ;;  %2405 = vst [vmem:[#allocation2 + $0x98] sm:$0x1] %v2404_v43 }
 0x226   : > { %v2191_v15 = vsel %vm12182_vm8, %v17575_v56, %v2190_v22  ;;  %v2411_v5 = vsel %vm11346_vm6, %v2209_v44, %v2410_v13  ;;  %v3326_v0 = vor.u32 %v3325_v49, %v3322_v27  ;;  %v3712_v10 = vrot.slane %v13457_v7, 5  ;;  %v465_v43 = vld [vmem:[#allocation2 + $0x9c] sm:$0x1]  ;;  %vm17579_vm0 = vmmov %vm17576_vm15 }
 0x227   : > { %2402 = vst.msk [vmem:[#allocation2 + $0x94] sm:$0xf] %vm17576_vm15, %v2191_v15  ;;  %v13490_v46 = vor.u32 %v2205_v20, %v2204_v37  ;;  %v3335_v32 = vrot.slane %v3333_v63, 4  ;;  %v3341_v11 = vrot.slane %v3339_v25, 5  ;;  %v10239_v40 = vrot.slane %v13461_v2, 9  ;;  %4759 = vrot.lane.b32.xlu0 %v10906_v3, %s11205_s29  ;;  %v13522_v15 = vpop.permute.xlu0 %4573  ;;  %v10923_v25 = vld [vmem:[#allocation2 + $0x60] sm:$0xff] }
 0x228   : > { %2412 = vst [vmem:[#allocation2 + $0xa4] sm:$0x1] %v2411_v5  ;;  %v3327_v28 = vrot.slane %v3326_v0, 4  ;;  %v3714_v59 = vrot.slane %v3712_v10, 4  ;;  %v3715_v50 = vrot.slane %v13463_v19, 5  ;;  %v5368_v39 = vsel %vm17577_vm9, %v13366_v42, %v4842_v60  ;;  %v13526_v5 = vpop.permute.xlu2 %5111 }
 0x229   : > { %v3336_v47 = vor.u32 %v3335_v32, %v3331_v58  ;;  %v3713_v34 = vsel %vm11373_vm10, %v10239_v40, %v3712_v10  ;;  %v5475_v12 = vsel %vm5471_vm12, %v13369_v21, %v5108_v9  ;;  %v10310_v23 = vrot.slane %v13480_v35, 9  ;;  %v13528_v0 = vld [vmem:[#allocation2 + $0x6c] sm:$0xf]  ;;  %v13531_v40 = vld [vmem:[#allocation2 + $0x70] sm:$0xf] }
 0x22a   : > { %v3332_v37 = vsel %vm11386_vm13, %v3327_v28, %v3331_v58  ;;  %v3716_v41 = vsel %vm11373_vm10, %v3714_v59, %v3715_v50  ;;  %v5512_v26 = vsel %vm5508_vm4, %v5475_v12, %v13226_v48  ;;  %v4375_v42 = vrot.slane %v13482_v51, 5  ;;  %v1889_v48 = vpop.permute.xlu1 %1888  ;;  %v13533_v28 = vld [vmem:[#allocation2 + $0x74] sm:$0x1] }
 0x22b   : > { %v3337_v22 = vrot.slane %v3336_v47, 4  ;;  %v4793_v4 = vunpack.c.l.b16 %v3332_v37  ;;  %v4886_v20 = vunpack.c.l.b16 %v3716_v41  ;;  %10555 = vmatmul.msk.bf16.gmra.mxu0 %vm17422_vm2, %v5512_v26  ;;  %v4378_v21 = vrot.slane %v13488_v29, 5  ;;  %4671 = vrot.lane.b32.xlu1 %v4645_v16, %s11204_s28 }
 0x22c   : > { %v4376_v9 = vsel %vm11373_vm10, %v10310_v23, %v4375_v42  ;;  %v4377_v27 = vrot.slane %v4375_v42, 4  ;;  %v3344_v13 = vshrl.u32 %v13461_v2, 16  ;;  %v3347_v44 = vshll.u32 %v13461_v2, 16 }
 0x22d   : > { %v3342_v49 = vsel %vm11386_vm13, %v3337_v22, %v3341_v11  ;;  %v4885_v58 = vunpack.c.l.b16 %v3713_v34  ;;  %v13519_v60 = vsel %vm17578_vm14, %v5368_v39, %v4932_v55  ;;  %v3353_v56 = vshll.u32 %v13457_v7, 16 }
 0x22e   : > { %v4794_v63 = vunpack.c.l.b16 %v3342_v49  ;;  %v4379_v3 = vsel %vm11373_vm10, %v4377_v27, %v4378_v21  ;;  %v3346_v16 = vrot.slane %v3344_v13, 4  ;;  %v3349_v2 = vrot.slane %v3347_v44, 5 }
 0x22f   : > { %v5153_v10 = vunpack.c.l.b16 %v4376_v9  ;;  %v5154_v32 = vunpack.c.l.b16 %v4379_v3  ;;  %v3355_v55 = vrot.slane %v3353_v56, 5  ;;  %v3357_v11 = vshrl.u32 %v13457_v7, 16  ;;  %5027 = vrot.lane.b32.xlu0 %v10923_v25, %s11210_s18 }
 0x230   : > { %v4823_v59 = vpack.c.b16 %v4794_v63, %v4793_v4  ;;  %v4914_v50 = vpack.c.b16 %v4886_v20, %v4885_v58  ;;  %v3350_v39 = vor.u32 %v3349_v2, %v3346_v16  ;;  %v466_v47 = vsel %vm11346_vm6, 0, %v465_v43  ;;  %v471_v63 = vld [vmem:[#allocation2 + $0xb4] sm:$0x1] }
 0x231   : > { %v5183_v34 = vpack.c.b16 %v5154_v32, %v5153_v10  ;;  %v3359_v12 = vrot.slane %v3357_v11, 4  ;;  %v3363_v23 = vshll.u32 %v13463_v19, 16  ;;  %467 = vst [vmem:[#allocation2 + $0x9c] sm:$0x1] %v466_v47  ;;  %v1962_v37 = vadd.f32 %v1889_v48, %v12830_v62  ;;  %v5110_v32 = vpop.permute.xlu0 %5109  ;;  %v1897_v47 = vpop.permute.xlu2 %1896 }
 0x232   : > { %4847 = vrot.lane.b32.xlu2 %v4823_v59, %s11208_s12  ;;  %v3351_v7 = vrot.slane %v3350_v39, 4  ;;  %v10240_v41 = vrot.slane %v13528_v0, 9  ;;  %v3719_v26 = vrot.slane %v13531_v40, 5  ;;  %v3722_v42 = vrot.slane %v13533_v28, 5  ;;  %v5200_v25 = vpop.permute.xlu1 %5199 }
 0x233   : > { %v3360_v22 = vor.u32 %v3359_v12, %v3355_v55  ;;  %v1994_v4 = vpack.c.bf16 %v1962_v37, %v1962_v37  ;;  %v2695_v20 = vshrl.u32 %v13420_v36, 16  ;;  %v2698_v21 = vshll.u32 %v13420_v36, 16  ;;  %4939 = vrot.lane.b32.xlu1 %v4914_v50, %s11207_s11 }
 0x234   : > { %v3356_v62 = vsel %vm11386_vm13, %v3351_v7, %v3355_v55  ;;  %v3720_v19 = vsel %vm11373_vm10, %v10240_v41, %v3719_v26  ;;  %v3721_v9 = vrot.slane %v3719_v26, 4  ;;  %v2704_v27 = vshll.u32 %v13422_v38, 16 }
 0x235   : > { %v3361_v13 = vrot.slane %v3360_v22, 4  ;;  %v3365_v44 = vrot.slane %v3363_v23, 5  ;;  %v4795_v48 = vunpack.c.l.b16 %v3356_v62  ;;  %v2194_v49 = vshrl.u32 %v1994_v4, 16  ;;  %v13574_v62 = vld [vmem:[#allocation2 + $0x6c] sm:$0xf] }
 0x236   : > { %v2197_v58 = vshll.u32 %v1994_v4, 16  ;;  %v3723_v56 = vsel %vm11373_vm10, %v3721_v9, %v3722_v42  ;;  %v2697_v36 = vrot.slane %v2695_v20, 4  ;;  %v2700_v43 = vrot.slane %v2698_v21, 5  ;;  %v13570_v21 = vld [vmem:[#allocation2 + $0x6c] sm:$0xf] }
 0x237   : > { %v3366_v3 = vsel %vm11386_vm13, %v3361_v13, %v3365_v44  ;;  %v2196_v16 = vrot.slane %v2194_v49, 7  ;;  %v4887_v2 = vunpack.c.l.b16 %v3720_v19  ;;  %v4888_v10 = vunpack.c.l.b16 %v3723_v56  ;;  %v13582_v9 = vld [vmem:[#allocation2 + $0x74] sm:$0x1] }
 0x238   : > { %v4796_v55 = vunpack.c.l.b16 %v3366_v3  ;;  %v2406_v11 = vld [vmem:[#allocation2 + $0x9c] sm:$0xf]  ;;  %v2701_v59 = vor.u32 %v2700_v43, %v2697_v36  ;;  %v2706_v50 = vrot.slane %v2704_v27, 5  ;;  %v2708_v39 = vshrl.u32 %v13422_v38, 16  ;;  %v13593_v43 = vld [vmem:[#allocation2 + $0x74] sm:$0x1] }
 0x239   : > { %v2199_v12 = vor.u32 %v2197_v58, %v2196_v16  ;;  %v2200_v23 = vrot.slane %v2196_v16, 4  ;;  %v2714_v37 = vshll.u32 %v13434_v61, 16  ;;  %v472_v7 = vsel %vm11346_vm6, 0, %v471_v63  ;;  %v10924_v16 = vld [vmem:[#allocation2 + $0x6c] sm:$0xff] }
 0x23a   : > { %5207 = vrot.lane.b32.xlu2 %v5183_v34, %s11211_s21  ;;  %v4824_v41 = vpack.c.b16 %v4796_v55, %v4795_v48  ;;  %v4915_v26 = vpack.c.b16 %v4888_v10, %v4887_v2  ;;  %v2702_v42 = vrot.slane %v2701_v59, 4  ;;  %v2710_v22 = vrot.slane %v2708_v39, 4  ;;  %473 = vst [vmem:[#allocation2 + $0xb4] sm:$0x1] %v472_v7  ;;  %v13572_v34 = vld [vmem:[#allocation2 + $0x70] sm:$0xf]  ;;  %v13601_v55 = vpop.permute.xlu1 %5021 }
 0x23b   : > { %v2208_v4 = vsel %vm12182_vm8, %v2200_v23, %v13490_v46  ;;  %v2407_v38 = vsel %vm12121_vm5, %v2199_v12, %v2406_v11  ;;  %v1966_v20 = vadd.f32 %v1897_v47, %v13134_v53  ;;  %v5440_v61 = vsel %vm5434_vm11, %v13470_v57, %v13363_v45  ;;  %1906 = vrot.lane.b32.xlu1 %v13043_v1, %s11212_s22  ;;  %v13584_v45 = vld [vmem:[#allocation2 + $0x70] sm:$0xf]  ;;  %v1893_v47 = vpop.permute.xlu0 %1892 }
 0x23c   : > { %4849 = vrot.lane.b32.xlu0 %v4824_v41, %s11208_s12  ;;  %2408 = vst [vmem:[#allocation2 + $0x9c] sm:$0xf] %v2407_v38  ;;  %v2707_v46 = vsel %vm11386_vm13, %v2702_v42, %v2706_v50  ;;  %v2711_v53 = vor.u32 %v2710_v22, %v2706_v50  ;;  %v5477_v19 = vsel %vm5471_vm12, %v5440_v61, %v5110_v32  ;;  %v2716_v57 = vrot.slane %v2714_v37, 5  ;;  %v13610_v42 = vpop.permute.xlu2 %5023 }
 0x23d   : > { %2409 = vst.msk [vmem:[#allocation2 + $0xa0] sm:$0xf] %vm17579_vm0, %v2208_v4  ;;  %v4527_v27 = vunpack.c.l.b16 %v2707_v46  ;;  %v1998_v13 = vpack.c.bf16 %v1966_v20, %v1966_v20  ;;  %v5514_v44 = vsel %vm5508_vm4, %v5477_v19, %v5200_v25  ;;  %v10169_v1 = vrot.slane %v13570_v21, 9 }
 0x23e   : > { %v2712_v48 = vrot.slane %v2711_v53, 4  ;;  %10556 = vmatmul.msk.bf16.vlgmr.msra.gmra.mxu2 %vm17422_vm2, %v5514_v44  ;;  %v3056_v49 = vrot.slane %v13572_v34, 5  ;;  %v4014_v58 = vshrl.u32 %v13574_v62, 16  ;;  %v3059_v36 = vrot.slane %v13582_v9, 5 }
 0x23f   : > { %v2228_v56 = vshrl.u32 %v1998_v13, 16  ;;  %v4017_v63 = vshll.u32 %v13574_v62, 16  ;;  %v4023_v3 = vshll.u32 %v13584_v45, 16  ;;  %v2231_v50 = vshll.u32 %v1998_v13, 16 }
 0x240   : > { %v2717_v25 = vsel %vm11386_vm13, %v2712_v48, %v2716_v57  ;;  %v3057_v2 = vsel %vm11373_vm10, %v10169_v1, %v3056_v49  ;;  %v3058_v10 = vrot.slane %v3056_v49, 4  ;;  %v4016_v32 = vrot.slane %v4014_v58, 4  ;;  %v468_v57 = vld [vmem:[#allocation2 + $0xa8] sm:$0x1] }
 0x241   : > { %v4528_v11 = vunpack.c.l.b16 %v2717_v25  ;;  %v13603_v59 = vrot.slane %v2228_v56, 7  ;;  %v4019_v39 = vrot.slane %v4017_v63, 5  ;;  %v2420_v12 = vld [vmem:[#allocation2 + $0xb4] sm:$0xf]  ;;  %v4025_v37 = vrot.slane %v4023_v3, 5 }
 0x242   : > { %5029 = vrot.lane.b32.xlu2 %v10924_v16, %s11210_s18  ;;  %v3060_v23 = vsel %vm11373_vm10, %v3058_v10, %v3059_v36  ;;  %v4027_v7 = vshrl.u32 %v13584_v45, 16  ;;  %v4033_v41 = vshll.u32 %v13593_v43, 16  ;;  %v4619_v38 = vunpack.c.l.b16 %v3057_v2  ;;  %v10885_v56 = vld [vmem:[#allocation2 + $0x30] sm:$0xff] }
 0x243   : > { %v4555_v22 = vpack.c.b16 %v4528_v11, %v4527_v27  ;;  %v2233_v4 = vor.u32 %v2231_v50, %v13603_v59  ;;  %v4620_v20 = vunpack.c.l.b16 %v3060_v23  ;;  %v4020_v61 = vor.u32 %v4019_v39, %v4016_v32 }
 0x244   : > { %4941 = vrot.lane.b32.xlu0 %v4915_v26, %s11207_s11  ;;  %v4029_v46 = vrot.slane %v4027_v7, 4  ;;  %v4035_v53 = vrot.slane %v4033_v41, 5  ;;  %v3990_v19 = vshrl.u32 %v13480_v35, 16  ;;  %v3993_v27 = vshll.u32 %v13480_v35, 16 }
 0x245   : > { %4581 = vrot.lane.b32.xlu1 %v4555_v22, %s11206_s30  ;;  %v2421_v13 = vsel %vm12121_vm5, %v2233_v4, %v2420_v12  ;;  %v4646_v44 = vpack.c.b16 %v4620_v20, %v4619_v38  ;;  %v3999_v48 = vshll.u32 %v13482_v51, 16  ;;  %v4021_v1 = vrot.slane %v4020_v61, 4  ;;  %v13639_v61 = vld [vmem:[#allocation2 + $0x78] sm:$0xf] }
 0x246   : > { %2422 = vst [vmem:[#allocation2 + $0xb4] sm:$0xf] %v2421_v13  ;;  %v4030_v49 = vor.u32 %v4029_v46, %v4025_v37  ;;  %v3992_v26 = vrot.slane %v3990_v19, 4  ;;  %v4003_v58 = vshrl.u32 %v13482_v51, 16  ;;  %v3995_v36 = vrot.slane %v3993_v27, 5  ;;  %v13641_v46 = vpop.permute.xlu2 %4667 }
 0x247   : > { %v4001_v63 = vrot.slane %v3999_v48, 5  ;;  %v4009_v3 = vshll.u32 %v13488_v29, 16  ;;  %v469_v16 = vsel %vm11346_vm6, 0, %v468_v57  ;;  %v4026_v25 = vsel %vm11386_vm13, %v4021_v1, %v4025_v37  ;;  %v13633_v37 = vpop.permute.xlu1 %4665 }
 0x248   : > { %v4031_v35 = vrot.slane %v4030_v49, 4  ;;  %v4005_v2 = vrot.slane %v4003_v58, 4  ;;  %470 = vst [vmem:[#allocation2 + $0xa8] sm:$0x1] %v469_v16  ;;  %v1964_v10 = vadd.f32 %v1893_v47, %v12966_v17  ;;  %v5246_v32 = vsel %vm805_vm1, %v10885_v56, %v13522_v15  ;;  %v13637_v47 = vpop.permute.xlu0 %4753  ;;  %v13652_v49 = vld [vmem:[#allocation2 + $0x80] sm:$0x1] }
 0x249   : > { %v5065_v51 = vunpack.c.l.b16 %v4026_v25  ;;  %v3996_v11 = vor.u32 %v3995_v36, %v3992_v26  ;;  %v4011_v50 = vrot.slane %v4009_v3, 5  ;;  %v2719_v23 = vshrl.u32 %v13570_v21, 16 }
 0x24a   : > { %4673 = vrot.lane.b32.xlu2 %v4646_v44, %s11204_s28  ;;  %v4036_v29 = vsel %vm11386_vm13, %v4031_v35, %v4035_v53  ;;  %v4006_v39 = vor.u32 %v4005_v2, %v4001_v63  ;;  %v1996_v12 = vpack.c.bf16 %v1964_v10, %v1964_v10  ;;  %v2722_v17 = vshll.u32 %v13570_v21, 16  ;;  %v13645_v44 = vld [vmem:[#allocation2 + $0x7c] sm:$0xf]  ;;  %v13660_v2 = vld [vmem:[#allocation2 + $0x78] sm:$0xf] }
 0x24b   : > { %v5066_v7 = vunpack.c.l.b16 %v4036_v29  ;;  %v3997_v41 = vrot.slane %v3996_v11, 4  ;;  %v2728_v15 = vshll.u32 %v13572_v34, 16  ;;  %v2721_v20 = vrot.slane %v2719_v23, 4  ;;  %v13672_v23 = vld [vmem:[#allocation2 + $0x80] sm:$0x1] }
 0x24c   : > { %v4007_v22 = vrot.slane %v4006_v39, 4  ;;  %v2211_v4 = vshrl.u32 %v1996_v12, 16  ;;  %v2214_v38 = vshll.u32 %v1996_v12, 16  ;;  %v2724_v57 = vrot.slane %v2722_v17, 5  ;;  %v13670_v12 = vld [vmem:[#allocation2 + $0x7c] sm:$0xf] }
 0x24d   : > { %v5094_v53 = vpack.c.b16 %v5066_v7, %v5065_v51  ;;  %v4002_v19 = vsel %vm11386_vm13, %v3997_v41, %v4001_v63  ;;  %v2730_v13 = vrot.slane %v2728_v15, 5  ;;  %v2732_v1 = vshrl.u32 %v13572_v34, 16 }
 0x24e   : > { %v4012_v21 = vsel %vm11386_vm13, %v4007_v22, %v4011_v50  ;;  %v5063_v27 = vunpack.c.l.b16 %v4002_v19  ;;  %v13649_v48 = vrot.slane %v2211_v4, 7  ;;  %v2725_v56 = vor.u32 %v2724_v57, %v2721_v20 }
 0x24f   : > { %5119 = vrot.lane.b32.xlu0 %v5094_v53, %s11209_s17  ;;  %v5064_v26 = vunpack.c.l.b16 %v4012_v21  ;;  %v2413_v58 = vld [vmem:[#allocation2 + $0xa8] sm:$0xf]  ;;  %v2738_v36 = vshll.u32 %v13582_v9, 16  ;;  %v10170_v63 = vrot.slane %v13639_v61, 9  ;;  %v2234_v3 = vrot.slane %v13603_v59, 4 }
 0x250   : > { %v2216_v16 = vor.u32 %v2214_v38, %v13649_v48  ;;  %v2734_v25 = vrot.slane %v2732_v1, 4  ;;  %v3063_v35 = vrot.slane %v13645_v44, 5  ;;  %v5442_v10 = vsel %vm5434_vm11, %v13519_v60, %v13601_v55  ;;  %v13685_v38 = vpop.permute.xlu1 %4933  ;;  %v10926_v59 = vld [vmem:[#allocation2 + $0x84] sm:$0xff] }
 0x251   : > { %v5093_v34 = vpack.c.b16 %v5064_v26, %v5063_v27  ;;  %v2726_v51 = vrot.slane %v2725_v56, 4  ;;  %v3066_v11 = vrot.slane %v13652_v49, 5  ;;  %v2217_v7 = vrot.slane %v13649_v48, 4  ;;  %v13693_v26 = vpop.permute.xlu2 %4935 }
 0x252   : > { %v2414_v9 = vsel %vm12121_vm5, %v2216_v16, %v2413_v58  ;;  %v2735_v50 = vor.u32 %v2734_v25, %v2730_v13  ;;  %v3064_v29 = vsel %vm11373_vm10, %v10170_v63, %v3063_v35  ;;  %v3065_v39 = vrot.slane %v3063_v35, 4  ;;  %v13701_v16 = vld [vmem:[#allocation2 + $0x7c] sm:$0xf] }
 0x253   : > { %5117 = vrot.lane.b32.xlu1 %v5093_v34, %s11209_s17  ;;  %2415 = vst [vmem:[#allocation2 + $0xa8] sm:$0xf] %v2414_v9  ;;  %v2731_v60 = vsel %vm11386_vm13, %v2726_v51, %v2730_v13  ;;  %v2740_v55 = vrot.slane %v2738_v36, 5  ;;  %v10312_v41 = vrot.slane %v13660_v2, 9  ;;  %v4621_v22 = vunpack.c.l.b16 %v3064_v29  ;;  %v5202_v13 = vpop.permute.xlu0 %5201 }
 0x254   : > { %v2736_v17 = vrot.slane %v2735_v50, 4  ;;  %v3067_v15 = vsel %vm11373_vm10, %v3065_v39, %v3066_v11  ;;  %vm17580_vm15 = vcmask 130048   ;;  %v4529_v20 = vunpack.c.l.b16 %v2731_v60  ;;  %v13711_v11 = vld [vmem:[#allocation2 + $0x80] sm:$0x1] }
 0x255   : > { %v13683_v4 = vsel %vm17580_vm15, %v5246_v32, %v13427_v54  ;;  %v4622_v53 = vunpack.c.l.b16 %v3067_v15  ;;  %v4389_v19 = vrot.slane %v13670_v12, 5  ;;  %v4392_v57 = vrot.slane %v13672_v23, 5  ;;  %v13697_v32 = vld [vmem:[#allocation2 + $0x78] sm:$0xf]  ;;  %vm17582_vm0 = vmmov %vm17580_vm15 }
 0x256   : > { %v2741_v21 = vsel %vm11386_vm13, %v2736_v17, %v2740_v55  ;;  %v10311_v27 = vrot.slane %v13574_v62, 9  ;;  %v4382_v1 = vrot.slane %v13584_v45, 5  ;;  %v5479_v54 = vsel %vm5471_vm12, %v5442_v10, %v13526_v5  ;;  %v10907_v5 = vld [vmem:[#allocation2 + $0x6c] sm:$0xff] }
 0x257   : > { %v4530_v58 = vunpack.c.l.b16 %v2741_v21  ;;  %v4647_v56 = vpack.c.b16 %v4622_v53, %v4621_v22  ;;  %v4390_v36 = vsel %vm11373_vm10, %v10312_v41, %v4389_v19  ;;  %v4391_v63 = vrot.slane %v4389_v19, 4 }
 0x258   : > { %v4383_v62 = vsel %vm11373_vm10, %v10311_v27, %v4382_v1  ;;  %v4384_v25 = vrot.slane %v4382_v1, 4  ;;  %v4385_v45 = vrot.slane %v13593_v43, 5  ;;  %v5516_v35 = vsel %vm5508_vm4, %v5479_v54, %v5202_v13 }
 0x259   : > { %v4556_v34 = vpack.c.b16 %v4530_v58, %v4529_v20  ;;  %4675 = vrot.lane.b32.xlu0 %v4647_v56, %s11204_s28  ;;  %v4393_v10 = vsel %vm11373_vm10, %v4391_v63, %v4392_v57  ;;  %v5157_v51 = vunpack.c.l.b16 %v4390_v36  ;;  %10557 = vmatmul.msk.bf16.gmra.mxu2 %vm17422_vm2, %v5516_v35  ;;  %v10241_v9 = vrot.slane %v13697_v32, 9  ;;  %v1895_v58 = vpop.permute.xlu1 %1894 }
 0x25a   : > { %v5158_v50 = vunpack.c.l.b16 %v4393_v10  ;;  %v4386_v43 = vsel %vm11373_vm10, %v4384_v25, %v4385_v45  ;;  %v5155_v29 = vunpack.c.l.b16 %v4383_v62  ;;  %v3726_v39 = vrot.slane %v13701_v16, 5  ;;  %v530_v10 = vld [vmem:[#allocation2 + $0xb0] sm:$0x1] }
 0x25b   : > { %4583 = vrot.lane.b32.xlu2 %v4556_v34, %s11206_s30  ;;  %4761 = vrot.lane.b32.xlu1 %v10907_v5, %s11205_s29  ;;  %v5156_v60 = vunpack.c.l.b16 %v4386_v43  ;;  %v2743_v55 = vshrl.u32 %v13639_v61, 16  ;;  %v2746_v41 = vshll.u32 %v13639_v61, 16  ;;  %v2752_v17 = vshll.u32 %v13645_v44, 16  ;;  %v4844_v25 = vpop.permute.xlu0 %4843  ;;  %v4578_v5 = vpop.permute.xlu2 %4577 }
 0x25c   : > { %v3727_v15 = vsel %vm11373_vm10, %v10241_v9, %v3726_v39  ;;  %v3728_v22 = vrot.slane %v3726_v39, 4  ;;  %v3729_v20 = vrot.slane %v13711_v11, 5  ;;  %v2756_v53 = vshrl.u32 %v13645_v44, 16 }
 0x25d   : > { %v5185_v19 = vpack.c.b16 %v5158_v50, %v5157_v51  ;;  %v5184_v57 = vpack.c.b16 %v5156_v60, %v5155_v29  ;;  %v2745_v13 = vrot.slane %v2743_v55, 4  ;;  %v2748_v21 = vrot.slane %v2746_v41, 5  ;;  %v10908_v51 = vld [vmem:[#allocation2 + $0x78] sm:$0xff] }
 0x25e   : > { %v3730_v27 = vsel %vm11373_vm10, %v3728_v22, %v3729_v20  ;;  %v2754_v1 = vrot.slane %v2752_v17, 5  ;;  %v2758_v54 = vrot.slane %v2756_v53, 4  ;;  %v2762_v61 = vshll.u32 %v13652_v49, 16 }
 0x25f   : > { %v4889_v56 = vunpack.c.l.b16 %v3727_v15  ;;  %v2749_v36 = vor.u32 %v2748_v21, %v2745_v13  ;;  %v3368_v63 = vshrl.u32 %v13528_v0, 16  ;;  %v3371_v62 = vshll.u32 %v13528_v0, 16  ;;  %v10887_v21 = vld [vmem:[#allocation2 + $0x48] sm:$0xff] }
 0x260   : > { %v4890_v44 = vunpack.c.l.b16 %v3730_v27  ;;  %v2759_v45 = vor.u32 %v2758_v54, %v2754_v1  ;;  %v3377_v35 = vshll.u32 %v13531_v40, 16  ;;  %v3381_v34 = vshrl.u32 %v13531_v40, 16 }
 0x261   : > { %5211 = vrot.lane.b32.xlu0 %v5185_v19, %s11211_s21  ;;  %v2750_v49 = vrot.slane %v2749_v36, 4  ;;  %v2764_v9 = vrot.slane %v2762_v61, 5  ;;  %v3370_v50 = vrot.slane %v3368_v63, 4  ;;  %v3373_v43 = vrot.slane %v3371_v62, 5  ;;  %v17581_v19 = vld [vmem:[#allocation16_spill] sm:$0xff] }
 0x262   : > { %v2760_v29 = vrot.slane %v2759_v45, 4  ;;  %v3379_v39 = vrot.slane %v3377_v35, 5  ;;  %v3383_v60 = vrot.slane %v3381_v34, 4  ;;  %v3387_v0 = vshll.u32 %v13533_v28, 16  ;;  %v533_v35 = vld [vmem:[#allocation2 + $0xbc] sm:$0x1] }
 0x263   : > { %v5333_v55 = vsel %vm5323_vm3, %v13683_v4, %v13637_v47  ;;  %4763 = vrot.lane.b32.xlu2 %v10908_v51, %s11205_s29  ;;  %5209 = vrot.lane.b32.xlu1 %v5184_v57, %s11211_s21  ;;  %v2755_v40 = vsel %vm11386_vm13, %v2750_v49, %v2754_v1  ;;  %v3374_v41 = vor.u32 %v3373_v43, %v3370_v50  ;;  %v531_v17 = vsel %vm11358_vm7, 0, %v530_v10  ;;  %v1899_v49 = vpop.permute.xlu0 %1898 }
 0x264   : > { %v4916_v15 = vpack.c.b16 %v4890_v44, %v4889_v56  ;;  %v2765_v22 = vsel %vm11386_vm13, %v2760_v29, %v2764_v9  ;;  %v4531_v28 = vunpack.c.l.b16 %v2755_v40  ;;  %v3384_v20 = vor.u32 %v3383_v60, %v3379_v39  ;;  %532 = vst [vmem:[#allocation2 + $0xb0] sm:$0x1] %v531_v17  ;;  %v13763_v29 = vpop.permute.xlu2 %4757 }
 0x265   : > { %v4532_v53 = vunpack.c.l.b16 %v2765_v22  ;;  %v3375_v47 = vrot.slane %v3374_v41, 4  ;;  %v3389_v4 = vrot.slane %v3387_v0, 5  ;;  %v1965_v13 = vadd.f32 %v1895_v58, %v17581_v19  ;;  %v13778_v19 = vld [vmem:[#allocation2 + $0x84] sm:$0xf] }
 0x266   : > { %v3385_v57 = vrot.slane %v3384_v20, 4  ;;  %v5370_v27 = vsel %vm17577_vm9, %v5333_v55, %v4844_v25  ;;  %v3392_v1 = vshrl.u32 %v13697_v32, 16  ;;  %v3395_v54 = vshll.u32 %v13697_v32, 16  ;;  %v4576_v25 = vpop.permute.xlu1 %4575 }
 0x267   : > { %v4557_v61 = vpack.c.b16 %v4532_v53, %v4531_v28  ;;  %v3380_v56 = vsel %vm11386_vm13, %v3375_v47, %v3379_v39  ;;  %v1997_v36 = vpack.c.bf16 %v1965_v13, %v1965_v13  ;;  %v3401_v63 = vshll.u32 %v13701_v16, 16 }
 0x268   : > { %v3390_v62 = vsel %vm11386_vm13, %v3385_v57, %v3389_v4  ;;  %v5252_v58 = vsel %vm805_vm1, %v10887_v21, %v4578_v5  ;;  %v3394_v44 = vrot.slane %v3392_v1, 4  ;;  %v3397_v45 = vrot.slane %v3395_v54, 5  ;;  %v10909_v57 = vld [vmem:[#allocation2 + $0x84] sm:$0xff]  ;;  %v10886_v21 = vld [vmem:[#allocation2 + $0x3c] sm:$0xff] }
 0x269   : > { %4585 = vrot.lane.b32.xlu0 %v4557_v61, %s11206_s30  ;;  %v4797_v34 = vunpack.c.l.b16 %v3380_v56  ;;  %v4798_v32 = vunpack.c.l.b16 %v3390_v62  ;;  %v13759_v10 = vsel %vm17578_vm14, %v5370_v27, %v13685_v38  ;;  %v2219_v51 = vshrl.u32 %v1997_v36, 16  ;;  %v13786_v1 = vld [vmem:[#allocation2 + $0x88] sm:$0xf]  ;;  %vm17585_vm14 = vmmov %vm17582_vm0 }
 0x26a   : > { %v3398_v9 = vor.u32 %v3397_v45, %v3394_v44  ;;  %v3403_v50 = vrot.slane %v3401_v63, 5  ;;  %v3405_v43 = vshrl.u32 %v13701_v16, 16  ;;  %v3411_v5 = vshll.u32 %v13711_v11, 16  ;;  %v13796_v45 = vld [vmem:[#allocation2 + $0x8c] sm:$0x1] }
 0x26b   : > { %4943 = vrot.lane.b32.xlu2 %v4916_v15, %s11207_s11  ;;  %v4825_v39 = vpack.c.b16 %v4798_v32, %v4797_v34  ;;  %v2221_v60 = vrot.slane %v2219_v51, 7  ;;  %v2222_v0 = vshll.u32 %v1997_v36, 16  ;;  %v534_v55 = vsel %vm11358_vm7, 0, %v533_v35  ;;  %v2417_v38 = vld [vmem:[#allocation2 + $0xb0] sm:$0x1]  ;;  %v10925_v51 = vld [vmem:[#allocation2 + $0x78] sm:$0xff] }
 0x26c   : > { %v3399_v40 = vrot.slane %v3398_v9, 4  ;;  %v3407_v41 = vrot.slane %v3405_v43, 4  ;;  %v13770_v17 = vsel %vm17582_vm0, %v5252_v58, %v13641_v46  ;;  %535 = vst [vmem:[#allocation2 + $0xbc] sm:$0x1] %v534_v55  ;;  %v1967_v16 = vadd.f32 %v1899_v49, %v13349_v33 }
 0x26d   : > { %4851 = vrot.lane.b32.xlu1 %v4825_v39, %s11208_s12  ;;  %v2224_v11 = vor.u32 %v2222_v0, %v2221_v60  ;;  %v2226_v15 = vrot.slane %v2221_v60, 4  ;;  %v3413_v22 = vrot.slane %v3411_v5, 5  ;;  %v4038_v28 = vshrl.u32 %v13660_v2, 16  ;;  %v13804_v60 = vpop.permute.xlu2 %5205  ;;  %v5114_v0 = vpop.permute.xlu0 %5113 }
 0x26e   : > { %v3404_v20 = vsel %vm11386_vm13, %v3399_v40, %v3403_v50  ;;  %v3408_v53 = vor.u32 %v3407_v41, %v3403_v50  ;;  %v1999_v47 = vpack.c.bf16 %v1967_v16, %v1967_v16  ;;  %v4041_v4 = vshll.u32 %v13660_v2, 16  ;;  %v13799_v34 = vpop.permute.xlu1 %4755  ;;  %v13808_v16 = vld [vmem:[#allocation2 + $0x84] sm:$0xf] }
 0x26f   : > { %v2225_v33 = vsel %vm12182_vm8, %v2217_v7, %v2224_v11  ;;  %v2418_v46 = vsel %vm11346_vm6, %v2226_v15, %v2417_v38  ;;  %v4799_v13 = vunpack.c.l.b16 %v3404_v20  ;;  %v4040_v27 = vrot.slane %v4038_v28, 4  ;;  %v13820_v20 = vld [vmem:[#allocation2 + $0x8c] sm:$0x1] }
 0x270   : > { %vm17583_vm15 = vcmask 60416   ;;  %v3409_v54 = vrot.slane %v3408_v53, 4  ;;  %v2236_v2 = vshrl.u32 %v1999_v47, 16  ;;  %v2239_v61 = vshll.u32 %v1999_v47, 16  ;;  %2419 = vst [vmem:[#allocation2 + $0xb0] sm:$0x1] %v2418_v46 }
 0x271   : > { %2416 = vst.msk [vmem:[#allocation2 + $0xac] sm:$0xf] %vm17583_vm15, %v2225_v33  ;;  %v4043_v56 = vrot.slane %v4041_v4, 5  ;;  %4765 = vrot.lane.b32.xlu0 %v10909_v57, %s11205_s29  ;;  %v4047_v48 = vshll.u32 %v13670_v12, 16  ;;  %v4051_v7 = vshrl.u32 %v13670_v12, 16  ;;  %v4057_v36 = vshll.u32 %v13672_v23, 16  ;;  %vm17584_vm9 = vmmov %vm17583_vm15 }
 0x272   : > { %v10171_v63 = vrot.slane %v13778_v19, 9  ;;  %v3414_v62 = vsel %vm11386_vm13, %v3409_v54, %v3413_v22  ;;  %v2238_v58 = vrot.slane %v2236_v2, 7  ;;  %v3070_v35 = vrot.slane %v13786_v1, 5  ;;  %v13822_v53 = vld [vmem:[#allocation2 + $0x84] sm:$0xf] }
 0x273   : > { %v4044_v44 = vor.u32 %v4043_v56, %v4040_v27  ;;  %v4800_v32 = vunpack.c.l.b16 %v3414_v62  ;;  %v2424_v49 = vld [vmem:[#allocation2 + $0xbc] sm:$0x1]  ;;  %v5249_v12 = vsel %vm805_vm1, %v10886_v21, %v4576_v25  ;;  %v4049_v9 = vrot.slane %v4047_v48, 5  ;;  %v13810_v25 = vld [vmem:[#allocation2 + $0x88] sm:$0xf] }
 0x274   : > { %v4053_v23 = vrot.slane %v4051_v7, 4  ;;  %v2241_v50 = vor.u32 %v2239_v61, %v2238_v58  ;;  %v2243_v43 = vrot.slane %v2238_v58, 4  ;;  %v3071_v39 = vsel %vm11373_vm10, %v10171_v63, %v3070_v35  ;;  %v10209_v46 = vld [vmem:[#allocation2 + $0x88] sm:$0xf]  ;;  %v10210_v54 = vld [vmem:[#allocation2 + $0x8c] sm:$0x1] }
 0x275   : > { %v4045_v5 = vrot.slane %v4044_v44, 4  ;;  %v4826_v55 = vpack.c.b16 %v4800_v32, %v4799_v13  ;;  %5031 = vrot.lane.b32.xlu1 %v10925_v51, %s11210_s18  ;;  %v3072_v40 = vrot.slane %v3070_v35, 4  ;;  %v3073_v41 = vrot.slane %v13796_v45, 5 }
 0x276   : > { %v4054_v38 = vor.u32 %v4053_v23, %v4049_v9  ;;  %v2242_v11 = vsel %vm12182_vm8, %v2234_v3, %v2241_v50  ;;  %v2425_v15 = vsel %vm11346_vm6, %v2243_v43, %v2424_v49  ;;  %v4059_v28 = vrot.slane %v4057_v36, 5  ;;  %v5204_v49 = vpop.permute.xlu1 %5203 }
 0x277   : > { %v4050_v22 = vsel %vm11386_vm13, %v4045_v5, %v4049_v9  ;;  %4853 = vrot.lane.b32.xlu2 %v4826_v55, %s11208_s12  ;;  %2423 = vst.msk [vmem:[#allocation2 + $0xb8] sm:$0xf] %vm17584_vm9, %v2242_v11  ;;  %v3074_v3 = vsel %vm11373_vm10, %v3072_v40, %v3073_v41  ;;  %v4623_v4 = vunpack.c.l.b16 %v3071_v39  ;;  %v5444_v33 = vsel %vm5434_vm11, %v13759_v10, %v13610_v42  ;;  %v13856_v55 = vpop.permute.xlu2 %4937 }
 0x278   : > { %v4055_v47 = vrot.slane %v4054_v38, 4  ;;  %2426 = vst [vmem:[#allocation2 + $0xbc] sm:$0x1] %v2425_v15  ;;  %v5067_v13 = vunpack.c.l.b16 %v4050_v22  ;;  %v4624_v57 = vunpack.c.l.b16 %v3074_v3  ;;  %v5481_v21 = vsel %vm5471_vm12, %v5444_v33, %v5114_v0  ;;  %v13858_v38 = vpop.permute.xlu0 %5025 }
 0x279   : > { %v13834_v27 = vsel %vm17585_vm14, %v5249_v12, %v13633_v37  ;;  %5033 = vrot.lane.b32.xlu0 %v10926_v59, %s11210_s18  ;;  %v10313_v61 = vrot.slane %v13808_v16, 9  ;;  %v4396_v42 = vrot.slane %v13810_v25, 5  ;;  %v4399_v10 = vrot.slane %v13820_v20, 5  ;;  %vm17589_vm14 = vmmov %vm17584_vm9 }
 0x27a   : > { %v4060_v2 = vsel %vm11386_vm13, %v4055_v47, %v4059_v28  ;;  %v4648_v48 = vpack.c.b16 %v4624_v57, %v4623_v4  ;;  %v10242_v7 = vrot.slane %v13822_v53, 9  ;;  %v3733_v36 = vrot.slane %v10209_v46, 5 }
 0x27b   : > { %v5068_v56 = vunpack.c.l.b16 %v4060_v2  ;;  %v4397_v37 = vsel %vm11373_vm10, %v10313_v61, %v4396_v42  ;;  %v4398_v63 = vrot.slane %v4396_v42, 4  ;;  %v3736_v62 = vrot.slane %v10210_v54, 5 }
 0x27c   : > { %v2767_v58 = vshrl.u32 %v13778_v19, 16  ;;  %v5159_v35 = vunpack.c.l.b16 %v4397_v37  ;;  %v3734_v32 = vsel %vm11373_vm10, %v10242_v7, %v3733_v36  ;;  %v3735_v51 = vrot.slane %v3733_v36, 4 }
 0x27d   : > { %v5095_v44 = vpack.c.b16 %v5068_v56, %v5067_v13  ;;  %4677 = vrot.lane.b32.xlu1 %v4648_v48, %s11204_s28  ;;  %v4400_v12 = vsel %vm11373_vm10, %v4398_v63, %v4399_v10  ;;  %v4891_v9 = vunpack.c.l.b16 %v3734_v32  ;;  %v2770_v50 = vshll.u32 %v13778_v19, 16 }
 0x27e   : > { %v2769_v23 = vrot.slane %v2767_v58, 4  ;;  %v5160_v43 = vunpack.c.l.b16 %v4400_v12  ;;  %v3737_v5 = vsel %vm11373_vm10, %v3735_v51, %v3736_v62  ;;  %v2776_v39 = vshll.u32 %v13786_v1, 16  ;;  %v536_v62 = vld [vmem:[#allocation2 + $0xc8] sm:$0x1] }
 0x27f   : > { %v2780_v0 = vshrl.u32 %v13786_v1, 16  ;;  %5121 = vrot.lane.b32.xlu2 %v5095_v44, %s11209_s17  ;;  %v4892_v40 = vunpack.c.l.b16 %v3737_v5  ;;  %v2772_v41 = vrot.slane %v2770_v50, 5  ;;  %v2786_v11 = vshll.u32 %v13796_v45, 16  ;;  %v1903_v50 = vpop.permute.xlu2 %1902  ;;  %v13881_v5 = vld [vmem:[#allocation2 + $0x90] sm:$0xf] }
 0x280   : > { %v5518_v19 = vsel %vm5508_vm4, %v5481_v21, %v5204_v49  ;;  %v5186_v15 = vpack.c.b16 %v5160_v43, %v5159_v35  ;;  %v2778_v22 = vrot.slane %v2776_v39, 5  ;;  %v3416_v47 = vshrl.u32 %v13822_v53, 16  ;;  %v13879_v43 = vpop.permute.xlu0 %4669 }
 0x281   : > { %v2782_v28 = vrot.slane %v2780_v0, 4  ;;  %10558 = vmatmul.msk.bf16.gmra.mxu2 %vm17422_vm2, %v5518_v19  ;;  %v4917_v1 = vpack.c.b16 %v4892_v40, %v4891_v9  ;;  %v2773_v59 = vor.u32 %v2772_v41, %v2769_v23  ;;  %v2788_v3 = vrot.slane %v2786_v11, 5  ;;  %v13885_v11 = vld [vmem:[#allocation2 + $0x94] sm:$0xf] }
 0x282   : > { %v3419_v4 = vshll.u32 %v13822_v53, 16  ;;  %v3418_v13 = vrot.slane %v3416_v47, 4  ;;  %v3425_v57 = vshll.u32 %v10209_v46, 16  ;;  %v3429_v2 = vshrl.u32 %v10209_v46, 16 }
 0x283   : > { %v2783_v33 = vor.u32 %v2782_v28, %v2778_v22  ;;  %4945 = vrot.lane.b32.xlu0 %v4917_v1, %s11207_s11  ;;  %v2774_v45 = vrot.slane %v2773_v59, 4  ;;  %v3435_v61 = vshll.u32 %v10210_v54, 16  ;;  %v4062_v42 = vshrl.u32 %v13808_v16, 16 }
 0x284   : > { %v3421_v21 = vrot.slane %v3419_v4, 5  ;;  %v3427_v56 = vrot.slane %v3425_v57, 5  ;;  %v3431_v48 = vrot.slane %v3429_v2, 4  ;;  %v4065_v7 = vshll.u32 %v13808_v16, 16  ;;  %v13896_v4 = vld [vmem:[#allocation2 + $0x90] sm:$0xf] }
 0x285   : > { %v2784_v10 = vrot.slane %v2783_v33, 4  ;;  %v2779_v36 = vsel %vm11386_vm13, %v2774_v45, %v2778_v22  ;;  %v3437_v37 = vrot.slane %v3435_v61, 5  ;;  %v4064_v63 = vrot.slane %v4062_v42, 4  ;;  %v10927_v57 = vld [vmem:[#allocation2 + $0x90] sm:$0xff] }
 0x286   : > { %v3422_v53 = vor.u32 %v3421_v21, %v3418_v13  ;;  %v4533_v58 = vunpack.c.l.b16 %v2779_v36  ;;  %v3432_v44 = vor.u32 %v3431_v48, %v3427_v56  ;;  %v4067_v54 = vrot.slane %v4065_v7, 5 }
 0x287   : > { %v2789_v46 = vsel %vm11386_vm13, %v2784_v10, %v2788_v3  ;;  %5213 = vrot.lane.b32.xlu2 %v5186_v15, %s11211_s21  ;;  %v4071_v51 = vshll.u32 %v13810_v25, 16  ;;  %v4075_v16 = vshrl.u32 %v13810_v25, 16  ;;  %v4081_v9 = vshll.u32 %v13820_v20, 16  ;;  %v4846_v25 = vpop.permute.xlu1 %4845  ;;  %v13894_v3 = vld [vmem:[#allocation2 + $0x98] sm:$0x1] }
 0x288   : > { %v4534_v35 = vunpack.c.l.b16 %v2789_v46  ;;  %v3423_v32 = vrot.slane %v3422_v53, 4  ;;  %v3433_v49 = vrot.slane %v3432_v44, 4  ;;  %v4068_v12 = vor.u32 %v4067_v54, %v4064_v63  ;;  %v13913_v63 = vld [vmem:[#allocation2 + $0x98] sm:$0x1] }
 0x289   : > { %v537_v23 = vsel %vm11358_vm7, 0, %v536_v62  ;;  %v4073_v40 = vrot.slane %v4071_v51, 5  ;;  %v4077_v41 = vrot.slane %v4075_v16, 4  ;;  %v5335_v20 = vsel %vm5323_vm3, %v13834_v27, %v13799_v34  ;;  %v548_v62 = vld [vmem:[#allocation3] sm:$0x1] }
 0x28a   : > { %v4558_v39 = vpack.c.b16 %v4534_v35, %v4533_v58  ;;  %v3428_v0 = vsel %vm11386_vm13, %v3423_v32, %v3427_v56  ;;  %538 = vst [vmem:[#allocation2 + $0xc8] sm:$0x1] %v537_v23  ;;  %v3438_v19 = vsel %vm11386_vm13, %v3433_v49, %v3437_v37  ;;  %v4069_v22 = vrot.slane %v4068_v12, 4  ;;  %v13906_v56 = vld [vmem:[#allocation2 + $0x94] sm:$0xf]  ;;  %v5635_v12 = vpop.f32.mrf.mxu0 }
 0x28b   : > { %v4801_v15 = vunpack.c.l.b16 %v3428_v0  ;;  %v4802_v28 = vunpack.c.l.b16 %v3438_v19  ;;  %v4078_v47 = vor.u32 %v4077_v41, %v4073_v40  ;;  %v4083_v1 = vrot.slane %v4081_v9, 5  ;;  %v13921_v35 = vld [vmem:[%s17402_s7] ss:$0 sm:$0xff]  ;;  %v4580_v41 = vpop.permute.xlu0 %4579 }
 0x28c   : > { %4587 = vrot.lane.b32.xlu1 %v4558_v39, %s11206_s30  ;;  %v1969_v59 = vadd.f32 %v1903_v50, %v13444_v31  ;;  %v4074_v33 = vsel %vm11386_vm13, %v4069_v22, %v4073_v40  ;;  %vm17586_vm0 = vcmask 261120   ;;  %v10172_v27 = vrot.slane %v13881_v5, 9  ;;  %v474_v9 = vld [vmem:[#allocation2 + $0xc0] sm:$0x1]  ;;  %v10888_v22 = vld [vmem:[#allocation2 + $0x54] sm:$0xff] }
 0x28d   : > { %v5372_v34 = vsel %vm17586_vm0, %v5335_v20, %v4846_v25  ;;  %v3077_v13 = vrot.slane %v13885_v11, 5  ;;  %v4827_v2 = vpack.c.b16 %v4802_v28, %v4801_v15  ;;  %v4079_v45 = vrot.slane %v4078_v47, 4 }
 0x28e   : > { %v5069_v21 = vunpack.c.l.b16 %v4074_v33  ;;  %v2001_v61 = vpack.c.bf16 %v1969_v59, %v1969_v59  ;;  %v3080_v10 = vrot.slane %v13894_v3, 5  ;;  %v4086_v48 = vshrl.u32 %v13896_v4, 16 }
 0x28f   : > { %v3078_v31 = vsel %vm11373_vm10, %v10172_v27, %v3077_v13  ;;  %v3079_v42 = vrot.slane %v3077_v13, 4  ;;  %5035 = vrot.lane.b32.xlu2 %v10927_v57, %s11210_s18  ;;  %4855 = vrot.lane.b32.xlu0 %v4827_v2, %s11208_s12  ;;  %v4084_v7 = vsel %vm11386_vm13, %v4079_v45, %v4083_v1  ;;  %v4089_v54 = vshll.u32 %v13896_v4, 16  ;;  %v1901_v28 = vpop.permute.xlu1 %1900 }
 0x290   : > { %v2253_v36 = vshrl.u32 %v2001_v61, 16  ;;  %v2256_v53 = vshll.u32 %v2001_v61, 16  ;;  %v4625_v37 = vunpack.c.l.b16 %v3078_v31  ;;  %v5070_v46 = vunpack.c.l.b16 %v4084_v7 }
 0x291   : > { %v3081_v58 = vsel %vm11373_vm10, %v3079_v42, %v3080_v10  ;;  %v4088_v44 = vrot.slane %v4086_v48, 4  ;;  %v4095_v16 = vshll.u32 %v13906_v56, 16  ;;  %v4099_v49 = vshrl.u32 %v13906_v56, 16  ;;  %v2431_v50 = vld [vmem:[#allocation2 + $0xc8] sm:$0x1] }
 0x292   : > { %v2255_v32 = vrot.slane %v2253_v36, 7  ;;  %v4626_v51 = vunpack.c.l.b16 %v3081_v58  ;;  %v5096_v23 = vpack.c.b16 %v5070_v46, %v5069_v21  ;;  %v4091_v39 = vrot.slane %v4089_v54, 5  ;;  %v13951_v58 = vld [vmem:[#allocation2 + $0x90] sm:$0xf] }
 0x293   : > { %v4105_v0 = vshll.u32 %v13913_v63, 16  ;;  %v549_v40 = vsel %vm11346_vm6, 0, %v548_v62  ;;  %vm17587_vm15 = vcmask 326656   ;;  %v4097_v15 = vrot.slane %v4095_v16, 5 }
 0x294   : > { %v13928_v25 = vor.u32 %v2256_v53, %v2255_v32  ;;  %v2260_v20 = vrot.slane %v2255_v32, 4  ;;  %v13932_v19 = vsel %vm17587_vm15, %v5372_v34, %v13693_v26  ;;  %550 = vst [vmem:[#allocation3] sm:$0x1] %v549_v40  ;;  %5123 = vrot.lane.b32.xlu1 %v5096_v23, %s11209_s17  ;;  %v4649_v47 = vpack.c.b16 %v4626_v51, %v4625_v37 }
 0x295   : > { %v4092_v1 = vor.u32 %v4091_v39, %v4088_v44  ;;  %v4101_v59 = vrot.slane %v4099_v49, 4  ;;  %v5636_v33 = vadd.f32 %v13921_v35, %v5635_v12  ;;  %v4107_v13 = vrot.slane %v4105_v0, 5 }
 0x296   : > { %v2432_v27 = vsel %vm11346_vm6, %v2260_v20, %v2431_v50  ;;  %v13939_v57 = vsel %vm805_vm1, %v10888_v22, %v4580_v41  ;;  %v475_v26 = vsel %vm11346_vm6, 0, %v474_v9  ;;  %v1968_v21 = vadd.f32 %v1901_v28, %v13353_v6  ;;  %v13962_v22 = vld [vmem:[#allocation2 + $0x98] sm:$0x1] }
 0x297   : > { %2433 = vst [vmem:[#allocation2 + $0xc8] sm:$0x1] %v2432_v27  ;;  %v4093_v34 = vrot.slane %v4092_v1, 4  ;;  %v4102_v2 = vor.u32 %v4101_v59, %v4097_v15  ;;  %v5725_v45 = vmax.f32 %v5636_v33, 0.0  ;;  %4679 = vrot.lane.b32.xlu2 %v4649_v47, %s11204_s28  ;;  %v2791_v61 = vshrl.u32 %v13881_v5, 16  ;;  %v13967_v59 = vpop.permute.xlu2 %4847 }
 0x298   : > { %476 = vst [vmem:[#allocation2 + $0xc0] sm:$0x1] %v475_v26  ;;  %v2794_v31 = vshll.u32 %v13881_v5, 16  ;;  %v2800_v42 = vshll.u32 %v13885_v11, 16  ;;  %v2804_v10 = vshrl.u32 %v13885_v11, 16  ;;  %v2000_v53 = vpack.c.bf16 %v1968_v21, %v1968_v21  ;;  %v10910_v5 = vld [vmem:[#allocation2 + $0x90] sm:$0xff] }
 0x299   : > { %v4098_v48 = vsel %vm11386_vm13, %v4093_v34, %v4097_v15  ;;  %v4103_v7 = vrot.slane %v4102_v2, 4  ;;  %v5761_v36 = vpack.c.bf16 %v5725_v45, %v5725_v45  ;;  %v2793_v62 = vrot.slane %v2791_v61, 4  ;;  %v13955_v11 = vld [vmem:[#allocation2 + $0x94] sm:$0xf]  ;;  %v13976_v21 = vld [vmem:[#allocation2 + $0xa0] sm:$0xf] }
 0x29a   : > { %v5071_v37 = vunpack.c.l.b16 %v4098_v48  ;;  %v2796_v6 = vrot.slane %v2794_v31, 5  ;;  %v2802_v46 = vrot.slane %v2800_v42, 5  ;;  %v2245_v51 = vshrl.u32 %v2000_v53, 16  ;;  %v13978_v61 = vld [vmem:[#allocation2 + $0xa4] sm:$0x1] }
 0x29b   : > { %v4108_v44 = vsel %vm11386_vm13, %v4103_v7, %v4107_v13  ;;  %v5801_v54 = vshrl.u32 %v5761_v36, 16  ;;  %v5804_v32 = vshll.u32 %v5761_v36, 16  ;;  %v2248_v49 = vshll.u32 %v2000_v53, 16  ;;  %v6163_v41 = vld [vmem:[#allocation3] sm:$0xf]  ;;  %v5637_v36 = vpop.f32.mrf.mxu0 }
 0x29c   : > { %v5072_v16 = vunpack.c.l.b16 %v4108_v44  ;;  %v2797_v12 = vor.u32 %v2796_v6, %v2793_v62  ;;  %v2806_v9 = vrot.slane %v2804_v10, 4  ;;  %4767 = vrot.lane.b32.xlu1 %v10910_v5, %s11205_s29  ;;  %v2247_v50 = vrot.slane %v2245_v51, 7  ;;  %v602_v7 = vld [vmem:[#allocation3 + $0x8] sm:$0x1]  ;;  %v477_v53 = vld [vmem:[#allocation2 + $0xcc] sm:$0x1] }
 0x29d   : > { %v13958_v23 = vrot.slane %v5801_v54, 7  ;;  %v2810_v39 = vshll.u32 %v13894_v3, 16  ;;  %v10243_v0 = vrot.slane %v13951_v58, 9  ;;  %v3740_v28 = vrot.slane %v13955_v11, 5  ;;  %v13969_v3 = vld [vmem:[#allocation2 + $0x9c] sm:$0xf] }
 0x29e   : > { %v5097_v40 = vpack.c.b16 %v5072_v16, %v5071_v37  ;;  %v2798_v20 = vrot.slane %v2797_v12, 4  ;;  %v2807_v15 = vor.u32 %v2806_v9, %v2802_v46  ;;  %v2250_v27 = vor.u32 %v2248_v49, %v2247_v50 }
 0x29f   : > { %v5806_v47 = vor.u32 %v5804_v32, %v13958_v23  ;;  %v5807_v1 = vrot.slane %v13958_v23, 4  ;;  %v2427_v33 = vld [vmem:[#allocation2 + $0xc0] sm:$0xf]  ;;  %v2251_v13 = vrot.slane %v2247_v50, 4  ;;  %v2812_v2 = vrot.slane %v2810_v39, 5 }
 0x2a0   : > { %5125 = vrot.lane.b32.xlu0 %v5097_v40, %s11209_s17  ;;  %v2803_v26 = vsel %vm11386_vm13, %v2798_v20, %v2802_v46  ;;  %v2808_v34 = vrot.slane %v2807_v15, 4  ;;  %v3741_v45 = vsel %vm11373_vm10, %v10243_v0, %v3740_v28  ;;  %v2428_v10 = vsel %vm12121_vm5, %v2250_v27, %v2427_v33  ;;  %v17590_v20 = vld [vmem:[#allocation17_spill] sm:$0xff]  ;;  %v17591_v15 = vld [vmem:[#allocation19_spill] sm:$0xff] }
 0x2a1   : > { %v6164_v31 = vsel %vm12121_vm5, %v5806_v47, %v6163_v41  ;;  %v2259_v42 = vsel %vm12182_vm8, %v2251_v13, %v13928_v25  ;;  %v4535_v48 = vunpack.c.l.b16 %v2803_v26  ;;  %v3742_v62 = vrot.slane %v3740_v28, 4  ;;  %2429 = vst [vmem:[#allocation2 + $0xc0] sm:$0xf] %v2428_v10  ;;  %v1905_v47 = vpop.permute.xlu0 %1904  ;;  %v5116_v26 = vpop.permute.xlu1 %5115 }
 0x2a2   : > { %6165 = vst [vmem:[#allocation3] sm:$0xf] %v6164_v31  ;;  %v2813_v37 = vsel %vm11386_vm13, %v2808_v34, %v2812_v2  ;;  %v3743_v6 = vrot.slane %v13962_v22, 5  ;;  %v4893_v46 = vunpack.c.l.b16 %v3741_v45  ;;  %v17588_v44 = vmov 0  }
 0x2a3   : > { %6295 = vst.msk [vmem:[#allocation3] sm:$0xf] %vm17584_vm9, %v17588_v44  ;;  %v4536_v5 = vunpack.c.l.b16 %v2813_v37  ;;  %v10173_v25 = vrot.slane %v13969_v3, 9  ;;  %v3084_v54 = vrot.slane %v13976_v21, 5  ;;  %v3087_v32 = vrot.slane %v13978_v61, 5 }
 0x2a4   : > { %v3744_v51 = vsel %vm11373_vm10, %v3742_v62, %v3743_v6  ;;  %v603_v16 = vsel %vm11358_vm7, 0, %v602_v7  ;;  %v5638_v49 = vadd.f32 %v13921_v35, %v5637_v36  ;;  %v478_v12 = vsel %vm11346_vm6, 0, %v477_v53  ;;  %2430 = vst.msk [vmem:[#allocation2 + $0xc4] sm:$0xf] %vm17589_vm14, %v2259_v42  ;;  %v14015_v42 = vpop.permute.xlu2 %5207 }
 0x2a5   : > { %v4559_v9 = vpack.c.b16 %v4536_v5, %v4535_v48  ;;  %v4894_v50 = vunpack.c.l.b16 %v3744_v51  ;;  %v3085_v39 = vsel %vm11373_vm10, %v10173_v25, %v3084_v54  ;;  %v3086_v0 = vrot.slane %v3084_v54, 4  ;;  %604 = vst [vmem:[#allocation3 + $0x8] sm:$0x1] %v603_v16  ;;  %v10911_v16 = vld [vmem:[#allocation2 + $0x9c] sm:$0xff] }
 0x2a6   : > { %v4627_v40 = vunpack.c.l.b16 %v3085_v39  ;;  %v5726_v41 = vmax.f32 %v5638_v49, 0.0  ;;  %v1751_v28 = vmul.f32 %v17591_v15, %v17590_v20  ;;  %vm1755_vm0 = vweird.f32 %v17590_v20  ;;  %479 = vst [vmem:[#allocation2 + $0xcc] sm:$0x1] %v478_v12 }
 0x2a7   : > { %4589 = vrot.lane.b32.xlu2 %v4559_v9, %s11206_s30  ;;  %v4918_v33 = vpack.c.b16 %v4894_v50, %v4893_v46  ;;  %v3088_v27 = vsel %vm11373_vm10, %v3086_v0, %v3087_v32  ;;  %vm1756_vm15 = vweird.f32 %v17591_v15  ;;  %v1759_v13 = vand.u32 2147483647, %v17590_v20  ;;  %v10928_v46 = vld [vmem:[#allocation2 + $0x9c] sm:$0xff] }
 0x2a8   : > { %v4628_v34 = vunpack.c.l.b16 %v3088_v27  ;;  %v5762_v2 = vpack.c.bf16 %v5726_v41, %v5726_v41  ;;  %v1752_v45 = vsub.f32 1.0, %v1751_v28  ;;  %v1761_v31 = vand.u32 2147483648, %v17590_v20  ;;  %vm14031_vm14 = vmor %vm1755_vm0, %vm1756_vm15 }
 0x2a9   : > { %4947 = vrot.lane.b32.xlu1 %v4918_v33, %s11207_s11  ;;  %vm14017_vm9 = vcmp.eq.f32.partialorder %v1759_v13, 8.507059e+37  ;;  %v5446_v48 = vsel %vm5434_vm11, %v13932_v19, %v13858_v38  ;;  %v10314_v7 = vrot.slane %v13896_v4, 9  ;;  %v4403_v36 = vrot.slane %v13906_v56, 5  ;;  %v14065_v10 = vpop.permute.xlu1 %4671 }
 0x2aa   : > { %v4650_v53 = vpack.c.b16 %v4628_v34, %v4627_v40  ;;  %v5809_v37 = vshrl.u32 %v5762_v2, 16  ;;  %v5812_v62 = vshll.u32 %v5762_v2, 16  ;;  %v1753_v6 = vmul.f32 %v17591_v15, %v1752_v45 }
 0x2ab   : > { %v1762_v5 = vor.u32 1.1754944e-38, %v1761_v31  ;;  %v5483_v38 = vsel %vm5471_vm12, %v5446_v48, %v5116_v26  ;;  %v4404_v4 = vsel %vm11373_vm10, %v10314_v7, %v4403_v36  ;;  %v4405_v56 = vrot.slane %v4403_v36, 4  ;;  %v4760_v26 = vpop.permute.xlu0 %4759 }
 0x2ac   : > { %4681 = vrot.lane.b32.xlu0 %v4650_v53, %s11204_s28  ;;  %v5811_v19 = vrot.slane %v5809_v37, 7  ;;  %v1754_v25 = vadd.f32 %v17591_v15, %v1753_v6  ;;  %v5520_v54 = vsel %vm5508_vm4, %v5483_v38, %v13804_v60  ;;  %v4406_v32 = vrot.slane %v13913_v63, 5  ;;  %v6170_v51 = vld [vmem:[#allocation3 + $0x8] sm:$0x1]  ;;  %v14079_v53 = vpop.permute.xlu2 %5029  ;;  %v14090_v38 = vld [vmem:[#allocation2 + $0x9c] sm:$0xf] }
 0x2ad   : > { %10559 = vmatmul.msk.bf16.gmra.mxu2 %vm17422_vm2, %v5520_v54  ;;  %v5161_v49 = vunpack.c.l.b16 %v4404_v4  ;;  %v2815_v12 = vshrl.u32 %v13969_v3, 16  ;;  %v2818_v9 = vshll.u32 %v13969_v3, 16  ;;  %v2824_v50 = vshll.u32 %v13976_v21, 16 }
 0x2ae   : > { %v5814_v39 = vor.u32 %v5812_v62, %v5811_v19  ;;  %v5816_v0 = vrot.slane %v5811_v19, 4  ;;  %v1758_v40 = vsel %vm14031_vm14, %v17591_v15, %v1754_v25  ;;  %v4407_v60 = vsel %vm11373_vm10, %v4405_v56, %v4406_v32  ;;  %v17596_v15 = vld [vmem:[#allocation4_spill] sm:$0xff]  ;;  %v14093_v19 = vld [vmem:[#allocation2 + $0xa0] sm:$0xf] }
 0x2af   : > { %v1763_v63 = vsel %vm14017_vm9, %v1762_v5, %v1758_v40  ;;  %4769 = vrot.lane.b32.xlu2 %v10911_v16, %s11205_s29  ;;  %v5162_v41 = vunpack.c.l.b16 %v4407_v60  ;;  %v2817_v20 = vrot.slane %v2815_v12, 4  ;;  %v2820_v28 = vrot.slane %v2818_v9, 5  ;;  %v2434_v9 = vld [vmem:[#allocation2 + $0xcc] sm:$0xf] }
 0x2b0   : > { %v5815_v3 = vsel %vm12182_vm8, %v5807_v1, %v5814_v39  ;;  %v6171_v33 = vsel %vm11346_vm6, %v5816_v0, %v6170_v51  ;;  %v1810_v27 = vmul.f32 %v1763_v63, %v17596_v15  ;;  %v2826_v13 = vrot.slane %v2824_v50, 5 }
 0x2b1   : > { %vm17597_vm0 = vcmask 60416   ;;  %v5187_v34 = vpack.c.b16 %v5162_v41, %v5161_v49  ;;  %v2821_v2 = vor.u32 %v2820_v28, %v2817_v20  ;;  %v2828_v45 = vshrl.u32 %v13976_v21, 16  ;;  %6172 = vst [vmem:[#allocation3 + $0x8] sm:$0x1] %v6171_v33  ;;  %v14108_v20 = vld [vmem:[#allocation2 + $0xa4] sm:$0x1] }
 0x2b2   : > { %6167 = vst.msk [vmem:[#allocation3 + $0x4] sm:$0xf] %vm17597_vm0, %v5815_v3  ;;  %v2834_v31 = vshll.u32 %v13978_v61, 16  ;;  %v5337_v23 = vsel %vm5323_vm3, %v13770_v17, %v13763_v29  ;;  %v1970_v1 = vadd.f32 %v1905_v47, %v1810_v27  ;;  %v3440_v48 = vshrl.u32 %v13951_v58, 16  ;;  %vm17599_vm9 = vmmov %vm17597_vm0 }
 0x2b3   : > { %v3443_v7 = vshll.u32 %v13951_v58, 16  ;;  %vm17598_vm15 = vcmask 261120   ;;  %6296 = vst.msk [vmem:[#allocation3 + $0x4] sm:$0xf] %vm17599_vm9, %v17588_v44  ;;  %5215 = vrot.lane.b32.xlu1 %v5187_v34, %s11211_s21  ;;  %v2822_v21 = vrot.slane %v2821_v2, 4  ;;  %v2830_v61 = vrot.slane %v2828_v45, 4  ;;  %v5028_v28 = vpop.permute.xlu0 %5027 }
 0x2b4   : > { %v14074_v36 = vsel %vm17598_vm15, %v5337_v23, %v13967_v59  ;;  %vm17600_vm14 = vcmask 130048   ;;  %vm17601_vm0 = vcmask 57344   ;;  %v2002_v17 = vpack.c.bf16 %v1970_v1, %v1970_v1  ;;  %v10214_v34 = vld [vmem:[#allocation2 + $0x9c] sm:$0xf]  ;;  %v14116_v23 = vld [vmem:[#allocation2 + $0xa0] sm:$0xf] }
 0x2b5   : > { %v5302_v29 = vsel %vm17600_vm14, %v13939_v57, %v13879_v43  ;;  %6298 = vst.msk [vmem:[#allocation3 + $0x8] sm:$0x1] %vm17601_vm0, %v17588_v44  ;;  %v3442_v58 = vrot.slane %v3440_v48, 4  ;;  %v3445_v59 = vrot.slane %v3443_v7, 5  ;;  %v3449_v47 = vshll.u32 %v13955_v11, 16 }
 0x2b6   : > { %v2827_v37 = vsel %vm11386_vm13, %v2822_v21, %v2826_v13  ;;  %v2831_v62 = vor.u32 %v2830_v61, %v2826_v13  ;;  %v2836_v6 = vrot.slane %v2834_v31, 5  ;;  %v3453_v5 = vshrl.u32 %v13955_v11, 16  ;;  %v14112_v13 = vpop.permute.xlu1 %4939  ;;  %v10216_v1 = vld [vmem:[#allocation2 + $0xa4] sm:$0x1] }
 0x2b7   : > { %v2262_v4 = vshrl.u32 %v2002_v17, 16  ;;  %v2265_v43 = vshll.u32 %v2002_v17, 16  ;;  %v3446_v57 = vor.u32 %v3445_v59, %v3442_v58  ;;  %v3459_v56 = vshll.u32 %v13962_v22, 16  ;;  %5037 = vrot.lane.b32.xlu2 %v10928_v46, %s11210_s18 }
 0x2b8   : > { %v2832_v25 = vrot.slane %v2831_v62, 4  ;;  %v4537_v54 = vunpack.c.l.b16 %v2827_v37  ;;  %v3451_v32 = vrot.slane %v3449_v47, 5  ;;  %v3455_v51 = vrot.slane %v3453_v5, 4 }
 0x2b9   : > { %v14096_v16 = vrot.slane %v2262_v4, 7  ;;  %v3447_v49 = vrot.slane %v3446_v57, 4  ;;  %v4110_v11 = vshrl.u32 %v14090_v38, 16  ;;  %v4113_v12 = vshll.u32 %v14090_v38, 16 }
 0x2ba   : > { %v2837_v50 = vsel %vm11386_vm13, %v2832_v25, %v2836_v6  ;;  %v3456_v22 = vor.u32 %v3455_v51, %v3451_v32  ;;  %v4119_v39 = vshll.u32 %v14093_v19, 16  ;;  %v4123_v0 = vshrl.u32 %v14093_v19, 16 }
 0x2bb   : > { %v2267_v40 = vor.u32 %v2265_v43, %v14096_v16  ;;  %v4538_v60 = vunpack.c.l.b16 %v2837_v50  ;;  %v14106_v63 = vsel %vm5323_vm3, %v5302_v29, %v4760_v26  ;;  %v3461_v41 = vrot.slane %v3459_v56, 5  ;;  %v14122_v29 = vpop.permute.xlu2 %4673 }
 0x2bc   : > { %v3452_v3 = vsel %vm11386_vm13, %v3447_v49, %v3451_v32  ;;  %v3457_v33 = vrot.slane %v3456_v22, 4  ;;  %v4112_v15 = vrot.slane %v4110_v11, 4  ;;  %v4115_v27 = vrot.slane %v4113_v12, 5  ;;  %v539_v22 = vld [vmem:[#allocation2 + $0xd4] sm:$0x1] }
 0x2bd   : > { %v2435_v2 = vsel %vm12121_vm5, %v2267_v40, %v2434_v9  ;;  %v4560_v45 = vpack.c.b16 %v4538_v60, %v4537_v54  ;;  %v4121_v31 = vrot.slane %v4119_v39, 5  ;;  %v4125_v26 = vrot.slane %v4123_v0, 4 }
 0x2be   : > { %v2268_v48 = vrot.slane %v14096_v16, 4  ;;  %2436 = vst [vmem:[#allocation2 + $0xcc] sm:$0xf] %v2435_v2  ;;  %v3462_v7 = vsel %vm11386_vm13, %v3457_v33, %v3461_v41  ;;  %v4116_v21 = vor.u32 %v4115_v27, %v4112_v15  ;;  %v4129_v61 = vshll.u32 %v14108_v20, 16  ;;  %v4850_v41 = vpop.permute.xlu0 %4849  ;;  %v14148_v27 = vpop.permute.xlu1 %1906 }
 0x2bf   : > { %4591 = vrot.lane.b32.xlu0 %v4560_v45, %s11206_s30  ;;  %v4803_v17 = vunpack.c.l.b16 %v3452_v3  ;;  %v4804_v58 = vunpack.c.l.b16 %v3462_v7  ;;  %v4126_v59 = vor.u32 %v4125_v26, %v4121_v31  ;;  %vm17602_vm15 = vcmask 326656   ;;  %v17604_v7 = vld [vmem:[#allocation18_spill] sm:$0xff] }
 0x2c0   : > { %v5411_v47 = vsel %vm17602_vm15, %v14074_v36, %v13856_v55  ;;  %v4117_v37 = vrot.slane %v4116_v21, 4  ;;  %v3477_v62 = vshrl.u32 %v14116_v23, 16  ;;  %v3483_v6 = vshll.u32 %v10216_v1, 16  ;;  %v17605_v21 = vld [vmem:[#allocation20_spill] sm:$0xff] }
 0x2c1   : > { %v10244_v46 = vrot.slane %v10214_v34, 9  ;;  %v4828_v5 = vpack.c.b16 %v4804_v58, %v4803_v17  ;;  %v4127_v4 = vrot.slane %v4126_v59, 4  ;;  %v4131_v43 = vrot.slane %v4129_v61, 5  ;;  %v10217_v17 = vld [vmem:[#allocation2 + $0xa8] sm:$0xf] }
 0x2c2   : > { %v3747_v57 = vrot.slane %v14116_v23, 5  ;;  %v4122_v56 = vsel %vm11386_vm13, %v4117_v37, %v4121_v31  ;;  %v14133_v25 = vsel %vm5434_vm11, %v5411_v47, %v5028_v28  ;;  %v3750_v54 = vrot.slane %v10216_v1, 5 }
 0x2c3   : > { %v3464_v32 = vshrl.u32 %v10214_v34, 16  ;;  %4857 = vrot.lane.b32.xlu1 %v4828_v5, %s11208_s12  ;;  %v4132_v55 = vsel %vm11386_vm13, %v4127_v4, %v4131_v43  ;;  %v5073_v36 = vunpack.c.l.b16 %v4122_v56  ;;  %v14140_v12 = vrot.slane %v3477_v62, 4  ;;  %v4584_v26 = vpop.permute.xlu2 %4583  ;;  %v14169_v4 = vld [vmem:[#allocation2 + $0xac] sm:$0xf] }
 0x2c4   : > { %v3748_v51 = vsel %vm11373_vm10, %v10244_v46, %v3747_v57  ;;  %v3749_v49 = vrot.slane %v3747_v57, 4  ;;  %v5074_v11 = vunpack.c.l.b16 %v4132_v55  ;;  %v14142_v9 = vrot.slane %v3483_v6, 5  ;;  %v10219_v6 = vld [vmem:[#allocation2 + $0xb0] sm:$0x1] }
 0x2c5   : > { %v3467_v50 = vshll.u32 %v10214_v34, 16  ;;  %v4895_v0 = vunpack.c.l.b16 %v3748_v51  ;;  %v10315_v40 = vrot.slane %v14090_v38, 9  ;;  %v4410_v60 = vrot.slane %v14093_v19, 5 }
 0x2c6   : > { %v3751_v39 = vsel %vm11373_vm10, %v3749_v49, %v3750_v54  ;;  %v5098_v28 = vpack.c.b16 %v5074_v11, %v5073_v36  ;;  %v3466_v33 = vrot.slane %v3464_v32, 4  ;;  %v4413_v45 = vrot.slane %v14108_v20, 5  ;;  %v10890_v20 = vld [vmem:[#allocation2 + $0x6c] sm:$0xff]  ;;  %v14225_v36 = vpop.permute.xlu0 %4941 }
 0x2c7   : > { %v4896_v3 = vunpack.c.l.b16 %v3751_v39  ;;  %v3469_v15 = vrot.slane %v3467_v50, 5  ;;  %v4411_v2 = vsel %vm11373_vm10, %v10315_v40, %v4410_v60  ;;  %v4412_v34 = vrot.slane %v4410_v60, 4 }
 0x2c8   : > { %v540_v31 = vsel %vm11358_vm7, 0, %v539_v22  ;;  %5127 = vrot.lane.b32.xlu0 %v5098_v28, %s11209_s17  ;;  %v5163_v19 = vunpack.c.l.b16 %v4411_v2  ;;  %vm17603_vm9 = vcmask 261120   ;;  %v1766_v61 = vmul.f32 %v17605_v21, %v17604_v7 }
 0x2c9   : > { %v4919_v38 = vpack.c.b16 %v4896_v3, %v4895_v0  ;;  %v5376_v1 = vsel %vm17603_vm9, %v14106_v63, %v4850_v41  ;;  %541 = vst [vmem:[#allocation2 + $0xd4] sm:$0x1] %v540_v31  ;;  %v4414_v58 = vsel %vm11373_vm10, %v4412_v34, %v4413_v45  ;;  %vm1770_vm14 = vweird.f32 %v17604_v7  ;;  %v551_v3 = vld [vmem:[#allocation3 + $0xc] sm:$0x1]  ;;  %v5640_v45 = vpop.f32.mrf.mxu0  ;;  %v14205_v31 = vpop.permute.xlu1 %4581 }
 0x2ca   : > { %vm1771_vm0 = vweird.f32 %v17605_v21  ;;  %v1774_v59 = vand.u32 2147483647, %v17604_v7  ;;  %v5164_v47 = vunpack.c.l.b16 %v4414_v58  ;;  %v1767_v37 = vsub.f32 1.0, %v1766_v61 }
 0x2cb   : > { %4949 = vrot.lane.b32.xlu2 %v4919_v38, %s11207_s11  ;;  %v1776_v63 = vand.u32 2147483648, %v17604_v7  ;;  %v3470_v62 = vor.u32 %v3469_v15, %v3466_v33  ;;  %v5261_v46 = vsel %vm805_vm1, %v10890_v20, %v4584_v26  ;;  %v3473_v5 = vshll.u32 %v14116_v23, 16  ;;  %vm14180_vm9 = vmor %vm1770_vm14, %vm1771_vm0  ;;  %v17610_v7 = vld [vmem:[#allocation5_spill] sm:$0xff]  ;;  %v10287_v20 = vld [vmem:[#allocation2 + $0xac] sm:$0xf] }
 0x2cc   : > { %v3488_v43 = vshrl.u32 %v10217_v17, 16  ;;  %v3491_v57 = vshll.u32 %v10217_v17, 16  ;;  %v5188_v56 = vpack.c.b16 %v5164_v47, %v5163_v19  ;;  %v14173_v54 = vsel %vm17602_vm15, %v5376_v1, %v14112_v13  ;;  %v10912_v13 = vld [vmem:[#allocation2 + $0xa8] sm:$0xff] }
 0x2cd   : > { %v1768_v32 = vmul.f32 %v17605_v21, %v1767_v37  ;;  %v3471_v55 = vrot.slane %v3470_v62, 4  ;;  %vm14184_vm2 = vcmp.eq.f32.partialorder %v1774_v59, 8.507059e+37  ;;  %v1777_v51 = vor.u32 1.1754944e-38, %v1776_v63  ;;  %v10286_v1 = vld [vmem:[#allocation2 + $0xa8] sm:$0xf]  ;;  %v4764_v63 = vpop.permute.xlu2 %4763 }
 0x2ce   : > { %v3475_v49 = vrot.slane %v3473_v5, 5  ;;  %v3507_v11 = vshll.u32 %v10219_v6, 16  ;;  %5217 = vrot.lane.b32.xlu1 %v5188_v56, %s11211_s21  ;;  %v14190_v22 = vrot.slane %v3488_v43, 4  ;;  %v10245_v39 = vrot.slane %v10217_v17, 9  ;;  %v10929_v43 = vld [vmem:[#allocation2 + $0xa8] sm:$0xff] }
 0x2cf   : > { %v1769_v50 = vadd.f32 %v17605_v21, %v1768_v32  ;;  %v3754_v0 = vrot.slane %v14169_v4, 5  ;;  %v14196_v41 = vrot.slane %v3491_v57, 5  ;;  %v3501_v28 = vshrl.u32 %v14169_v4, 16  ;;  %v10288_v56 = vld [vmem:[#allocation2 + $0xb0] sm:$0x1] }
 0x2d0   : > { %v3476_v40 = vsel %vm11386_vm13, %v3471_v55, %v3475_v49  ;;  %v3480_v60 = vor.u32 %v14140_v12, %v3475_v49  ;;  %4771 = vrot.lane.b32.xlu0 %v10912_v13, %s11205_s29  ;;  %v3757_v34 = vrot.slane %v10219_v6, 5  ;;  %v14209_v26 = vrot.slane %v3507_v11, 5 }
 0x2d1   : > { %v1773_v33 = vsel %vm14180_vm9, %v17605_v21, %v1769_v50  ;;  %v3755_v15 = vsel %vm11373_vm10, %v10245_v39, %v3754_v0  ;;  %v3756_v2 = vrot.slane %v3754_v0, 4  ;;  %v4805_v19 = vunpack.c.l.b16 %v3476_v40 }
 0x2d2   : > { %v1778_v12 = vsel %vm14184_vm2, %v1777_v51, %v1773_v33  ;;  %v3481_v38 = vrot.slane %v3480_v60, 4  ;;  %v4897_v17 = vunpack.c.l.b16 %v3755_v15  ;;  %v552_v58 = vsel %vm11346_vm6, 0, %v551_v3  ;;  %v14233_v3 = vld [vmem:[#allocation2 + $0xac] sm:$0xf] }
 0x2d3   : > { %v1811_v61 = vmul.f32 %v1778_v12, %v17610_v7  ;;  %v3758_v21 = vsel %vm11373_vm10, %v3756_v2, %v3757_v34  ;;  %v14219_v37 = vrot.slane %v3501_v28, 4  ;;  %553 = vst [vmem:[#allocation3 + $0xc] sm:$0x1] %v552_v58  ;;  %v5641_v62 = vadd.f32 %v13921_v35, %v5640_v45  ;;  %v14235_v7 = vld [vmem:[#allocation2 + $0xa8] sm:$0xf] }
 0x2d4   : > { %v3486_v59 = vsel %vm11386_vm13, %v3481_v38, %v14142_v9  ;;  %v4898_v47 = vunpack.c.l.b16 %v3758_v21  ;;  %vm17611_vm2 = vcmask 130048   ;;  %v4134_v32 = vshrl.u32 %v10286_v1, 16  ;;  %v2438_v21 = vld [vmem:[#allocation2 + $0xd4] sm:$0x1] }
 0x2d5   : > { %v1971_v6 = vadd.f32 %v14148_v27, %v1811_v61  ;;  %v4806_v5 = vunpack.c.l.b16 %v3486_v59  ;;  %v5306_v57 = vsel %vm17611_vm2, %v5261_v46, %v14122_v29  ;;  %v5727_v9 = vmax.f32 %v5641_v62, 0.0  ;;  %v5118_v61 = vpop.permute.xlu1 %5117  ;;  %vm17615_vm9 = vmmov %vm17611_vm2 }
 0x2d6   : > { %v4920_v55 = vpack.c.b16 %v4898_v47, %v4897_v17  ;;  %v4137_v23 = vshll.u32 %v10286_v1, 16  ;;  %v4143_v51 = vshll.u32 %v10287_v20, 16  ;;  %5039 = vrot.lane.b32.xlu1 %v10929_v43, %s11210_s18  ;;  %v4136_v13 = vrot.slane %v4134_v32, 4  ;;  %v14245_v32 = vld [vmem:[#allocation2 + $0xb0] sm:$0x1] }
 0x2d7   : > { %v2003_v49 = vpack.c.bf16 %v1971_v6, %v1971_v6  ;;  %v4829_v11 = vpack.c.b16 %v4806_v5, %v4805_v19  ;;  %v4147_v50 = vshrl.u32 %v10287_v20, 16  ;;  %v5763_v27 = vpack.c.bf16 %v5727_v9, %v5727_v9 }
 0x2d8   : > { %v4139_v39 = vrot.slane %v4137_v23, 5  ;;  %v4145_v0 = vrot.slane %v4143_v51, 5  ;;  %v4153_v40 = vshll.u32 %v10288_v56, 16  ;;  %4951 = vrot.lane.b32.xlu0 %v4920_v55, %s11207_s11  ;;  %v14231_v46 = vsel %vm5323_vm3, %v5306_v57, %v4764_v63 }
 0x2d9   : > { %v2270_v60 = vshrl.u32 %v2003_v49, 16  ;;  %v2273_v29 = vshll.u32 %v2003_v49, 16  ;;  %4859 = vrot.lane.b32.xlu2 %v4829_v11, %s11208_s12  ;;  %v4149_v28 = vrot.slane %v4147_v50, 4  ;;  %v5818_v33 = vshrl.u32 %v5763_v27, 16  ;;  %v605_v11 = vld [vmem:[#allocation3 + $0x14] sm:$0x1] }
 0x2da   : > { %v5821_v15 = vshll.u32 %v5763_v27, 16  ;;  %v4140_v2 = vor.u32 %v4139_v39, %v4136_v13  ;;  %v10316_v34 = vrot.slane %v10286_v1, 9  ;;  %v4155_v38 = vrot.slane %v4153_v40, 5  ;;  %v6173_v6 = vld [vmem:[#allocation3 + $0xc] sm:$0xf]  ;;  %v10889_v50 = vld [vmem:[#allocation2 + $0x60] sm:$0xff] }
 0x2db   : > { %v2272_v45 = vrot.slane %v2270_v60, 7  ;;  %v4150_v12 = vor.u32 %v4149_v28, %v4145_v0  ;;  %v4417_v19 = vrot.slane %v10287_v20, 5  ;;  %v14237_v17 = vrot.slane %v5818_v33, 7 }
 0x2dc   : > { %v4141_v58 = vrot.slane %v4140_v2, 4  ;;  %v4420_v59 = vrot.slane %v10288_v56, 5  ;;  %v3091_v47 = vrot.slane %v14233_v3, 5  ;;  %v10174_v55 = vrot.slane %v14235_v7, 9  ;;  %v14248_v56 = vpop.permute.xlu2 %4943 }
 0x2dd   : > { %v2275_v63 = vor.u32 %v2273_v29, %v2272_v45  ;;  %v2277_v62 = vrot.slane %v2272_v45, 4  ;;  %v4151_v5 = vrot.slane %v4150_v12, 4  ;;  %v4418_v1 = vsel %vm11373_vm10, %v10316_v34, %v4417_v19 }
 0x2de   : > { %v5823_v43 = vor.u32 %v5821_v15, %v14237_v17  ;;  %v4146_v20 = vsel %vm11386_vm13, %v4141_v58, %v4145_v0  ;;  %v4419_v57 = vrot.slane %v4417_v19, 4  ;;  %vm17612_vm14 = vcmask 60416   ;;  %v5642_v0 = vpop.f32.mrf.mxu0 }
 0x2df   : > { %v2276_v9 = vsel %vm12182_vm8, %v2268_v48, %v2275_v63  ;;  %v2439_v23 = vsel %vm11346_vm6, %v2277_v62, %v2438_v21  ;;  %v4156_v51 = vsel %vm11386_vm13, %v4151_v5, %v4155_v38  ;;  %v5075_v49 = vunpack.c.l.b16 %v4146_v20  ;;  %v5120_v48 = vpop.permute.xlu0 %5119  ;;  %v4762_v62 = vpop.permute.xlu1 %4761  ;;  %vm17616_vm2 = vmmov %vm17612_vm14 }
 0x2e0   : > { %2437 = vst.msk [vmem:[#allocation2 + $0xd0] sm:$0xf] %vm17612_vm14, %v2276_v9  ;;  %v6174_v13 = vsel %vm12121_vm5, %v5823_v43, %v6173_v6  ;;  %v5076_v27 = vunpack.c.l.b16 %v4156_v51  ;;  %v4421_v16 = vsel %vm11373_vm10, %v4419_v57, %v4420_v59  ;;  %v5165_v39 = vunpack.c.l.b16 %v4418_v1 }
 0x2e1   : > { %2440 = vst [vmem:[#allocation2 + $0xd4] sm:$0x1] %v2439_v23  ;;  %v5166_v40 = vunpack.c.l.b16 %v4421_v16  ;;  %v3092_v60 = vsel %vm11373_vm10, %v10174_v55, %v3091_v47  ;;  %v3093_v29 = vrot.slane %v3091_v47, 4  ;;  %v3094_v28 = vrot.slane %v14245_v32, 5 }
 0x2e2   : > { %6175 = vst [vmem:[#allocation3 + $0xc] sm:$0xf] %v6174_v13  ;;  %v14268_v33 = vsel %vm805_vm1, %v10889_v50, %v14205_v31  ;;  %v5099_v15 = vpack.c.b16 %v5076_v27, %v5075_v49  ;;  %v4629_v2 = vunpack.c.l.b16 %v3092_v60  ;;  %v606_v34 = vsel %vm11358_vm7, 0, %v605_v11  ;;  %v14299_v11 = vld [vmem:[#allocation2 + $0xb4] sm:$0xf] }
 0x2e3   : > { %v5189_v45 = vpack.c.b16 %v5166_v40, %v5165_v39  ;;  %v3095_v12 = vsel %vm11373_vm10, %v3093_v29, %v3094_v28  ;;  %v5450_v38 = vsel %vm5434_vm11, %v14173_v54, %v14079_v53  ;;  %607 = vst [vmem:[#allocation3 + $0x14] sm:$0x1] %v606_v34  ;;  %v5643_v19 = vadd.f32 %v13921_v35, %v5642_v0  ;;  %v10930_v50 = vld [vmem:[#allocation2 + $0xb4] sm:$0xff]  ;;  %v14313_v28 = vld [vmem:[#allocation2 + $0xbc] sm:$0x1] }
 0x2e4   : > { %5129 = vrot.lane.b32.xlu2 %v5099_v15, %s11209_s17  ;;  %v4630_v31 = vunpack.c.l.b16 %v3095_v12  ;;  %v5485_v21 = vsel %vm5471_vm12, %v14133_v25, %v5118_v61  ;;  %v3494_v58 = vor.u32 %v14196_v41, %v14190_v22  ;;  %v3497_v59 = vshll.u32 %v14169_v4, 16  ;;  %v5645_v41 = vpop.f32.mrf.mxu2  ;;  %v4854_v55 = vpop.permute.xlu2 %4853 }
 0x2e5   : > { %5219 = vrot.lane.b32.xlu0 %v5189_v45, %s11211_s21  ;;  %v5728_v47 = vmax.f32 %v5643_v19, 0.0  ;;  %v5522_v53 = vsel %vm5508_vm4, %v5485_v21, %v14015_v42  ;;  %v2839_v54 = vshrl.u32 %v14235_v7, 16  ;;  %v2842_v63 = vshll.u32 %v14235_v7, 16 }
 0x2e6   : > { %v4651_v6 = vpack.c.b16 %v4630_v31, %v4629_v2  ;;  %vm17613_vm0 = vcmask 588800   ;;  %v3495_v25 = vrot.slane %v3494_v58, 4  ;;  %v3499_v61 = vrot.slane %v3497_v59, 5 }
 0x2e7   : > { %10560 = vmatmul.msk.bf16.gmra.mxu2 %vm17613_vm0, %v5522_v53  ;;  %v2848_v22 = vshll.u32 %v14233_v3, 16  ;;  %v5764_v4 = vpack.c.bf16 %v5728_v47, %v5728_v47  ;;  %v2841_v5 = vrot.slane %v2839_v54, 4  ;;  %v2844_v1 = vrot.slane %v2842_v63, 5  ;;  %v5210_v54 = vpop.permute.xlu1 %5209  ;;  %vm17617_vm14 = vmmov %vm17613_vm0 }
 0x2e8   : > { %v2852_v43 = vshrl.u32 %v14233_v3, 16  ;;  %4683 = vrot.lane.b32.xlu1 %v4651_v6, %s11204_s28  ;;  %v3500_v42 = vsel %vm11386_vm13, %v3495_v25, %v3499_v61  ;;  %v3504_v7 = vor.u32 %v14219_v37, %v3499_v61  ;;  %v2858_v57 = vshll.u32 %v14245_v32, 16  ;;  %v14301_v3 = vld [vmem:[#allocation2 + $0xb8] sm:$0xf]  ;;  %v14303_v37 = vpop.permute.xlu0 %4675  ;;  %vm17618_vm0 = vmmov %vm17616_vm2 }
 0x2e9   : > { %v2850_v20 = vrot.slane %v2848_v22, 5  ;;  %v5824_v9 = vrot.slane %v14237_v17, 4  ;;  %v5487_v23 = vsel %vm5471_vm12, %v5450_v38, %v5120_v48  ;;  %v5826_v51 = vshrl.u32 %v5764_v4, 16  ;;  %v554_v38 = vld [vmem:[#allocation3 + $0x18] sm:$0x1] }
 0x2ea   : > { %v2845_v49 = vor.u32 %v2844_v1, %v2841_v5  ;;  %v5829_v13 = vshll.u32 %v5764_v4, 16  ;;  %v3505_v27 = vrot.slane %v3504_v7, 4  ;;  %v4807_v16 = vunpack.c.l.b16 %v3500_v42  ;;  %v6177_v48 = vld [vmem:[#allocation3 + $0x14] sm:$0x1]  ;;  %v608_v22 = vld [vmem:[#allocation3 + $0x20] sm:$0x1] }
 0x2eb   : > { %v2854_v39 = vrot.slane %v2852_v43, 4  ;;  %v5828_v0 = vrot.slane %v5826_v51, 7  ;;  %v2860_v40 = vrot.slane %v2858_v57, 5  ;;  %vm17614_vm15 = vcmask 261120   ;;  %v14345_v7 = vld [vmem:[#allocation2 + $0xbc] sm:$0x1] }
 0x2ec   : > { %v2846_v32 = vrot.slane %v2845_v49, 4  ;;  %v14307_v17 = vsel %vm17614_vm15, %v14231_v46, %v4854_v55  ;;  %5041 = vrot.lane.b32.xlu2 %v10930_v50, %s11210_s18  ;;  %v3510_v60 = vsel %vm11386_vm13, %v3505_v27, %v14209_v26  ;;  %v10175_v15 = vrot.slane %v14299_v11, 9  ;;  %v5647_v4 = vpop.f32.mrf.mxu2  ;;  %v14351_v55 = vld [vmem:[#allocation2 + $0xb8] sm:$0xf]  ;;  %v14362_v27 = vld [vmem:[#allocation2 + $0xbc] sm:$0x1] }
 0x2ed   : > { %v2855_v29 = vor.u32 %v2854_v39, %v2850_v20  ;;  %v3098_v2 = vrot.slane %v14301_v3, 5  ;;  %v5831_v34 = vor.u32 %v5829_v13, %v5828_v0  ;;  %v5833_v45 = vrot.slane %v5828_v0, 4  ;;  %v14359_v13 = vld [vmem:[%s17402_s7] ss:$0 sm:$0xff] }
 0x2ee   : > { %v4808_v12 = vunpack.c.l.b16 %v3510_v60  ;;  %v5304_v46 = vsel %vm17615_vm9, %v14268_v33, %v14065_v10  ;;  %v2851_v19 = vsel %vm11386_vm13, %v2846_v32, %v2850_v20  ;;  %v3101_v53 = vrot.slane %v14313_v28, 5  ;;  %v14329_v10 = vld [vmem:[#allocation2 + $0xb4] sm:$0xf]  ;;  %v14331_v33 = vld [vmem:[#allocation2 + $0xb8] sm:$0xf] }
 0x2ef   : > { %v2856_v31 = vrot.slane %v2855_v29, 4  ;;  %v3099_v26 = vsel %vm11373_vm10, %v10175_v15, %v3098_v2  ;;  %v3100_v21 = vrot.slane %v3098_v2, 4  ;;  %v5832_v58 = vsel %vm12182_vm8, %v5824_v9, %v5831_v34  ;;  %v14374_v2 = vld [vmem:[#allocation2 + $0xc4] sm:$0xf] }
 0x2f0   : > { %v6178_v59 = vsel %vm11346_vm6, %v5833_v45, %v6177_v48  ;;  %v4830_v47 = vpack.c.b16 %v4808_v12, %v4807_v16  ;;  %6176 = vst.msk [vmem:[#allocation3 + $0x10] sm:$0xf] %vm17616_vm2, %v5832_v58  ;;  %v14337_v6 = vsel %vm5323_vm3, %v5304_v46, %v4762_v62  ;;  %v555_v25 = vsel %vm11346_vm6, 0, %v554_v38  ;;  %v14347_v62 = vld [vmem:[#allocation2 + $0xb4] sm:$0xf]  ;;  %v14366_v0 = vpop.permute.xlu0 %5211 }
 0x2f1   : > { %v2861_v63 = vsel %vm11386_vm13, %v2856_v31, %v2860_v40  ;;  %v5646_v61 = vadd.f32 %v13921_v35, %v5645_v41  ;;  %6179 = vst [vmem:[#allocation3 + $0x14] sm:$0x1] %v6178_v59  ;;  %v4539_v5 = vunpack.c.l.b16 %v2851_v19  ;;  %v3102_v43 = vsel %vm11373_vm10, %v3100_v21, %v3101_v53  ;;  %v14381_v46 = vld [vmem:[#allocation2 + $0xc8] sm:$0x1]  ;;  %v10931_v19 = vld [vmem:[#allocation2 + $0xc0] sm:$0xff]  ;;  %v14384_v31 = vpop.permute.xlu2 %5121 }
 0x2f2   : > { %4861 = vrot.lane.b32.xlu0 %v4830_v47, %s11208_s12  ;;  %v4540_v1 = vunpack.c.l.b16 %v2861_v63  ;;  %v4631_v42 = vunpack.c.l.b16 %v3099_v26  ;;  %v4632_v20 = vunpack.c.l.b16 %v3102_v43  ;;  %556 = vst [vmem:[#allocation3 + $0x18] sm:$0x1] %v555_v25  ;;  %v5524_v35 = vsel %vm5508_vm4, %v5487_v23, %v5210_v54  ;;  %v14364_v23 = vld [vmem:[#allocation2 + $0xc0] sm:$0xf] }
 0x2f3   : > { %v5729_v57 = vmax.f32 %v5646_v61, 0.0  ;;  %v4424_v41 = vrot.slane %v14331_v33, 5  ;;  %v10317_v51 = vrot.slane %v14329_v10, 9  ;;  %v609_v49 = vsel %vm11358_vm7, 0, %v608_v22 }
 0x2f4   : > { %v4561_v9 = vpack.c.b16 %v4540_v1, %v4539_v5  ;;  %v5648_v50 = vadd.f32 %v14359_v13, %v5647_v4  ;;  %v4652_v16 = vpack.c.b16 %v4632_v20, %v4631_v42  ;;  %v4427_v40 = vrot.slane %v14345_v7, 5  ;;  %610 = vst [vmem:[#allocation3 + $0x20] sm:$0x1] %v609_v49 }
 0x2f5   : > { %v5765_v39 = vpack.c.bf16 %v5729_v57, %v5729_v57  ;;  %v4426_v32 = vrot.slane %v4424_v41, 4  ;;  %v4425_v48 = vsel %vm11373_vm10, %v10317_v51, %v4424_v41  ;;  %v10246_v29 = vrot.slane %v14347_v62, 9 }
 0x2f6   : > { %4593 = vrot.lane.b32.xlu1 %v4561_v9, %s11206_s30  ;;  %v5730_v60 = vmax.f32 %v5648_v50, 0.0  ;;  %v3761_v15 = vrot.slane %v14351_v55, 5  ;;  %4685 = vrot.lane.b32.xlu2 %v4652_v16, %s11204_s28  ;;  %v3764_v12 = vrot.slane %v14362_v27, 5  ;;  %v10176_v38 = vrot.slane %v14364_v23, 9 }
 0x2f7   : > { %v5835_v34 = vshrl.u32 %v5765_v39, 16  ;;  %10561 = vmatmul.msk.bf16.gmra.mxu2 %vm17617_vm14, %v5524_v35  ;;  %v4428_v45 = vsel %vm11373_vm10, %v4426_v32, %v4427_v40  ;;  %v5838_v53 = vshll.u32 %v5765_v39, 16  ;;  %v5167_v54 = vunpack.c.l.b16 %v4425_v48  ;;  %v10913_v35 = vld [vmem:[#allocation2 + $0xb4] sm:$0xff] }
 0x2f8   : > { %v5168_v26 = vunpack.c.l.b16 %v4428_v45  ;;  %v5766_v21 = vpack.c.bf16 %v5730_v60, %v5730_v60  ;;  %v3762_v58 = vsel %vm11373_vm10, %v10246_v29, %v3761_v15  ;;  %v3763_v59 = vrot.slane %v3761_v15, 4  ;;  %v4852_v45 = vpop.permute.xlu1 %4851 }
 0x2f9   : > { %v5837_v47 = vrot.slane %v5835_v34, 7  ;;  %v3105_v63 = vrot.slane %v14374_v2, 5  ;;  %v6180_v25 = vld [vmem:[#allocation3 + $0x18] sm:$0xf]  ;;  %v4899_v4 = vunpack.c.l.b16 %v3762_v58  ;;  %v3108_v5 = vrot.slane %v14381_v46, 5  ;;  %v4586_v34 = vpop.permute.xlu0 %4585 }
 0x2fa   : > { %5043 = vrot.lane.b32.xlu0 %v10931_v19, %s11210_s18  ;;  %v5843_v61 = vshrl.u32 %v5766_v21, 16  ;;  %v3765_v22 = vsel %vm11373_vm10, %v3763_v59, %v3764_v12  ;;  %v5190_v43 = vpack.c.b16 %v5168_v26, %v5167_v54  ;;  %v5846_v9 = vshll.u32 %v5766_v21, 16 }
 0x2fb   : > { %v5840_v1 = vor.u32 %v5838_v53, %v5837_v47  ;;  %v4900_v42 = vunpack.c.l.b16 %v3765_v22  ;;  %v3106_v20 = vsel %vm11373_vm10, %v10176_v38, %v3105_v63  ;;  %v5841_v57 = vrot.slane %v5837_v47, 4  ;;  %v6184_v50 = vld [vmem:[#allocation3 + $0x20] sm:$0x1] }
 0x2fc   : > { %v5845_v41 = vrot.slane %v5843_v61, 7  ;;  %v3107_v51 = vrot.slane %v3105_v63, 4  ;;  %v4633_v39 = vunpack.c.l.b16 %v3106_v20  ;;  %v2863_v32 = vshrl.u32 %v14299_v11, 16  ;;  %v14412_v63 = vpop.permute.xlu2 %5213 }
 0x2fd   : > { %v6181_v49 = vsel %vm12121_vm5, %v5840_v1, %v6180_v25  ;;  %v4921_v16 = vpack.c.b16 %v4900_v42, %v4899_v4  ;;  %v2866_v29 = vshll.u32 %v14299_v11, 16  ;;  %v2872_v38 = vshll.u32 %v14301_v3, 16 }
 0x2fe   : > { %6182 = vst [vmem:[#allocation3 + $0x18] sm:$0xf] %v6181_v49  ;;  %4773 = vrot.lane.b32.xlu1 %v10913_v35, %s11205_s29  ;;  %v5848_v40 = vor.u32 %v5846_v9, %v5845_v41  ;;  %v5850_v48 = vrot.slane %v5845_v41, 4  ;;  %v3109_v60 = vsel %vm11373_vm10, %v3107_v51, %v3108_v5  ;;  %5221 = vrot.lane.b32.xlu2 %v5190_v43, %s11211_s21  ;;  %v2865_v12 = vrot.slane %v2863_v32, 4 }
 0x2ff   : > { %v4634_v15 = vunpack.c.l.b16 %v3109_v60  ;;  %v2876_v19 = vshrl.u32 %v14301_v3, 16  ;;  %v2868_v58 = vrot.slane %v2866_v29, 5  ;;  %v2882_v59 = vshll.u32 %v14313_v28, 16 }
 0x300   : > { %v5849_v26 = vsel %vm12182_vm8, %v5841_v57, %v5848_v40  ;;  %v6185_v21 = vsel %vm11346_vm6, %v5850_v48, %v6184_v50  ;;  %v2874_v47 = vrot.slane %v2872_v38, 5  ;;  %v3512_v54 = vshrl.u32 %v14347_v62, 16  ;;  %v10891_v48 = vld [vmem:[#allocation2 + $0x78] sm:$0xff] }
 0x301   : > { %6183 = vst.msk [vmem:[#allocation3 + $0x1c] sm:$0xf] %vm17618_vm0, %v5849_v26  ;;  %v4653_v11 = vpack.c.b16 %v4634_v15, %v4633_v39  ;;  %v2878_v53 = vrot.slane %v2876_v19, 4  ;;  %v5378_v3 = vsel %vm17614_vm15, %v14337_v6, %v4852_v45  ;;  %v2869_v25 = vor.u32 %v2868_v58, %v2865_v12  ;;  %v14431_v38 = vpop.permute.xlu0 %4765  ;;  %v557_v19 = vld [vmem:[#allocation3 + $0x24] sm:$0x1] }
 0x302   : > { %6186 = vst [vmem:[#allocation3 + $0x20] sm:$0x1] %v6185_v21  ;;  %v3515_v61 = vshll.u32 %v14347_v62, 16  ;;  %v3521_v22 = vshll.u32 %v14351_v55, 16  ;;  %v2884_v4 = vrot.slane %v2882_v59, 5  ;;  %v3514_v5 = vrot.slane %v3512_v54, 4 }
 0x303   : > { %4687 = vrot.lane.b32.xlu0 %v4653_v11, %s11204_s28  ;;  %v2879_v28 = vor.u32 %v2878_v53, %v2874_v47  ;;  %v3525_v1 = vshrl.u32 %v14351_v55, 16  ;;  %v2870_v43 = vrot.slane %v2869_v25, 4  ;;  %v2887_v57 = vshrl.u32 %v14364_v23, 16  ;;  %v5032_v11 = vpop.permute.xlu1 %5031 }
 0x304   : > { %v3517_v42 = vrot.slane %v3515_v61, 5  ;;  %v3523_v20 = vrot.slane %v3521_v22, 5  ;;  %v3531_v6 = vshll.u32 %v14362_v27, 16  ;;  %v2890_v62 = vshll.u32 %v14364_v23, 16  ;;  %v14439_v22 = vpop.permute.xlu2 %5035 }
 0x305   : > { %v2880_v35 = vrot.slane %v2879_v28, 4  ;;  %v3527_v41 = vrot.slane %v3525_v1, 4  ;;  %v2875_v9 = vsel %vm11386_vm13, %v2870_v43, %v2874_v47  ;;  %v2889_v49 = vrot.slane %v2887_v57, 4  ;;  %v5650_v47 = vpop.f32.mrf.mxu2 }
 0x306   : > { %4953 = vrot.lane.b32.xlu1 %v4921_v16, %s11207_s11  ;;  %v3518_v51 = vor.u32 %v3517_v42, %v3514_v5  ;;  %v2896_v55 = vshll.u32 %v14374_v2, 16  ;;  %v4541_v39 = vunpack.c.l.b16 %v2875_v9  ;;  %v2892_v40 = vrot.slane %v2890_v62, 5 }
 0x307   : > { %v2885_v50 = vsel %vm11386_vm13, %v2880_v35, %v2884_v4  ;;  %v3528_v32 = vor.u32 %v3527_v41, %v3523_v20  ;;  %v2900_v23 = vshrl.u32 %v14374_v2, 16  ;;  %v3533_v15 = vrot.slane %v3531_v6, 5 }
 0x308   : > { %v4542_v60 = vunpack.c.l.b16 %v2885_v50  ;;  %v3519_v27 = vrot.slane %v3518_v51, 4  ;;  %v2898_v29 = vrot.slane %v2896_v55, 5  ;;  %v2893_v45 = vor.u32 %v2892_v40, %v2889_v49  ;;  %v10914_v50 = vld [vmem:[#allocation2 + $0xc0] sm:$0xff] }
 0x309   : > { %v3529_v16 = vrot.slane %v3528_v32, 4  ;;  %v2906_v12 = vshll.u32 %v14381_v46, 16  ;;  %v5264_v26 = vsel %vm805_vm1, %v10891_v48, %v4586_v34  ;;  %v2902_v59 = vrot.slane %v2900_v23, 4  ;;  %v14465_v32 = vld [vmem:[#allocation2 + $0xc4] sm:$0xf] }
 0x30a   : > { %v4562_v21 = vpack.c.b16 %v4542_v60, %v4541_v39  ;;  %v3524_v58 = vsel %vm11386_vm13, %v3519_v27, %v3523_v20  ;;  %v2894_v54 = vrot.slane %v2893_v45, 4  ;;  %vm17619_vm9 = vcmask 326656   ;;  %v14469_v27 = vld [vmem:[#allocation2 + $0xc8] sm:$0x1] }
 0x30b   : > { %v3534_v2 = vsel %vm11386_vm13, %v3529_v16, %v3533_v15  ;;  %v4809_v53 = vunpack.c.l.b16 %v3524_v58  ;;  %v2908_v25 = vrot.slane %v2906_v12, 5  ;;  %v2903_v61 = vor.u32 %v2902_v59, %v2898_v29  ;;  %v14472_v15 = vpop.permute.xlu0 %5033  ;;  %vm17621_vm0 = vmmov %vm17619_vm9 }
 0x30c   : > { %4595 = vrot.lane.b32.xlu2 %v4562_v21, %s11206_s30  ;;  %v4810_v46 = vunpack.c.l.b16 %v3534_v2  ;;  %v5415_v34 = vsel %vm17619_vm9, %v5378_v3, %v14225_v36  ;;  %v558_v28 = vsel %vm11346_vm6, 0, %v557_v19  ;;  %v2899_v4 = vsel %vm11386_vm13, %v2894_v54, %v2898_v29  ;;  %v14452_v36 = vld [vmem:[#allocation2 + $0xc0] sm:$0xf]  ;;  %v14476_v21 = vpop.permute.xlu1 %4677 }
 0x30d   : > { %v5452_v5 = vsel %vm5434_vm11, %v5415_v34, %v5032_v11  ;;  %559 = vst [vmem:[#allocation3 + $0x24] sm:$0x1] %v558_v28  ;;  %v5651_v1 = vadd.f32 %v14359_v13, %v5650_v47  ;;  %v4158_v43 = vshrl.u32 %v14329_v10, 16  ;;  %v2904_v20 = vrot.slane %v2903_v61, 4 }
 0x30e   : > { %v4831_v42 = vpack.c.b16 %v4810_v46, %v4809_v53  ;;  %v4543_v57 = vunpack.c.l.b16 %v2899_v4  ;;  %v5489_v35 = vsel %vm5471_vm12, %v5452_v5, %v14384_v31  ;;  %v4161_v62 = vshll.u32 %v14329_v10, 16  ;;  %v14483_v46 = vpop.permute.xlu2 %4679  ;;  %v611_v5 = vld [vmem:[#allocation3 + $0x2c] sm:$0x1] }
 0x30f   : > { %v5526_v3 = vsel %vm5508_vm4, %v5489_v35, %v14366_v0  ;;  %v5731_v41 = vmax.f32 %v5651_v1, 0.0  ;;  %v4160_v6 = vrot.slane %v4158_v43, 4  ;;  %v2909_v9 = vsel %vm11386_vm13, %v2904_v20, %v2908_v25  ;;  %v5652_v1 = vpop.f32.mrf.mxu2 }
 0x310   : > { %4863 = vrot.lane.b32.xlu1 %v4831_v42, %s11208_s12  ;;  %vm17620_vm2 = vcmask 130048   ;;  %10562 = vmatmul.msk.bf16.gmra.mxu2 %vm17617_vm14, %v5526_v3  ;;  %v4167_v31 = vshll.u32 %v14331_v33, 16  ;;  %v4171_v49 = vshrl.u32 %v14331_v33, 16  ;;  %v4544_v55 = vunpack.c.l.b16 %v2909_v9 }
 0x311   : > { %v5308_v51 = vsel %vm17620_vm2, %v5264_v26, %v14303_v37  ;;  %v5767_v0 = vpack.c.bf16 %v5731_v41, %v5731_v41  ;;  %v4163_v39 = vrot.slane %v4161_v62, 5  ;;  %v3536_v10 = vshrl.u32 %v14452_v36, 16  ;;  %v10293_v62 = vld [vmem:[#allocation2 + $0xc4] sm:$0xf]  ;;  %vm17623_vm9 = vmmov %vm17620_vm2 }
 0x312   : > { %v4169_v40 = vrot.slane %v4167_v31, 5  ;;  %v4173_v48 = vrot.slane %v4171_v49, 4  ;;  %v4177_v60 = vshll.u32 %v14345_v7, 16  ;;  %v3539_v37 = vshll.u32 %v14452_v36, 16 }
 0x313   : > { %v4563_v29 = vpack.c.b16 %v4544_v55, %v4543_v57  ;;  %v5852_v23 = vshrl.u32 %v5767_v0, 16  ;;  %v5855_v16 = vshll.u32 %v5767_v0, 16  ;;  %v4164_v33 = vor.u32 %v4163_v39, %v4160_v6  ;;  %v10292_v6 = vld [vmem:[#allocation2 + $0xc0] sm:$0xf] }
 0x314   : > { %4775 = vrot.lane.b32.xlu2 %v10914_v50, %s11205_s29  ;;  %v4174_v45 = vor.u32 %v4173_v48, %v4169_v40  ;;  %v3538_v12 = vrot.slane %v3536_v10, 4  ;;  %v3541_v19 = vrot.slane %v3539_v37, 5  ;;  %v3545_v26 = vshll.u32 %v14465_v32, 16  ;;  %v6187_v47 = vld [vmem:[#allocation3 + $0x24] sm:$0xf] }
 0x315   : > { %4597 = vrot.lane.b32.xlu0 %v4563_v29, %s11206_s30  ;;  %v14479_v7 = vrot.slane %v5852_v23, 7  ;;  %v4165_v58 = vrot.slane %v4164_v33, 4  ;;  %v3549_v59 = vshrl.u32 %v14465_v32, 16  ;;  %v3555_v11 = vshll.u32 %v14469_v27, 16  ;;  %v14517_v23 = vpop.permute.xlu0 %4945 }
 0x316   : > { %v4175_v2 = vrot.slane %v4174_v45, 4  ;;  %v4179_v53 = vrot.slane %v4177_v60, 5  ;;  %v3542_v54 = vor.u32 %v3541_v19, %v3538_v12  ;;  %v3547_v25 = vrot.slane %v3545_v26, 5  ;;  %v14521_v45 = vpop.permute.xlu1 %4587 }
 0x317   : > { %v14487_v61 = vsel %vm5323_vm3, %v5308_v51, %v14431_v38  ;;  %v5857_v34 = vor.u32 %v5855_v16, %v14479_v7  ;;  %v4170_v28 = vsel %vm11386_vm13, %v4165_v58, %v4169_v40  ;;  %v3551_v4 = vrot.slane %v3549_v59, 4 }
 0x318   : > { %v4180_v43 = vsel %vm11386_vm13, %v4175_v2, %v4179_v53  ;;  %v5077_v42 = vunpack.c.l.b16 %v4170_v28  ;;  %v3543_v20 = vrot.slane %v3542_v54, 4  ;;  %v14497_v57 = vsel %vm17621_vm0, %v14307_v17, %v14248_v56  ;;  %v14507_v17 = vld [vmem:[#allocation2 + $0xc8] sm:$0x1]  ;;  %v4590_v53 = vpop.permute.xlu2 %4589 }
 0x319   : > { %v6188_v38 = vsel %vm12121_vm5, %v5857_v34, %v6187_v47  ;;  %v5078_v35 = vunpack.c.l.b16 %v4180_v43  ;;  %v3552_v3 = vor.u32 %v3551_v4, %v3547_v25  ;;  %v3557_v41 = vrot.slane %v3555_v11, 5  ;;  %v10893_v4 = vld [vmem:[#allocation2 + $0x90] sm:$0xff] }
 0x31a   : > { %6189 = vst [vmem:[#allocation3 + $0x24] sm:$0xf] %v6188_v38  ;;  %v3548_v9 = vsel %vm11386_vm13, %v3543_v20, %v3547_v25  ;;  %v612_v51 = vsel %vm11358_vm7, 0, %v611_v5  ;;  %v5653_v31 = vadd.f32 %v14359_v13, %v5652_v1  ;;  %v10247_v56 = vrot.slane %v14452_v36, 9  ;;  %v14528_v20 = vld [vmem:[#allocation2 + $0xcc] sm:$0xf] }
 0x31b   : > { %v5100_v49 = vpack.c.b16 %v5078_v35, %v5077_v42  ;;  %v3553_v55 = vrot.slane %v3552_v3, 4  ;;  %v4811_v0 = vunpack.c.l.b16 %v3548_v9  ;;  %613 = vst [vmem:[#allocation3 + $0x2c] sm:$0x1] %v612_v51  ;;  %v3768_v50 = vrot.slane %v14465_v32, 5  ;;  %v14530_v38 = vld [vmem:[#allocation2 + $0xd0] sm:$0xf] }
 0x31c   : > { %v5732_v39 = vmax.f32 %v5653_v31, 0.0  ;;  %v3771_v10 = vrot.slane %v14469_v27, 5  ;;  %v10318_v40 = vrot.slane %v10292_v6, 9  ;;  %v4431_v48 = vrot.slane %v10293_v62, 5 }
 0x31d   : > { %5131 = vrot.lane.b32.xlu1 %v5100_v49, %s11209_s17  ;;  %v3558_v60 = vsel %vm11386_vm13, %v3553_v55, %v3557_v41  ;;  %v3769_v36 = vsel %vm11373_vm10, %v10247_v56, %v3768_v50  ;;  %v3770_v37 = vrot.slane %v3768_v50, 4  ;;  %v4434_v29 = vrot.slane %v14507_v17, 5  ;;  %v14535_v55 = vld [vmem:[#allocation2 + $0xcc] sm:$0xf] }
 0x31e   : > { %v4812_v16 = vunpack.c.l.b16 %v3558_v60  ;;  %v5768_v32 = vpack.c.bf16 %v5732_v39, %v5732_v39  ;;  %v4901_v33 = vunpack.c.l.b16 %v3769_v36  ;;  %v4432_v27 = vsel %vm11373_vm10, %v10318_v40, %v4431_v48  ;;  %v14543_v39 = vld [vmem:[#allocation2 + $0xd4] sm:$0x1] }
 0x31f   : > { %v3772_v12 = vsel %vm11373_vm10, %v3770_v37, %v3771_v10  ;;  %v4433_v19 = vrot.slane %v4431_v48, 4  ;;  %v5169_v26 = vunpack.c.l.b16 %v4432_v27  ;;  %v4182_v58 = vshrl.u32 %v10292_v6, 16  ;;  %v14552_v36 = vld [vmem:[#allocation2 + $0xd4] sm:$0x1] }
 0x320   : > { %v4832_v59 = vpack.c.b16 %v4812_v16, %v4811_v0  ;;  %v5860_v11 = vshrl.u32 %v5768_v32, 16  ;;  %v5863_v47 = vshll.u32 %v5768_v32, 16  ;;  %v4902_v2 = vunpack.c.l.b16 %v3772_v12  ;;  %v4856_v16 = vpop.permute.xlu0 %4855 }
 0x321   : > { %v4435_v54 = vsel %vm11373_vm10, %v4433_v19, %v4434_v29  ;;  %v4184_v25 = vrot.slane %v4182_v58, 4  ;;  %v4185_v34 = vshll.u32 %v10292_v6, 16  ;;  %v4191_v28 = vshll.u32 %v10293_v62, 16 }
 0x322   : > { %4865 = vrot.lane.b32.xlu0 %v4832_v59, %s11208_s12  ;;  %v5862_v5 = vrot.slane %v5860_v11, 7  ;;  %v4922_v1 = vpack.c.b16 %v4902_v2, %v4901_v33  ;;  %v5170_v43 = vunpack.c.l.b16 %v4435_v54  ;;  %v4195_v42 = vshrl.u32 %v10293_v62, 16  ;;  %v6191_v3 = vld [vmem:[#allocation3 + $0x2c] sm:$0x1]  ;;  %v14537_v62 = vld [vmem:[#allocation2 + $0xd0] sm:$0xf] }
 0x323   : > { %v5858_v35 = vrot.slane %v14479_v7, 4  ;;  %v4187_v41 = vrot.slane %v4185_v34, 5  ;;  %v4193_v9 = vrot.slane %v4191_v28, 5  ;;  %v4201_v51 = vshll.u32 %v14507_v17, 16  ;;  %v10892_v33 = vld [vmem:[#allocation2 + $0x84] sm:$0xff]  ;;  %v4770_v34 = vpop.permute.xlu2 %4769 }
 0x324   : > { %v5865_v6 = vor.u32 %v5863_v47, %v5862_v5  ;;  %v5867_v31 = vrot.slane %v5862_v5, 4  ;;  %4955 = vrot.lane.b32.xlu2 %v4922_v1, %s11207_s11  ;;  %v5191_v56 = vpack.c.b16 %v5170_v43, %v5169_v26  ;;  %v4197_v49 = vrot.slane %v4195_v42, 4  ;;  %v5124_v26 = vpop.permute.xlu1 %5123  ;;  %v14573_v43 = vld [vmem:[#allocation2 + $0xcc] sm:$0xf]  ;;  %v14575_v42 = vld [vmem:[#allocation2 + $0xd0] sm:$0xf] }
 0x325   : > { %v5454_v0 = vsel %vm5434_vm11, %v14497_v57, %v14472_v15  ;;  %v4188_v7 = vor.u32 %v4187_v41, %v4184_v25  ;;  %v5270_v50 = vsel %vm805_vm1, %v10893_v4, %v4590_v53  ;;  %v10319_v17 = vrot.slane %v14528_v20, 9 }
 0x326   : > { %v5866_v10 = vsel %vm12182_vm8, %v5858_v35, %v5865_v6  ;;  %v6192_v40 = vsel %vm11346_vm6, %v5867_v31, %v6191_v3  ;;  %5223 = vrot.lane.b32.xlu1 %v5191_v56, %s11211_s21  ;;  %v4198_v48 = vor.u32 %v4197_v49, %v4193_v9  ;;  %v4438_v60 = vrot.slane %v14530_v38, 5 }
 0x327   : > { %vm17622_vm15 = vcmask 60416   ;;  %v4189_v15 = vrot.slane %v4188_v7, 4  ;;  %v4203_v57 = vrot.slane %v4201_v51, 5  ;;  %v10177_v37 = vrot.slane %v14535_v55, 9  ;;  %6193 = vst [vmem:[#allocation3 + $0x2c] sm:$0x1] %v6192_v40 }
 0x328   : > { %6190 = vst.msk [vmem:[#allocation3 + $0x28] sm:$0xf] %vm17622_vm15, %v5866_v10  ;;  %v3112_v29 = vrot.slane %v14537_v62, 5  ;;  %v4199_v32 = vrot.slane %v4198_v48, 4  ;;  %v4439_v27 = vsel %vm11373_vm10, %v10319_v17, %v4438_v60  ;;  %v4440_v12 = vrot.slane %v4438_v60, 4  ;;  %vm17625_vm15 = vmmov %vm17623_vm9 }
 0x329   : > { %v4441_v19 = vrot.slane %v14543_v39, 5  ;;  %v4194_v58 = vsel %vm11386_vm13, %v4189_v15, %v4193_v9  ;;  %v3115_v47 = vrot.slane %v14552_v36, 5  ;;  %v5267_v54 = vsel %vm805_vm1, %v10892_v33, %v14521_v45  ;;  %v14580_v9 = vld [vmem:[#allocation2 + $0xd4] sm:$0x1] }
 0x32a   : > { %v3113_v59 = vsel %vm11373_vm10, %v10177_v37, %v3112_v29  ;;  %v3114_v11 = vrot.slane %v3112_v29, 4  ;;  %v4204_v2 = vsel %vm11386_vm13, %v4199_v32, %v4203_v57  ;;  %v5079_v53 = vunpack.c.l.b16 %v4194_v58 }
 0x32b   : > { %v4442_v25 = vsel %vm11373_vm10, %v4440_v12, %v4441_v19  ;;  %v5080_v28 = vunpack.c.l.b16 %v4204_v2  ;;  %v5171_v4 = vunpack.c.l.b16 %v4439_v27  ;;  %v4635_v35 = vunpack.c.l.b16 %v3113_v59  ;;  %v560_v19 = vld [vmem:[#allocation3 + $0x30] sm:$0x1] }
 0x32c   : > { %v5172_v5 = vunpack.c.l.b16 %v4442_v25  ;;  %v3116_v1 = vsel %vm11373_vm10, %v3114_v11, %v3115_v47  ;;  %v5312_v41 = vsel %vm17623_vm9, %v5270_v50, %v14483_v46  ;;  %v5491_v45 = vsel %vm5471_vm12, %v5454_v0, %v5124_v26  ;;  %v14604_v12 = vpop.permute.xlu1 %4767  ;;  %v5655_v11 = vpop.f32.mrf.mxu2  ;;  %vm17626_vm9 = vmmov %vm17617_vm14 }
 0x32d   : > { %v4636_v3 = vunpack.c.l.b16 %v3116_v1  ;;  %v5101_v51 = vpack.c.b16 %v5080_v28, %v5079_v53  ;;  %vm17624_vm2 = vcmask 261120   ;;  %v5528_v56 = vsel %vm5508_vm4, %v5491_v45, %v14412_v63  ;;  %v14609_v53 = vpop.permute.xlu2 %5037 }
 0x32e   : > { %v5192_v6 = vpack.c.b16 %v5172_v5, %v5171_v4  ;;  %v5382_v31 = vsel %vm17624_vm2, %v14487_v61, %v4856_v16  ;;  %10563 = vmatmul.msk.bf16.gmra.mxu2 %vm17617_vm14, %v5528_v56  ;;  %v3560_v7 = vshrl.u32 %v14573_v43, 16  ;;  %v3563_v17 = vshll.u32 %v14573_v43, 16  ;;  %v14600_v16 = vpop.permute.xlu0 %5125 }
 0x32f   : > { %v4654_v49 = vpack.c.b16 %v4636_v3, %v4635_v35  ;;  %v3569_v46 = vshll.u32 %v14575_v42, 16  ;;  %5133 = vrot.lane.b32.xlu0 %v5101_v51, %s11209_s17  ;;  %v3573_v0 = vshrl.u32 %v14575_v42, 16  ;;  %v3579_v61 = vshll.u32 %v14580_v9, 16 }
 0x330   : > { %5225 = vrot.lane.b32.xlu2 %v5192_v6, %s11211_s21  ;;  %v2911_v50 = vshrl.u32 %v14535_v55, 16  ;;  %v2914_v63 = vshll.u32 %v14535_v55, 16  ;;  %v3562_v10 = vrot.slane %v3560_v7, 4  ;;  %v3565_v40 = vrot.slane %v3563_v17, 5 }
 0x331   : > { %4689 = vrot.lane.b32.xlu1 %v4654_v49, %s11204_s28  ;;  %v3571_v48 = vrot.slane %v3569_v46, 5  ;;  %v2920_v60 = vshll.u32 %v14537_v62, 16  ;;  %v5419_v15 = vsel %vm17621_vm0, %v5382_v31, %v14517_v23  ;;  %v3575_v57 = vrot.slane %v3573_v0, 4 }
 0x332   : > { %v2913_v37 = vrot.slane %v2911_v50, 4  ;;  %v2916_v29 = vrot.slane %v2914_v63, 5  ;;  %v3566_v32 = vor.u32 %v3565_v40, %v3562_v10  ;;  %v2924_v27 = vshrl.u32 %v14537_v62, 16 }
 0x333   : > { %v2922_v33 = vrot.slane %v2920_v60, 5  ;;  %v2930_v55 = vshll.u32 %v14552_v36, 16  ;;  %v14607_v26 = vsel %vm5323_vm3, %v5312_v41, %v4770_v34  ;;  %v3576_v58 = vor.u32 %v3575_v57, %v3571_v48  ;;  %v10915_v36 = vld [vmem:[#allocation2 + $0xcc] sm:$0xff] }
 0x334   : > { %v3581_v59 = vrot.slane %v3579_v61, 5  ;;  %v2917_v23 = vor.u32 %v2916_v29, %v2913_v37  ;;  %v3567_v47 = vrot.slane %v3566_v32, 4  ;;  %v2926_v2 = vrot.slane %v2924_v27, 4  ;;  %v6303_v60 = vld [vmem:[#allocation3] sm:$0xf] }
 0x335   : > { %v5456_v25 = vsel %vm5434_vm11, %v5419_v15, %v14439_v22  ;;  %v14615_v62 = vsel %vm17625_vm15, %v5267_v54, %v14476_v21  ;;  %v3577_v28 = vrot.slane %v3576_v58, 4  ;;  %v2932_v34 = vrot.slane %v2930_v55, 5  ;;  %v14634_v15 = vld [vmem:[#allocation3 + $0x4] sm:$0xf]  ;;  %v10932_v27 = vld [vmem:[#allocation2 + $0xcc] sm:$0xff] }
 0x336   : > { %v2918_v4 = vrot.slane %v2917_v23, 4  ;;  %v561_v5 = vsel %vm11346_vm6, 0, %v560_v19  ;;  %v3572_v1 = vsel %vm11386_vm13, %v3567_v47, %v3571_v48  ;;  %v2927_v35 = vor.u32 %v2926_v2, %v2922_v33  ;;  %v14636_v57 = vpop.permute.xlu0 %4681  ;;  %v14647_v2 = vpop.permute.xlu2 %4949 }
 0x337   : > { %562 = vst [vmem:[#allocation3 + $0x30] sm:$0x1] %v561_v5  ;;  %v5656_v3 = vadd.f32 %v14359_v13, %v5655_v11  ;;  %v4206_v22 = vshrl.u32 %v14528_v20, 16  ;;  %4777 = vrot.lane.b32.xlu0 %v10915_v36, %s11205_s29  ;;  %v3582_v21 = vsel %vm11386_vm13, %v3577_v28, %v3581_v59  ;;  %v4813_v54 = vunpack.c.l.b16 %v3572_v1 }
 0x338   : > { %v2923_v41 = vsel %vm11386_vm13, %v2918_v4, %v2922_v33  ;;  %v4209_v45 = vshll.u32 %v14528_v20, 16  ;;  %v4814_v51 = vunpack.c.l.b16 %v3582_v21  ;;  %v2928_v6 = vrot.slane %v2927_v35, 4  ;;  %v14640_v33 = vpop.permute.xlu1 %4947 }
 0x339   : > { %v4545_v31 = vunpack.c.l.b16 %v2923_v41  ;;  %v5733_v56 = vmax.f32 %v5656_v3, 0.0  ;;  %v4208_v49 = vrot.slane %v4206_v22, 4  ;;  %v4215_v17 = vshll.u32 %v14530_v38, 16  ;;  %v614_v3 = vld [vmem:[#allocation3 + $0x38] sm:$0x1]  ;;  %v5657_v22 = vpop.f32.mrf.mxu2 }
 0x33a   : > { %v4211_v7 = vrot.slane %v4209_v45, 5  ;;  %v4219_v46 = vshrl.u32 %v14530_v38, 16  ;;  %v4833_v0 = vpack.c.b16 %v4814_v51, %v4813_v54  ;;  %v2933_v61 = vsel %vm11386_vm13, %v2928_v6, %v2932_v34  ;;  %v6305_v34 = vld [vmem:[#allocation3 + $0x8] sm:$0x1] }
 0x33b   : > { %v5769_v50 = vpack.c.bf16 %v5733_v56, %v5733_v56  ;;  %v4225_v63 = vshll.u32 %v14543_v39, 16  ;;  %v4546_v10 = vunpack.c.l.b16 %v2933_v61  ;;  %v4217_v20 = vrot.slane %v4215_v17, 5  ;;  %v14669_v17 = vld [vmem:[#allocation3 + $0xc] sm:$0xf] }
 0x33c   : > { %v4212_v40 = vor.u32 %v4211_v7, %v4208_v49  ;;  %v4221_v48 = vrot.slane %v4219_v46, 4  ;;  %4867 = vrot.lane.b32.xlu2 %v4833_v0, %s11208_s12  ;;  %v10248_v32 = vrot.slane %v14573_v43, 9  ;;  %v3775_v58 = vrot.slane %v14575_v42, 5 }
 0x33d   : > { %v5869_v37 = vshrl.u32 %v5769_v50, 16  ;;  %v5872_v38 = vshll.u32 %v5769_v50, 16  ;;  %v4227_v29 = vrot.slane %v4225_v63, 5  ;;  %v4564_v39 = vpack.c.b16 %v4546_v10, %v4545_v31  ;;  %v14673_v63 = vld [vmem:[#allocation3 + $0x10] sm:$0xf] }
 0x33e   : > { %v4213_v55 = vrot.slane %v4212_v40, 4  ;;  %v4222_v19 = vor.u32 %v4221_v48, %v4217_v20  ;;  %v3778_v23 = vrot.slane %v14580_v9, 5  ;;  %v10572_v11 = vrot.slane %v6303_v60, 9  ;;  %v6194_v43 = vld [vmem:[#allocation3 + $0x30] sm:$0xf] }
 0x33f   : > { %v14643_v59 = vrot.slane %v5869_v37, 7  ;;  %v6785_v47 = vrot.slane %v14634_v15, 5  ;;  %5045 = vrot.lane.b32.xlu0 %v10932_v27, %s11210_s18  ;;  %4599 = vrot.lane.b32.xlu1 %v4564_v39, %s11206_s30  ;;  %v3776_v42 = vsel %vm11373_vm10, %v10248_v32, %v3775_v58  ;;  %v3777_v4 = vrot.slane %v3775_v58, 4  ;;  %v14676_v37 = vpop.permute.xlu0 %4591  ;;  %v14680_v32 = vld [vmem:[#allocation3 + $0x14] sm:$0x1] }
 0x340   : > { %v4218_v36 = vsel %vm11386_vm13, %v4213_v55, %v4217_v20  ;;  %v4223_v28 = vrot.slane %v4222_v19, 4  ;;  %v5493_v9 = vsel %vm5471_vm12, %v5456_v25, %v14600_v16  ;;  %v4903_v35 = vunpack.c.l.b16 %v3776_v42 }
 0x341   : > { %v5874_v5 = vor.u32 %v5872_v38, %v14643_v59  ;;  %v5081_v1 = vunpack.c.l.b16 %v4218_v36  ;;  %v3779_v54 = vsel %vm11373_vm10, %v3777_v4, %v3778_v23  ;;  %v6786_v41 = vsel %vm11373_vm10, %v10572_v11, %v6785_v47 }
 0x342   : > { %v4228_v21 = vsel %vm11386_vm13, %v4223_v28, %v4227_v29  ;;  %v6787_v45 = vrot.slane %v6785_v47, 4  ;;  %v4904_v25 = vunpack.c.l.b16 %v3779_v54  ;;  %v6788_v6 = vrot.slane %v6305_v34, 5 }
 0x343   : > { %v6195_v51 = vsel %vm12121_vm5, %v5874_v5, %v6194_v43  ;;  %v5082_v16 = vunpack.c.l.b16 %v4228_v21  ;;  %v8209_v31 = vunpack.c.l.b16 %v6786_v41  ;;  %v615_v56 = vsel %vm11358_vm7, 0, %v614_v3  ;;  %v4860_v43 = vpop.permute.xlu2 %4859  ;;  %v10955_v21 = vld [vmem:[#allocation3 + $0xc] sm:$0xff] }
 0x344   : > { %6196 = vst [vmem:[#allocation3 + $0x30] sm:$0xf] %v6195_v51  ;;  %v5658_v49 = vadd.f32 %v14359_v13, %v5657_v22  ;;  %v6352_v7 = vshrl.u32 %v6303_v60, 16  ;;  %v4923_v0 = vpack.c.b16 %v4904_v25, %v4903_v35  ;;  %v6789_v61 = vsel %vm11373_vm10, %v6787_v45, %v6788_v6 }
 0x345   : > { %v5102_v46 = vpack.c.b16 %v5082_v16, %v5081_v1  ;;  %616 = vst [vmem:[#allocation3 + $0x38] sm:$0x1] %v615_v56  ;;  %v6355_v50 = vshll.u32 %v6303_v60, 16  ;;  %v8210_v10 = vunpack.c.l.b16 %v6789_v61  ;;  %v6361_v48 = vshll.u32 %v14634_v15, 16  ;;  %v5216_v60 = vpop.permute.xlu1 %5215 }
 0x346   : > { %v5734_v40 = vmax.f32 %v5658_v49, 0.0  ;;  %v6354_v20 = vrot.slane %v6352_v7, 4  ;;  %v6365_v38 = vshrl.u32 %v14634_v15, 16  ;;  %v6371_v29 = vshll.u32 %v6305_v34, 16 }
 0x347   : > { %5135 = vrot.lane.b32.xlu2 %v5102_v46, %s11209_s17  ;;  %v6357_v13 = vrot.slane %v6355_v50, 5  ;;  %v10588_v27 = vrot.slane %v14669_v17, 9  ;;  %4957 = vrot.lane.b32.xlu0 %v4923_v0, %s11207_s11  ;;  %v8241_v39 = vpack.c.b16 %v8210_v10, %v8209_v31  ;;  %v6363_v19 = vrot.slane %v6361_v48, 5  ;;  %v6306_v46 = vld [vmem:[#allocation3 + $0xc] sm:$0xf] }
 0x348   : > { %v5770_v55 = vpack.c.bf16 %v5734_v40, %v5734_v40  ;;  %v7378_v58 = vrot.slane %v14673_v63, 5  ;;  %v14688_v23 = vsel %vm5323_vm3, %v14615_v62, %v14604_v12  ;;  %v5875_v15 = vrot.slane %v14643_v59, 4  ;;  %v6307_v0 = vld [vmem:[#allocation3 + $0x10] sm:$0xf]  ;;  %v563_v48 = vld [vmem:[#allocation3 + $0x3c] sm:$0x1] }
 0x349   : > { %v6358_v11 = vor.u32 %v6357_v13, %v6354_v20  ;;  %v6367_v47 = vrot.slane %v6365_v38, 4  ;;  %8257 = vrot.lane.b32.xlu1 %v8241_v39, %s11204_s28  ;;  %v7381_v4 = vrot.slane %v14680_v32, 5  ;;  %v6373_v35 = vrot.slane %v6371_v29, 5  ;;  %v14713_v20 = vpop.permute.xlu0 %5127  ;;  %v10894_v38 = vld [vmem:[#allocation2 + $0x9c] sm:$0xff] }
 0x34a   : > { %v5877_v36 = vshrl.u32 %v5770_v55, 16  ;;  %v7379_v28 = vsel %vm11373_vm10, %v10588_v27, %v7378_v58  ;;  %v7380_v42 = vrot.slane %v7378_v58, 4  ;;  %v5880_v34 = vshll.u32 %v5770_v55, 16 }
 0x34b   : > { %v6359_v5 = vrot.slane %v6358_v11, 4  ;;  %v6368_v1 = vor.u32 %v6367_v47, %v6363_v19  ;;  %v8449_v59 = vunpack.c.l.b16 %v7379_v28  ;;  %v5530_v3 = vsel %vm5508_vm4, %v5493_v9, %v5216_v60  ;;  %v5660_v11 = vpop.f32.mrf.mxu2 }
 0x34c   : > { %v5879_v12 = vrot.slane %v5877_v36, 7  ;;  %v7382_v62 = vsel %vm11373_vm10, %v7380_v42, %v7381_v4  ;;  %v6198_v22 = vld [vmem:[#allocation3 + $0x38] sm:$0x1]  ;;  %10564 = vmatmul.msk.bf16.gmra.mxu2 %vm17626_vm9, %v5530_v3  ;;  %v6945_v51 = vshrl.u32 %v14669_v17, 16  ;;  %v6948_v31 = vshll.u32 %v14669_v17, 16  ;;  %v14728_v36 = vpop.permute.xlu2 %5129 }
 0x34d   : > { %v6364_v54 = vsel %vm11386_vm13, %v6359_v5, %v6363_v19  ;;  %v6369_v41 = vrot.slane %v6368_v1, 4  ;;  %v8450_v45 = vunpack.c.l.b16 %v7382_v62  ;;  %v6954_v7 = vshll.u32 %v14673_v63, 16  ;;  %v14711_v17 = vld [vmem:[#allocation3 + $0x14] sm:$0x1]  ;;  %v4858_v39 = vpop.permute.xlu1 %4857  ;;  %v14740_v1 = vld [vmem:[%s17402_s7] ss:$0 sm:$0xff] }
 0x34e   : > { %v5882_v16 = vor.u32 %v5880_v34, %v5879_v12  ;;  %v5884_v25 = vrot.slane %v5879_v12, 4  ;;  %v8129_v6 = vunpack.c.l.b16 %v6364_v54  ;;  %v6947_v49 = vrot.slane %v6945_v51, 4  ;;  %v10971_v34 = vld [vmem:[#allocation3 + $0x18] sm:$0xff] }
 0x34f   : > { %8337 = vrot.lane.b32.xlu2 %v10955_v21, %s11205_s29  ;;  %v6374_v9 = vsel %vm11386_vm13, %v6369_v41, %v6373_v35  ;;  %v8481_v56 = vpack.c.b16 %v8450_v45, %v8449_v59  ;;  %v6950_v40 = vrot.slane %v6948_v31, 5  ;;  %vm17627_vm2 = vcmask 60416   ;;  %v14748_v45 = vld [vmem:[#allocation3 + $0x18] sm:$0xf]  ;;  %v14750_v31 = vld [vmem:[#allocation3 + $0x1c] sm:$0xf] }
 0x350   : > { %v5883_v61 = vsel %vm12182_vm8, %v5875_v15, %v5882_v16  ;;  %v6199_v50 = vsel %vm11346_vm6, %v5884_v25, %v6198_v22  ;;  %v8130_v10 = vunpack.c.l.b16 %v6374_v9  ;;  %vm17628_vm14 = vcmask 261120  }
 0x351   : > { %6197 = vst.msk [vmem:[#allocation3 + $0x34] sm:$0xf] %vm17627_vm2, %v5883_v61  ;;  %v14718_v13 = vsel %vm17628_vm14, %v14607_v26, %v4860_v43  ;;  %v6956_v29 = vrot.slane %v6954_v7, 5  ;;  %v6958_v27 = vshrl.u32 %v14673_v63, 16  ;;  %v6964_v60 = vshll.u32 %v14680_v32, 16  ;;  %8497 = vrot.lane.b32.xlu1 %v8481_v56, %s11207_s11  ;;  %vm17629_vm0 = vmmov %vm17628_vm14 }
 0x352   : > { %6200 = vst [vmem:[#allocation3 + $0x38] sm:$0x1] %v6199_v50  ;;  %v8161_v55 = vpack.c.b16 %v8130_v10, %v8129_v6  ;;  %v6951_v19 = vor.u32 %v6950_v40, %v6947_v49  ;;  %v10573_v58 = vrot.slane %v6306_v46, 9  ;;  %v6792_v15 = vrot.slane %v6307_v0, 5  ;;  %v14755_v40 = vld [vmem:[#allocation3 + $0x20] sm:$0x1] }
 0x353   : > { %v14725_v47 = vsel %vm805_vm1, %v10894_v38, %v14676_v37  ;;  %v6960_v26 = vrot.slane %v6958_v27, 4  ;;  %v6795_v43 = vrot.slane %v14711_v17, 5  ;;  %v564_v63 = vsel %vm11346_vm6, 0, %v563_v48  ;;  %v14757_v48 = vpop.permute.xlu0 %4771 }
 0x354   : > { %8177 = vrot.lane.b32.xlu0 %v8161_v55, %s11206_s30  ;;  %v6952_v32 = vrot.slane %v6951_v19, 4  ;;  %v6966_v28 = vrot.slane %v6964_v60, 5  ;;  %v6793_v42 = vsel %vm11373_vm10, %v10573_v58, %v6792_v15  ;;  %v6794_v4 = vrot.slane %v6792_v15, 4  ;;  %565 = vst [vmem:[#allocation3 + $0x3c] sm:$0x1] %v564_v63 }
 0x355   : > { %v6961_v37 = vor.u32 %v6960_v26, %v6956_v29  ;;  %v5384_v5 = vsel %vm17629_vm0, %v14688_v23, %v4858_v39  ;;  %v5661_v35 = vadd.f32 %v14740_v1, %v5660_v11  ;;  %v6376_v12 = vshrl.u32 %v6306_v46, 16  ;;  %v5218_v60 = vpop.permute.xlu1 %5217  ;;  %v617_v63 = vld [vmem:[#allocation3 + $0x44] sm:$0x1]  ;;  %vm17633_vm0 = vmmov %vm17626_vm9 }
 0x356   : > { %v6957_v62 = vsel %vm11386_vm13, %v6952_v32, %v6956_v29  ;;  %v6796_v59 = vsel %vm11373_vm10, %v6794_v4, %v6795_v43  ;;  %v6379_v3 = vshll.u32 %v6306_v46, 16  ;;  %v6385_v22 = vshll.u32 %v6307_v0, 16 }
 0x357   : > { %8577 = vrot.lane.b32.xlu2 %v10971_v34, %s11210_s18  ;;  %v6962_v21 = vrot.slane %v6961_v37, 4  ;;  %v8211_v23 = vunpack.c.l.b16 %v6793_v42  ;;  %v8212_v54 = vunpack.c.l.b16 %v6796_v59  ;;  %v5735_v41 = vmax.f32 %v5661_v35, 0.0  ;;  %v5662_v37 = vpop.f32.mrf.mxu2 }
 0x358   : > { %v6378_v51 = vrot.slane %v6376_v12, 4  ;;  %v6381_v16 = vrot.slane %v6379_v3, 5  ;;  %v6387_v25 = vrot.slane %v6385_v22, 5  ;;  %v6389_v6 = vshrl.u32 %v6307_v0, 16 }
 0x359   : > { %v6967_v9 = vsel %vm11386_vm13, %v6962_v21, %v6966_v28  ;;  %v8369_v56 = vunpack.c.l.b16 %v6957_v62  ;;  %v8242_v49 = vpack.c.b16 %v8212_v54, %v8211_v23  ;;  %v5771_v7 = vpack.c.bf16 %v5735_v41, %v5735_v41 }
 0x35a   : > { %v8370_v46 = vunpack.c.l.b16 %v6967_v9  ;;  %v6382_v61 = vor.u32 %v6381_v16, %v6378_v51  ;;  %v6391_v50 = vrot.slane %v6389_v6, 4  ;;  %v6395_v10 = vshll.u32 %v14711_v17, 16  ;;  %v10956_v17 = vld [vmem:[#allocation3 + $0x18] sm:$0xff] }
 0x35b   : > { %8259 = vrot.lane.b32.xlu1 %v8242_v49, %s11204_s28  ;;  %vm17630_vm15 = vcmask 326656   ;;  %v5886_v38 = vshrl.u32 %v5771_v7, 16  ;;  %v10604_v29 = vrot.slane %v14748_v45, 9  ;;  %v7971_v27 = vrot.slane %v14750_v31, 5  ;;  %v6201_v32 = vld [vmem:[#allocation3 + $0x3c] sm:$0xf] }
 0x35c   : > { %v5421_v0 = vsel %vm17630_vm15, %v5384_v5, %v14640_v33  ;;  %v8401_v39 = vpack.c.b16 %v8370_v46, %v8369_v56  ;;  %v5889_v55 = vshll.u32 %v5771_v7, 16  ;;  %v6383_v19 = vrot.slane %v6382_v61, 4  ;;  %v14769_v33 = vpop.permute.xlu2 %5041  ;;  %v6899_v16 = vld [vmem:[#allocation3 + $0x18] sm:$0xf]  ;;  %v6900_v56 = vld [vmem:[#allocation3 + $0x1c] sm:$0xf]  ;;  %vm17631_vm2 = vmmov %vm17630_vm15 }
 0x35d   : > { %v6392_v58 = vor.u32 %v6391_v50, %v6387_v25  ;;  %v14764_v15 = vrot.slane %v5886_v38, 7  ;;  %v7972_v11 = vsel %vm11373_vm10, %v10604_v29, %v7971_v27  ;;  %v7973_v26 = vrot.slane %v7971_v27, 4  ;;  %v14796_v61 = vld [vmem:[#allocation3 + $0x20] sm:$0x1]  ;;  %v14800_v29 = vpop.permute.xlu0 %4951 }
 0x35e   : > { %v7974_v43 = vrot.slane %v14755_v40, 5  ;;  %8417 = vrot.lane.b32.xlu0 %v8401_v39, %s11208_s12  ;;  %v6388_v28 = vsel %vm11386_vm13, %v6383_v19, %v6387_v25  ;;  %v6397_v4 = vrot.slane %v6395_v10, 5  ;;  %v8689_v34 = vunpack.c.l.b16 %v7972_v11  ;;  %v5040_v19 = vpop.permute.xlu1 %5039 }
 0x35f   : > { %v6393_v42 = vrot.slane %v6392_v58, 4  ;;  %8339 = vrot.lane.b32.xlu2 %v10956_v17, %s11205_s29  ;;  %v5891_v5 = vor.u32 %v5889_v55, %v14764_v15  ;;  %v5892_v35 = vrot.slane %v14764_v15, 4  ;;  %v8131_v12 = vunpack.c.l.b16 %v6388_v28 }
 0x360   : > { %v7975_v62 = vsel %vm11373_vm10, %v7973_v26, %v7974_v43  ;;  %v5458_v22 = vsel %vm5434_vm11, %v5421_v0, %v14609_v53  ;;  %v618_v21 = vsel %vm11358_vm7, 0, %v617_v63  ;;  %v5663_v51 = vadd.f32 %v14740_v1, %v5662_v37 }
 0x361   : > { %v6398_v59 = vsel %vm11386_vm13, %v6393_v42, %v6397_v4  ;;  %v8690_v3 = vunpack.c.l.b16 %v7975_v62  ;;  %v6202_v23 = vsel %vm12121_vm5, %v5891_v5, %v6201_v32  ;;  %v5495_v41 = vsel %vm5471_vm12, %v5458_v22, %v14713_v20  ;;  %619 = vst [vmem:[#allocation3 + $0x44] sm:$0x1] %v618_v21 }
 0x362   : > { %v8132_v54 = vunpack.c.l.b16 %v6398_v59  ;;  %6203 = vst [vmem:[#allocation3 + $0x3c] sm:$0xf] %v6202_v23  ;;  %v5532_v6 = vsel %vm5508_vm4, %v5495_v41, %v5218_v60  ;;  %v7538_v53 = vshrl.u32 %v14748_v45, 16  ;;  %v7541_v9 = vshll.u32 %v14748_v45, 16  ;;  %v10972_v45 = vld [vmem:[#allocation3 + $0x24] sm:$0xff] }
 0x363   : > { %v8721_v25 = vpack.c.b16 %v8690_v3, %v8689_v34  ;;  %10565 = vmatmul.msk.bf16.gmra.mxu2 %vm17626_vm9, %v5532_v6  ;;  %v5736_v7 = vmax.f32 %v5663_v51, 0.0  ;;  %v7547_v46 = vshll.u32 %v14750_v31, 16  ;;  %v7551_v20 = vshrl.u32 %v14750_v31, 16  ;;  %v14819_v51 = vld [vmem:[#allocation3 + $0x18] sm:$0xf] }
 0x364   : > { %v8162_v49 = vpack.c.b16 %v8132_v54, %v8131_v12  ;;  %v7540_v50 = vrot.slane %v7538_v53, 4  ;;  %v7543_v10 = vrot.slane %v7541_v9, 5  ;;  %v7557_v0 = vshll.u32 %v14755_v40, 16  ;;  %v14810_v32 = vpop.permute.xlu2 %4685  ;;  %v14821_v9 = vld [vmem:[#allocation3 + $0x1c] sm:$0xf] }
 0x365   : > { %8737 = vrot.lane.b32.xlu1 %v8721_v25, %s11211_s21  ;;  %v10589_v38 = vrot.slane %v6899_v16, 9  ;;  %v5772_v27 = vpack.c.bf16 %v5736_v7, %v5736_v7  ;;  %v7549_v60 = vrot.slane %v7547_v46, 5  ;;  %v7553_v39 = vrot.slane %v7551_v20, 4  ;;  %v10957_v46 = vld [vmem:[#allocation3 + $0x24] sm:$0xff] }
 0x366   : > { %v7385_v55 = vrot.slane %v6900_v56, 5  ;;  %8179 = vrot.lane.b32.xlu0 %v8162_v49, %s11206_s30  ;;  %v7544_v31 = vor.u32 %v7543_v10, %v7540_v50  ;;  %v7559_v58 = vrot.slane %v7557_v0, 5  ;;  %v7388_v17 = vrot.slane %v14796_v61, 5  ;;  %v14823_v49 = vld [vmem:[#allocation3 + $0x20] sm:$0x1] }
 0x367   : > { %v5423_v11 = vsel %vm17631_vm2, %v14718_v13, %v14647_v2  ;;  %8579 = vrot.lane.b32.xlu2 %v10972_v45, %s11210_s18  ;;  %v5894_v40 = vshrl.u32 %v5772_v27, 16  ;;  %v5897_v26 = vshll.u32 %v5772_v27, 16  ;;  %v7554_v43 = vor.u32 %v7553_v39, %v7549_v60  ;;  %v14831_v10 = vld [vmem:[#allocation3 + $0x24] sm:$0xf] }
 0x368   : > { %v7386_v63 = vsel %vm11373_vm10, %v10589_v38, %v7385_v55  ;;  %v7545_v28 = vrot.slane %v7544_v31, 4  ;;  %v7387_v42 = vrot.slane %v7385_v55, 4  ;;  %v5460_v34 = vsel %vm5434_vm11, %v5423_v11, %v5040_v19  ;;  %v6205_v2 = vld [vmem:[#allocation3 + $0x44] sm:$0x1] }
 0x369   : > { %v8451_v4 = vunpack.c.l.b16 %v7386_v63  ;;  %v5896_v37 = vrot.slane %v5894_v40, 7  ;;  %v7555_v5 = vrot.slane %v7554_v43, 4  ;;  %v6969_v12 = vshrl.u32 %v6899_v16, 16 }
 0x36a   : > { %v6972_v62 = vshll.u32 %v6899_v16, 16  ;;  %v7550_v13 = vsel %vm11386_vm13, %v7545_v28, %v7549_v60  ;;  %v7389_v59 = vsel %vm11373_vm10, %v7387_v42, %v7388_v17  ;;  %v6978_v3 = vshll.u32 %v6900_v56, 16  ;;  %v5220_v60 = vpop.permute.xlu0 %5219  ;;  %v14845_v17 = vld [vmem:[#allocation3 + $0x28] sm:$0xf] }
 0x36b   : > { %v6982_v22 = vshrl.u32 %v6900_v56, 16  ;;  %v5899_v21 = vor.u32 %v5897_v26, %v5896_v37  ;;  %v5901_v23 = vrot.slane %v5896_v37, 4  ;;  %v7560_v54 = vsel %vm11386_vm13, %v7555_v5, %v7559_v58  ;;  %v14841_v58 = vpop.permute.xlu1 %4683  ;;  %v14855_v37 = vld [vmem:[#allocation3 + $0x2c] sm:$0x1] }
 0x36c   : > { %v8609_v41 = vunpack.c.l.b16 %v7550_v13  ;;  %v8610_v25 = vunpack.c.l.b16 %v7560_v54  ;;  %v8452_v6 = vunpack.c.l.b16 %v7389_v59  ;;  %v6971_v16 = vrot.slane %v6969_v12, 4  ;;  %v14850_v63 = vpop.permute.xlu2 %5221 }
 0x36d   : > { %v6974_v53 = vrot.slane %v6972_v62, 5  ;;  %v5900_v56 = vsel %vm12182_vm8, %v5892_v35, %v5899_v21  ;;  %v6206_v7 = vsel %vm11346_vm6, %v5901_v23, %v6205_v2  ;;  %v6980_v20 = vrot.slane %v6978_v3, 5 }
 0x36e   : > { %v6984_v50 = vrot.slane %v6982_v22, 4  ;;  %vm17632_vm14 = vcmask 60416   ;;  %v8641_v0 = vpack.c.b16 %v8610_v25, %v8609_v41  ;;  %v8482_v38 = vpack.c.b16 %v8452_v6, %v8451_v4  ;;  %6207 = vst [vmem:[#allocation3 + $0x44] sm:$0x1] %v6206_v7  ;;  %v14870_v7 = vld [vmem:[#allocation3 + $0x28] sm:$0xf] }
 0x36f   : > { %6204 = vst.msk [vmem:[#allocation3 + $0x40] sm:$0xf] %vm17632_vm14, %v5900_v56  ;;  %v6975_v45 = vor.u32 %v6974_v53, %v6971_v16  ;;  %v6988_v27 = vshll.u32 %v14796_v61, 16  ;;  %8341 = vrot.lane.b32.xlu2 %v10957_v46, %s11205_s29  ;;  %v10574_v35 = vrot.slane %v14819_v51, 9  ;;  %v6799_v39 = vrot.slane %v14821_v9, 5 }
 0x370   : > { %v6985_v15 = vor.u32 %v6984_v50, %v6980_v20  ;;  %v6802_v55 = vrot.slane %v14823_v49, 5  ;;  %8657 = vrot.lane.b32.xlu0 %v8641_v0, %s11209_s17  ;;  %8499 = vrot.lane.b32.xlu1 %v8482_v38, %s11207_s11  ;;  %v5497_v61 = vsel %vm5471_vm12, %v5460_v34, %v14728_v36  ;;  %v6424_v11 = vshrl.u32 %v14831_v10, 16  ;;  %v14868_v56 = vld [vmem:[#allocation3 + $0x24] sm:$0xf] }
 0x371   : > { %v6976_v19 = vrot.slane %v6975_v45, 4  ;;  %v6990_v31 = vrot.slane %v6988_v27, 5  ;;  %v6800_v26 = vsel %vm11373_vm10, %v10574_v35, %v6799_v39  ;;  %v6801_v43 = vrot.slane %v6799_v39, 4  ;;  %v14880_v35 = vld [vmem:[#allocation3 + $0x2c] sm:$0x1] }
 0x372   : > { %v6986_v40 = vrot.slane %v6985_v15, 4  ;;  %v5534_v28 = vsel %vm5508_vm4, %v5497_v61, %v5220_v60  ;;  %v8213_v4 = vunpack.c.l.b16 %v6800_v26  ;;  %v6426_v36 = vrot.slane %v6424_v11, 4  ;;  %v4862_v61 = vpop.permute.xlu0 %4861 }
 0x373   : > { %v6981_v42 = vsel %vm11386_vm13, %v6976_v19, %v6980_v20  ;;  %v6427_v34 = vshll.u32 %v14831_v10, 16  ;;  %v6803_v62 = vsel %vm11373_vm10, %v6801_v43, %v6802_v55  ;;  %10566 = vmatmul.msk.bf16.gmra.mxu2 %vm17633_vm0, %v5534_v28  ;;  %v6433_v2 = vshll.u32 %v14845_v17, 16  ;;  %v4594_v11 = vpop.permute.xlu1 %4593 }
 0x374   : > { %v6991_v5 = vsel %vm11386_vm13, %v6986_v40, %v6990_v31  ;;  %v8371_v12 = vunpack.c.l.b16 %v6981_v42  ;;  %v8214_v59 = vunpack.c.l.b16 %v6803_v62  ;;  %v6437_v22 = vshrl.u32 %v14845_v17, 16  ;;  %v4596_v43 = vpop.permute.xlu2 %4595 }
 0x375   : > { %v8372_v13 = vunpack.c.l.b16 %v6991_v5  ;;  %v6429_v3 = vrot.slane %v6427_v34, 5  ;;  %v6435_v21 = vrot.slane %v6433_v2, 5  ;;  %v6443_v23 = vshll.u32 %v14855_v37, 16  ;;  %v10896_v34 = vld [vmem:[#allocation2 + $0xb4] sm:$0xff] }
 0x376   : > { %v6400_v54 = vshrl.u32 %v14819_v51, 16  ;;  %v6403_v41 = vshll.u32 %v14819_v51, 16  ;;  %v8243_v6 = vpack.c.b16 %v8214_v59, %v8213_v4  ;;  %v6439_v53 = vrot.slane %v6437_v22, 4  ;;  %v10895_v22 = vld [vmem:[#allocation2 + $0xa8] sm:$0xff] }
 0x377   : > { %v8402_v25 = vpack.c.b16 %v8372_v13, %v8371_v12  ;;  %v6430_v16 = vor.u32 %v6429_v3, %v6426_v36  ;;  %vm17634_vm15 = vcmask 130048   ;;  %v6409_v0 = vshll.u32 %v14821_v9, 16 }
 0x378   : > { %v5314_v46 = vsel %vm17634_vm15, %v14725_v47, %v14636_v57  ;;  %v6402_v20 = vrot.slane %v6400_v54, 4  ;;  %v6405_v50 = vrot.slane %v6403_v41, 5  ;;  %8261 = vrot.lane.b32.xlu1 %v8243_v6, %s11204_s28  ;;  %v6440_v38 = vor.u32 %v6439_v53, %v6435_v21  ;;  %vm17636_vm14 = vmmov %vm17634_vm15 }
 0x379   : > { %8419 = vrot.lane.b32.xlu0 %v8402_v25, %s11208_s12  ;;  %v6431_v51 = vrot.slane %v6430_v16, 4  ;;  %v6413_v45 = vshrl.u32 %v14821_v9, 16  ;;  %v6419_v27 = vshll.u32 %v14823_v49, 16  ;;  %v6411_v15 = vrot.slane %v6409_v0, 5  ;;  %v14907_v16 = vld [vmem:[#allocation3 + $0x2c] sm:$0x1]  ;;  %vm17637_vm0 = vmmov %vm17636_vm14 }
 0x37a   : > { %v6406_v60 = vor.u32 %v6405_v50, %v6402_v20  ;;  %v10605_v57 = vrot.slane %v14868_v56, 9  ;;  %v7978_v47 = vrot.slane %v14870_v7, 5  ;;  %v6441_v55 = vrot.slane %v6440_v38, 4 }
 0x37b   : > { %v6436_v39 = vsel %vm11386_vm13, %v6431_v51, %v6435_v21  ;;  %v6445_v19 = vrot.slane %v6443_v23, 5  ;;  %v6415_v31 = vrot.slane %v6413_v45, 4  ;;  %v5351_v9 = vsel %vm5323_vm3, %v5314_v46, %v14757_v48  ;;  %v14899_v21 = vld [vmem:[#allocation3 + $0x24] sm:$0xf]  ;;  %v14901_v23 = vld [vmem:[#allocation3 + $0x28] sm:$0xf] }
 0x37c   : > { %v6407_v49 = vrot.slane %v6406_v60, 4  ;;  %v7979_v40 = vsel %vm11373_vm10, %v10605_v57, %v7978_v47  ;;  %v7980_v26 = vrot.slane %v7978_v47, 4  ;;  %v6421_v4 = vrot.slane %v6419_v27, 5  ;;  %v14917_v45 = vld [vmem:[#allocation3 + $0x30] sm:$0xf] }
 0x37d   : > { %v6446_v28 = vsel %vm11386_vm13, %v6441_v55, %v6445_v19  ;;  %v6416_v42 = vor.u32 %v6415_v31, %v6411_v15  ;;  %v7981_v36 = vrot.slane %v14880_v35, 5  ;;  %v8135_v5 = vunpack.c.l.b16 %v6436_v39  ;;  %v14923_v57 = vld [vmem:[#allocation3 + $0x34] sm:$0xf]  ;;  %v14932_v19 = vld [vmem:[#allocation3 + $0x38] sm:$0x1] }
 0x37e   : > { %v8136_v12 = vunpack.c.l.b16 %v6446_v28  ;;  %v6412_v62 = vsel %vm11386_vm13, %v6407_v49, %v6411_v15  ;;  %vm17635_vm9 = vcmask 261120   ;;  %v8691_v59 = vunpack.c.l.b16 %v7979_v40 }
 0x37f   : > { %v5388_v48 = vsel %vm17635_vm9, %v5351_v9, %v4862_v61  ;;  %v6417_v2 = vrot.slane %v6416_v42, 4  ;;  %v7982_v13 = vsel %vm11373_vm10, %v7980_v26, %v7981_v36  ;;  %v5279_v3 = vsel %vm805_vm1, %v10896_v34, %v4596_v43  ;;  %v14940_v9 = vpop.permute.xlu1 %4773  ;;  %v14950_v34 = vpop.permute.xlu0 %5043  ;;  %vm17638_vm15 = vmmov %vm17635_vm9 }
 0x380   : > { %v8164_v54 = vpack.c.b16 %v8136_v12, %v8135_v5  ;;  %v8133_v41 = vunpack.c.l.b16 %v6412_v62  ;;  %v8692_v25 = vunpack.c.l.b16 %v7982_v13  ;;  %v14905_v6 = vsel %vm17631_vm2, %v5388_v48, %v14800_v29  ;;  %v566_v48 = vld [vmem:[#allocation3 + $0x48] sm:$0x1] }
 0x381   : > { %v6422_v53 = vsel %vm11386_vm13, %v6417_v2, %v6421_v4  ;;  %v5276_v46 = vsel %vm805_vm1, %v10895_v22, %v4594_v11  ;;  %v10575_v20 = vrot.slane %v14831_v10, 9  ;;  %v6806_v50 = vrot.slane %v14845_v17, 5  ;;  %v10973_v4 = vld [vmem:[#allocation3 + $0x30] sm:$0xff]  ;;  %v5665_v2 = vpop.f32.mrf.mxu2 }
 0x382   : > { %8183 = vrot.lane.b32.xlu2 %v8164_v54, %s11206_s30  ;;  %v8134_v0 = vunpack.c.l.b16 %v6422_v53  ;;  %v8722_v51 = vpack.c.b16 %v8692_v25, %v8691_v59  ;;  %v10590_v38 = vrot.slane %v14899_v21, 9  ;;  %v7392_v29 = vrot.slane %v14901_v23, 5  ;;  %v14955_v54 = vld [vmem:[#allocation3 + $0x30] sm:$0xf] }
 0x383   : > { %v6807_v27 = vsel %vm11373_vm10, %v10575_v20, %v6806_v50  ;;  %v6808_v60 = vrot.slane %v6806_v50, 4  ;;  %v6809_v15 = vrot.slane %v14855_v37, 5  ;;  %v7395_v10 = vrot.slane %v14907_v16, 5 }
 0x384   : > { %v8163_v17 = vpack.c.b16 %v8134_v0, %v8133_v41  ;;  %8739 = vrot.lane.b32.xlu1 %v8722_v51, %s11211_s21  ;;  %v7393_v47 = vsel %vm11373_vm10, %v10590_v38, %v7392_v29  ;;  %v7394_v39 = vrot.slane %v7392_v29, 4  ;;  %v14930_v55 = vsel %vm17636_vm14, %v5279_v3, %v14810_v32  ;;  %v14967_v38 = vld [vmem:[#allocation3 + $0x38] sm:$0x1] }
 0x385   : > { %v6810_v37 = vsel %vm11373_vm10, %v6808_v60, %v6809_v15  ;;  %v8215_v31 = vunpack.c.l.b16 %v6807_v27  ;;  %v8453_v61 = vunpack.c.l.b16 %v7393_v47  ;;  %v14938_v11 = vsel %vm17637_vm0, %v5276_v46, %v14841_v58  ;;  %v14962_v46 = vld [vmem:[#allocation3 + $0x34] sm:$0xf]  ;;  %v4776_v60 = vpop.permute.xlu2 %4775  ;;  %vm17641_vm0 = vmmov %vm17638_vm15 }
 0x386   : > { %8181 = vrot.lane.b32.xlu0 %v8163_v17, %s11206_s30  ;;  %v8216_v49 = vunpack.c.l.b16 %v6810_v37  ;;  %v7396_v32 = vsel %vm11373_vm10, %v7394_v39, %v7395_v10  ;;  %v10576_v40 = vrot.slane %v14917_v45, 9  ;;  %v6813_v26 = vrot.slane %v14923_v57, 5 }
 0x387   : > { %v8454_v43 = vunpack.c.l.b16 %v7396_v32  ;;  %v6816_v28 = vrot.slane %v14932_v19, 5  ;;  %v7562_v42 = vshrl.u32 %v14868_v56, 16  ;;  %v7565_v58 = vshll.u32 %v14868_v56, 16 }
 0x388   : > { %v8244_v36 = vpack.c.b16 %v8216_v49, %v8215_v31  ;;  %v6814_v5 = vsel %vm11373_vm10, %v10576_v40, %v6813_v26  ;;  %v6815_v12 = vrot.slane %v6813_v26, 4  ;;  %v7571_v62 = vshll.u32 %v14870_v7, 16  ;;  %v14977_v40 = vpop.permute.xlu1 %4953 }
 0x389   : > { %v8483_v13 = vpack.c.b16 %v8454_v43, %v8453_v61  ;;  %v8217_v59 = vunpack.c.l.b16 %v6814_v5  ;;  %v7564_v3 = vrot.slane %v7562_v42, 4  ;;  %v7567_v22 = vrot.slane %v7565_v58, 5 }
 0x38a   : > { %8581 = vrot.lane.b32.xlu2 %v10973_v4, %s11210_s18  ;;  %v6817_v56 = vsel %vm11373_vm10, %v6815_v12, %v6816_v28  ;;  %v7573_v41 = vrot.slane %v7571_v62, 5  ;;  %v7575_v25 = vshrl.u32 %v14870_v7, 16  ;;  %v7581_v53 = vshll.u32 %v14880_v35, 16 }
 0x38b   : > { %v8218_v20 = vunpack.c.l.b16 %v6817_v56  ;;  %v7568_v50 = vor.u32 %v7567_v22, %v7564_v3  ;;  %v567_v0 = vsel %vm11346_vm6, 0, %v566_v48  ;;  %v5666_v51 = vadd.f32 %v14740_v1, %v5665_v2  ;;  %v10958_v2 = vld [vmem:[#allocation3 + $0x30] sm:$0xff] }
 0x38c   : > { %8501 = vrot.lane.b32.xlu1 %v8483_v13, %s11207_s11  ;;  %v7577_v29 = vrot.slane %v7575_v25, 4  ;;  %v7583_v27 = vrot.slane %v7581_v53, 5  ;;  %568 = vst [vmem:[#allocation3 + $0x48] sm:$0x1] %v567_v0  ;;  %v7017_v7 = vshrl.u32 %v14955_v54, 16  ;;  %v7020_v35 = vshll.u32 %v14955_v54, 16  ;;  %v14984_v13 = vpop.permute.xlu0 %4687 }
 0x38d   : > { %v8245_v15 = vpack.c.b16 %v8218_v20, %v8217_v59  ;;  %v7569_v10 = vrot.slane %v7568_v50, 4  ;;  %v5737_v17 = vmax.f32 %v5666_v51, 0.0  ;;  %v7026_v47 = vshll.u32 %v14962_v46, 16  ;;  %v14990_v20 = vld [vmem:[#allocation3 + $0x30] sm:$0xf] }
 0x38e   : > { %8263 = vrot.lane.b32.xlu0 %v8244_v36, %s11204_s28  ;;  %v7578_v39 = vor.u32 %v7577_v29, %v7573_v41  ;;  %v7019_v37 = vrot.slane %v7017_v7, 4  ;;  %v7022_v31 = vrot.slane %v7020_v35, 5  ;;  %v7030_v61 = vshrl.u32 %v14962_v46, 16 }
 0x38f   : > { %v7574_v49 = vsel %vm11386_vm13, %v7569_v10, %v7573_v41  ;;  %v5773_v32 = vpack.c.bf16 %v5737_v17, %v5737_v17  ;;  %v7028_v26 = vrot.slane %v7026_v47, 5  ;;  %v7036_v43 = vshll.u32 %v14967_v38, 16  ;;  %v15001_v10 = vld [vmem:[#allocation3 + $0x34] sm:$0xf]  ;;  %v15003_v17 = vld [vmem:[#allocation3 + $0x38] sm:$0x1] }
 0x390   : > { %v7579_v28 = vrot.slane %v7578_v39, 4  ;;  %v8611_v42 = vunpack.c.l.b16 %v7574_v49  ;;  %v7023_v58 = vor.u32 %v7022_v31, %v7019_v37  ;;  %v7032_v4 = vrot.slane %v7030_v61, 4  ;;  %v620_v61 = vld [vmem:[#allocation3 + $0x50] sm:$0x1] }
 0x391   : > { %v5903_v5 = vshrl.u32 %v5773_v32, 16  ;;  %v5906_v36 = vshll.u32 %v5773_v32, 16  ;;  %v7038_v12 = vrot.slane %v7036_v43, 5  ;;  %v6993_v62 = vshrl.u32 %v14899_v21, 16 }
 0x392   : > { %8265 = vrot.lane.b32.xlu2 %v8245_v15, %s11204_s28  ;;  %v7584_v48 = vsel %vm11386_vm13, %v7579_v28, %v7583_v27  ;;  %v7024_v59 = vrot.slane %v7023_v58, 4  ;;  %v7033_v3 = vor.u32 %v7032_v4, %v7028_v26  ;;  %v6996_v22 = vshll.u32 %v14899_v21, 16 }
 0x393   : > { %v8612_v56 = vunpack.c.l.b16 %v7584_v48  ;;  %v14987_v41 = vrot.slane %v5903_v5, 7  ;;  %v6995_v25 = vrot.slane %v6993_v62, 4  ;;  %v7002_v53 = vshll.u32 %v14901_v23, 16  ;;  %v6208_v50 = vld [vmem:[#allocation3 + $0x48] sm:$0xf]  ;;  %v4864_v62 = vpop.permute.xlu1 %4863 }
 0x394   : > { %8343 = vrot.lane.b32.xlu1 %v10958_v2, %s11205_s29  ;;  %v7029_v0 = vsel %vm11386_vm13, %v7024_v59, %v7028_v26  ;;  %v7034_v51 = vrot.slane %v7033_v3, 4  ;;  %v6998_v29 = vrot.slane %v6996_v22, 5  ;;  %v7006_v27 = vshrl.u32 %v14901_v23, 16  ;;  %v5667_v23 = vpop.f32.mrf.mxu2  ;;  %v15023_v3 = vld [vmem:[#allocation3 + $0x3c] sm:$0xf] }
 0x395   : > { %v14998_v21 = vsel %vm5323_vm3, %v14930_v55, %v4776_v60  ;;  %v8642_v7 = vpack.c.b16 %v8612_v56, %v8611_v42  ;;  %v5908_v35 = vor.u32 %v5906_v36, %v14987_v41  ;;  %v8375_v15 = vunpack.c.l.b16 %v7029_v0  ;;  %v15010_v60 = vpop.permute.xlu2 %4955  ;;  %v15032_v0 = vld [vmem:[#allocation3 + $0x44] sm:$0x1] }
 0x396   : > { %v7039_v47 = vsel %vm11386_vm13, %v7034_v51, %v7038_v12  ;;  %v6999_v39 = vor.u32 %v6998_v29, %v6995_v25  ;;  %v7004_v37 = vrot.slane %v7002_v53, 5  ;;  %v7008_v31 = vrot.slane %v7006_v27, 4 }
 0x397   : > { %8659 = vrot.lane.b32.xlu0 %v8642_v7, %s11209_s17  ;;  %v6209_v55 = vsel %vm12121_vm5, %v5908_v35, %v6208_v50  ;;  %v8376_v49 = vunpack.c.l.b16 %v7039_v47  ;;  %v7012_v32 = vshll.u32 %v14907_v16, 16  ;;  %v10606_v26 = vrot.slane %v14990_v20, 9  ;;  %v15030_v50 = vld [vmem:[#allocation3 + $0x40] sm:$0xf]  ;;  %v4598_v7 = vpop.permute.xlu0 %4597 }
 0x398   : > { %6210 = vst [vmem:[#allocation3 + $0x48] sm:$0xf] %v6209_v55  ;;  %v7000_v43 = vrot.slane %v6999_v39, 4  ;;  %v7009_v28 = vor.u32 %v7008_v31, %v7004_v37  ;;  %v7985_v42 = vrot.slane %v15001_v10, 5  ;;  %v7988_v58 = vrot.slane %v15003_v17, 5 }
 0x399   : > { %v8404_v4 = vpack.c.b16 %v8376_v49, %v8375_v15  ;;  %v7014_v5 = vrot.slane %v7012_v32, 5  ;;  %v621_v36 = vsel %vm11358_vm7, 0, %v620_v61  ;;  %v5668_v12 = vadd.f32 %v14740_v1, %v5667_v23 }
 0x39a   : > { %v7005_v16 = vsel %vm11386_vm13, %v7000_v43, %v7004_v37  ;;  %v7010_v48 = vrot.slane %v7009_v28, 4  ;;  %v7986_v2 = vsel %vm11373_vm10, %v10606_v26, %v7985_v42  ;;  %v7987_v59 = vrot.slane %v7985_v42, 4  ;;  %622 = vst [vmem:[#allocation3 + $0x50] sm:$0x1] %v621_v36 }
 0x39b   : > { %v5353_v22 = vsel %vm5323_vm3, %v14938_v11, %v14940_v9  ;;  %v5909_v56 = vrot.slane %v14987_v41, 4  ;;  %8423 = vrot.lane.b32.xlu2 %v8404_v4, %s11208_s12  ;;  %v8373_v25 = vunpack.c.l.b16 %v7005_v16  ;;  %v5738_v53 = vmax.f32 %v5668_v12, 0.0 }
 0x39c   : > { %v7015_v51 = vsel %vm11386_vm13, %v7010_v48, %v7014_v5  ;;  %v7989_v29 = vsel %vm11373_vm10, %v7987_v59, %v7988_v58  ;;  %v8693_v27 = vunpack.c.l.b16 %v7986_v2  ;;  %v5390_v11 = vsel %vm17638_vm15, %v5353_v22, %v4864_v62  ;;  %v5670_v42 = vpop.f32.mrf.mxu2 }
 0x39d   : > { %v8374_v9 = vunpack.c.l.b16 %v7015_v51  ;;  %v8694_v41 = vunpack.c.l.b16 %v7989_v29  ;;  %v5774_v35 = vpack.c.bf16 %v5738_v53, %v5738_v53  ;;  %v10592_v15 = vrot.slane %v15023_v3, 9  ;;  %v15050_v58 = vpop.permute.xlu2 %5225  ;;  %v569_v53 = vld [vmem:[#allocation3 + $0x54] sm:$0x1] }
 0x39e   : > { %v7406_v47 = vrot.slane %v15030_v50, 5  ;;  %v7409_v39 = vrot.slane %v15032_v0, 5  ;;  %v10591_v37 = vrot.slane %v14955_v54, 9  ;;  %v7399_v31 = vrot.slane %v14962_v46, 5  ;;  %v10897_v51 = vld [vmem:[#allocation2 + $0xc0] sm:$0xff] }
 0x39f   : > { %v8403_v61 = vpack.c.b16 %v8374_v9, %v8373_v25  ;;  %v8723_v23 = vpack.c.b16 %v8694_v41, %v8693_v27  ;;  %v5911_v55 = vshrl.u32 %v5774_v35, 16  ;;  %v5914_v49 = vshll.u32 %v5774_v35, 16 }
 0x3a0   : > { %v7407_v32 = vsel %vm11373_vm10, %v10592_v15, %v7406_v47  ;;  %v7408_v26 = vrot.slane %v7406_v47, 4  ;;  %v7400_v43 = vsel %vm11373_vm10, %v10591_v37, %v7399_v31  ;;  %v7401_v28 = vrot.slane %v7399_v31, 4  ;;  %v5132_v47 = vpop.permute.xlu1 %5131 }
 0x3a1   : > { %8421 = vrot.lane.b32.xlu0 %v8403_v61, %s11208_s12  ;;  %8741 = vrot.lane.b32.xlu1 %v8723_v23, %s11211_s21  ;;  %v5913_v54 = vrot.slane %v5911_v55, 7  ;;  %v8457_v46 = vunpack.c.l.b16 %v7407_v32  ;;  %v7402_v4 = vrot.slane %v14967_v38, 5  ;;  %v8455_v5 = vunpack.c.l.b16 %v7400_v43  ;;  %v6212_v36 = vld [vmem:[#allocation3 + $0x50] sm:$0x1] }
 0x3a2   : > { %v7410_v12 = vsel %vm11373_vm10, %v7408_v26, %v7409_v39  ;;  %v6448_v62 = vshrl.u32 %v14917_v45, 16  ;;  %v6451_v16 = vshll.u32 %v14917_v45, 16  ;;  %v6457_v48 = vshll.u32 %v14923_v57, 16  ;;  %v15065_v39 = vld [vmem:[#allocation3 + $0x3c] sm:$0xf] }
 0x3a3   : > { %v5916_v2 = vor.u32 %v5914_v49, %v5913_v54  ;;  %v5918_v59 = vrot.slane %v5913_v54, 4  ;;  %v8458_v22 = vunpack.c.l.b16 %v7410_v12  ;;  %v7403_v25 = vsel %vm11373_vm10, %v7401_v28, %v7402_v4 }
 0x3a4   : > { %v8456_v38 = vunpack.c.l.b16 %v7403_v25  ;;  %v6450_v29 = vrot.slane %v6448_v62, 4  ;;  %v6453_v27 = vrot.slane %v6451_v16, 5  ;;  %v6459_v9 = vrot.slane %v6457_v48, 5 }
 0x3a5   : > { %v5917_v41 = vsel %vm12182_vm8, %v5909_v56, %v5916_v2  ;;  %v6213_v45 = vsel %vm11346_vm6, %v5918_v59, %v6212_v36  ;;  %v8485_v35 = vpack.c.b16 %v8458_v22, %v8457_v46  ;;  %v6461_v15 = vshrl.u32 %v14923_v57, 16  ;;  %v4866_v56 = vpop.permute.xlu0 %4865  ;;  %v5672_v36 = vpop.f32.mrf.mxu2 }
 0x3a6   : > { %vm17639_vm9 = vcmask 60416   ;;  %v15069_v37 = vsel %vm805_vm1, %v10897_v51, %v4598_v7  ;;  %v8484_v31 = vpack.c.b16 %v8456_v38, %v8455_v5  ;;  %v6454_v61 = vor.u32 %v6453_v27, %v6450_v29  ;;  %6214 = vst [vmem:[#allocation3 + $0x50] sm:$0x1] %v6213_v45  ;;  %v15079_v7 = vld [vmem:[#allocation3 + $0x40] sm:$0xf]  ;;  %v15098_v48 = vpop.permute.xlu2 %4867 }
 0x3a7   : > { %6211 = vst.msk [vmem:[#allocation3 + $0x4c] sm:$0xf] %vm17639_vm9, %v5917_v41  ;;  %v570_v23 = vsel %vm11346_vm6, 0, %v569_v53  ;;  %8505 = vrot.lane.b32.xlu2 %v8485_v35, %s11207_s11  ;;  %v6463_v55 = vrot.slane %v6461_v15, 4  ;;  %v6467_v57 = vshll.u32 %v14932_v19, 16  ;;  %v5671_v49 = vadd.f32 %v14740_v1, %v5670_v42 }
 0x3a8   : > { %v5462_v32 = vsel %vm5434_vm11, %v14905_v6, %v14769_v33  ;;  %v15083_v26 = vsel %vm17631_vm2, %v5390_v11, %v14977_v40  ;;  %v6455_v43 = vrot.slane %v6454_v61, 4  ;;  %571 = vst [vmem:[#allocation3 + $0x54] sm:$0x1] %v570_v23  ;;  %v7610_v54 = vshrl.u32 %v15065_v39, 16  ;;  %v15090_v33 = vld [vmem:[#allocation3 + $0x44] sm:$0x1] }
 0x3a9   : > { %v5499_v28 = vsel %vm5471_vm12, %v5462_v32, %v5132_v47  ;;  %8503 = vrot.lane.b32.xlu0 %v8484_v31, %s11207_s11  ;;  %v6464_v19 = vor.u32 %v6463_v55, %v6459_v9  ;;  %v5739_v42 = vmax.f32 %v5671_v49, 0.0  ;;  %v7613_v6 = vshll.u32 %v15065_v39, 16 }
 0x3aa   : > { %v5536_v46 = vsel %vm5508_vm4, %v5499_v28, %v14850_v63  ;;  %v6460_v40 = vsel %vm11386_vm13, %v6455_v43, %v6459_v9  ;;  %vm17640_vm14 = vcmask 588800   ;;  %v7612_v11 = vrot.slane %v7610_v54, 4 }
 0x3ab   : > { %10567 = vmatmul.msk.bf16.gmra.mxu2 %vm17640_vm14, %v5536_v46  ;;  %v7619_v4 = vshll.u32 %v15079_v7, 16  ;;  %v7623_v5 = vshrl.u32 %v15079_v7, 16  ;;  %v6465_v12 = vrot.slane %v6464_v19, 4  ;;  %v6469_v62 = vrot.slane %v6467_v57, 5  ;;  %v5224_v46 = vpop.permute.xlu1 %5223  ;;  %vm17642_vm15 = vmmov %vm17640_vm14 }
 0x3ac   : > { %v5775_v16 = vpack.c.bf16 %v5739_v42, %v5739_v42  ;;  %v7615_v63 = vrot.slane %v7613_v6, 5  ;;  %v7629_v22 = vshll.u32 %v15090_v33, 16  ;;  %v7586_v25 = vshrl.u32 %v14990_v20, 16  ;;  %v623_v42 = vld [vmem:[#allocation3 + $0x5c] sm:$0x1] }
 0x3ad   : > { %v7621_v2 = vrot.slane %v7619_v4, 5  ;;  %v7625_v59 = vrot.slane %v7623_v5, 4  ;;  %v6470_v53 = vsel %vm11386_vm13, %v6465_v12, %v6469_v62  ;;  %v8137_v51 = vunpack.c.l.b16 %v6460_v40  ;;  %v5134_v32 = vpop.permute.xlu0 %5133  ;;  %v15124_v62 = vld [vmem:[#allocation3 + $0x40] sm:$0xf] }
 0x3ae   : > { %v5920_v38 = vshrl.u32 %v5775_v16, 16  ;;  %v7616_v29 = vor.u32 %v7615_v63, %v7612_v11  ;;  %v8138_v27 = vunpack.c.l.b16 %v6470_v53  ;;  %v5923_v9 = vshll.u32 %v5775_v16, 16 }
 0x3af   : > { %v7626_v41 = vor.u32 %v7625_v59, %v7621_v2  ;;  %v7588_v45 = vrot.slane %v7586_v25, 4  ;;  %v7589_v47 = vshll.u32 %v14990_v20, 16  ;;  %v7595_v31 = vshll.u32 %v15001_v10, 16  ;;  %v6215_v23 = vld [vmem:[#allocation3 + $0x54] sm:$0xf]  ;;  %v5675_v59 = vpop.f32.mrf.mxu2 }
 0x3b0   : > { %v15104_v35 = vrot.slane %v5920_v38, 7  ;;  %v7617_v15 = vrot.slane %v7616_v29, 4  ;;  %v8165_v61 = vpack.c.b16 %v8138_v27, %v8137_v51  ;;  %v7631_v57 = vrot.slane %v7629_v22, 5  ;;  %v15132_v51 = vpop.permute.xlu2 %5135  ;;  %v15135_v29 = vld [vmem:[#allocation3 + $0x44] sm:$0x1] }
 0x3b1   : > { %v7627_v55 = vrot.slane %v7626_v41, 4  ;;  %v7599_v49 = vshrl.u32 %v15001_v10, 16  ;;  %v7591_v54 = vrot.slane %v7589_v47, 5  ;;  %v7605_v19 = vshll.u32 %v15003_v17, 16  ;;  %v15122_v17 = vld [vmem:[#allocation3 + $0x3c] sm:$0xf] }
 0x3b2   : > { %v5925_v43 = vor.u32 %v5923_v9, %v15104_v35  ;;  %v7622_v28 = vsel %vm11386_vm13, %v7617_v15, %v7621_v2  ;;  %8185 = vrot.lane.b32.xlu1 %v8165_v61, %s11206_s30  ;;  %v15116_v20 = vsel %vm17641_vm0, %v14998_v21, %v4866_v56  ;;  %v7597_v6 = vrot.slane %v7595_v31, 5  ;;  %v572_v2 = vld [vmem:[#allocation3 + $0x60] sm:$0x1] }
 0x3b3   : > { %v7632_v10 = vsel %vm11386_vm13, %v7627_v55, %v7631_v57  ;;  %v7601_v40 = vrot.slane %v7599_v49, 4  ;;  %v8615_v4 = vunpack.c.l.b16 %v7622_v28  ;;  %v7592_v12 = vor.u32 %v7591_v54, %v7588_v45  ;;  %v15148_v45 = vld [vmem:[%s17402_s7] ss:$0 sm:$0xff]  ;;  %v10974_v31 = vld [vmem:[#allocation3 + $0x3c] sm:$0xff] }
 0x3b4   : > { %v6216_v11 = vsel %vm12121_vm5, %v5925_v43, %v6215_v23  ;;  %v8616_v5 = vunpack.c.l.b16 %v7632_v10  ;;  %v624_v21 = vsel %vm11358_vm7, 0, %v623_v42  ;;  %v5673_v56 = vadd.f32 %v14740_v1, %v5672_v36 }
 0x3b5   : > { %6217 = vst [vmem:[#allocation3 + $0x54] sm:$0xf] %v6216_v11  ;;  %v7602_v16 = vor.u32 %v7601_v40, %v7597_v6  ;;  %v5464_v63 = vsel %vm5434_vm11, %v15083_v26, %v14950_v34  ;;  %v7593_v25 = vrot.slane %v7592_v12, 4  ;;  %v7607_v53 = vrot.slane %v7605_v19, 5  ;;  %v10960_v40 = vld [vmem:[#allocation3 + $0x48] sm:$0xff] }
 0x3b6   : > { %v8644_v22 = vpack.c.b16 %v8616_v5, %v8615_v4  ;;  %625 = vst [vmem:[#allocation3 + $0x5c] sm:$0x1] %v624_v21  ;;  %v5501_v38 = vsel %vm5471_vm12, %v5464_v63, %v5134_v32  ;;  %v5740_v9 = vmax.f32 %v5673_v56, 0.0  ;;  %v10577_v1 = vrot.slane %v15122_v17, 9  ;;  %v15164_v5 = vpop.permute.xlu1 %4689 }
 0x3b7   : > { %v7603_v27 = vrot.slane %v7602_v16, 4  ;;  %v6820_v36 = vrot.slane %v15124_v62, 5  ;;  %v7598_v34 = vsel %vm11386_vm13, %v7593_v25, %v7597_v6  ;;  %v5538_v26 = vsel %vm5508_vm4, %v5501_v38, %v5224_v46  ;;  %v4778_v46 = vpop.permute.xlu0 %4777 }
 0x3b8   : > { %8663 = vrot.lane.b32.xlu2 %v8644_v22, %s11209_s17  ;;  %v573_v41 = vsel %vm11346_vm6, 0, %v572_v2  ;;  %v5676_v15 = vadd.f32 %v15148_v45, %v5675_v59  ;;  %v5776_v61 = vpack.c.bf16 %v5740_v9, %v5740_v9  ;;  %v6823_v55 = vrot.slane %v15135_v29, 5 }
 0x3b9   : > { %v7608_v47 = vsel %vm11386_vm13, %v7603_v27, %v7607_v53  ;;  %v6821_v23 = vsel %vm11373_vm10, %v10577_v1, %v6820_v36  ;;  %574 = vst [vmem:[#allocation3 + $0x60] sm:$0x1] %v573_v41  ;;  %v8613_v57 = vunpack.c.l.b16 %v7598_v34  ;;  %v6822_v32 = vrot.slane %v6820_v36, 4  ;;  %v15180_v1 = vld [vmem:[#allocation3 + $0x48] sm:$0xf] }
 0x3ba   : > { %v8614_v49 = vunpack.c.l.b16 %v7608_v47  ;;  %v5741_v43 = vmax.f32 %v5676_v15, 0.0  ;;  %v5926_v28 = vrot.slane %v15104_v35, 4  ;;  %8583 = vrot.lane.b32.xlu1 %v10974_v31, %s11210_s18  ;;  %v5928_v54 = vshrl.u32 %v5776_v61, 16  ;;  %v15187_v41 = vld [vmem:[#allocation3 + $0x4c] sm:$0xf] }
 0x3bb   : > { %v5931_v19 = vshll.u32 %v5776_v61, 16  ;;  %v8219_v42 = vunpack.c.l.b16 %v6821_v23  ;;  %10568 = vmatmul.msk.bf16.gmra.mxu2 %vm17642_vm15, %v5538_v26  ;;  %v6824_v6 = vsel %vm11373_vm10, %v6822_v32, %v6823_v55  ;;  %vm17643_vm9 = vcmask 130048   ;;  %v15196_v23 = vld [vmem:[#allocation3 + $0x50] sm:$0x1] }
 0x3bc   : > { %v8643_v10 = vpack.c.b16 %v8614_v49, %v8613_v57  ;;  %v5777_v11 = vpack.c.bf16 %v5741_v43, %v5741_v43  ;;  %v5320_v4 = vsel %vm17643_vm9, %v15069_v37, %v14984_v13  ;;  %v5930_v35 = vrot.slane %v5928_v54, 7  ;;  %v626_v43 = vld [vmem:[#allocation3 + $0x68] sm:$0x1]  ;;  %vm17646_vm0 = vmmov %vm17643_vm9 }
 0x3bd   : > { %v8220_v12 = vunpack.c.l.b16 %v6824_v6  ;;  %v10607_v16 = vrot.slane %v15065_v39, 9  ;;  %v7992_v21 = vrot.slane %v15079_v7, 5  ;;  %v6219_v56 = vld [vmem:[#allocation3 + $0x5c] sm:$0x1]  ;;  %v15170_v2 = vsel %vm5323_vm3, %v5320_v4, %v4778_v46  ;;  %v15176_v39 = vpop.permute.xlu2 %8337  ;;  %v5677_v46 = vpop.f32.mrf.mxu2 }
 0x3be   : > { %8661 = vrot.lane.b32.xlu0 %v8643_v10, %s11209_s17  ;;  %v5937_v63 = vshrl.u32 %v5777_v11, 16  ;;  %v7041_v59 = vshrl.u32 %v15023_v3, 16  ;;  %v7044_v22 = vshll.u32 %v15023_v3, 16  ;;  %v5933_v13 = vor.u32 %v5931_v19, %v5930_v35 }
 0x3bf   : > { %v5935_v37 = vrot.slane %v5930_v35, 4  ;;  %v5940_v25 = vshll.u32 %v5777_v11, 16  ;;  %v7995_v53 = vrot.slane %v15090_v33, 5  ;;  %v8246_v38 = vpack.c.b16 %v8220_v12, %v8219_v42 }
 0x3c0   : > { %8347 = vrot.lane.b32.xlu2 %v10960_v40, %s11205_s29  ;;  %v15178_v7 = vrot.slane %v5937_v63, 7  ;;  %v7994_v27 = vrot.slane %v7992_v21, 4  ;;  %v7043_v9 = vrot.slane %v7041_v59, 4  ;;  %v5934_v36 = vsel %vm12182_vm8, %v5926_v28, %v5933_v13  ;;  %v6222_v34 = vld [vmem:[#allocation3 + $0x60] sm:$0xf] }
 0x3c1   : > { %v6220_v3 = vsel %vm11346_vm6, %v5935_v37, %v6219_v56  ;;  %v7046_v26 = vrot.slane %v7044_v22, 5  ;;  %v7050_v33 = vshll.u32 %v15030_v50, 16  ;;  %vm17644_vm2 = vcmask 60416   ;;  %v10959_v28 = vld [vmem:[#allocation3 + $0x3c] sm:$0xff] }
 0x3c2   : > { %6218 = vst.msk [vmem:[#allocation3 + $0x58] sm:$0xf] %vm17644_vm2, %v5934_v36  ;;  %v5942_v15 = vor.u32 %v5940_v25, %v15178_v7  ;;  %v7993_v47 = vsel %vm11373_vm10, %v10607_v16, %v7992_v21  ;;  %v7996_v31 = vsel %vm11373_vm10, %v7994_v27, %v7995_v53  ;;  %v7054_v61 = vshrl.u32 %v15030_v50, 16  ;;  %8267 = vrot.lane.b32.xlu1 %v8246_v38, %s11204_s28  ;;  %v5046_v16 = vpop.permute.xlu0 %5045  ;;  %v4600_v21 = vpop.permute.xlu1 %4599  ;;  %v10898_v13 = vld [vmem:[#allocation2 + $0xcc] sm:$0xff]  ;;  %vm17648_vm15 = vmmov %vm17644_vm2 }
 0x3c3   : > { %6221 = vst [vmem:[#allocation3 + $0x5c] sm:$0x1] %v6220_v3  ;;  %v8696_v55 = vunpack.c.l.b16 %v7996_v31  ;;  %v7047_v57 = vor.u32 %v7046_v26, %v7043_v9  ;;  %v7052_v49 = vrot.slane %v7050_v33, 5  ;;  %v7060_v32 = vshll.u32 %v15032_v0, 16 }
 0x3c4   : > { %v6223_v54 = vsel %vm12121_vm5, %v5942_v15, %v6222_v34  ;;  %v7056_v19 = vrot.slane %v7054_v61, 4  ;;  %v10608_v42 = vrot.slane %v15180_v1, 9  ;;  %v7999_v50 = vrot.slane %v15187_v41, 5 }
 0x3c5   : > { %v5943_v10 = vrot.slane %v15178_v7, 4  ;;  %6224 = vst [vmem:[#allocation3 + $0x60] sm:$0xf] %v6223_v54  ;;  %v8695_v6 = vunpack.c.l.b16 %v7993_v47  ;;  %v7048_v40 = vrot.slane %v7047_v57, 4  ;;  %v8002_v11 = vrot.slane %v15196_v23, 5  ;;  %v15223_v26 = vpop.permute.xlu2 %8577 }
 0x3c6   : > { %8345 = vrot.lane.b32.xlu0 %v10959_v28, %s11205_s29  ;;  %v7057_v0 = vor.u32 %v7056_v19, %v7052_v49  ;;  %v8000_v4 = vsel %vm11373_vm10, %v10608_v42, %v7999_v50  ;;  %v8001_v35 = vrot.slane %v7999_v50, 4  ;;  %v627_v12 = vsel %vm11358_vm7, 0, %v626_v43  ;;  %v15234_v28 = vld [vmem:[#allocation3 + $0x4c] sm:$0xf]  ;;  %v15242_v50 = vld [vmem:[#allocation3 + $0x50] sm:$0x1] }
 0x3c7   : > { %v8724_v56 = vpack.c.b16 %v8696_v55, %v8695_v6  ;;  %v7053_v63 = vsel %vm11386_vm13, %v7048_v40, %v7052_v49  ;;  %v7062_v59 = vrot.slane %v7060_v32, 5  ;;  %628 = vst [vmem:[#allocation3 + $0x68] sm:$0x1] %v627_v12  ;;  %v5678_v22 = vadd.f32 %v15148_v45, %v5677_v46  ;;  %v15229_v55 = vld [vmem:[#allocation3 + $0x48] sm:$0xf] }
 0x3c8   : > { %v7058_v37 = vrot.slane %v7057_v0, 4  ;;  %v8003_v25 = vsel %vm11373_vm10, %v8001_v35, %v8002_v11  ;;  %v8697_v53 = vunpack.c.l.b16 %v8000_v4  ;;  %vm17645_vm14 = vcmask 326656   ;;  %v15244_v46 = vld [vmem:[#allocation3 + $0x48] sm:$0xf] }
 0x3c9   : > { %v5429_v38 = vsel %vm17645_vm14, %v15116_v20, %v15010_v60  ;;  %v8698_v27 = vunpack.c.l.b16 %v8003_v25  ;;  %v5742_v9 = vmax.f32 %v5678_v22, 0.0  ;;  %v5285_v3 = vsel %vm805_vm1, %v10898_v13, %v4600_v21  ;;  %v15256_v25 = vld [vmem:[#allocation3 + $0x4c] sm:$0xf]  ;;  %vm17650_vm2 = vmmov %vm17645_vm14 }
 0x3ca   : > { %v5466_v36 = vsel %vm5434_vm11, %v5429_v38, %v5046_v16  ;;  %v7063_v34 = vsel %vm11386_vm13, %v7058_v37, %v7062_v59  ;;  %v5322_v33 = vsel %vm17646_vm0, %v5285_v3, %v15164_v5  ;;  %v6472_v15 = vshrl.u32 %v15122_v17, 16  ;;  %v4958_v59 = vpop.permute.xlu0 %4957 }
 0x3cb   : > { %v6475_v47 = vshll.u32 %v15122_v17, 16  ;;  %v8377_v31 = vunpack.c.l.b16 %v7053_v63  ;;  %v8378_v60 = vunpack.c.l.b16 %v7063_v34  ;;  %v8725_v20 = vpack.c.b16 %v8698_v27, %v8697_v53  ;;  %v17647_v17 = vld [vmem:[#allocation6_spill] sm:$0xff] }
 0x3cc   : > { %v5778_v61 = vpack.c.bf16 %v5742_v9, %v5742_v9  ;;  %v5503_v57 = vsel %vm5471_vm12, %v5466_v36, %v15132_v51  ;;  %v6474_v49 = vrot.slane %v6472_v15, 4  ;;  %v6481_v43 = vshll.u32 %v15124_v62, 16  ;;  %v15260_v9 = vld [vmem:[#allocation3 + $0x50] sm:$0x1] }
 0x3cd   : > { %v6477_v32 = vrot.slane %v6475_v47, 5  ;;  %v8405_v5 = vpack.c.b16 %v8378_v60, %v8377_v31  ;;  %8745 = vrot.lane.b32.xlu2 %v8725_v20, %s11211_s21  ;;  %v15239_v19 = vsel %vm5323_vm3, %v5322_v33, %v17647_v17  ;;  %v6485_v42 = vshrl.u32 %v15124_v62, 16 }
 0x3ce   : > { %v5945_v54 = vshrl.u32 %v5778_v61, 16  ;;  %8743 = vrot.lane.b32.xlu0 %v8724_v56, %s11211_s21  ;;  %v5948_v51 = vshll.u32 %v5778_v61, 16  ;;  %v6483_v40 = vrot.slane %v6481_v43, 5  ;;  %v6491_v11 = vshll.u32 %v15135_v29, 16  ;;  %v6226_v62 = vld [vmem:[#allocation3 + $0x68] sm:$0x1]  ;;  %v15273_v61 = vpop.permute.xlu2 %8339  ;;  %v8258_v43 = vpop.permute.xlu1 %8257 }
 0x3cf   : > { %v6478_v6 = vor.u32 %v6477_v32, %v6474_v49  ;;  %8425 = vrot.lane.b32.xlu1 %v8405_v5, %s11208_s12  ;;  %v6487_v4 = vrot.slane %v6485_v42, 4  ;;  %v10593_v35 = vrot.slane %v15229_v55, 9  ;;  %v7413_v12 = vrot.slane %v15234_v28, 5 }
 0x3d0   : > { %v5947_v0 = vrot.slane %v5945_v54, 7  ;;  %v7416_v21 = vrot.slane %v15242_v50, 5  ;;  %v6496_v63 = vshrl.u32 %v15244_v46, 16  ;;  %v6499_v56 = vshll.u32 %v15244_v46, 16 }
 0x3d1   : > { %v6479_v16 = vrot.slane %v6478_v6, 4  ;;  %v6488_v29 = vor.u32 %v6487_v4, %v6483_v40  ;;  %v7414_v37 = vsel %vm11373_vm10, %v10593_v35, %v7413_v12  ;;  %v6493_v38 = vrot.slane %v6491_v11, 5 }
 0x3d2   : > { %v5950_v22 = vor.u32 %v5948_v51, %v5947_v0  ;;  %v5952_v13 = vrot.slane %v5947_v0, 4  ;;  %v7415_v27 = vrot.slane %v7413_v12, 4  ;;  %v6498_v36 = vrot.slane %v6496_v63, 4  ;;  %v575_v0 = vld [vmem:[#allocation3 + $0x6c] sm:$0x1] }
 0x3d3   : > { %v6484_v53 = vsel %vm11386_vm13, %v6479_v16, %v6483_v40  ;;  %v6489_v33 = vrot.slane %v6488_v29, 4  ;;  %v8459_v15 = vunpack.c.l.b16 %v7414_v37  ;;  %v6501_v31 = vrot.slane %v6499_v56, 5  ;;  %v5680_v16 = vpop.f32.mrf.mxu2  ;;  %v17652_v29 = vld [vmem:[#allocation12_spill] sm:$0xff] }
 0x3d4   : > { %v5951_v3 = vsel %vm12182_vm8, %v5943_v10, %v5950_v22  ;;  %v6227_v34 = vsel %vm11346_vm6, %v5952_v13, %v6226_v62  ;;  %v7417_v47 = vsel %vm11373_vm10, %v7415_v27, %v7416_v21  ;;  %v6505_v60 = vshll.u32 %v15256_v25, 16  ;;  %v8178_v13 = vpop.permute.xlu0 %8177 }
 0x3d5   : > { %6225 = vst.msk [vmem:[#allocation3 + $0x64] sm:$0xf] %vm17648_vm15, %v5951_v3  ;;  %v6509_v20 = vshrl.u32 %v15256_v25, 16  ;;  %v6494_v7 = vsel %vm11386_vm13, %v6489_v33, %v6493_v38  ;;  %v8139_v10 = vunpack.c.l.b16 %v6484_v53  ;;  %v8460_v49 = vunpack.c.l.b16 %v7417_v47  ;;  %v15304_v47 = vld [vmem:[#allocation3 + $0x54] sm:$0xf] }
 0x3d6   : > { %6228 = vst [vmem:[#allocation3 + $0x68] sm:$0x1] %v6227_v34  ;;  %v6515_v32 = vshll.u32 %v15260_v9, 16  ;;  %v8140_v5 = vunpack.c.l.b16 %v6494_v7  ;;  %v6502_v54 = vor.u32 %v6501_v31, %v6498_v36  ;;  %v6507_v17 = vrot.slane %v6505_v60, 5 }
 0x3d7   : > { %v6511_v42 = vrot.slane %v6509_v20, 4  ;;  %v8486_v51 = vpack.c.b16 %v8460_v49, %v8459_v15  ;;  %vm17649_vm9 = vcmask 261120   ;;  %v5540_v11 = vsel %vm5508_vm4, %v5503_v57, %v15050_v58  ;;  %v10939_v58 = vld [vmem:[#allocation3] sm:$0xff]  ;;  %v15306_v20 = vpop.permute.xlu2 %8579  ;;  %v15310_v49 = vld [vmem:[#allocation3 + $0x58] sm:$0xf] }
 0x3d8   : > { %v6517_v6 = vrot.slane %v6515_v32, 5  ;;  %v5394_v40 = vsel %vm17649_vm9, %v15170_v2, %v15098_v48  ;;  %v8166_v4 = vpack.c.b16 %v8140_v5, %v8139_v10  ;;  %v6503_v35 = vrot.slane %v6502_v54, 4 }
 0x3d9   : > { %v6512_v12 = vor.u32 %v6511_v42, %v6507_v17  ;;  %v5431_v62 = vsel %vm17650_vm2, %v5394_v40, %v4958_v59  ;;  %vm17651_vm14 = vcmask 588800   ;;  %8507 = vrot.lane.b32.xlu1 %v8486_v51, %s11207_s11  ;;  %v7634_v21 = vshrl.u32 %v15180_v1, 16  ;;  %v15316_v51 = vld [vmem:[#allocation3 + $0x5c] sm:$0x1] }
 0x3da   : > { %10569 = vmatmul.msk.bf16.gmra.mxu2 %vm17651_vm14, %v5540_v11  ;;  %v7637_v63 = vshll.u32 %v15180_v1, 16  ;;  %v7643_v48 = vshll.u32 %v15187_v41, 16  ;;  %v7647_v2 = vshrl.u32 %v15187_v41, 16  ;;  %8187 = vrot.lane.b32.xlu0 %v8166_v4, %s11206_s30  ;;  %v6508_v57 = vsel %vm11386_vm13, %v6503_v35, %v6507_v17  ;;  %v15313_v17 = vpop.permute.xlu1 %8497  ;;  %vm17656_vm2 = vmmov %vm17651_vm14 }
 0x3db   : > { %v6513_v56 = vrot.slane %v6512_v12, 4  ;;  %v7653_v59 = vshll.u32 %v15196_v23, 16  ;;  %v576_v22 = vsel %vm11346_vm6, 0, %v575_v0  ;;  %v15298_v1 = vsel %vm5434_vm11, %v5431_v62, %v17652_v29 }
 0x3dc   : > { %v7636_v37 = vrot.slane %v7634_v21, 4  ;;  %v7639_v53 = vrot.slane %v7637_v63, 5  ;;  %v7645_v41 = vrot.slane %v7643_v48, 5  ;;  %577 = vst [vmem:[#allocation3 + $0x6c] sm:$0x1] %v576_v22  ;;  %v8141_v27 = vunpack.c.l.b16 %v6508_v57  ;;  %v5682_v63 = vpop.f32.mrf.mxu2 }
 0x3dd   : > { %v6518_v38 = vsel %vm11386_vm13, %v6513_v56, %v6517_v6  ;;  %v7649_v36 = vrot.slane %v7647_v2, 4  ;;  %v5681_v3 = vadd.f32 %v15148_v45, %v5680_v16  ;;  %v7655_v33 = vrot.slane %v7653_v59, 5  ;;  %v10975_v6 = vld [vmem:[#allocation3 + $0x48] sm:$0xff]  ;;  %v9049_v48 = vld [vmem:[%s17403_s8 + $0x20] sm:$0xf] }
 0x3de   : > { %v8142_v23 = vunpack.c.l.b16 %v6518_v38  ;;  %v7640_v34 = vor.u32 %v7639_v53, %v7636_v37  ;;  %v8771_v15 = vsel %vm805_vm1, %v10939_v58, %v8178_v13  ;;  %v10578_v7 = vrot.slane %v15244_v46, 9 }
 0x3df   : > { %v7650_v31 = vor.u32 %v7649_v36, %v7645_v41  ;;  %v5743_v60 = vmax.f32 %v5681_v3, 0.0  ;;  %v6827_v10 = vrot.slane %v15256_v25, 5  ;;  %v8818_v54 = vsel %vm17646_vm0, %v8771_v15, %v8258_v43  ;;  %v10976_v15 = vld [vmem:[#allocation3 + $0x54] sm:$0xff]  ;;  %vm17659_vm0 = vmmov %vm17649_vm9 }
 0x3e0   : > { %v8167_v32 = vpack.c.b16 %v8142_v23, %v8141_v27  ;;  %v7641_v5 = vrot.slane %v7640_v34, 4  ;;  %v6830_v42 = vrot.slane %v15260_v9, 5  ;;  %v10579_v43 = vrot.slane %v15304_v47, 9  ;;  %v629_v9 = vld [vmem:[#allocation3 + $0x74] sm:$0x1] }
 0x3e1   : > { %v7651_v40 = vrot.slane %v7650_v31, 4  ;;  %v5779_v11 = vpack.c.bf16 %v5743_v60, %v5743_v60  ;;  %v6828_v46 = vsel %vm11373_vm10, %v10578_v7, %v6827_v10  ;;  %v6829_v0 = vrot.slane %v6827_v10, 4  ;;  %v17653_v10 = vld [vmem:[#allocation11_spill] sm:$0xff] }
 0x3e2   : > { %8189 = vrot.lane.b32.xlu2 %v8167_v32, %s11206_s30  ;;  %v7646_v25 = vsel %vm11386_vm13, %v7641_v5, %v7645_v41  ;;  %v8221_v4 = vunpack.c.l.b16 %v6828_v46  ;;  %v6834_v35 = vrot.slane %v15310_v49, 5  ;;  %8585 = vrot.lane.b32.xlu0 %v10975_v6, %s11210_s18  ;;  %v6837_v21 = vrot.slane %v15316_v51, 5  ;;  %v15351_v6 = vpop.permute.xlu2 %8341 }
 0x3e3   : > { %v7656_v12 = vsel %vm11386_vm13, %v7651_v40, %v7655_v33  ;;  %v8617_v62 = vunpack.c.l.b16 %v7646_v25  ;;  %v5954_v16 = vshrl.u32 %v5779_v11, 16  ;;  %v6831_v58 = vsel %vm11373_vm10, %v6829_v0, %v6830_v42  ;;  %v6229_v53 = vld [vmem:[#allocation3 + $0x6c] sm:$0xf]  ;;  %v8418_v33 = vpop.permute.xlu0 %8417  ;;  %v15360_v25 = vld [vmem:[#allocation3 + $0x54] sm:$0xf] }
 0x3e4   : > { %v8618_v2 = vunpack.c.l.b16 %v7656_v12  ;;  %v6835_v57 = vsel %vm11373_vm10, %v10579_v43, %v6834_v35  ;;  %v6836_v56 = vrot.slane %v6834_v35, 4  ;;  %v5957_v22 = vshll.u32 %v5779_v11, 16  ;;  %v17654_v11 = vld [vmem:[#allocation10_spill] sm:$0xff] }
 0x3e5   : > { %v15336_v59 = vrot.slane %v5954_v16, 7  ;;  %v8222_v13 = vunpack.c.l.b16 %v6831_v58  ;;  %v630_v29 = vsel %vm11358_vm7, 0, %v629_v9  ;;  %v5683_v38 = vadd.f32 %v15148_v45, %v5682_v63  ;;  %v10990_v0 = vld [vmem:[%s17403_s8 + $0x18] sm:$0xff]  ;;  %v15373_v9 = vld [vmem:[#allocation3 + $0x5c] sm:$0x1] }
 0x3e6   : > { %v8645_v37 = vpack.c.b16 %v8618_v2, %v8617_v62  ;;  %v6838_v41 = vsel %vm11373_vm10, %v6836_v56, %v6837_v21  ;;  %631 = vst [vmem:[#allocation3 + $0x74] sm:$0x1] %v630_v29  ;;  %v9071_v27 = vunpack.c.l.b16 %v9049_v48  ;;  %v8223_v23 = vunpack.c.l.b16 %v6835_v57  ;;  %v15380_v63 = vld [vmem:[#allocation3 + $0x54] sm:$0xf]  ;;  %v15383_v56 = vld [vmem:[#allocation3 + $0x58] sm:$0xf] }
 0x3e7   : > { %v5959_v36 = vor.u32 %v5957_v22, %v15336_v59  ;;  %v5960_v3 = vrot.slane %v15336_v59, 4  ;;  %v8224_v34 = vunpack.c.l.b16 %v6838_v41  ;;  %v8247_v31 = vpack.c.b16 %v8222_v13, %v8221_v4  ;;  %v15362_v4 = vld [vmem:[#allocation3 + $0x58] sm:$0xf] }
 0x3e8   : > { %8665 = vrot.lane.b32.xlu1 %v8645_v37, %s11209_s17  ;;  %v5744_v60 = vmax.f32 %v5683_v38, 0.0  ;;  %v9076_v7 = vpack.c.b16 %v9071_v27, %v9071_v27  ;;  %v5505_v32 = vsel %vm5471_vm12, %v15298_v1, %v17653_v10  ;;  %v8850_v40 = vsel %vm5323_vm3, %v8818_v54, %v15176_v39  ;;  %v15369_v39 = vpop.permute.xlu1 %8259 }
 0x3e9   : > { %v6230_v5 = vsel %vm12121_vm5, %v5959_v36, %v6229_v53  ;;  %v8248_v42 = vpack.c.b16 %v8224_v34, %v8223_v23  ;;  %v5542_v46 = vsel %vm5508_vm4, %v5505_v32, %v17654_v11  ;;  %vm17655_vm15 = vcmask 1043456  }
 0x3ea   : > { %8587 = vrot.lane.b32.xlu2 %v10976_v15, %s11210_s18  ;;  %6231 = vst [vmem:[#allocation3 + $0x6c] sm:$0xf] %v6230_v5  ;;  %v5780_v1 = vpack.c.bf16 %v5744_v60, %v5744_v60  ;;  %v9114_v43 = vsel %vm17655_vm15, %v9076_v7, 0  ;;  %v15367_v35 = vsel %vm17649_vm9, %v8850_v40, %v8418_v33  ;;  %10570 = vmatmul.msk.bf16.gmra.mxu2 %vm17656_vm2, %v5542_v46  ;;  %v7065_v54 = vshrl.u32 %v15229_v55, 16  ;;  %v10989_v33 = vld [vmem:[%s17403_s8 + $0x10] sm:$0xff] }
 0x3eb   : > { %8269 = vrot.lane.b32.xlu0 %v8247_v31, %s11204_s28  ;;  %9119 = vmatpush.bf16.msra.mxu3 %v9114_v43  ;;  %v7068_v12 = vshll.u32 %v15229_v55, 16  ;;  %v7074_v62 = vshll.u32 %v15234_v28, 16  ;;  %v7078_v16 = vshrl.u32 %v15234_v28, 16  ;;  %v7084_v21 = vshll.u32 %v15242_v50, 16  ;;  %v10961_v55 = vld [vmem:[#allocation3 + $0x54] sm:$0xff] }
 0x3ec   : > { %v5962_v48 = vshrl.u32 %v5780_v1, 16  ;;  %v5965_v2 = vshll.u32 %v5780_v1, 16  ;;  %v7067_v58 = vrot.slane %v7065_v54, 4  ;;  %v10609_v57 = vrot.slane %v15360_v25, 9  ;;  %v6916_v1 = vld [vmem:[#allocation3 + $0x5c] sm:$0x1]  ;;  %v15405_v54 = vpop.permute.xlu0 %8179 }
 0x3ed   : > { %v7070_v22 = vrot.slane %v7068_v12, 5  ;;  %v7076_v13 = vrot.slane %v7074_v62, 5  ;;  %v7080_v29 = vrot.slane %v7078_v16, 4  ;;  %v7086_v37 = vrot.slane %v7084_v21, 5  ;;  %v6233_v38 = vld [vmem:[#allocation3 + $0x74] sm:$0x1]  ;;  %v8184_v62 = vpop.permute.xlu2 %8183 }
 0x3ee   : > { %v5964_v53 = vrot.slane %v5962_v48, 7  ;;  %v8006_v41 = vrot.slane %v15362_v4, 5  ;;  %v8009_v28 = vrot.slane %v15373_v9, 5  ;;  %v7089_v50 = vshrl.u32 %v15380_v63, 16  ;;  %v10988_v16 = vld [vmem:[%s17403_s8 + $0x8] sm:$0xff] }
 0x3ef   : > { %9120 = vmatpush.bf16.msra.mxu3 %v10990_v0  ;;  %v7071_v27 = vor.u32 %v7070_v22, %v7067_v58  ;;  %v7081_v36 = vor.u32 %v7080_v29, %v7076_v13  ;;  %v7092_v23 = vshll.u32 %v15380_v63, 16  ;;  %v7098_v34 = vshll.u32 %v15383_v56, 16  ;;  %v5685_v29 = vpop.f32.mrf.mxu2 }
 0x3f0   : > { %8349 = vrot.lane.b32.xlu1 %v10961_v55, %s11205_s29  ;;  %v5967_v15 = vor.u32 %v5965_v2, %v5964_v53  ;;  %v5969_v31 = vrot.slane %v5964_v53, 4  ;;  %v8007_v60 = vsel %vm11373_vm10, %v10609_v57, %v8006_v41  ;;  %v8008_v7 = vrot.slane %v8006_v41, 4  ;;  %v10942_v57 = vld [vmem:[#allocation3 + $0x24] sm:$0xff]  ;;  %v15416_v22 = vpop.permute.xlu1 %8737 }
 0x3f1   : > { %v7072_v10 = vrot.slane %v7071_v27, 4  ;;  %v7082_v32 = vrot.slane %v7081_v36, 4  ;;  %v8699_v5 = vunpack.c.l.b16 %v8007_v60  ;;  %v7091_v40 = vrot.slane %v7089_v50, 4 }
 0x3f2   : > { %8271 = vrot.lane.b32.xlu2 %v8248_v42, %s11204_s28  ;;  %v5968_v11 = vsel %vm12182_vm8, %v5960_v3, %v5967_v15  ;;  %v6234_v46 = vsel %vm11346_vm6, %v5969_v31, %v6233_v38  ;;  %v8010_v0 = vsel %vm11373_vm10, %v8008_v7, %v8009_v28  ;;  %v7094_v43 = vrot.slane %v7092_v23, 5 }
 0x3f3   : > { %vm17657_vm14 = vcmask 60416   ;;  %v7077_v42 = vsel %vm11386_vm13, %v7072_v10, %v7076_v13  ;;  %v7087_v59 = vsel %vm11386_vm13, %v7082_v32, %v7086_v37  ;;  %v8700_v12 = vunpack.c.l.b16 %v8010_v0  ;;  %9121 = vmatpush.bf16.msra.mxu3 %v10989_v33  ;;  %6235 = vst [vmem:[#allocation3 + $0x74] sm:$0x1] %v6234_v46  ;;  %v578_v13 = vld [vmem:[#allocation3 + $0x78] sm:$0x1]  ;;  %v17658_v37 = vld [vmem:[#allocation9_spill] sm:$0xff] }
 0x3f4   : > { %6232 = vst.msk [vmem:[#allocation3 + $0x70] sm:$0xf] %vm17657_vm14, %v5968_v11  ;;  %v7100_v3 = vrot.slane %v7098_v34, 5  ;;  %v8379_v21 = vunpack.c.l.b16 %v7077_v42  ;;  %v8380_v48 = vunpack.c.l.b16 %v7087_v59  ;;  %v7095_v2 = vor.u32 %v7094_v43, %v7091_v40  ;;  %vm17666_vm14 = vmmov %vm17656_vm2 }
 0x3f5   : > { %v7102_v58 = vshrl.u32 %v15383_v56, 16  ;;  %v15421_v55 = vsel %vm17659_vm0, %v15239_v19, %v17658_v37  ;;  %vm17660_vm15 = vcmask 326656   ;;  %v8726_v41 = vpack.c.b16 %v8700_v12, %v8699_v5  ;;  %v15448_v12 = vld [vmem:[#allocation3 + $0x60] sm:$0xf] }
 0x3f6   : > { %v15426_v53 = vsel %vm17660_vm15, %v15367_v35, %v15313_v17  ;;  %v7108_v28 = vshll.u32 %v6916_v1, 16  ;;  %v8406_v50 = vpack.c.b16 %v8380_v48, %v8379_v21  ;;  %v7096_v38 = vrot.slane %v7095_v2, 4  ;;  %v10987_v17 = vld [vmem:[%s17403_s8] sm:$0xff]  ;;  %vm17662_vm9 = vmmov %vm17660_vm15 }
 0x3f7   : > { %v7104_v27 = vrot.slane %v7102_v58, 4  ;;  %v15429_v36 = vsel %vm805_vm1, %v10942_v57, %v8184_v62  ;;  %9122 = vmatpush.bf16.msra.mxu3 %v10988_v16  ;;  %v579_v34 = vsel %vm11346_vm6, 0, %v578_v13  ;;  %v5686_v19 = vadd.f32 %v15148_v45, %v5685_v29  ;;  %v15455_v62 = vld [vmem:[#allocation3 + $0x64] sm:$0xf]  ;;  %v8658_v16 = vpop.permute.xlu0 %8657  ;;  %v10940_v57 = vld [vmem:[#allocation3 + $0xc] sm:$0xff] }
 0x3f8   : > { %v7110_v23 = vrot.slane %v7108_v28, 5  ;;  %v10594_v33 = vrot.slane %v15380_v63, 9  ;;  %8427 = vrot.lane.b32.xlu0 %v8406_v50, %s11208_s12  ;;  %8747 = vrot.lane.b32.xlu1 %v8726_v41, %s11211_s21  ;;  %v7101_v35 = vsel %vm11386_vm13, %v7096_v38, %v7100_v3  ;;  %580 = vst [vmem:[#allocation3 + $0x78] sm:$0x1] %v579_v34  ;;  %v7420_v31 = vrot.slane %v15383_v56, 5  ;;  %v15461_v50 = vpop.permute.xlu1 %8499  ;;  %v5687_v34 = vpop.f32.mrf.mxu2 }
 0x3f9   : > { %v7105_v15 = vor.u32 %v7104_v27, %v7100_v3  ;;  %v7423_v60 = vrot.slane %v6916_v1, 5  ;;  %v8381_v7 = vunpack.c.l.b16 %v7101_v35  ;;  %v5745_v10 = vmax.f32 %v5686_v19, 0.0  ;;  %v15458_v41 = vld [vmem:[#allocation3 + $0x68] sm:$0x1] }
 0x3fa   : > { %v6520_v63 = vshrl.u32 %v15304_v47, 16  ;;  %v6523_v32 = vshll.u32 %v15304_v47, 16  ;;  %v7421_v40 = vsel %vm11373_vm10, %v10594_v33, %v7420_v31  ;;  %v7422_v11 = vrot.slane %v7420_v31, 4 }
 0x3fb   : > { %v7106_v5 = vrot.slane %v7105_v15, 4  ;;  %v6529_v46 = vshll.u32 %v15310_v49, 16  ;;  %v5781_v0 = vpack.c.bf16 %v5745_v10, %v5745_v10  ;;  %v8461_v43 = vunpack.c.l.b16 %v7421_v40  ;;  %9123 = vmatpush.bf16.msra.mxu3 %v10987_v17 }
 0x3fc   : > { %v6522_v42 = vrot.slane %v6520_v63, 4  ;;  %v6525_v59 = vrot.slane %v6523_v32, 5  ;;  %v7424_v47 = vsel %vm11373_vm10, %v7422_v11, %v7423_v60  ;;  %v6533_v3 = vshrl.u32 %v15310_v49, 16 }
 0x3fd   : > { %v7111_v56 = vsel %vm11386_vm13, %v7106_v5, %v7110_v23  ;;  %v6531_v1 = vrot.slane %v6529_v46, 5  ;;  %v5971_v48 = vshrl.u32 %v5781_v0, 16  ;;  %v5974_v2 = vshll.u32 %v5781_v0, 16  ;;  %v632_v5 = vld [vmem:[#allocation3 + $0x80] sm:$0x1] }
 0x3fe   : > { %v8382_v21 = vunpack.c.l.b16 %v7111_v56  ;;  %v8462_v58 = vunpack.c.l.b16 %v7424_v47  ;;  %v6526_v13 = vor.u32 %v6525_v59, %v6522_v42  ;;  %v6535_v29 = vrot.slane %v6533_v3, 4  ;;  %v17661_v59 = vld [vmem:[#allocation7_spill] sm:$0xff]  ;;  %v17663_v47 = vld [vmem:[#allocation8_spill] sm:$0xff] }
 0x3ff   : > { %v6539_v37 = vshll.u32 %v15316_v51, 16  ;;  %v10595_v28 = vrot.slane %v15448_v12, 9  ;;  %v15463_v49 = vrot.slane %v5971_v48, 7  ;;  %v7427_v23 = vrot.slane %v15455_v62, 5  ;;  %v6236_v33 = vld [vmem:[#allocation3 + $0x78] sm:$0xf] }
 0x400   : > { %v8407_v38 = vpack.c.b16 %v8382_v21, %v8381_v7  ;;  %v8487_v27 = vpack.c.b16 %v8462_v58, %v8461_v43  ;;  %v8774_v19 = vsel %vm805_vm1, %v10940_v57, %v15405_v54  ;;  %v6527_v17 = vrot.slane %v6526_v13, 4  ;;  %v17664_v48 = vld [vmem:[#allocation14_spill] sm:$0xff]  ;;  %v15501_v58 = vld [vmem:[#allocation3 + $0x60] sm:$0xf]  ;;  %v8420_v57 = vpop.permute.xlu0 %8419 }
 0x401   : > { %v6536_v35 = vor.u32 %v6535_v29, %v6531_v1  ;;  %v6541_v51 = vrot.slane %v6539_v37, 5  ;;  %v5976_v15 = vor.u32 %v5974_v2, %v15463_v49  ;;  %v7428_v31 = vsel %vm11373_vm10, %v10595_v28, %v7427_v23  ;;  %v17665_v29 = vld [vmem:[#allocation13_spill] sm:$0xff] }
 0x402   : > { %8429 = vrot.lane.b32.xlu2 %v8407_v38, %s11208_s12  ;;  %8509 = vrot.lane.b32.xlu0 %v8487_v27, %s11207_s11  ;;  %v7429_v60 = vrot.slane %v7427_v23, 4  ;;  %v7430_v7 = vrot.slane %v15458_v41, 5  ;;  %v6532_v10 = vsel %vm11386_vm13, %v6527_v17, %v6531_v1  ;;  %v8463_v63 = vunpack.c.l.b16 %v7428_v31  ;;  %v15506_v27 = vld [vmem:[#allocation3 + $0x64] sm:$0xf]  ;;  %v15511_v17 = vpop.permute.xlu1 %8261 }
 0x403   : > { %v6537_v54 = vrot.slane %v6536_v35, 4  ;;  %v8946_v32 = vsel %vm5434_vm11, %v15426_v53, %v15223_v26  ;;  %v6237_v40 = vsel %vm12121_vm5, %v5976_v15, %v6236_v33  ;;  %v8143_v11 = vunpack.c.l.b16 %v6532_v10 }
 0x404   : > { %v7431_v46 = vsel %vm11373_vm10, %v7429_v60, %v7430_v7  ;;  %v8978_v0 = vsel %vm5471_vm12, %v8946_v32, %v8658_v16  ;;  %6238 = vst [vmem:[#allocation3 + $0x78] sm:$0xf] %v6237_v40  ;;  %v5433_v56 = vsel %vm17662_vm9, %v15421_v55, %v17661_v59  ;;  %v633_v3 = vsel %vm11358_vm7, 0, %v632_v5  ;;  %v5690_v60 = vpop.f32.mrf.mxu2  ;;  %v15521_v32 = vld [vmem:[#allocation3 + $0x68] sm:$0x1] }
 0x405   : > { %v6542_v43 = vsel %vm11386_vm13, %v6537_v54, %v6541_v51  ;;  %v8464_v42 = vunpack.c.l.b16 %v7431_v46  ;;  %v9010_v26 = vsel %vm5508_vm4, %v8978_v0, %v15416_v22  ;;  %v5470_v1 = vsel %vm5434_vm11, %v5433_v56, %v17663_v47  ;;  %634 = vst [vmem:[#allocation3 + $0x80] sm:$0x1] %v633_v3 }
 0x406   : > { %v8144_v53 = vunpack.c.l.b16 %v6542_v43  ;;  %10828 = vmatmul.msk.bf16.vlgmr.msra.gmra.mxu3 %vm17656_vm2, %v9010_v26  ;;  %v5688_v16 = vadd.f32 %v15148_v45, %v5687_v34  ;;  %v5507_v2 = vsel %vm5471_vm12, %v5470_v1, %v17664_v48  ;;  %v7658_v55 = vshrl.u32 %v15360_v25, 16 }
 0x407   : > { %v8488_v21 = vpack.c.b16 %v8464_v42, %v8463_v63  ;;  %v7661_v22 = vshll.u32 %v15360_v25, 16  ;;  %v5544_v37 = vsel %vm5508_vm4, %v5507_v2, %v17665_v29  ;;  %v7667_v38 = vshll.u32 %v15362_v4, 16  ;;  %v581_v2 = vld [vmem:[#allocation3 + $0x84] sm:$0x1] }
 0x408   : > { %v8168_v13 = vpack.c.b16 %v8144_v53, %v8143_v11  ;;  %v5746_v28 = vmax.f32 %v5688_v16, 0.0  ;;  %10571 = vmatmul.msk.bf16.gmra.mxu2 %vm17666_vm14, %v5544_v37  ;;  %v7660_v23 = vrot.slane %v7658_v55, 4  ;;  %v7671_v33 = vshrl.u32 %v15362_v4, 16  ;;  %v10977_v16 = vld [vmem:[#allocation3 + $0x60] sm:$0xff] }
 0x409   : > { %v7663_v34 = vrot.slane %v7661_v22, 5  ;;  %v7677_v25 = vshll.u32 %v15373_v9, 16  ;;  %v7669_v51 = vrot.slane %v7667_v38, 5  ;;  %v7682_v15 = vshrl.u32 %v15501_v58, 16  ;;  %v15532_v37 = vld [vmem:[#allocation3 + $0x60] sm:$0xf]  ;;  %v8182_v38 = vpop.permute.xlu0 %8181 }
 0x40a   : > { %8191 = vrot.lane.b32.xlu1 %v8168_v13, %s11206_s30  ;;  %8511 = vrot.lane.b32.xlu2 %v8488_v21, %s11207_s11  ;;  %v5782_v35 = vpack.c.bf16 %v5746_v28, %v5746_v28  ;;  %v7685_v31 = vshll.u32 %v15501_v58, 16  ;;  %vm17667_vm0 = vcmask 130048   ;;  %v7673_v4 = vrot.slane %v7671_v33, 4  ;;  %v15534_v28 = vld [vmem:[#allocation3 + $0x64] sm:$0xf] }
 0x40b   : > { %v8820_v7 = vsel %vm17667_vm0, %v8774_v19, %v15369_v39  ;;  %v7664_v10 = vor.u32 %v7663_v34, %v7660_v23  ;;  %v7691_v9 = vshll.u32 %v15506_v27, 16  ;;  %v5977_v54 = vrot.slane %v15463_v49, 4 }
 0x40c   : > { %v5979_v63 = vshrl.u32 %v5782_v35, 16  ;;  %v7684_v5 = vrot.slane %v7682_v15, 4  ;;  %v7687_v40 = vrot.slane %v7685_v31, 5  ;;  %v7674_v46 = vor.u32 %v7673_v4, %v7669_v51  ;;  %v6240_v19 = vld [vmem:[#allocation3 + $0x80] sm:$0x1] }
 0x40d   : > { %v7665_v11 = vrot.slane %v7664_v10, 4  ;;  %v7693_v0 = vrot.slane %v7691_v9, 5  ;;  %v7695_v43 = vshrl.u32 %v15506_v27, 16  ;;  %v5982_v59 = vshll.u32 %v5782_v35, 16 }
 0x40e   : > { %v5981_v42 = vrot.slane %v5979_v63, 7  ;;  %v7679_v56 = vrot.slane %v7677_v25, 5  ;;  %v7688_v39 = vor.u32 %v7687_v40, %v7684_v5  ;;  %v7675_v53 = vrot.slane %v7674_v46, 4  ;;  %v15543_v25 = vld [vmem:[#allocation3 + $0x68] sm:$0x1]  ;;  %v5692_v63 = vpop.f32.mrf.mxu2 }
 0x40f   : > { %v7670_v26 = vsel %vm11386_vm13, %v7665_v11, %v7669_v51  ;;  %v7697_v49 = vrot.slane %v7695_v43, 4  ;;  %v7701_v47 = vshll.u32 %v15521_v32, 16  ;;  %v8852_v48 = vsel %vm5323_vm3, %v8820_v7, %v15273_v61  ;;  %v15549_v7 = vpop.permute.xlu1 %8739 }
 0x410   : > { %v5984_v1 = vor.u32 %v5982_v59, %v5981_v42  ;;  %v5986_v3 = vrot.slane %v5981_v42, 4  ;;  %v7689_v21 = vrot.slane %v7688_v39, 4  ;;  %v7680_v55 = vsel %vm11386_vm13, %v7675_v53, %v7679_v56  ;;  %v15571_v39 = vld [vmem:[%s17402_s7] ss:$0 sm:$0xff] }
 0x411   : > { %v8619_v22 = vunpack.c.l.b16 %v7670_v26  ;;  %v7698_v13 = vor.u32 %v7697_v49, %v7693_v0  ;;  %vm17668_vm15 = vcmask 261120   ;;  %v8620_v61 = vunpack.c.l.b16 %v7680_v55 }
 0x412   : > { %v8884_v29 = vsel %vm17668_vm15, %v8852_v48, %v8420_v57  ;;  %v5985_v23 = vsel %vm12182_vm8, %v5977_v54, %v5984_v1  ;;  %v6241_v34 = vsel %vm11346_vm6, %v5986_v3, %v6240_v19  ;;  %8589 = vrot.lane.b32.xlu1 %v10977_v16, %s11210_s18  ;;  %v7694_v33 = vsel %vm11386_vm13, %v7689_v21, %v7693_v0  ;;  %v635_v57 = vld [vmem:[#allocation3 + $0x8c] sm:$0x1]  ;;  %vm17672_vm15 = vmmov %vm17667_vm0 }
 0x413   : > { %vm17669_vm9 = vcmask 60416   ;;  %v7699_v35 = vrot.slane %v7698_v13, 4  ;;  %v7703_v51 = vrot.slane %v7701_v47, 5  ;;  %v582_v15 = vsel %vm11346_vm6, 0, %v581_v2  ;;  %6242 = vst [vmem:[#allocation3 + $0x80] sm:$0x1] %v6241_v34 }
 0x414   : > { %6239 = vst.msk [vmem:[#allocation3 + $0x7c] sm:$0xf] %vm17669_vm9, %v5985_v23  ;;  %v5691_v31 = vadd.f32 %v15148_v45, %v5690_v60  ;;  %v8646_v10 = vpack.c.b16 %v8620_v61, %v8619_v22  ;;  %vm17670_vm2 = vcmask 326656   ;;  %v10580_v9 = vrot.slane %v15532_v37, 9  ;;  %v10941_v45 = vld [vmem:[#allocation3 + $0x18] sm:$0xff]  ;;  %v10962_v34 = vld [vmem:[#allocation3 + $0x60] sm:$0xff]  ;;  %vm17671_vm14 = vmmov %vm17669_vm9 }
 0x415   : > { %v15553_v4 = vsel %vm17670_vm2, %v8884_v29, %v15461_v50  ;;  %v6841_v54 = vrot.slane %v15534_v28, 5  ;;  %v7704_v5 = vsel %vm11386_vm13, %v7699_v35, %v7703_v51  ;;  %v8621_v40 = vunpack.c.l.b16 %v7694_v33  ;;  %583 = vst [vmem:[#allocation3 + $0x84] sm:$0x1] %v582_v15 }
 0x416   : > { %v5747_v11 = vmax.f32 %v5691_v31, 0.0  ;;  %v636_v60 = vsel %vm11358_vm7, 0, %v635_v57  ;;  %8667 = vrot.lane.b32.xlu0 %v8646_v10, %s11209_s17  ;;  %v8622_v46 = vunpack.c.l.b16 %v7704_v5  ;;  %v6844_v43 = vrot.slane %v15543_v25, 5  ;;  %v15590_v31 = vld [vmem:[#allocation3 + $0x6c] sm:$0xf] }
 0x417   : > { %v6842_v50 = vsel %vm11373_vm10, %v10580_v9, %v6841_v54  ;;  %v6843_v0 = vrot.slane %v6841_v54, 4  ;;  %637 = vst [vmem:[#allocation3 + $0x8c] sm:$0x1] %v636_v60  ;;  %v15566_v56 = vsel %vm805_vm1, %v10941_v45, %v8182_v38  ;;  %v5693_v19 = vadd.f32 %v15571_v39, %v5692_v63  ;;  %v15592_v10 = vld [vmem:[#allocation3 + $0x70] sm:$0xf]  ;;  %v15594_v9 = vpop.permute.xlu1 %8501 }
 0x418   : > { %v5783_v42 = vpack.c.bf16 %v5747_v11, %v5747_v11  ;;  %v8225_v59 = vunpack.c.l.b16 %v6842_v50  ;;  %v8647_v26 = vpack.c.b16 %v8622_v46, %v8621_v40  ;;  %v10610_v49 = vrot.slane %v15501_v58, 9  ;;  %v15598_v11 = vld [vmem:[#allocation3 + $0x74] sm:$0x1]  ;;  %v10963_v60 = vld [vmem:[#allocation3 + $0x6c] sm:$0xff] }
 0x419   : > { %v6845_v53 = vsel %vm11373_vm10, %v6843_v0, %v6844_v43  ;;  %v8013_v47 = vrot.slane %v15506_v27, 5  ;;  %v5748_v16 = vmax.f32 %v5693_v19, 0.0  ;;  %v8016_v21 = vrot.slane %v15521_v32, 5  ;;  %v15584_v27 = vpop.permute.xlu0 %8263 }
 0x41a   : > { %v5988_v1 = vshrl.u32 %v5783_v42, 16  ;;  %v8226_v3 = vunpack.c.l.b16 %v6845_v53  ;;  %8669 = vrot.lane.b32.xlu2 %v8647_v26, %s11209_s17  ;;  %v7113_v55 = vshrl.u32 %v15448_v12, 16  ;;  %v7116_v22 = vshll.u32 %v15448_v12, 16 }
 0x41b   : > { %v8014_v48 = vsel %vm11373_vm10, %v10610_v49, %v8013_v47  ;;  %v8015_v2 = vrot.slane %v8013_v47, 4  ;;  %v5991_v29 = vshll.u32 %v5783_v42, 16  ;;  %v5784_v38 = vpack.c.bf16 %v5748_v16, %v5748_v16 }
 0x41c   : > { %v5990_v13 = vrot.slane %v5988_v1, 7  ;;  %v8249_v58 = vpack.c.b16 %v8226_v3, %v8225_v59  ;;  %v6243_v23 = vld [vmem:[#allocation3 + $0x84] sm:$0xf]  ;;  %v7115_v61 = vrot.slane %v7113_v55, 4  ;;  %v7118_v33 = vrot.slane %v7116_v22, 5 }
 0x41d   : > { %v8017_v32 = vsel %vm11373_vm10, %v8015_v2, %v8016_v21  ;;  %v7122_v57 = vshll.u32 %v15455_v62, 16  ;;  %v5996_v12 = vshrl.u32 %v5784_v38, 16  ;;  %v8701_v15 = vunpack.c.l.b16 %v8014_v48  ;;  %v584_v1 = vld [vmem:[#allocation3 + $0x90] sm:$0x1]  ;;  %v5695_v48 = vpop.f32.mrf.mxu2 }
 0x41e   : > { %v5993_v35 = vor.u32 %v5991_v29, %v5990_v13  ;;  %v5994_v51 = vrot.slane %v5990_v13, 4  ;;  %8273 = vrot.lane.b32.xlu1 %v8249_v58, %s11204_s28  ;;  %8351 = vrot.lane.b32.xlu0 %v10962_v34, %s11205_s29  ;;  %v8702_v54 = vunpack.c.l.b16 %v8017_v32  ;;  %v7119_v63 = vor.u32 %v7118_v33, %v7115_v61  ;;  %v6247_v0 = vld [vmem:[#allocation3 + $0x8c] sm:$0x1] }
 0x41f   : > { %v7124_v5 = vrot.slane %v7122_v57, 5  ;;  %v7126_v40 = vshrl.u32 %v15455_v62, 16  ;;  %v5998_v46 = vrot.slane %v5996_v12, 7  ;;  %v5999_v50 = vshll.u32 %v5784_v38, 16  ;;  %v15620_v34 = vld [vmem:[#allocation3 + $0x6c] sm:$0xf] }
 0x420   : > { %v6244_v45 = vsel %vm12121_vm5, %v5993_v35, %v6243_v23  ;;  %v7132_v43 = vshll.u32 %v15458_v41, 16  ;;  %v7120_v42 = vrot.slane %v7119_v63, 4  ;;  %v10611_v19 = vrot.slane %v15590_v31, 9  ;;  %v15625_v35 = vld [vmem:[#allocation3 + $0x70] sm:$0xf] }
 0x421   : > { %6245 = vst [vmem:[#allocation3 + $0x84] sm:$0xf] %v6244_v45  ;;  %v7128_v59 = vrot.slane %v7126_v40, 4  ;;  %v8020_v26 = vrot.slane %v15592_v10, 5  ;;  %v6001_v53 = vor.u32 %v5999_v50, %v5998_v46  ;;  %v6003_v62 = vrot.slane %v5998_v46, 4  ;;  %v15639_v50 = vpop.permute.xlu1 %8343 }
 0x422   : > { %v8727_v49 = vpack.c.b16 %v8702_v54, %v8701_v15  ;;  %v8023_v47 = vrot.slane %v15598_v11, 5  ;;  %8353 = vrot.lane.b32.xlu2 %v10963_v60, %s11205_s29  ;;  %v7125_v3 = vsel %vm11386_vm13, %v7120_v42, %v7124_v5  ;;  %v7134_v22 = vrot.slane %v7132_v43, 5  ;;  %v15635_v60 = vld [vmem:[#allocation3 + $0x74] sm:$0x1]  ;;  %v15637_v46 = vld [vmem:[#allocation3 + $0x6c] sm:$0xf] }
 0x423   : > { %v7129_v16 = vor.u32 %v7128_v59, %v7124_v5  ;;  %v8021_v41 = vsel %vm11373_vm10, %v10611_v19, %v8020_v26  ;;  %v8022_v21 = vrot.slane %v8020_v26, 4  ;;  %v6002_v2 = vsel %vm12182_vm8, %v5994_v51, %v6001_v53  ;;  %v15627_v51 = vpop.permute.xlu0 %8659  ;;  %v15641_v19 = vpop.permute.xlu2 %8581 }
 0x424   : > { %v6248_v55 = vsel %vm11346_vm6, %v6003_v62, %v6247_v0  ;;  %v8383_v13 = vunpack.c.l.b16 %v7125_v3  ;;  %6246 = vst.msk [vmem:[#allocation3 + $0x88] sm:$0xf] %vm17671_vm14, %v6002_v2  ;;  %v8703_v38 = vunpack.c.l.b16 %v8021_v41  ;;  %v585_v23 = vsel %vm11346_vm6, 0, %v584_v1  ;;  %v15647_v1 = vld [vmem:[#allocation3 + $0x70] sm:$0xf] }
 0x425   : > { %v7130_v29 = vrot.slane %v7129_v16, 4  ;;  %v8024_v58 = vsel %vm11373_vm10, %v8022_v21, %v8023_v47  ;;  %6249 = vst [vmem:[#allocation3 + $0x8c] sm:$0x1] %v6248_v55  ;;  %v5696_v61 = vadd.f32 %v15571_v39, %v5695_v48  ;;  %v6544_v33 = vshrl.u32 %v15532_v37, 16 }
 0x426   : > { %v8704_v32 = vunpack.c.l.b16 %v8024_v58  ;;  %v6547_v57 = vshll.u32 %v15532_v37, 16  ;;  %8749 = vrot.lane.b32.xlu0 %v8727_v49, %s11211_s21  ;;  %586 = vst [vmem:[#allocation3 + $0x90] sm:$0x1] %v585_v23  ;;  %v6553_v15 = vshll.u32 %v15534_v28, 16  ;;  %v6557_v54 = vshrl.u32 %v15534_v28, 16 }
 0x427   : > { %v7135_v12 = vsel %vm11386_vm13, %v7130_v29, %v7134_v22  ;;  %v6563_v63 = vshll.u32 %v15543_v25, 16  ;;  %v5749_v45 = vmax.f32 %v5696_v61, 0.0  ;;  %v6546_v37 = vrot.slane %v6544_v33, 4 }
 0x428   : > { %v8384_v5 = vunpack.c.l.b16 %v7135_v12  ;;  %v8728_v40 = vpack.c.b16 %v8704_v32, %v8703_v38  ;;  %v6549_v0 = vrot.slane %v6547_v57, 5  ;;  %v6555_v43 = vrot.slane %v6553_v15, 5  ;;  %v15663_v12 = vld [vmem:[#allocation3 + $0x74] sm:$0x1] }
 0x429   : > { %v6559_v42 = vrot.slane %v6557_v54, 4  ;;  %v6565_v59 = vrot.slane %v6563_v63, 5  ;;  %v5785_v28 = vpack.c.bf16 %v5749_v45, %v5749_v45  ;;  %v10596_v25 = vrot.slane %v15620_v34, 9 }
 0x42a   : > { %v8408_v26 = vpack.c.b16 %v8384_v5, %v8383_v13  ;;  %v7434_v53 = vrot.slane %v15625_v35, 5  ;;  %8751 = vrot.lane.b32.xlu2 %v8728_v40, %s11211_s21  ;;  %v6550_v62 = vor.u32 %v6549_v0, %v6546_v37  ;;  %v7437_v47 = vrot.slane %v15635_v60, 5 }
 0x42b   : > { %v6560_v49 = vor.u32 %v6559_v42, %v6555_v43  ;;  %v6568_v3 = vshrl.u32 %v15637_v46, 16  ;;  %v6005_v16 = vshrl.u32 %v5785_v28, 16  ;;  %v6008_v41 = vshll.u32 %v5785_v28, 16  ;;  %v8422_v45 = vpop.permute.xlu0 %8421 }
 0x42c   : > { %8431 = vrot.lane.b32.xlu1 %v8408_v26, %s11208_s12  ;;  %v7435_v21 = vsel %vm11373_vm10, %v10596_v25, %v7434_v53  ;;  %v7436_v48 = vrot.slane %v7434_v53, 4  ;;  %v6551_v2 = vrot.slane %v6550_v62, 4  ;;  %v6571_v38 = vshll.u32 %v15637_v46, 16  ;;  %v638_v26 = vld [vmem:[#allocation3 + $0x98] sm:$0x1] }
 0x42d   : > { %v6561_v55 = vrot.slane %v6560_v49, 4  ;;  %v8465_v22 = vunpack.c.l.b16 %v7435_v21  ;;  %v6570_v13 = vrot.slane %v6568_v3, 4  ;;  %v15653_v29 = vrot.slane %v6005_v16, 7  ;;  %v6250_v32 = vld [vmem:[#allocation3 + $0x90] sm:$0xf]  ;;  %v15683_v16 = vpop.permute.xlu2 %8265 }
 0x42e   : > { %v7438_v58 = vsel %vm11373_vm10, %v7436_v48, %v7437_v47  ;;  %v6577_v23 = vshll.u32 %v15647_v1, 16  ;;  %v6556_v61 = vsel %vm11386_vm13, %v6551_v2, %v6555_v43  ;;  %v6581_v15 = vshrl.u32 %v15647_v1, 16 }
 0x42f   : > { %v6566_v33 = vsel %vm11386_vm13, %v6561_v55, %v6565_v59  ;;  %v8466_v57 = vunpack.c.l.b16 %v7438_v58  ;;  %v8822_v54 = vsel %vm17667_vm0, %v15566_v56, %v15511_v17  ;;  %v6010_v63 = vor.u32 %v6008_v41, %v15653_v29  ;;  %v5697_v59 = vpop.f32.mrf.mxu2  ;;  %v15676_v56 = vpop.permute.xlu1 %8741 }
 0x430   : > { %v8145_v5 = vunpack.c.l.b16 %v6556_v61  ;;  %v8146_v40 = vunpack.c.l.b16 %v6566_v33  ;;  %v6573_v0 = vrot.slane %v6571_v38, 5  ;;  %v6579_v43 = vrot.slane %v6577_v23, 5 }
 0x431   : > { %v8489_v37 = vpack.c.b16 %v8466_v57, %v8465_v22  ;;  %v6583_v42 = vrot.slane %v6581_v15, 4  ;;  %v6251_v28 = vsel %vm12121_vm5, %v6010_v63, %v6250_v32  ;;  %v6587_v53 = vshll.u32 %v15663_v12, 16 }
 0x432   : > { %v8169_v25 = vpack.c.b16 %v8146_v40, %v8145_v5  ;;  %v8948_v17 = vsel %vm5434_vm11, %v15553_v4, %v15306_v20  ;;  %v8824_v62 = vsel %vm17672_vm15, %v15429_v36, %v15584_v27  ;;  %6252 = vst [vmem:[#allocation3 + $0x90] sm:$0xf] %v6251_v28  ;;  %v6574_v49 = vor.u32 %v6573_v0, %v6570_v13 }
 0x433   : > { %v6584_v47 = vor.u32 %v6583_v42, %v6579_v43  ;;  %v8980_v3 = vsel %vm5471_vm12, %v8948_v17, %v15627_v51  ;;  %v6589_v41 = vrot.slane %v6587_v53, 5  ;;  %v639_v4 = vsel %vm11358_vm7, 0, %v638_v26  ;;  %v15709_v42 = vld [vmem:[#allocation3 + $0x7c] sm:$0xf]  ;;  %v15711_v26 = vpop.permute.xlu0 %8503 }
 0x434   : > { %8193 = vrot.lane.b32.xlu0 %v8169_v25, %s11206_s30  ;;  %8513 = vrot.lane.b32.xlu1 %v8489_v37, %s11207_s11  ;;  %v9012_v20 = vsel %vm5508_vm4, %v8980_v3, %v15549_v7  ;;  %v5698_v36 = vadd.f32 %v15571_v39, %v5697_v59  ;;  %v6575_v27 = vrot.slane %v6574_v49, 4  ;;  %vm17673_vm9 = vcmask 588800   ;;  %640 = vst [vmem:[#allocation3 + $0x98] sm:$0x1] %v639_v4  ;;  %v15714_v25 = vld [vmem:[#allocation3 + $0x80] sm:$0x1] }
 0x435   : > { %v6585_v21 = vrot.slane %v6584_v47, 4  ;;  %10829 = vmatmul.msk.bf16.gmra.mxu3 %vm17673_vm9, %v9012_v20  ;;  %v7706_v51 = vshrl.u32 %v15590_v31, 16  ;;  %v7709_v48 = vshll.u32 %v15590_v31, 16  ;;  %v7715_v55 = vshll.u32 %v15592_v10, 16  ;;  %v8424_v20 = vpop.permute.xlu2 %8423 }
 0x436   : > { %v5750_v2 = vmax.f32 %v5698_v36, 0.0  ;;  %v7719_v22 = vshrl.u32 %v15592_v10, 16  ;;  %v7725_v7 = vshll.u32 %v15598_v11, 16  ;;  %v6580_v13 = vsel %vm11386_vm13, %v6575_v27, %v6579_v43  ;;  %v10978_v10 = vld [vmem:[#allocation3 + $0x6c] sm:$0xff]  ;;  %v15707_v43 = vld [vmem:[#allocation3 + $0x78] sm:$0xf] }
 0x437   : > { %v6590_v58 = vsel %vm11386_vm13, %v6585_v21, %v6589_v41  ;;  %v7708_v38 = vrot.slane %v7706_v51, 4  ;;  %v7711_v23 = vrot.slane %v7709_v48, 5  ;;  %v8147_v32 = vunpack.c.l.b16 %v6580_v13 }
 0x438   : > { %v8148_v61 = vunpack.c.l.b16 %v6590_v58  ;;  %v5786_v33 = vpack.c.bf16 %v5750_v2, %v5750_v2  ;;  %v7717_v57 = vrot.slane %v7715_v55, 5  ;;  %v6011_v31 = vrot.slane %v15653_v29, 4 }
 0x439   : > { %v8856_v15 = vsel %vm5323_vm3, %v8824_v62, %v15639_v50  ;;  %v7712_v63 = vor.u32 %v7711_v23, %v7708_v38  ;;  %v7721_v11 = vrot.slane %v7719_v22, 4  ;;  %v7727_v37 = vrot.slane %v7725_v7, 5  ;;  %v8186_v62 = vpop.permute.xlu1 %8185 }
 0x43a   : > { %v8170_v5 = vpack.c.b16 %v8148_v61, %v8147_v32  ;;  %v6013_v40 = vshrl.u32 %v5786_v33, 16  ;;  %v8854_v0 = vsel %vm5323_vm3, %v8822_v54, %v15351_v6  ;;  %v6016_v59 = vshll.u32 %v5786_v33, 16  ;;  %v10979_v32 = vld [vmem:[#allocation3 + $0x78] sm:$0xff] }
 0x43b   : > { %v7713_v29 = vrot.slane %v7712_v63, 4  ;;  %v7722_v28 = vor.u32 %v7721_v11, %v7717_v57  ;;  %vm17674_vm2 = vcmask 261120   ;;  %v10581_v6 = vrot.slane %v15637_v46, 9  ;;  %v6254_v49 = vld [vmem:[#allocation3 + $0x98] sm:$0x1] }
 0x43c   : > { %v8886_v50 = vsel %vm17674_vm2, %v8854_v0, %v8422_v45  ;;  %8195 = vrot.lane.b32.xlu2 %v8170_v5, %s11206_s30  ;;  %v6015_v53 = vrot.slane %v6013_v40, 7  ;;  %8591 = vrot.lane.b32.xlu0 %v10978_v10, %s11210_s18  ;;  %v6848_v54 = vrot.slane %v15647_v1, 5  ;;  %v6851_v17 = vrot.slane %v15663_v12, 5  ;;  %vm17676_vm15 = vmmov %vm17674_vm2  ;;  %v15746_v10 = vld [vmem:[#allocation3 + $0x78] sm:$0xf] }
 0x43d   : > { %v7718_v47 = vsel %vm11386_vm13, %v7713_v29, %v7717_v57  ;;  %v7723_v3 = vrot.slane %v7722_v28, 4  ;;  %v10582_v45 = vrot.slane %v15707_v43, 9  ;;  %v6855_v41 = vrot.slane %v15709_v42, 5  ;;  %v15751_v40 = vld [vmem:[#allocation3 + $0x7c] sm:$0xf] }
 0x43e   : > { %v6018_v4 = vor.u32 %v6016_v59, %v6015_v53  ;;  %v6020_v36 = vrot.slane %v6015_v53, 4  ;;  %v6849_v46 = vsel %vm11373_vm10, %v10581_v6, %v6848_v54  ;;  %v6858_v1 = vrot.slane %v15714_v25, 5  ;;  %v15760_v29 = vld [vmem:[#allocation3 + $0x78] sm:$0xf]  ;;  %v15762_v28 = vld [vmem:[#allocation3 + $0x7c] sm:$0xf] }
 0x43f   : > { %v7728_v12 = vsel %vm11386_vm13, %v7723_v3, %v7727_v37  ;;  %v8623_v27 = vunpack.c.l.b16 %v7718_v47  ;;  %v6850_v21 = vrot.slane %v6848_v54, 4  ;;  %v6856_v51 = vsel %vm11373_vm10, %v10582_v45, %v6855_v41  ;;  %v15764_v54 = vld [vmem:[#allocation3 + $0x80] sm:$0x1] }
 0x440   : > { %v6019_v48 = vsel %vm12182_vm8, %v6011_v31, %v6018_v4  ;;  %v6255_v2 = vsel %vm11346_vm6, %v6020_v36, %v6254_v49  ;;  %v8624_v55 = vunpack.c.l.b16 %v7728_v12  ;;  %v6857_v22 = vrot.slane %v6855_v41, 4  ;;  %v10943_v31 = vld [vmem:[#allocation3 + $0x30] sm:$0xff]  ;;  %v15774_v4 = vpop.permute.xlu2 %8505  ;;  %v6925_v12 = vld [vmem:[#allocation3 + $0x80] sm:$0x1] }
 0x441   : > { %6253 = vst.msk [vmem:[#allocation3 + $0x94] sm:$0xf] %vm17671_vm14, %v6019_v48  ;;  %vm17675_vm0 = vcmask 326656   ;;  %v6852_v13 = vsel %vm11373_vm10, %v6850_v21, %v6851_v17  ;;  %v8227_v58 = vunpack.c.l.b16 %v6849_v46  ;;  %v8229_v38 = vunpack.c.l.b16 %v6856_v51 }
 0x442   : > { %v15739_v7 = vsel %vm17675_vm0, %v8886_v50, %v15594_v9  ;;  %6256 = vst [vmem:[#allocation3 + $0x98] sm:$0x1] %v6255_v2  ;;  %v8648_v23 = vpack.c.b16 %v8624_v55, %v8623_v27  ;;  %v8228_v61 = vunpack.c.l.b16 %v6852_v13  ;;  %v6859_v33 = vsel %vm11373_vm10, %v6857_v22, %v6858_v1  ;;  %v10964_v55 = vld [vmem:[#allocation3 + $0x78] sm:$0xff]  ;;  %vm17677_vm9 = vmmov %vm17675_vm0 }
 0x443   : > { %v8888_v57 = vsel %vm17676_vm15, %v8856_v15, %v8424_v20  ;;  %v8230_v63 = vunpack.c.l.b16 %v6859_v33  ;;  %v7137_v9 = vshrl.u32 %v15620_v34, 16  ;;  %v7140_v11 = vshll.u32 %v15620_v34, 16  ;;  %v8662_v34 = vpop.permute.xlu0 %8661 }
 0x444   : > { %v7146_v5 = vshll.u32 %v15625_v35, 16  ;;  %8671 = vrot.lane.b32.xlu1 %v8648_v23, %s11209_s17  ;;  %8593 = vrot.lane.b32.xlu2 %v10979_v32, %s11210_s18  ;;  %v8250_v37 = vpack.c.b16 %v8228_v61, %v8227_v58  ;;  %v15756_v0 = vsel %vm805_vm1, %v10943_v31, %v8186_v62  ;;  %v7150_v15 = vshrl.u32 %v15625_v35, 16 }
 0x445   : > { %v7156_v59 = vshll.u32 %v15635_v60, 16  ;;  %v7139_v50 = vrot.slane %v7137_v9, 4  ;;  %v7142_v53 = vrot.slane %v7140_v11, 5  ;;  %v10612_v17 = vrot.slane %v15746_v10, 9  ;;  %v15769_v60 = vpop.permute.xlu1 %8583 }
 0x446   : > { %v7148_v6 = vrot.slane %v7146_v5, 5  ;;  %8275 = vrot.lane.b32.xlu0 %v8250_v37, %s11204_s28  ;;  %v8251_v62 = vpack.c.b16 %v8230_v63, %v8229_v38  ;;  %v7152_v49 = vrot.slane %v7150_v15, 4  ;;  %v8027_v35 = vrot.slane %v15751_v40, 5 }
 0x447   : > { %v7158_v47 = vrot.slane %v7156_v59, 5  ;;  %v7143_v3 = vor.u32 %v7142_v53, %v7139_v50  ;;  %v7161_v45 = vshrl.u32 %v15760_v29, 16  ;;  %v7164_v41 = vshll.u32 %v15760_v29, 16 }
 0x448   : > { %v7170_v20 = vshll.u32 %v15762_v28, 16  ;;  %v7153_v36 = vor.u32 %v7152_v49, %v7148_v6  ;;  %v8029_v46 = vrot.slane %v8027_v35, 4  ;;  %v8030_v1 = vrot.slane %v15764_v54, 5 }
 0x449   : > { %v7174_v27 = vshrl.u32 %v15762_v28, 16  ;;  %v7144_v21 = vrot.slane %v7143_v3, 4  ;;  %v8028_v51 = vsel %vm11373_vm10, %v10612_v17, %v8027_v35  ;;  %v7163_v48 = vrot.slane %v7161_v45, 4 }
 0x44a   : > { %v7166_v2 = vrot.slane %v7164_v41, 5  ;;  %v7154_v22 = vrot.slane %v7153_v36, 4  ;;  %v8031_v13 = vsel %vm11373_vm10, %v8029_v46, %v8030_v1  ;;  %v7172_v58 = vrot.slane %v7170_v20, 5  ;;  %v15811_v20 = vld [vmem:[#allocation3 + $0x84] sm:$0xf]  ;;  %v15813_v36 = vpop.permute.xlu2 %8663 }
 0x44b   : > { %v7176_v38 = vrot.slane %v7174_v27, 4  ;;  %v7149_v23 = vsel %vm11386_vm13, %v7144_v21, %v7148_v6  ;;  %v8706_v32 = vunpack.c.l.b16 %v8031_v13  ;;  %v7180_v33 = vshll.u32 %v6925_v12, 16  ;;  %v15819_v27 = vld [vmem:[#allocation3 + $0x88] sm:$0xf] }
 0x44c   : > { %v7167_v61 = vor.u32 %v7166_v2, %v7163_v48  ;;  %8355 = vrot.lane.b32.xlu1 %v10964_v55, %s11205_s29  ;;  %8277 = vrot.lane.b32.xlu2 %v8251_v62, %s11204_s28  ;;  %v8920_v31 = vsel %vm17677_vm9, %v8888_v57, %v15711_v26  ;;  %v7159_v63 = vsel %vm11386_vm13, %v7154_v22, %v7158_v47  ;;  %v8705_v9 = vunpack.c.l.b16 %v8028_v51  ;;  %v15794_v62 = vpop.permute.xlu0 %8345  ;;  %v15825_v2 = vld [vmem:[#allocation3 + $0x8c] sm:$0x1] }
 0x44d   : > { %v7177_v11 = vor.u32 %v7176_v38, %v7172_v58  ;;  %v8385_v5 = vunpack.c.l.b16 %v7149_v23  ;;  %v8386_v37 = vunpack.c.l.b16 %v7159_v63  ;;  %v8950_v59 = vsel %vm5434_vm11, %v15739_v7, %v15641_v19  ;;  %v15805_v3 = vpop.permute.xlu1 %8267 }
 0x44e   : > { %v7168_v15 = vrot.slane %v7167_v61, 4  ;;  %v8729_v50 = vpack.c.b16 %v8706_v32, %v8705_v9  ;;  %v7182_v6 = vrot.slane %v7180_v33, 5  ;;  %v8982_v17 = vsel %vm5471_vm12, %v8950_v59, %v8662_v34 }
 0x44f   : > { %v7178_v53 = vrot.slane %v7177_v11, 4  ;;  %v8409_v26 = vpack.c.b16 %v8386_v37, %v8385_v5  ;;  %v9014_v49 = vsel %vm5508_vm4, %v8982_v17, %v15676_v56  ;;  %v10597_v47 = vrot.slane %v15760_v29, 9 }
 0x450   : > { %v7173_v57 = vsel %vm11386_vm13, %v7168_v15, %v7172_v58  ;;  %vm17678_vm2 = vcmask 588800   ;;  %v7441_v7 = vrot.slane %v15762_v28, 5  ;;  %v7444_v34 = vrot.slane %v6925_v12, 5 }
 0x451   : > { %v7183_v35 = vsel %vm11386_vm13, %v7178_v53, %v7182_v6  ;;  %v8387_v19 = vunpack.c.l.b16 %v7173_v57  ;;  %10830 = vmatmul.msk.bf16.gmra.mxu3 %vm17678_vm2, %v9014_v49  ;;  %8433 = vrot.lane.b32.xlu0 %v8409_v26, %s11208_s12  ;;  %v6592_v41 = vshrl.u32 %v15707_v43, 16  ;;  %v6595_v56 = vshll.u32 %v15707_v43, 16  ;;  %v15847_v57 = vld [vmem:[#allocation3 + $0x84] sm:$0xf]  ;;  %v5700_v49 = vpop.f32.mrf.mxu2  ;;  %vm17680_vm0 = vmmov %vm17678_vm2 }
 0x452   : > { %v8388_v45 = vunpack.c.l.b16 %v7183_v35  ;;  %v6601_v29 = vshll.u32 %v15709_v42, 16  ;;  %v7442_v46 = vsel %vm11373_vm10, %v10597_v47, %v7441_v7  ;;  %v7443_v28 = vrot.slane %v7441_v7, 4 }
 0x453   : > { %v6605_v1 = vshrl.u32 %v15709_v42, 16  ;;  %v6611_v12 = vshll.u32 %v15714_v25, 16  ;;  %v15823_v43 = vsel %vm5434_vm11, %v8920_v31, %v15769_v60  ;;  %v6594_v51 = vrot.slane %v6592_v41, 4 }
 0x454   : > { %v8410_v21 = vpack.c.b16 %v8388_v45, %v8387_v19  ;;  %v6597_v48 = vrot.slane %v6595_v56, 5  ;;  %8753 = vrot.lane.b32.xlu1 %v8729_v50, %s11211_s21  ;;  %v7445_v55 = vsel %vm11373_vm10, %v7443_v28, %v7444_v34  ;;  %v8467_v22 = vunpack.c.l.b16 %v7442_v46  ;;  %v8744_v50 = vpop.permute.xlu0 %8743  ;;  %v15852_v19 = vld [vmem:[#allocation3 + $0x88] sm:$0xf]  ;;  %v15857_v56 = vld [vmem:[#allocation3 + $0x8c] sm:$0x1] }
 0x455   : > { %v6603_v42 = vrot.slane %v6601_v29, 5  ;;  %v6607_v13 = vrot.slane %v6605_v1, 4  ;;  %v8468_v25 = vunpack.c.l.b16 %v7445_v55  ;;  %v10598_v38 = vrot.slane %v15811_v20, 9  ;;  %v15854_v7 = vpop.permute.xlu1 %8425  ;;  %v15859_v29 = vpop.permute.xlu2 %8347 }
 0x456   : > { %8435 = vrot.lane.b32.xlu2 %v8410_v21, %s11208_s12  ;;  %v6598_v58 = vor.u32 %v6597_v48, %v6594_v51  ;;  %v7448_v60 = vrot.slane %v15819_v27, 5  ;;  %v6613_v32 = vrot.slane %v6611_v12, 5  ;;  %v7451_v61 = vrot.slane %v15825_v2, 5 }
 0x457   : > { %v6608_v23 = vor.u32 %v6607_v13, %v6603_v42  ;;  %v7730_v33 = vshrl.u32 %v15746_v10, 16  ;;  %v8490_v31 = vpack.c.b16 %v8468_v25, %v8467_v22  ;;  %vm17679_vm14 = vcmask 130048  }
 0x458   : > { %v6599_v63 = vrot.slane %v6598_v58, 4  ;;  %v7449_v9 = vsel %vm11373_vm10, %v10598_v38, %v7448_v60  ;;  %v7450_v11 = vrot.slane %v7448_v60, 4  ;;  %v8826_v15 = vsel %vm17679_vm14, %v15756_v0, %v15683_v16  ;;  %vm17683_vm14 = vmmov %vm17680_vm0 }
 0x459   : > { %v6609_v5 = vrot.slane %v6608_v23, 4  ;;  %v8469_v37 = vunpack.c.l.b16 %v7449_v9  ;;  %v7732_v59 = vrot.slane %v7730_v33, 4  ;;  %8515 = vrot.lane.b32.xlu0 %v8490_v31, %s11207_s11  ;;  %v7733_v17 = vshll.u32 %v15746_v10, 16 }
 0x45a   : > { %v6604_v53 = vsel %vm11386_vm13, %v6599_v63, %v6603_v42  ;;  %v7452_v6 = vsel %vm11373_vm10, %v7450_v11, %v7451_v61  ;;  %v7739_v26 = vshll.u32 %v15751_v40, 16  ;;  %v7743_v35 = vshrl.u32 %v15751_v40, 16  ;;  %v587_v40 = vld [vmem:[#allocation3 + $0x9c] sm:$0x1]  ;;  %v15875_v11 = vld [vmem:[#allocation3 + $0x84] sm:$0xf] }
 0x45b   : > { %v6614_v16 = vsel %vm11386_vm13, %v6609_v5, %v6613_v32  ;;  %v8149_v0 = vunpack.c.l.b16 %v6604_v53  ;;  %v8470_v47 = vunpack.c.l.b16 %v7452_v6  ;;  %v7735_v45 = vrot.slane %v7733_v17, 5  ;;  %v15877_v5 = vld [vmem:[#allocation3 + $0x88] sm:$0xf]  ;;  %v15884_v17 = vld [vmem:[#allocation3 + $0x8c] sm:$0x1] }
 0x45c   : > { %v8150_v34 = vunpack.c.l.b16 %v6614_v16  ;;  %v7741_v41 = vrot.slane %v7739_v26, 5  ;;  %v7749_v10 = vshll.u32 %v15764_v54, 16  ;;  %v7745_v28 = vrot.slane %v7743_v35, 4 }
 0x45d   : > { %v8491_v46 = vpack.c.b16 %v8470_v47, %v8469_v37  ;;  %v7754_v1 = vshrl.u32 %v15847_v57, 16  ;;  %v7757_v12 = vshll.u32 %v15847_v57, 16  ;;  %v7736_v51 = vor.u32 %v7735_v45, %v7732_v59  ;;  %v5702_v47 = vpop.f32.mrf.mxu2 }
 0x45e   : > { %v8171_v21 = vpack.c.b16 %v8150_v34, %v8149_v0  ;;  %v7751_v48 = vrot.slane %v7749_v10, 5  ;;  %v7763_v55 = vshll.u32 %v15852_v19, 16  ;;  %v7746_v22 = vor.u32 %v7745_v28, %v7741_v41  ;;  %v10980_v10 = vld [vmem:[#allocation3 + $0x84] sm:$0xff] }
 0x45f   : > { %8517 = vrot.lane.b32.xlu2 %v8491_v46, %s11207_s11  ;;  %v7756_v54 = vrot.slane %v7754_v1, 4  ;;  %v7759_v42 = vrot.slane %v7757_v12, 5  ;;  %v7767_v13 = vshrl.u32 %v15852_v19, 16  ;;  %v7737_v25 = vrot.slane %v7736_v51, 4  ;;  %v15899_v1 = vpop.permute.xlu2 %8745 }
 0x460   : > { %8197 = vrot.lane.b32.xlu1 %v8171_v21, %s11206_s30  ;;  %v7765_v58 = vrot.slane %v7763_v55, 5  ;;  %v7773_v38 = vshll.u32 %v15857_v56, 16  ;;  %v588_v60 = vsel %vm11346_vm6, 0, %v587_v40  ;;  %v7747_v23 = vrot.slane %v7746_v22, 4 }
 0x461   : > { %v7760_v32 = vor.u32 %v7759_v42, %v7756_v54  ;;  %v7769_v61 = vrot.slane %v7767_v13, 4  ;;  %589 = vst [vmem:[#allocation3 + $0x9c] sm:$0x1] %v588_v60  ;;  %v5701_v33 = vadd.f32 %v15571_v39, %v5700_v49  ;;  %v8858_v31 = vsel %vm5323_vm3, %v8826_v15, %v15794_v62  ;;  %v641_v62 = vld [vmem:[#allocation3 + $0xa4] sm:$0x1]  ;;  %v15886_v15 = vpop.permute.xlu0 %8187 }
 0x462   : > { %v7742_v63 = vsel %vm11386_vm13, %v7737_v25, %v7741_v41  ;;  %v7775_v9 = vrot.slane %v7773_v38, 5  ;;  %v7752_v37 = vsel %vm11386_vm13, %v7747_v23, %v7751_v48  ;;  %v8984_v6 = vsel %vm5471_vm12, %v15823_v43, %v15813_v36  ;;  %v15894_v43 = vpop.permute.xlu1 %8507 }
 0x463   : > { %v7761_v59 = vrot.slane %v7760_v32, 4  ;;  %v7770_v53 = vor.u32 %v7769_v61, %v7765_v58  ;;  %v8625_v26 = vunpack.c.l.b16 %v7742_v63  ;;  %v8626_v49 = vunpack.c.l.b16 %v7752_v37 }
 0x464   : > { %v5751_v16 = vmax.f32 %v5701_v33, 0.0  ;;  %v9016_v0 = vsel %vm5508_vm4, %v8984_v6, %v8744_v50  ;;  %v10583_v45 = vrot.slane %v15875_v11, 9  ;;  %v6862_v36 = vrot.slane %v15877_v5, 5 }
 0x465   : > { %v7766_v35 = vsel %vm11386_vm13, %v7761_v59, %v7765_v58  ;;  %v7771_v34 = vrot.slane %v7770_v53, 4  ;;  %10831 = vmatmul.msk.bf16.gmra.mxu3 %vm17680_vm0, %v9016_v0  ;;  %v8649_v41 = vpack.c.b16 %v8626_v49, %v8625_v26  ;;  %v6865_v28 = vrot.slane %v15884_v17, 5  ;;  %v15922_v49 = vld [vmem:[#allocation3 + $0x90] sm:$0xf] }
 0x466   : > { %v5787_v46 = vpack.c.bf16 %v5751_v16, %v5751_v16  ;;  %v642_v50 = vsel %vm11358_vm7, 0, %v641_v62  ;;  %v6863_v40 = vsel %vm11373_vm10, %v10583_v45, %v6862_v36  ;;  %v6864_v21 = vrot.slane %v6862_v36, 4  ;;  %v10965_v16 = vld [vmem:[#allocation3 + $0x84] sm:$0xff] }
 0x467   : > { %v7776_v12 = vsel %vm11386_vm13, %v7771_v34, %v7775_v9  ;;  %643 = vst [vmem:[#allocation3 + $0xa4] sm:$0x1] %v642_v50  ;;  %v5703_v51 = vadd.f32 %v15571_v39, %v5702_v47  ;;  %8673 = vrot.lane.b32.xlu0 %v8649_v41, %s11209_s17  ;;  %v8627_v48 = vunpack.c.l.b16 %v7766_v35  ;;  %v15910_v54 = vsel %vm17676_vm15, %v8858_v31, %v15854_v7  ;;  %v15926_v34 = vld [vmem:[#allocation3 + $0x94] sm:$0xf] }
 0x468   : > { %8595 = vrot.lane.b32.xlu1 %v10980_v10, %s11210_s18  ;;  %v8628_v55 = vunpack.c.l.b16 %v7776_v12  ;;  %v6022_v22 = vshrl.u32 %v5787_v46, 16  ;;  %v6025_v42 = vshll.u32 %v5787_v46, 16  ;;  %v6866_v13 = vsel %vm11373_vm10, %v6864_v21, %v6865_v28  ;;  %v6257_v61 = vld [vmem:[#allocation3 + $0x9c] sm:$0xf] }
 0x469   : > { %v8231_v25 = vunpack.c.l.b16 %v6863_v40  ;;  %v5752_v58 = vmax.f32 %v5703_v51, 0.0  ;;  %v8232_v23 = vunpack.c.l.b16 %v6866_v13  ;;  %v10613_v32 = vrot.slane %v15847_v57, 9  ;;  %v15935_v40 = vld [vmem:[#allocation3 + $0x98] sm:$0x1]  ;;  %v5705_v51 = vpop.f32.mrf.mxu2  ;;  %v590_v13 = vld [vmem:[#allocation3 + $0xa8] sm:$0x1] }
 0x46a   : > { %v8650_v38 = vpack.c.b16 %v8628_v55, %v8627_v48  ;;  %v6024_v60 = vrot.slane %v6022_v22, 7  ;;  %v8034_v63 = vrot.slane %v15852_v19, 5  ;;  %v8037_v9 = vrot.slane %v15857_v56, 5  ;;  %v8586_v19 = vpop.permute.xlu0 %8585  ;;  %v8666_v10 = vpop.permute.xlu1 %8665 }
 0x46b   : > { %v5788_v33 = vpack.c.bf16 %v5752_v58, %v5752_v58  ;;  %v7185_v7 = vshrl.u32 %v15811_v20, 16  ;;  %v8252_v59 = vpack.c.b16 %v8232_v23, %v8231_v25  ;;  %v7188_v53 = vshll.u32 %v15811_v20, 16  ;;  %v15938_v48 = vpop.permute.xlu2 %8189  ;;  %v10966_v25 = vld [vmem:[#allocation3 + $0x90] sm:$0xff] }
 0x46c   : > { %8675 = vrot.lane.b32.xlu2 %v8650_v38, %s11209_s17  ;;  %v6027_v31 = vor.u32 %v6025_v42, %v6024_v60  ;;  %v6028_v37 = vrot.slane %v6024_v60, 4  ;;  %v8035_v57 = vsel %vm11373_vm10, %v10613_v32, %v8034_v63  ;;  %v8036_v26 = vrot.slane %v8034_v63, 4 }
 0x46d   : > { %v6030_v6 = vshrl.u32 %v5788_v33, 16  ;;  %v6033_v62 = vshll.u32 %v5788_v33, 16  ;;  %v8707_v0 = vunpack.c.l.b16 %v8035_v57  ;;  %v7187_v47 = vrot.slane %v7185_v7, 4 }
 0x46e   : > { %v6258_v56 = vsel %vm12121_vm5, %v6027_v31, %v6257_v61  ;;  %v7190_v35 = vrot.slane %v7188_v53, 5  ;;  %v8038_v45 = vsel %vm11373_vm10, %v8036_v26, %v8037_v9  ;;  %v7194_v36 = vshll.u32 %v15819_v27, 16  ;;  %v6261_v46 = vld [vmem:[#allocation3 + $0xa4] sm:$0x1] }
 0x46f   : > { %6259 = vst [vmem:[#allocation3 + $0x9c] sm:$0xf] %v6258_v56  ;;  %v6032_v20 = vrot.slane %v6030_v6, 7  ;;  %v7198_v41 = vshrl.u32 %v15819_v27, 16  ;;  %8357 = vrot.lane.b32.xlu0 %v10965_v16, %s11205_s29  ;;  %v8708_v28 = vunpack.c.l.b16 %v8038_v45  ;;  %v7204_v12 = vshll.u32 %v15825_v2, 16  ;;  %v10944_v16 = vld [vmem:[#allocation3 + $0x3c] sm:$0xff] }
 0x470   : > { %8279 = vrot.lane.b32.xlu1 %v8252_v59, %s11204_s28  ;;  %v7191_v50 = vor.u32 %v7190_v35, %v7187_v47  ;;  %v10614_v21 = vrot.slane %v15922_v49, 9  ;;  %v7196_v27 = vrot.slane %v7194_v36, 5  ;;  %v8041_v23 = vrot.slane %v15926_v34, 5 }
 0x471   : > { %v6035_v55 = vor.u32 %v6033_v62, %v6032_v20  ;;  %v6037_v22 = vrot.slane %v6032_v20, 4  ;;  %v7200_v42 = vrot.slane %v7198_v41, 4  ;;  %v8730_v58 = vpack.c.b16 %v8708_v28, %v8707_v0 }
 0x472   : > { %v7192_v38 = vrot.slane %v7191_v50, 4  ;;  %v7206_v60 = vrot.slane %v7204_v12, 5  ;;  %v8044_v33 = vrot.slane %v15935_v40, 5  ;;  %vm17681_vm9 = vcmask 60416   ;;  %v15965_v20 = vpop.permute.xlu0 %8269  ;;  %v15978_v50 = vld [vmem:[#allocation3 + $0x94] sm:$0xf]  ;;  %v15980_v12 = vpop.permute.xlu1 %8349 }
 0x473   : > { %v6036_v2 = vsel %vm12182_vm8, %v6028_v37, %v6035_v55  ;;  %v6262_v32 = vsel %vm11346_vm6, %v6037_v22, %v6261_v46  ;;  %v7201_v61 = vor.u32 %v7200_v42, %v7196_v27  ;;  %v8042_v9 = vsel %vm11373_vm10, %v10614_v21, %v8041_v23  ;;  %v15984_v55 = vld [vmem:[#allocation3 + $0x98] sm:$0x1]  ;;  %v15986_v22 = vld [vmem:[#allocation3 + $0x90] sm:$0xf] }
 0x474   : > { %8359 = vrot.lane.b32.xlu2 %v10966_v25, %s11205_s29  ;;  %6260 = vst.msk [vmem:[#allocation3 + $0xa0] sm:$0xf] %vm17681_vm9, %v6036_v2  ;;  %v7197_v63 = vsel %vm11386_vm13, %v7192_v38, %v7196_v27  ;;  %v8043_v7 = vrot.slane %v8041_v23, 4  ;;  %v591_v31 = vsel %vm11346_vm6, 0, %v590_v13  ;;  %v8709_v53 = vunpack.c.l.b16 %v8042_v9  ;;  %v15988_v27 = vpop.permute.xlu2 %8587 }
 0x475   : > { %6263 = vst [vmem:[#allocation3 + $0xa4] sm:$0x1] %v6262_v32  ;;  %v7202_v37 = vrot.slane %v7201_v61, 4  ;;  %v8389_v59 = vunpack.c.l.b16 %v7197_v63  ;;  %v5706_v6 = vadd.f32 %v15571_v39, %v5705_v51  ;;  %vm17682_vm2 = vcmask 326656  }
 0x476   : > { %v8045_v62 = vsel %vm11373_vm10, %v8043_v7, %v8044_v33  ;;  %592 = vst [vmem:[#allocation3 + $0xa8] sm:$0x1] %v591_v31  ;;  %v8922_v57 = vsel %vm17682_vm2, %v15910_v54, %v15774_v4  ;;  %v6616_v26 = vshrl.u32 %v15875_v11, 16  ;;  %v6619_v56 = vshll.u32 %v15875_v11, 16 }
 0x477   : > { %v7207_v0 = vsel %vm11386_vm13, %v7202_v37, %v7206_v60  ;;  %v8710_v47 = vunpack.c.l.b16 %v8045_v62  ;;  %v5753_v35 = vmax.f32 %v5706_v6, 0.0  ;;  %v8954_v39 = vsel %vm5434_vm11, %v8922_v57, %v8586_v19  ;;  %8755 = vrot.lane.b32.xlu0 %v8730_v58, %s11211_s21  ;;  %v15976_v19 = vld [vmem:[#allocation3 + $0x90] sm:$0xf]  ;;  %v16004_v37 = vld [vmem:[#allocation3 + $0x94] sm:$0xf] }
 0x478   : > { %v8390_v45 = vunpack.c.l.b16 %v7207_v0  ;;  %v8986_v36 = vsel %vm5471_vm12, %v8954_v39, %v8666_v10  ;;  %v6618_v4 = vrot.slane %v6616_v26, 4  ;;  %v6621_v54 = vrot.slane %v6619_v56, 5  ;;  %v16007_v57 = vld [vmem:[#allocation3 + $0x98] sm:$0x1]  ;;  %v644_v26 = vld [vmem:[#allocation3 + $0xb0] sm:$0x1] }
 0x479   : > { %v15971_v11 = vsel %vm805_vm1, %v10944_v16, %v15886_v15  ;;  %v5789_v41 = vpack.c.bf16 %v5753_v35, %v5753_v35  ;;  %v9018_v46 = vsel %vm5508_vm4, %v8986_v36, %v15899_v1  ;;  %v6625_v28 = vshll.u32 %v15877_v5, 16  ;;  %v5707_v1 = vpop.f32.mrf.mxu2 }
 0x47a   : > { %v8411_v21 = vpack.c.b16 %v8390_v45, %v8389_v59  ;;  %v8731_v10 = vpack.c.b16 %v8710_v47, %v8709_v53  ;;  %10832 = vmatmul.msk.bf16.gmra.mxu3 %vm17683_vm14, %v9018_v46  ;;  %v6622_v51 = vor.u32 %v6621_v54, %v6618_v4  ;;  %v6629_v15 = vshrl.u32 %v15877_v5, 16  ;;  %v16015_v4 = vpop.permute.xlu0 %8427  ;;  %v10945_v54 = vld [vmem:[#allocation3 + $0x48] sm:$0xff] }
 0x47b   : > { %v6039_v42 = vshrl.u32 %v5789_v41, 16  ;;  %v6042_v13 = vshll.u32 %v5789_v41, 16  ;;  %v6627_v25 = vrot.slane %v6625_v28, 5  ;;  %v6635_v58 = vshll.u32 %v15884_v17, 16 }
 0x47c   : > { %8437 = vrot.lane.b32.xlu1 %v8411_v21, %s11208_s12  ;;  %8757 = vrot.lane.b32.xlu2 %v8731_v10, %s11211_s21  ;;  %v6623_v38 = vrot.slane %v6622_v51, 4  ;;  %v6631_v60 = vrot.slane %v6629_v15, 4  ;;  %v10599_v5 = vrot.slane %v15976_v19, 9  ;;  %v7455_v23 = vrot.slane %v15978_v50, 5 }
 0x47d   : > { %v15995_v2 = vrot.slane %v6039_v42, 7  ;;  %v7458_v32 = vrot.slane %v15984_v55, 5  ;;  %v6640_v61 = vshrl.u32 %v15986_v22, 16  ;;  %v6643_v33 = vshll.u32 %v15986_v22, 16  ;;  %v6264_v63 = vld [vmem:[#allocation3 + $0xa8] sm:$0xf] }
 0x47e   : > { %v6628_v17 = vsel %vm11386_vm13, %v6623_v38, %v6627_v25  ;;  %v6632_v9 = vor.u32 %v6631_v60, %v6627_v25  ;;  %v7456_v7 = vsel %vm11373_vm10, %v10599_v5, %v7455_v23  ;;  %v7457_v31 = vrot.slane %v7455_v23, 4  ;;  %v16033_v60 = vld [vmem:[%s17402_s7] ss:$0 sm:$0xff] }
 0x47f   : > { %v6044_v59 = vor.u32 %v6042_v13, %v15995_v2  ;;  %v6637_v53 = vrot.slane %v6635_v58, 5  ;;  %v8151_v6 = vunpack.c.l.b16 %v6628_v17  ;;  %v8471_v62 = vunpack.c.l.b16 %v7456_v7  ;;  %v16022_v13 = vpop.permute.xlu1 %8747  ;;  %v593_v7 = vld [vmem:[#allocation3 + $0xb4] sm:$0x1] }
 0x480   : > { %v6633_v56 = vrot.slane %v6632_v9, 4  ;;  %v7459_v16 = vsel %vm11373_vm10, %v7457_v31, %v7458_v32  ;;  %v6642_v0 = vrot.slane %v6640_v61, 4  ;;  %v6645_v47 = vrot.slane %v6643_v33, 5  ;;  %v16036_v32 = vpop.permute.xlu2 %8271 }
 0x481   : > { %v6265_v35 = vsel %vm12121_vm5, %v6044_v59, %v6264_v63  ;;  %v8472_v39 = vunpack.c.l.b16 %v7459_v16  ;;  %v6649_v45 = vshll.u32 %v16004_v37, 16  ;;  %v6653_v36 = vshrl.u32 %v16004_v37, 16  ;;  %v5710_v23 = vpop.f32.mrf.mxu2 }
 0x482   : > { %6266 = vst [vmem:[#allocation3 + $0xa8] sm:$0xf] %v6265_v35  ;;  %v6638_v41 = vsel %vm11386_vm13, %v6633_v56, %v6637_v53  ;;  %v6646_v46 = vor.u32 %v6645_v47, %v6642_v0  ;;  %v6659_v28 = vshll.u32 %v16007_v57, 16  ;;  %v645_v21 = vsel %vm11358_vm7, 0, %v644_v26 }
 0x483   : > { %v8152_v10 = vunpack.c.l.b16 %v6638_v41  ;;  %v8492_v51 = vpack.c.b16 %v8472_v39, %v8471_v62  ;;  %v6651_v15 = vrot.slane %v6649_v45, 5  ;;  %v6655_v42 = vrot.slane %v6653_v36, 4  ;;  %646 = vst [vmem:[#allocation3 + $0xb0] sm:$0x1] %v645_v21 }
 0x484   : > { %v8789_v25 = vsel %vm805_vm1, %v10945_v54, %v15938_v48  ;;  %vm17684_vm0 = vcmask 130048   ;;  %v6045_v38 = vrot.slane %v15995_v2, 4  ;;  %v5708_v5 = vadd.f32 %v16033_v60, %v5707_v1 }
 0x485   : > { %v8828_v58 = vsel %vm17684_vm0, %v15971_v11, %v15805_v3  ;;  %v8172_v61 = vpack.c.b16 %v8152_v10, %v8151_v6  ;;  %8519 = vrot.lane.b32.xlu1 %v8492_v51, %s11207_s11  ;;  %v6647_v48 = vrot.slane %v6646_v46, 4  ;;  %v6656_v33 = vor.u32 %v6655_v42, %v6651_v15  ;;  %vm17685_vm15 = vmmov %vm17684_vm0  ;;  %v16054_v46 = vpop.permute.xlu0 %8509  ;;  %v10981_v42 = vld [vmem:[#allocation3 + $0x90] sm:$0xff] }
 0x486   : > { %v7778_v63 = vshrl.u32 %v15922_v49, 16  ;;  %v6661_v3 = vrot.slane %v6659_v28, 5  ;;  %v5754_v11 = vmax.f32 %v5708_v5, 0.0  ;;  %v7781_v17 = vshll.u32 %v15922_v49, 16 }
 0x487   : > { %v7787_v9 = vshll.u32 %v15926_v34, 16  ;;  %8199 = vrot.lane.b32.xlu0 %v8172_v61, %s11206_s30  ;;  %v6652_v1 = vsel %vm11386_vm13, %v6647_v48, %v6651_v15  ;;  %v6657_v31 = vrot.slane %v6656_v33, 4  ;;  %v7791_v53 = vshrl.u32 %v15926_v34, 16  ;;  %v16060_v33 = vpop.permute.xlu1 %8191 }
 0x488   : > { %v7780_v59 = vrot.slane %v7778_v63, 4  ;;  %v5790_v6 = vpack.c.bf16 %v5754_v11, %v5754_v11  ;;  %v7783_v62 = vrot.slane %v7781_v17, 5  ;;  %v7797_v56 = vshll.u32 %v15935_v40, 16 }
 0x489   : > { %v7789_v26 = vrot.slane %v7787_v9, 5  ;;  %v6662_v49 = vsel %vm11386_vm13, %v6657_v31, %v6661_v3  ;;  %v7793_v16 = vrot.slane %v7791_v53, 4  ;;  %v594_v0 = vsel %vm11346_vm6, 0, %v593_v7  ;;  %v16072_v7 = vld [vmem:[#allocation3 + $0x9c] sm:$0xf] }
 0x48a   : > { %v5711_v47 = vadd.f32 %v16033_v60, %v5710_v23  ;;  %v8153_v35 = vunpack.c.l.b16 %v6652_v1  ;;  %v8154_v39 = vunpack.c.l.b16 %v6662_v49  ;;  %v6047_v45 = vshrl.u32 %v5790_v6, 16  ;;  %595 = vst [vmem:[#allocation3 + $0xb4] sm:$0x1] %v594_v0  ;;  %v6268_v15 = vld [vmem:[#allocation3 + $0xb0] sm:$0x1] }
 0x48b   : > { %v7784_v36 = vor.u32 %v7783_v62, %v7780_v59  ;;  %v6050_v34 = vshll.u32 %v5790_v6, 16  ;;  %v8830_v54 = vsel %vm17685_vm15, %v8789_v25, %v15965_v20  ;;  %v7794_v41 = vor.u32 %v7793_v16, %v7789_v26  ;;  %v16074_v1 = vld [vmem:[#allocation3 + $0xa0] sm:$0xf]  ;;  %v16082_v6 = vld [vmem:[#allocation3 + $0xa4] sm:$0x1] }
 0x48c   : > { %v5755_v40 = vmax.f32 %v5711_v47, 0.0  ;;  %v8173_v28 = vpack.c.b16 %v8154_v39, %v8153_v35  ;;  %v6049_v21 = vrot.slane %v6047_v45, 7  ;;  %v8860_v51 = vsel %vm5323_vm3, %v8828_v58, %v15859_v29  ;;  %v5712_v29 = vpop.f32.mrf.mxu2  ;;  %v16066_v58 = vpop.permute.xlu2 %8429  ;;  %v647_v62 = vld [vmem:[#allocation3 + $0xbc] sm:$0x1] }
 0x48d   : > { %v7785_v10 = vrot.slane %v7784_v36, 4  ;;  %v7795_v5 = vrot.slane %v7794_v41, 4  ;;  %v7799_v23 = vrot.slane %v7797_v56, 5  ;;  %vm17686_vm9 = vcmask 261120   ;;  %v10982_v16 = vld [vmem:[#allocation3 + $0x9c] sm:$0xff] }
 0x48e   : > { %v5791_v61 = vpack.c.bf16 %v5755_v40, %v5755_v40  ;;  %v8892_v48 = vsel %vm17686_vm9, %v8860_v51, %v16015_v4  ;;  %8201 = vrot.lane.b32.xlu2 %v8173_v28, %s11206_s30  ;;  %v6052_v20 = vor.u32 %v6050_v34, %v6049_v21  ;;  %v6054_v25 = vrot.slane %v6049_v21, 4  ;;  %v16112_v51 = vpop.permute.xlu0 %8667  ;;  %vm17690_vm15 = vmmov %vm17686_vm9 }
 0x48f   : > { %v7790_v63 = vsel %vm11386_vm13, %v7785_v10, %v7789_v26  ;;  %v6869_v3 = vrot.slane %v16004_v37, 5  ;;  %8597 = vrot.lane.b32.xlu0 %v10981_v42, %s11210_s18  ;;  %v7800_v11 = vsel %vm11386_vm13, %v7795_v5, %v7799_v23  ;;  %v10584_v9 = vrot.slane %v15986_v22, 9 }
 0x490   : > { %v8629_v4 = vunpack.c.l.b16 %v7790_v63  ;;  %v6056_v17 = vshrl.u32 %v5791_v61, 16  ;;  %v6053_v37 = vsel %vm12182_vm8, %v6045_v38, %v6052_v20  ;;  %v6269_v31 = vsel %vm11346_vm6, %v6054_v25, %v6268_v15  ;;  %v16122_v63 = vld [vmem:[#allocation3 + $0xa0] sm:$0xf] }
 0x491   : > { %v8630_v59 = vunpack.c.l.b16 %v7800_v11  ;;  %v6059_v53 = vshll.u32 %v5791_v61, 16  ;;  %vm17687_vm2 = vcmask 60416   ;;  %v6271_v26 = vld [vmem:[#allocation3 + $0xb4] sm:$0xf]  ;;  %v6870_v56 = vsel %vm11373_vm10, %v10584_v9, %v6869_v3  ;;  %6270 = vst [vmem:[#allocation3 + $0xb0] sm:$0x1] %v6269_v31 }
 0x492   : > { %6267 = vst.msk [vmem:[#allocation3 + $0xac] sm:$0xf] %vm17687_vm2, %v6053_v37  ;;  %v16085_v22 = vrot.slane %v6056_v17, 7  ;;  %v6871_v2 = vrot.slane %v6869_v3, 4  ;;  %v5713_v49 = vadd.f32 %v16033_v60, %v5712_v29  ;;  %v6872_v0 = vrot.slane %v16007_v57, 5  ;;  %v16124_v3 = vpop.permute.xlu1 %8589  ;;  %v10967_v31 = vld [vmem:[#allocation3 + $0x9c] sm:$0xff]  ;;  %vm17689_vm0 = vmmov %vm17687_vm2 }
 0x493   : > { %v8651_v38 = vpack.c.b16 %v8630_v59, %v8629_v4  ;;  %v10585_v47 = vrot.slane %v16072_v7, 9  ;;  %v6876_v35 = vrot.slane %v16074_v1, 5  ;;  %v16095_v39 = vsel %vm5323_vm3, %v8830_v54, %v15980_v12  ;;  %v16127_v9 = vld [vmem:[#allocation3 + $0xa4] sm:$0x1] }
 0x494   : > { %v6061_v45 = vor.u32 %v6059_v53, %v16085_v22  ;;  %v6879_v36 = vrot.slane %v16082_v6, 5  ;;  %v648_v34 = vsel %vm11358_vm7, 0, %v647_v62  ;;  %v6873_v57 = vsel %vm11373_vm10, %v6871_v2, %v6872_v0  ;;  %v16129_v37 = vpop.permute.xlu2 %8511 }
 0x495   : > { %8677 = vrot.lane.b32.xlu1 %v8651_v38, %s11209_s17  ;;  %v6877_v41 = vsel %vm11373_vm10, %v10585_v47, %v6876_v35  ;;  %v6878_v40 = vrot.slane %v6876_v35, 4  ;;  %649 = vst [vmem:[#allocation3 + $0xbc] sm:$0x1] %v648_v34  ;;  %v5756_v28 = vmax.f32 %v5713_v49, 0.0  ;;  %vm17688_vm14 = vcmask 326656  }
 0x496   : > { %v6272_v12 = vsel %vm12121_vm5, %v6061_v45, %v6271_v26  ;;  %v16110_v54 = vsel %vm17688_vm14, %v8892_v48, %v15894_v43  ;;  %v8233_v21 = vunpack.c.l.b16 %v6870_v56  ;;  %v8234_v10 = vunpack.c.l.b16 %v6873_v57  ;;  %8599 = vrot.lane.b32.xlu2 %v10982_v16, %s11210_s18  ;;  %v16120_v48 = vld [vmem:[#allocation3 + $0x9c] sm:$0xf]  ;;  %vm17692_vm2 = vmmov %vm17688_vm14 }
 0x497   : > { %v6062_v15 = vrot.slane %v16085_v22, 4  ;;  %6273 = vst [vmem:[#allocation3 + $0xb4] sm:$0xf] %v6272_v12  ;;  %v6880_v42 = vsel %vm11373_vm10, %v6878_v40, %v6879_v36  ;;  %v5792_v5 = vpack.c.bf16 %v5756_v28, %v5756_v28  ;;  %v7209_v23 = vshrl.u32 %v15976_v19, 16  ;;  %v16136_v49 = vld [vmem:[#allocation3 + $0x9c] sm:$0xf]  ;;  %vm17693_vm14 = vmmov %vm17689_vm0 }
 0x498   : > { %v8253_v61 = vpack.c.b16 %v8234_v10, %v8233_v21  ;;  %v8235_v20 = vunpack.c.l.b16 %v6877_v41  ;;  %v8236_v25 = vunpack.c.l.b16 %v6880_v42  ;;  %v7212_v43 = vshll.u32 %v15976_v19, 16  ;;  %v6933_v40 = vld [vmem:[#allocation3 + $0xa0] sm:$0xf]  ;;  %v6934_v42 = vld [vmem:[#allocation3 + $0xa4] sm:$0x1] }
 0x499   : > { %v6064_v29 = vshrl.u32 %v5792_v5, 16  ;;  %v6067_v11 = vshll.u32 %v5792_v5, 16  ;;  %v7211_v4 = vrot.slane %v7209_v23, 4  ;;  %v7218_v17 = vshll.u32 %v15978_v50, 16  ;;  %v596_v23 = vld [vmem:[#allocation3 + $0xc0] sm:$0x1] }
 0x49a   : > { %8281 = vrot.lane.b32.xlu0 %v8253_v61, %s11204_s28  ;;  %v8254_v59 = vpack.c.b16 %v8236_v25, %v8235_v20  ;;  %v7214_v19 = vrot.slane %v7212_v43, 5  ;;  %v7222_v53 = vshrl.u32 %v15978_v50, 16  ;;  %v7228_v62 = vshll.u32 %v15984_v55, 16 }
 0x49b   : > { %v6066_v22 = vrot.slane %v6064_v29, 7  ;;  %v7220_v26 = vrot.slane %v7218_v17, 5  ;;  %v10615_v56 = vrot.slane %v16120_v48, 9  ;;  %v8048_v2 = vrot.slane %v16122_v63, 5  ;;  %v5715_v29 = vpop.f32.mrf.mxu2 }
 0x49c   : > { %v6275_v38 = vld [vmem:[#allocation3 + $0xbc] sm:$0x1]  ;;  %v7215_v16 = vor.u32 %v7214_v19, %v7211_v4  ;;  %v7224_v0 = vrot.slane %v7222_v53, 4  ;;  %v7230_v47 = vrot.slane %v7228_v62, 5  ;;  %v8051_v35 = vrot.slane %v16127_v9, 5 }
 0x49d   : > { %8361 = vrot.lane.b32.xlu1 %v10967_v31, %s11205_s29  ;;  %v6069_v45 = vor.u32 %v6067_v11, %v6066_v22  ;;  %v6071_v50 = vrot.slane %v6066_v22, 4  ;;  %v8049_v55 = vsel %vm11373_vm10, %v10615_v56, %v8048_v2  ;;  %v8050_v36 = vrot.slane %v8048_v2, 4  ;;  %v16160_v22 = vpop.permute.xlu1 %8273 }
 0x49e   : > { %v7216_v34 = vrot.slane %v7215_v16, 4  ;;  %v7225_v57 = vor.u32 %v7224_v0, %v7220_v26  ;;  %v8711_v41 = vunpack.c.l.b16 %v8049_v55  ;;  %v7233_v28 = vshrl.u32 %v16136_v49, 16  ;;  %8283 = vrot.lane.b32.xlu2 %v8254_v59, %s11204_s28  ;;  %v16162_v16 = vpop.permute.xlu2 %8669 }
 0x49f   : > { %v6070_v12 = vsel %vm12182_vm8, %v6062_v15, %v6069_v45  ;;  %v6276_v21 = vsel %vm11346_vm6, %v6071_v50, %v6275_v38  ;;  %v8052_v10 = vsel %vm11373_vm10, %v8050_v36, %v8051_v35  ;;  %v7236_v5 = vshll.u32 %v16136_v49, 16  ;;  %v16154_v15 = vpop.permute.xlu0 %8351 }
 0x4a0   : > { %6274 = vst.msk [vmem:[#allocation3 + $0xb8] sm:$0xf] %vm17689_vm0, %v6070_v12  ;;  %v7221_v61 = vsel %vm11386_vm13, %v7216_v34, %v7220_v26  ;;  %v7226_v20 = vrot.slane %v7225_v57, 4  ;;  %v8712_v25 = vunpack.c.l.b16 %v8052_v10  ;;  %v7235_v43 = vrot.slane %v7233_v28, 4 }
 0x4a1   : > { %6277 = vst [vmem:[#allocation3 + $0xbc] sm:$0x1] %v6276_v21  ;;  %v8391_v11 = vunpack.c.l.b16 %v7221_v61  ;;  %v7238_v4 = vrot.slane %v7236_v5, 5  ;;  %v7242_v17 = vshll.u32 %v6933_v40, 16  ;;  %v7246_v31 = vshrl.u32 %v6933_v40, 16 }
 0x4a2   : > { %v7231_v59 = vsel %vm11386_vm13, %v7226_v20, %v7230_v47  ;;  %v8732_v19 = vpack.c.b16 %v8712_v25, %v8711_v41  ;;  %v7252_v53 = vshll.u32 %v6934_v42, 16  ;;  %v597_v62 = vsel %vm11346_vm6, 0, %v596_v23 }
 0x4a3   : > { %v8392_v26 = vunpack.c.l.b16 %v7231_v59  ;;  %v7239_v56 = vor.u32 %v7238_v4, %v7235_v43  ;;  %v7244_v2 = vrot.slane %v7242_v17, 5  ;;  %v7248_v38 = vrot.slane %v7246_v31, 4  ;;  %598 = vst [vmem:[#allocation3 + $0xc0] sm:$0x1] %v597_v62  ;;  %v5717_v43 = vpop.f32.mrf.mxu2  ;;  %v16195_v62 = vld [vmem:[#allocation3 + $0xa8] sm:$0xf] }
 0x4a4   : > { %v8894_v0 = vsel %vm17690_vm15, %v16095_v39, %v16066_v58  ;;  %v5716_v47 = vadd.f32 %v16033_v60, %v5715_v29  ;;  %v8956_v35 = vsel %vm5434_vm11, %v16110_v54, %v15988_v27  ;;  %v7254_v34 = vrot.slane %v7252_v53, 5 }
 0x4a5   : > { %v8412_v45 = vpack.c.b16 %v8392_v26, %v8391_v11  ;;  %8759 = vrot.lane.b32.xlu1 %v8732_v19, %s11211_s21  ;;  %v7240_v50 = vrot.slane %v7239_v56, 4  ;;  %v7249_v55 = vor.u32 %v7248_v38, %v7244_v2  ;;  %v8988_v36 = vsel %vm5471_vm12, %v8956_v35, %v16112_v51  ;;  %v16197_v26 = vpop.permute.xlu1 %8431 }
 0x4a6   : > { %v5757_v57 = vmax.f32 %v5716_v47, 0.0  ;;  %v9020_v41 = vsel %vm5508_vm4, %v8988_v36, %v16022_v13  ;;  %v10600_v58 = vrot.slane %v16136_v49, 9  ;;  %vm17691_vm9 = vcmask 588800  }
 0x4a7   : > { %8439 = vrot.lane.b32.xlu0 %v8412_v45, %s11208_s12  ;;  %v7245_v27 = vsel %vm11386_vm13, %v7240_v50, %v7244_v2  ;;  %v7250_v39 = vrot.slane %v7249_v55, 4  ;;  %10833 = vmatmul.msk.bf16.gmra.mxu3 %vm17691_vm9, %v9020_v41  ;;  %v7462_v54 = vrot.slane %v6933_v40, 5  ;;  %v7465_v28 = vrot.slane %v6934_v42, 5  ;;  %v650_v42 = vld [vmem:[#allocation3 + $0xc8] sm:$0x1]  ;;  %v16188_v29 = vpop.permute.xlu0 %8749  ;;  %v16205_v50 = vpop.permute.xlu2 %8353  ;;  %vm17695_vm15 = vmmov %vm17691_vm9 }
 0x4a8   : > { %v8393_v12 = vunpack.c.l.b16 %v7245_v27  ;;  %v5793_v21 = vpack.c.bf16 %v5757_v57, %v5757_v57  ;;  %v6664_v51 = vshrl.u32 %v16072_v7, 16  ;;  %v6667_v10 = vshll.u32 %v16072_v7, 16  ;;  %v16203_v45 = vld [vmem:[#allocation3 + $0xac] sm:$0xf]  ;;  %v16216_v27 = vld [vmem:[#allocation3 + $0xb0] sm:$0x1] }
 0x4a9   : > { %v7255_v13 = vsel %vm11386_vm13, %v7250_v39, %v7254_v34  ;;  %v7463_v49 = vsel %vm11373_vm10, %v10600_v58, %v7462_v54  ;;  %v7464_v5 = vrot.slane %v7462_v54, 4  ;;  %v6673_v23 = vshll.u32 %v16074_v1, 16 }
 0x4aa   : > { %v8394_v61 = vunpack.c.l.b16 %v7255_v13  ;;  %v6073_v20 = vshrl.u32 %v5793_v21, 16  ;;  %v6076_v25 = vshll.u32 %v5793_v21, 16  ;;  %v8473_v40 = vunpack.c.l.b16 %v7463_v49  ;;  %v6278_v56 = vld [vmem:[#allocation3 + $0xc0] sm:$0xf] }
 0x4ab   : > { %v7466_v7 = vsel %vm11373_vm10, %v7464_v5, %v7465_v28  ;;  %v6666_v11 = vrot.slane %v6664_v51, 4  ;;  %v6669_v4 = vrot.slane %v6667_v10, 5  ;;  %v6675_v17 = vrot.slane %v6673_v23, 5 }
 0x4ac   : > { %v8413_v31 = vpack.c.b16 %v8394_v61, %v8393_v12  ;;  %v16192_v59 = vrot.slane %v6073_v20, 7  ;;  %v8474_v19 = vunpack.c.l.b16 %v7466_v7  ;;  %v6677_v53 = vshrl.u32 %v16074_v1, 16 }
 0x4ad   : > { %v6670_v2 = vor.u32 %v6669_v4, %v6666_v11  ;;  %v6683_v38 = vshll.u32 %v16082_v6, 16  ;;  %v651_v47 = vsel %vm11358_vm7, 0, %v650_v42  ;;  %v5718_v35 = vadd.f32 %v16033_v60, %v5717_v43 }
 0x4ae   : > { %v8926_v1 = vsel %vm17692_vm2, %v8894_v0, %v16054_v46  ;;  %8441 = vrot.lane.b32.xlu2 %v8413_v31, %s11208_s12  ;;  %v6078_v55 = vor.u32 %v6076_v25, %v16192_v59  ;;  %v8493_v36 = vpack.c.b16 %v8474_v19, %v8473_v40  ;;  %v6679_v34 = vrot.slane %v6677_v53, 4  ;;  %652 = vst [vmem:[#allocation3 + $0xc8] sm:$0x1] %v651_v47  ;;  %v16229_v25 = vld [vmem:[#allocation3 + $0xa8] sm:$0xf]  ;;  %v5720_v47 = vpop.f32.mrf.mxu2 }
 0x4af   : > { %v6079_v6 = vrot.slane %v16192_v59, 4  ;;  %v16214_v57 = vsel %vm5434_vm11, %v8926_v1, %v16124_v3  ;;  %v6671_v41 = vrot.slane %v6670_v2, 4  ;;  %v5758_v58 = vmax.f32 %v5718_v35, 0.0  ;;  %v16236_v11 = vpop.permute.xlu0 %8193  ;;  %v16242_v35 = vpop.permute.xlu1 %8513 }
 0x4b0   : > { %v6279_v46 = vsel %vm12121_vm5, %v6078_v55, %v6278_v56  ;;  %8521 = vrot.lane.b32.xlu0 %v8493_v36, %s11207_s11  ;;  %v6680_v0 = vor.u32 %v6679_v34, %v6675_v17  ;;  %v10601_v39 = vrot.slane %v16195_v62, 9  ;;  %v7469_v54 = vrot.slane %v16203_v45, 5  ;;  %v16244_v34 = vld [vmem:[#allocation3 + $0xac] sm:$0xf] }
 0x4b1   : > { %6280 = vst [vmem:[#allocation3 + $0xc0] sm:$0xf] %v6279_v46  ;;  %v6676_v28 = vsel %vm11386_vm13, %v6671_v41, %v6675_v17  ;;  %v6685_v3 = vrot.slane %v6683_v38, 5  ;;  %v5794_v12 = vpack.c.bf16 %v5758_v58, %v5758_v58  ;;  %v7802_v21 = vshrl.u32 %v16120_v48, 16  ;;  %v16246_v41 = vld [vmem:[#allocation3 + $0xb0] sm:$0x1]  ;;  %v16248_v58 = vpop.permute.xlu2 %8751 }
 0x4b2   : > { %v6681_v51 = vrot.slane %v6680_v0, 4  ;;  %v7470_v10 = vsel %vm11373_vm10, %v10601_v39, %v7469_v54  ;;  %v7471_v13 = vrot.slane %v7469_v54, 4  ;;  %v7472_v49 = vrot.slane %v16216_v27, 5 }
 0x4b3   : > { %v8155_v5 = vunpack.c.l.b16 %v6676_v28  ;;  %v6081_v23 = vshrl.u32 %v5794_v12, 16  ;;  %v6084_v61 = vshll.u32 %v5794_v12, 16  ;;  %v8475_v20 = vunpack.c.l.b16 %v7470_v10 }
 0x4b4   : > { %v6686_v40 = vsel %vm11386_vm13, %v6681_v51, %v6685_v3  ;;  %v7473_v42 = vsel %vm11373_vm10, %v7471_v13, %v7472_v49  ;;  %v7804_v43 = vrot.slane %v7802_v21, 4  ;;  %v7805_v7 = vshll.u32 %v16120_v48, 16  ;;  %v10946_v49 = vld [vmem:[#allocation3 + $0x54] sm:$0xff] }
 0x4b5   : > { %v8156_v4 = vunpack.c.l.b16 %v6686_v40  ;;  %v6083_v17 = vrot.slane %v6081_v23, 7  ;;  %v8476_v31 = vunpack.c.l.b16 %v7473_v42  ;;  %v7811_v59 = vshll.u32 %v16122_v63, 16  ;;  %v6282_v19 = vld [vmem:[#allocation3 + $0xc8] sm:$0x1] }
 0x4b6   : > { %v7807_v53 = vrot.slane %v7805_v7, 5  ;;  %v7815_v56 = vshrl.u32 %v16122_v63, 16  ;;  %v7821_v2 = vshll.u32 %v16127_v9, 16  ;;  %v7826_v38 = vshrl.u32 %v16229_v25, 16  ;;  %v599_v9 = vld [vmem:[#allocation3 + $0xcc] sm:$0x1] }
 0x4b7   : > { %v8174_v1 = vpack.c.b16 %v8156_v4, %v8155_v5  ;;  %v6086_v48 = vor.u32 %v6084_v61, %v6083_v17  ;;  %v6088_v55 = vrot.slane %v6083_v17, 4  ;;  %v8494_v36 = vpack.c.b16 %v8476_v31, %v8475_v20  ;;  %v16266_v7 = vpop.permute.xlu0 %8591 }
 0x4b8   : > { %v7808_v46 = vor.u32 %v7807_v53, %v7804_v43  ;;  %v7813_v0 = vrot.slane %v7811_v59, 5  ;;  %v7817_v63 = vrot.slane %v7815_v56, 4  ;;  %v7823_v39 = vrot.slane %v7821_v2, 5  ;;  %v16272_v56 = vld [vmem:[#allocation3 + $0xa8] sm:$0xf] }
 0x4b9   : > { %8203 = vrot.lane.b32.xlu1 %v8174_v1, %s11206_s30  ;;  %v6087_v54 = vsel %vm12182_vm8, %v6079_v6, %v6086_v48  ;;  %v6283_v28 = vsel %vm11346_vm6, %v6088_v55, %v6282_v19  ;;  %8523 = vrot.lane.b32.xlu2 %v8494_v36, %s11207_s11  ;;  %v7828_v3 = vrot.slane %v7826_v38, 4  ;;  %v7829_v12 = vshll.u32 %v16229_v25, 16  ;;  %v10983_v38 = vld [vmem:[#allocation3 + $0xa8] sm:$0xff] }
 0x4ba   : > { %6281 = vst.msk [vmem:[#allocation3 + $0xc4] sm:$0xf] %vm17693_vm14, %v6087_v54  ;;  %v7809_v21 = vrot.slane %v7808_v46, 4  ;;  %v7818_v51 = vor.u32 %v7817_v63, %v7813_v0  ;;  %v7835_v10 = vshll.u32 %v16244_v34, 16  ;;  %v7839_v13 = vshrl.u32 %v16244_v34, 16 }
 0x4bb   : > { %6284 = vst [vmem:[#allocation3 + $0xc8] sm:$0x1] %v6283_v28  ;;  %v7831_v5 = vrot.slane %v7829_v12, 5  ;;  %v7845_v6 = vshll.u32 %v16246_v41, 16  ;;  %v600_v23 = vsel %vm11346_vm6, 0, %v599_v9  ;;  %v5721_v61 = vadd.f32 %v16033_v60, %v5720_v47  ;;  %v16283_v9 = vpop.permute.xlu1 %8671 }
 0x4bc   : > { %v7814_v20 = vsel %vm11386_vm13, %v7809_v21, %v7813_v0  ;;  %v7819_v40 = vrot.slane %v7818_v51, 4  ;;  %v7837_v42 = vrot.slane %v7835_v10, 5  ;;  %v7841_v43 = vrot.slane %v7839_v13, 4  ;;  %601 = vst [vmem:[#allocation3 + $0xcc] sm:$0x1] %v600_v23 }
 0x4bd   : > { %v8792_v4 = vsel %vm805_vm1, %v10946_v49, %v16060_v33  ;;  %v7832_v17 = vor.u32 %v7831_v5, %v7828_v3  ;;  %v5759_v31 = vmax.f32 %v5721_v61, 0.0  ;;  %v8631_v19 = vunpack.c.l.b16 %v7814_v20  ;;  %v16277_v55 = vld [vmem:[#allocation3 + $0xac] sm:$0xf]  ;;  %v653_v63 = vld [vmem:[#allocation3 + $0xd4] sm:$0x1]  ;;  %v16292_v3 = vpop.permute.xlu2 %8195 }
 0x4be   : > { %v7824_v59 = vsel %vm11386_vm13, %v7819_v40, %v7823_v39  ;;  %v7842_v53 = vor.u32 %v7841_v43, %v7837_v42  ;;  %v8990_v48 = vsel %vm5471_vm12, %v16214_v57, %v16162_v16  ;;  %vm17694_vm0 = vcmask 130048   ;;  %v5722_v39 = vpop.f32.mrf.mxu2  ;;  %v16289_v28 = vld [vmem:[#allocation3 + $0xb0] sm:$0x1] }
 0x4bf   : > { %v8632_v2 = vunpack.c.l.b16 %v7824_v59  ;;  %v7833_v47 = vrot.slane %v7832_v17, 4  ;;  %v5795_v1 = vpack.c.bf16 %v5759_v31, %v5759_v31  ;;  %v8832_v33 = vsel %vm17694_vm0, %v8792_v4, %v16036_v32  ;;  %v16311_v4 = vld [vmem:[#allocation3 + $0xb4] sm:$0xf]  ;;  %v16315_v17 = vpop.permute.xlu0 %8275 }
 0x4c0   : > { %v7843_v36 = vrot.slane %v7842_v53, 4  ;;  %v7847_v46 = vrot.slane %v7845_v6, 5  ;;  %v9022_v0 = vsel %vm5508_vm4, %v8990_v48, %v16188_v29  ;;  %v10586_v32 = vrot.slane %v16272_v56, 9  ;;  %v16320_v53 = vld [vmem:[#allocation3 + $0xbc] sm:$0x1] }
 0x4c1   : > { %v8652_v54 = vpack.c.b16 %v8632_v2, %v8631_v19  ;;  %8601 = vrot.lane.b32.xlu1 %v10983_v38, %s11210_s18  ;;  %v7838_v16 = vsel %vm11386_vm13, %v7833_v47, %v7837_v42  ;;  %v6090_v57 = vshrl.u32 %v5795_v1, 16  ;;  %10834 = vmatmul.msk.bf16.gmra.mxu3 %vm17695_vm15, %v9022_v0  ;;  %v6093_v21 = vshll.u32 %v5795_v1, 16 }
 0x4c2   : > { %v7848_v29 = vsel %vm11386_vm13, %v7843_v36, %v7847_v46  ;;  %v8633_v12 = vunpack.c.l.b16 %v7838_v16  ;;  %v6883_v51 = vrot.slane %v16277_v55, 5  ;;  %v654_v49 = vsel %vm11358_vm7, 0, %v653_v63  ;;  %vm17697_vm7 = vmmov %vm17693_vm14  ;;  %v10968_v46 = vld [vmem:[#allocation3 + $0xa8] sm:$0xff] }
 0x4c3   : > { %8679 = vrot.lane.b32.xlu0 %v8652_v54, %s11209_s17  ;;  %v8634_v10 = vunpack.c.l.b16 %v7848_v29  ;;  %v16298_v13 = vrot.slane %v6090_v57, 7  ;;  %v5723_v5 = vadd.f32 %v16033_v60, %v5722_v39  ;;  %v8864_v6 = vsel %vm5323_vm3, %v8832_v33, %v16154_v15  ;;  %v6285_v23 = vld [vmem:[#allocation3 + $0xcc] sm:$0xf]  ;;  %655 = vst [vmem:[#allocation3 + $0xd4] sm:$0x1] %v654_v49  ;;  %v16337_v16 = vpop.permute.xlu1 %8355  ;;  %vm17702_vm14 = vmmov %vm17695_vm15 }
 0x4c4   : > { %v6884_v61 = vsel %vm11373_vm10, %v10586_v32, %v6883_v51  ;;  %v6885_v20 = vrot.slane %v6883_v51, 4  ;;  %v6886_v40 = vrot.slane %v16289_v28, 5  ;;  %vm17696_vm9 = vcmask 261120   ;;  %v16313_v60 = vld [vmem:[#allocation3 + $0xb8] sm:$0xf] }
 0x4c5   : > { %v8653_v42 = vpack.c.b16 %v8634_v10, %v8633_v12  ;;  %v6095_v43 = vor.u32 %v6093_v21, %v16298_v13  ;;  %v8896_v18 = vsel %vm17696_vm9, %v8864_v6, %v16197_v26  ;;  %v6096_v15 = vrot.slane %v16298_v13, 4  ;;  %v16344_v21 = vpop.permute.xlu2 %8593  ;;  %vm17703_vm15 = vmmov %vm17696_vm9 }
 0x4c6   : > { %v6887_v31 = vsel %vm11373_vm10, %v6885_v20, %v6886_v40  ;;  %v8237_v59 = vunpack.c.l.b16 %v6884_v61  ;;  %v5760_v19 = vmax.f32 %v5723_v5, 0.0  ;;  %v10616_v38 = vrot.slane %v16229_v25, 9  ;;  %v10969_v5 = vld [vmem:[#allocation3 + $0xb4] sm:$0xff] }
 0x4c7   : > { %8681 = vrot.lane.b32.xlu2 %v8653_v42, %s11209_s17  ;;  %v6286_v26 = vsel %vm12121_vm5, %v6095_v43, %v6285_v23  ;;  %v8238_v2 = vunpack.c.l.b16 %v6887_v31  ;;  %v8055_v47 = vrot.slane %v16244_v34, 5  ;;  %v8058_v48 = vrot.slane %v16246_v41, 5  ;;  %vm17698_vm5 = vmmov %vm17692_vm2 }
 0x4c8   : > { %6287 = vst [vmem:[#allocation3 + $0xcc] sm:$0xf] %v6286_v26  ;;  %v5796_v1 = vpack.c.bf16 %v5760_v19, %v5760_v19  ;;  %v10617_v33 = vrot.slane %v16311_v4, 9  ;;  %v8062_v36 = vrot.slane %v16313_v60, 5  ;;  %v8065_v25 = vrot.slane %v16320_v53, 5  ;;  %vm17699_vm2 = vmmov %vm17697_vm7 }
 0x4c9   : > { %6300 = vst.msk [vmem:[#allocation3 + $0xcc] sm:$0xf] %vm17697_vm7, %v17588_v44  ;;  %v8255_v0 = vpack.c.b16 %v8238_v2, %v8237_v59  ;;  %v8056_v8 = vsel %vm11373_vm10, %v10616_v38, %v8055_v47  ;;  %v8057_v63 = vrot.slane %v8055_v47, 4  ;;  %v7257_v12 = vshrl.u32 %v16195_v62, 16  ;;  %v16353_v38 = vpop.permute.xlu0 %8433  ;;  %vm17704_vm9 = vmmov %vm17698_vm5 }
 0x4ca   : > { %v6098_v34 = vshrl.u32 %v5796_v1, 16  ;;  %v6101_v39 = vshll.u32 %v5796_v1, 16  ;;  %v8713_v54 = vunpack.c.l.b16 %v8056_v8  ;;  %v8063_v41 = vsel %vm11373_vm10, %v10617_v33, %v8062_v36  ;;  %v6289_v6 = vld [vmem:[#allocation3 + $0xd4] sm:$0x1]  ;;  %vm17705_vm7 = vmmov %vm17694_vm0 }
 0x4cb   : > { %8363 = vrot.lane.b32.xlu0 %v10968_v46, %s11205_s29  ;;  %8285 = vrot.lane.b32.xlu1 %v8255_v0, %s11204_s28  ;;  %v8059_v57 = vsel %vm11373_vm10, %v8057_v63, %v8058_v48  ;;  %v8064_v32 = vrot.slane %v8062_v36, 4  ;;  %v8715_v29 = vunpack.c.l.b16 %v8063_v41  ;;  %v7260_v13 = vshll.u32 %v16195_v62, 16  ;;  %v16365_v0 = vpop.f32.mrf.mxu3 }
 0x4cc   : > { %v6100_v51 = vrot.slane %v6098_v34, 7  ;;  %v8714_v10 = vunpack.c.l.b16 %v8059_v57  ;;  %v7266_v49 = vshll.u32 %v16203_v45, 16  ;;  %v7259_v61 = vrot.slane %v7257_v12, 4  ;;  %v16381_v34 = vpop.permute.xlu1 %8753 }
 0x4cd   : > { %v8066_v23 = vsel %vm11373_vm10, %v8064_v32, %v8065_v25  ;;  %v7270_v20 = vshrl.u32 %v16203_v45, 16  ;;  %v7276_v40 = vshll.u32 %v16216_v27, 16  ;;  %v7262_v19 = vrot.slane %v7260_v13, 5 }
 0x4ce   : > { %v6103_v42 = vor.u32 %v6101_v39, %v6100_v51  ;;  %v6105_v43 = vrot.slane %v6100_v51, 4  ;;  %v8733_v31 = vpack.c.b16 %v8714_v10, %v8713_v54  ;;  %v8716_v59 = vunpack.c.l.b16 %v8066_v23 }
 0x4cf   : > { %8365 = vrot.lane.b32.xlu2 %v10969_v5, %s11205_s29  ;;  %v7268_v62 = vrot.slane %v7266_v49, 5  ;;  %v7272_v26 = vrot.slane %v7270_v20, 4  ;;  %v7278_v2 = vrot.slane %v7276_v40, 5  ;;  %v8928_v27 = vsel %vm17698_vm5, %v8896_v18, %v16129_v37  ;;  %v10947_v49 = vld [vmem:[#allocation3 + $0x60] sm:$0xff]  ;;  %vm17706_vm5 = vmmov %vm17702_vm14 }
 0x4d0   : > { %v6104_v47 = vsel %vm12182_vm8, %v6096_v15, %v6103_v42  ;;  %v6290_v45 = vsel %vm11346_vm6, %v6105_v43, %v6289_v6  ;;  %v8734_v1 = vpack.c.b16 %v8716_v59, %v8715_v29  ;;  %v7263_v48 = vor.u32 %v7262_v19, %v7259_v61  ;;  %vm17700_vm6 = vmmov %vm17699_vm2  ;;  %v16395_v42 = vld [vmem:[#allocation3 + $0xb4] sm:$0xf]  ;;  %v16397_v43 = vld [vmem:[#allocation3 + $0xb8] sm:$0xf] }
 0x4d1   : > { %6288 = vst.msk [vmem:[#allocation3 + $0xd0] sm:$0xf] %vm17699_vm2, %v6104_v47  ;;  %v7273_v33 = vor.u32 %v7272_v26, %v7268_v62  ;;  %v8960_v36 = vsel %vm5434_vm11, %v8928_v27, %v16266_v7  ;;  %v7850_v46 = vshrl.u32 %v16311_v4, 16  ;;  %v7853_v30 = vshll.u32 %v16311_v4, 16  ;;  %v10985_v47 = vld [vmem:[#allocation3 + $0xc0] sm:$0xff]  ;;  %vm17707_vm2 = vmmov %vm17703_vm15 }
 0x4d2   : > { %6291 = vst [vmem:[#allocation3 + $0xd4] sm:$0x1] %v6290_v45  ;;  %v8992_v14 = vsel %vm5471_vm12, %v8960_v36, %v16283_v9  ;;  %v7859_v15 = vshll.u32 %v16313_v60, 16  ;;  %v7863_v37 = vshrl.u32 %v16313_v60, 16  ;;  %v7264_v7 = vrot.slane %v7263_v48, 4 }
 0x4d3   : > { %6301 = vst.msk [vmem:[#allocation3 + $0xd0] sm:$0xf] %vm17700_vm6, %v17588_v44  ;;  %8761 = vrot.lane.b32.xlu0 %v8733_v31, %s11211_s21  ;;  %v7274_v18 = vrot.slane %v7273_v33, 4  ;;  %v9024_v8 = vsel %vm5508_vm4, %v8992_v14, %v16248_v58  ;;  %v7852_v63 = vrot.slane %v7850_v46, 4  ;;  %vm17701_vm8 = vcmask 57344   ;;  %v16399_v31 = vpop.permute.xlu0 %8515  ;;  %vm17708_vm6 = vmmov %vm17704_vm9 }
 0x4d4   : > { %6302 = vst.msk [vmem:[#allocation3 + $0xd4] sm:$0x1] %vm17701_vm8, %v17588_v44  ;;  %10835 = vmatmul.msk.bf16.gmra.mxu3 %vm17702_vm14, %v9024_v8  ;;  %v7855_v9 = vrot.slane %v7853_v30, 5  ;;  %v7861_v4 = vrot.slane %v7859_v15, 5  ;;  %v7865_v25 = vrot.slane %v7863_v37, 4  ;;  %v7869_v60 = vshll.u32 %v16320_v53, 16  ;;  %v16389_v44 = vpop.permute.xlu2 %8277  ;;  %vm17709_vm8 = vmmov %vm17694_vm0 }
 0x4d5   : > { %v7269_v39 = vsel %vm11386_vm13, %v7264_v7, %v7268_v62  ;;  %v7279_v54 = vsel %vm11386_vm13, %v7274_v18, %v7278_v2  ;;  %v6688_v58 = vshrl.u32 %v16272_v56, 16  ;;  %v6691_v41 = vshll.u32 %v16272_v56, 16  ;;  %v16408_v2 = vpop.f32.mrf.mxu3  ;;  %v16418_v30 = vld [vmem:[#allocation3 + $0xb4] sm:$0xf]  ;;  %v16420_v15 = vld [vmem:[#allocation3 + $0xb8] sm:$0xf]  ;;  %vm17710_vm14 = vmmov %vm17707_vm2 }
 0x4d6   : > { %v8395_v57 = vunpack.c.l.b16 %v7269_v39  ;;  %v8396_v32 = vunpack.c.l.b16 %v7279_v54  ;;  %v7856_v29 = vor.u32 %v7855_v9, %v7852_v63  ;;  %v7866_v12 = vor.u32 %v7865_v25, %v7861_v4  ;;  %v16424_v63 = vpop.permute.xlu1 %8197 }
 0x4d7   : > { %8763 = vrot.lane.b32.xlu2 %v8734_v1, %s11211_s21  ;;  %v7871_v53 = vrot.slane %v7869_v60, 5  ;;  %v6690_v51 = vrot.slane %v6688_v58, 4  ;;  %v6693_v10 = vrot.slane %v6691_v41, 5  ;;  %v6697_v13 = vshll.u32 %v16277_v55, 16  ;;  %v16410_v1 = vld [vmem:[#allocation3 + $0xbc] sm:$0x1] }
 0x4d8   : > { %v8414_v5 = vpack.c.b16 %v8396_v32, %v8395_v57  ;;  %v7857_v6 = vrot.slane %v7856_v29, 4  ;;  %v7867_v23 = vrot.slane %v7866_v12, 4  ;;  %v6701_v61 = vshrl.u32 %v16277_v55, 16  ;;  %v16428_v60 = vld [vmem:[#allocation3 + $0xbc] sm:$0x1] }
 0x4d9   : > { %v6694_v56 = vor.u32 %v6693_v10, %v6690_v51  ;;  %v6699_v20 = vrot.slane %v6697_v13, 5  ;;  %v6707_v40 = vshll.u32 %v16289_v28, 16  ;;  %v8795_v59 = vsel %vm805_vm1, %v10947_v49, %v16236_v11 }
 0x4da   : > { %8443 = vrot.lane.b32.xlu1 %v8414_v5, %s11208_s12  ;;  %v7862_v19 = vsel %vm11386_vm13, %v7857_v6, %v7861_v4  ;;  %v7872_v55 = vsel %vm11386_vm13, %v7867_v23, %v7871_v53  ;;  %v6703_v62 = vrot.slane %v6701_v61, 4  ;;  %v6712_v27 = vshrl.u32 %v16395_v42, 16  ;;  %v16436_v53 = vld [vmem:[#allocation3 + $0xc0] sm:$0xf] }
 0x4db   : > { %v8636_v26 = vunpack.c.l.b16 %v7872_v55  ;;  %v6695_v28 = vrot.slane %v6694_v56, 4  ;;  %v6715_v11 = vshll.u32 %v16395_v42, 16  ;;  %v6721_v48 = vshll.u32 %v16397_v43, 16  ;;  %v16442_v5 = vpop.permute.xlu0 %8673 }
 0x4dc   : > { %v6704_v45 = vor.u32 %v6703_v62, %v6699_v20  ;;  %v8834_v33 = vsel %vm17694_vm0, %v8795_v59, %v16160_v22  ;;  %v8635_v36 = vunpack.c.l.b16 %v7862_v19  ;;  %v6709_v46 = vrot.slane %v6707_v40, 5  ;;  %v16430_v39 = vpop.permute.xlu2 %8435  ;;  %v16454_v62 = vld [vmem:[#allocation3 + $0xc8] sm:$0x1]  ;;  %vm17711_vm0 = vmmov %vm17706_vm5 }
 0x4dd   : > { %v6725_v14 = vshrl.u32 %v16397_v43, 16  ;;  %v6700_v37 = vsel %vm11386_vm13, %v6695_v28, %v6699_v20  ;;  %v6714_v18 = vrot.slane %v6712_v27, 4  ;;  %v6717_v8 = vrot.slane %v6715_v11, 5  ;;  %v16446_v20 = vld [vmem:[#allocation3 + $0xc4] sm:$0xf]  ;;  %v16452_v55 = vpop.f32.mrf.mxu3 }
 0x4de   : > { %v6705_v7 = vrot.slane %v6704_v45, 4  ;;  %v8654_v9 = vpack.c.b16 %v8636_v26, %v8635_v36  ;;  %v6723_v22 = vrot.slane %v6721_v48, 5  ;;  %v6731_v25 = vshll.u32 %v16410_v1, 16  ;;  %v16461_v27 = vld [vmem:[#allocation3 + $0xc4] sm:$0xf] }
 0x4df   : > { %8605 = vrot.lane.b32.xlu2 %v10985_v47, %s11210_s18  ;;  %v6727_v4 = vrot.slane %v6725_v14, 4  ;;  %v6718_v58 = vor.u32 %v6717_v8, %v6714_v18  ;;  %v10602_v41 = vrot.slane %v16418_v30, 9  ;;  %v7476_v57 = vrot.slane %v16420_v15, 5  ;;  %v16470_v8 = vld [vmem:[#allocation3 + $0xc8] sm:$0x1] }
 0x4e0   : > { %v6710_v54 = vsel %vm11386_vm13, %v6705_v7, %v6709_v46  ;;  %v8157_v32 = vunpack.c.l.b16 %v6700_v37  ;;  %v7479_v49 = vrot.slane %v16428_v60, 5  ;;  %v6733_v61 = vrot.slane %v6731_v25, 5  ;;  %v16465_v46 = vld [vmem:[#allocation3 + $0xc0] sm:$0xf] }
 0x4e1   : > { %v8158_v29 = vunpack.c.l.b16 %v6710_v54  ;;  %v6728_v12 = vor.u32 %v6727_v4, %v6723_v22  ;;  %v6719_v51 = vrot.slane %v6718_v58, 4  ;;  %v7477_v10 = vsel %vm11373_vm10, %v10602_v41, %v7476_v57  ;;  %v16473_v54 = vpop.permute.xlu1 %8595 }
 0x4e2   : > { %8683 = vrot.lane.b32.xlu1 %v8654_v9, %s11209_s17  ;;  %v7478_v13 = vrot.slane %v7476_v57, 4  ;;  %v8866_v56 = vsel %vm5323_vm3, %v8834_v33, %v16205_v50  ;;  %v8477_v19 = vunpack.c.l.b16 %v7477_v10  ;;  %v7305_v26 = vshrl.u32 %v16436_v53, 16 }
 0x4e3   : > { %v8175_v6 = vpack.c.b16 %v8158_v29, %v8157_v32  ;;  %v6729_v23 = vrot.slane %v6728_v12, 4  ;;  %v6724_v40 = vsel %vm11386_vm13, %v6719_v51, %v6723_v22  ;;  %v7308_v45 = vshll.u32 %v16436_v53, 16 }
 0x4e4   : > { %v7480_v59 = vsel %vm11373_vm10, %v7478_v13, %v7479_v49  ;;  %v8159_v28 = vunpack.c.l.b16 %v6724_v40  ;;  %v7307_v48 = vrot.slane %v7305_v26, 4  ;;  %v7314_v33 = vshll.u32 %v16446_v20, 16  ;;  %v16477_v29 = vpop.permute.xlu2 %8517  ;;  %v10984_v13 = vld [vmem:[#allocation3 + $0xb4] sm:$0xff]  ;;  %v16489_v26 = vpop.permute.xlu0 %8357 }
 0x4e5   : > { %8205 = vrot.lane.b32.xlu0 %v8175_v6, %s11206_s30  ;;  %v6734_v50 = vsel %vm11386_vm13, %v6729_v23, %v6733_v61  ;;  %v8478_v47 = vunpack.c.l.b16 %v7480_v59  ;;  %v7318_v36 = vshrl.u32 %v16446_v20, 16  ;;  %v8898_v37 = vsel %vm17703_vm15, %v8866_v56, %v16353_v38 }
 0x4e6   : > { %v8160_v11 = vunpack.c.l.b16 %v6734_v50  ;;  %v7310_v7 = vrot.slane %v7308_v45, 5  ;;  %v7324_v18 = vshll.u32 %v16454_v62, 16  ;;  %v7316_v22 = vrot.slane %v7314_v33, 5 }
 0x4e7   : > { %v8495_v14 = vpack.c.b16 %v8478_v47, %v8477_v19  ;;  %v7320_v4 = vrot.slane %v7318_v36, 4  ;;  %v8069_v25 = vrot.slane %v16461_v27, 5  ;;  %v10618_v57 = vrot.slane %v16465_v46, 9  ;;  %v16497_v36 = vpop.f32.mrf.mxu3 }
 0x4e8   : > { %v8176_v9 = vpack.c.b16 %v8160_v11, %v8159_v28  ;;  %v7311_v58 = vor.u32 %v7310_v7, %v7307_v48  ;;  %v7326_v41 = vrot.slane %v7324_v18, 5  ;;  %v7281_v32 = vshrl.u32 %v16418_v30, 16 }
 0x4e9   : > { %v7321_v38 = vor.u32 %v7320_v4, %v7316_v22  ;;  %v8071_v12 = vrot.slane %v8069_v25, 4  ;;  %v8072_v51 = vrot.slane %v16470_v8, 5  ;;  %v7284_v10 = vshll.u32 %v16418_v30, 16 }
 0x4ea   : > { %8207 = vrot.lane.b32.xlu2 %v8176_v9, %s11206_s30  ;;  %8525 = vrot.lane.b32.xlu1 %v8495_v14, %s11207_s11  ;;  %v7312_v49 = vrot.slane %v7311_v58, 4  ;;  %v8070_v6 = vsel %vm11373_vm10, %v10618_v57, %v8069_v25  ;;  %v7283_v23 = vrot.slane %v7281_v32, 4  ;;  %v7290_v61 = vshll.u32 %v16420_v15, 16 }
 0x4eb   : > { %v7322_v56 = vrot.slane %v7321_v38, 4  ;;  %v8073_v40 = vsel %vm11373_vm10, %v8071_v12, %v8072_v51  ;;  %v7286_v59 = vrot.slane %v7284_v10, 5  ;;  %v7294_v19 = vshrl.u32 %v16420_v15, 16  ;;  %v16507_v38 = vpop.permute.xlu1 %8279  ;;  %v10948_v51 = vld [vmem:[#allocation3 + $0x6c] sm:$0xff] }
 0x4ec   : > { %v7317_v30 = vsel %vm11386_vm13, %v7312_v49, %v7316_v22  ;;  %v8718_v50 = vunpack.c.l.b16 %v8073_v40  ;;  %v7292_v28 = vrot.slane %v7290_v61, 5  ;;  %v7300_v47 = vshll.u32 %v16428_v60, 16  ;;  %v16511_v10 = vpop.permute.xlu2 %8675 }
 0x4ed   : > { %8603 = vrot.lane.b32.xlu0 %v10984_v13, %s11210_s18  ;;  %v7327_v45 = vsel %vm11386_vm13, %v7322_v56, %v7326_v41  ;;  %v8717_v11 = vunpack.c.l.b16 %v8070_v6  ;;  %v7287_v48 = vor.u32 %v7286_v59, %v7283_v23  ;;  %v7296_v33 = vrot.slane %v7294_v19, 4 }
 0x4ee   : > { %v8399_v15 = vunpack.c.l.b16 %v7317_v30  ;;  %v8400_v14 = vunpack.c.l.b16 %v7327_v45  ;;  %v8930_v22 = vsel %vm17704_vm9, %v8898_v37, %v16242_v35  ;;  %v7302_v25 = vrot.slane %v7300_v47, 5  ;;  %vm17712_vm9 = vmmov %vm17708_vm6 }
 0x4ef   : > { %v8735_v7 = vpack.c.b16 %v8718_v50, %v8717_v11  ;;  %v7288_v18 = vrot.slane %v7287_v48, 4  ;;  %v7297_v9 = vor.u32 %v7296_v33, %v7292_v28  ;;  %v7874_v60 = vshrl.u32 %v16465_v46, 16  ;;  %v16524_v30 = vpop.f32.mrf.mxu3  ;;  %v8756_v50 = vpop.permute.xlu0 %8755 }
 0x4f0   : > { %v8416_v4 = vpack.c.b16 %v8400_v14, %v8399_v15  ;;  %v7877_v57 = vshll.u32 %v16465_v46, 16  ;;  %v7883_v32 = vshll.u32 %v16461_v27, 16  ;;  %v7887_v37 = vshrl.u32 %v16461_v27, 16  ;;  %v10949_v15 = vld [vmem:[#allocation3 + $0x78] sm:$0xff] }
 0x4f1   : > { %v7293_v58 = vsel %vm11386_vm13, %v7288_v18, %v7292_v28  ;;  %v7298_v41 = vrot.slane %v7297_v9, 4  ;;  %v7876_v35 = vrot.slane %v7874_v60, 4  ;;  %v8962_v46 = vsel %vm5434_vm11, %v8930_v22, %v16344_v21 }
 0x4f2   : > { %8765 = vrot.lane.b32.xlu1 %v8735_v7, %s11211_s21  ;;  %8447 = vrot.lane.b32.xlu2 %v8416_v4, %s11208_s12  ;;  %v8397_v12 = vunpack.c.l.b16 %v7293_v58  ;;  %v7879_v49 = vrot.slane %v7877_v57, 5  ;;  %v7885_v6 = vrot.slane %v7883_v32, 5  ;;  %v7889_v61 = vrot.slane %v7887_v37, 4  ;;  %v10986_v32 = vld [vmem:[#allocation3 + $0xcc] sm:$0xff] }
 0x4f3   : > { %v7303_v13 = vsel %vm11386_vm13, %v7298_v41, %v7302_v25  ;;  %v7893_v56 = vshll.u32 %v16470_v8, 16  ;;  %v8994_v40 = vsel %vm5471_vm12, %v8962_v46, %v16442_v5  ;;  %v8798_v27 = vsel %vm805_vm1, %v10948_v51, %v16292_v3  ;;  %v16533_v3 = vld [vmem:[%s17404_s9] ss:$0 sm:$0xff]  ;;  %v10970_v5 = vld [vmem:[#allocation3 + $0xc0] sm:$0xff]  ;;  %v8438_v4 = vpop.permute.xlu1 %8437 }
 0x4f4   : > { %v8398_v23 = vunpack.c.l.b16 %v7303_v13  ;;  %v7880_v59 = vor.u32 %v7879_v49, %v7876_v35  ;;  %v9026_v19 = vsel %vm5508_vm4, %v8994_v40, %v16381_v34  ;;  %v8836_v21 = vsel %vm17705_vm7, %v8798_v27, %v16315_v17  ;;  %v16556_v58 = vpop.permute.xlu2 %8359  ;;  %v7535_v35 = vld [vmem:[#allocation3 + $0xd0] sm:$0xf]  ;;  %v7536_v27 = vld [vmem:[#allocation3 + $0xd4] sm:$0x1] }
 0x4f5   : > { %v7890_v47 = vor.u32 %v7889_v61, %v7885_v6  ;;  %10836 = vmatmul.msk.bf16.gmra.mxu3 %vm17706_vm5, %v9026_v19  ;;  %v6890_v8 = vrot.slane %v16397_v43, 5  ;;  %v7895_v11 = vrot.slane %v7893_v56, 5  ;;  %v8868_v17 = vsel %vm5323_vm3, %v8836_v21, %v16337_v16  ;;  %vm17714_vm5 = vmmov %vm17707_vm2 }
 0x4f6   : > { %v8415_v28 = vpack.c.b16 %v8398_v23, %v8397_v12  ;;  %v7881_v45 = vrot.slane %v7880_v59, 4  ;;  %v6893_v33 = vrot.slane %v16410_v1, 5  ;;  %v7483_v7 = vrot.slane %v16446_v20, 5 }
 0x4f7   : > { %v7891_v34 = vrot.slane %v7890_v47, 4  ;;  %v6892_v48 = vrot.slane %v6890_v8, 4  ;;  %v9126_v18 = vadd.f32 %v16533_v3, %v16365_v0  ;;  %v10587_v22 = vrot.slane %v16395_v42, 9  ;;  %v16572_v51 = vpop.f32.mrf.mxu3 }
 0x4f8   : > { %8445 = vrot.lane.b32.xlu0 %v8415_v28, %s11208_s12  ;;  %v7886_v43 = vsel %vm11386_vm13, %v7881_v45, %v7885_v6  ;;  %v9131_v25 = vadd.f32 %v16533_v3, %v16452_v55  ;;  %v8900_v1 = vsel %vm17707_vm2, %v8868_v17, %v16430_v39  ;;  %v8801_v60 = vsel %vm805_vm1, %v10949_v15, %v16424_v63  ;;  %v7534_v6 = vld [vmem:[#allocation3 + $0xcc] sm:$0xf]  ;;  %vm17715_vm2 = vmmov %vm17708_vm6 }
 0x4f9   : > { %v7896_v14 = vsel %vm11386_vm13, %v7891_v34, %v7895_v11  ;;  %v6894_v16 = vsel %vm11373_vm10, %v6892_v48, %v6893_v33  ;;  %v8637_v20 = vunpack.c.l.b16 %v7886_v43  ;;  %v8932_v0 = vsel %vm17708_vm6, %v8900_v1, %v16399_v31 }
 0x4fa   : > { %8367 = vrot.lane.b32.xlu1 %v10970_v5, %s11205_s29  ;;  %v8638_v9 = vunpack.c.l.b16 %v7896_v14  ;;  %v6891_v42 = vsel %vm11373_vm10, %v10587_v22, %v6890_v8  ;;  %v10603_v41 = vrot.slane %v16436_v53, 9  ;;  %v7485_v57 = vrot.slane %v7483_v7, 4  ;;  %v16574_v53 = vpop.permute.xlu0 %8199 }
 0x4fb   : > { %v8964_v39 = vsel %vm5434_vm11, %v8932_v0, %v16473_v54  ;;  %v8240_v12 = vunpack.c.l.b16 %v6894_v16  ;;  %v8838_v63 = vsel %vm17709_vm8, %v8801_v60, %v16389_v44  ;;  %v7486_v31 = vrot.slane %v16454_v62, 5  ;;  %vm17716_vm8 = vmmov %vm17711_vm0 }
 0x4fc   : > { %v8655_v55 = vpack.c.b16 %v8638_v9, %v8637_v20  ;;  %v16569_v37 = vsel %vm11373_vm10, %v10603_v41, %v7483_v7  ;;  %v16576_v13 = vmax.f32 %v9126_v18, 0.0  ;;  %v16578_v49 = vmax.f32 %v9131_v25, 0.0  ;;  %v8758_v14 = vpop.permute.xlu2 %8757 }
 0x4fd   : > { %v8239_v54 = vunpack.c.l.b16 %v6891_v42  ;;  %v8870_v44 = vsel %vm5323_vm3, %v8838_v63, %v16489_v26  ;;  %v16585_v46 = vsel %vm11373_vm10, %v7485_v57, %v7486_v31  ;;  %v8996_v23 = vsel %vm5471_vm12, %v8964_v39, %v16511_v10  ;;  %v16594_v10 = vpop.permute.xlu1 %8519 }
 0x4fe   : > { %v8902_v62 = vsel %vm17710_vm14, %v8870_v44, %v8438_v4  ;;  %v8076_v61 = vrot.slane %v7535_v35, 5  ;;  %v8479_v40 = vunpack.c.l.b16 %v16569_v37  ;;  %v7898_v59 = vshrl.u32 %v7534_v6, 16  ;;  %vm17717_vm14 = vmmov %vm17705_vm7 }
 0x4ff   : > { %v8256_v56 = vpack.c.b16 %v8240_v12, %v8239_v54  ;;  %v7901_v19 = vshll.u32 %v7534_v6, 16  ;;  %v9028_v26 = vsel %vm5508_vm4, %v8996_v23, %v8756_v50  ;;  %v10619_v21 = vrot.slane %v7534_v6, 9  ;;  %v16607_v60 = vpop.f32.mrf.mxu3 }
 0x500   : > { %8685 = vrot.lane.b32.xlu0 %v8655_v55, %s11209_s17  ;;  %v7907_v28 = vshll.u32 %v7535_v35, 16  ;;  %v7911_v47 = vshrl.u32 %v7535_v35, 16  ;;  %v8480_v8 = vunpack.c.l.b16 %v16585_v46  ;;  %v7900_v5 = vrot.slane %v7898_v59, 4 }
 0x501   : > { %v7903_v45 = vrot.slane %v7901_v19, 5  ;;  %v7917_v34 = vshll.u32 %v7536_v27, 16  ;;  %v8078_v11 = vrot.slane %v8076_v61, 4  ;;  %v8079_v48 = vrot.slane %v7536_v27, 5 }
 0x502   : > { %8607 = vrot.lane.b32.xlu1 %v10986_v32, %s11210_s18  ;;  %v7909_v17 = vrot.slane %v7907_v28, 5  ;;  %v7913_v43 = vrot.slane %v7911_v47, 4  ;;  %vm9254_vm15 = vcmask 1041409   ;;  %v9494_v50 = vrot.slane %v16576_v13, 7  ;;  %v8598_v20 = vpop.permute.xlu0 %8597 }
 0x503   : > { %v7904_v33 = vor.u32 %v7903_v45, %v7900_v5  ;;  %v9495_v15 = vrot.slane %v16578_v49, 6  ;;  %v7919_v18 = vrot.slane %v7917_v34, 5  ;;  %v9358_v9 = vrot.slane %v16576_v13, 3 }
 0x504   : > { %v7914_v7 = vor.u32 %v7913_v43, %v7909_v17  ;;  %v9359_v22 = vrot.slane %v16578_v49, 2  ;;  %v8077_v16 = vsel %vm11373_vm10, %v10619_v21, %v8076_v61  ;;  %v8934_v4 = vsel %vm17712_vm9, %v8902_v62, %v16477_v29  ;;  %v16640_v5 = vpop.permute.xlu2 %8201  ;;  %vm17719_vm9 = vmmov %vm17715_vm2 }
 0x505   : > { %10837 = vmatmul.msk.bf16.gmra.mxu3 %vm17711_vm0, %v9028_v26  ;;  %v7905_v25 = vrot.slane %v7904_v33, 4  ;;  %v9496_v1 = vsel %vm9254_vm15, %v9495_v15, %v9494_v50  ;;  %v9324_v41 = vrot.slane %v16576_v13, 2  ;;  %v9325_v57 = vrot.slane %v16578_v49, 1 }
 0x506   : > { %v7915_v0 = vrot.slane %v7914_v7, 4  ;;  %v9360_v42 = vsel %vm9254_vm15, %v9359_v22, %v9358_v9  ;;  %v9290_v55 = vrot.slane %v16576_v13, 1  ;;  %v9460_v29 = vrot.slane %v16576_v13, 6 }
 0x507   : > { %v7910_v32 = vsel %vm11386_vm13, %v7905_v25, %v7909_v17  ;;  %v9461_v39 = vrot.slane %v16578_v49, 5  ;;  %v8080_v12 = vsel %vm11373_vm10, %v8078_v11, %v8079_v48  ;;  %v9326_v37 = vsel %vm9254_vm15, %v9325_v57, %v9324_v41  ;;  %v8678_v59 = vpop.permute.xlu1 %8677  ;;  %v9142_v45 = vpop.f32.mrf.mxu3  ;;  %vm17713_vm10 = vmmov %vm17711_vm0  ;;  %v10950_v57 = vld [vmem:[#allocation3 + $0x84] sm:$0xff] }
 0x508   : > { %8287 = vrot.lane.b32.xlu0 %v8256_v56, %s11204_s28  ;;  %v7920_v35 = vsel %vm11386_vm13, %v7915_v0, %v7919_v18  ;;  %v8639_v63 = vunpack.c.l.b16 %v7910_v32  ;;  %v8966_v31 = vsel %vm5434_vm11, %v8934_v4, %v8598_v20  ;;  %v9291_v44 = vsel %vm9254_vm15, %v16578_v49, %v9290_v55  ;;  %vm17718_vm0 = vmmov %vm17714_vm5 }
 0x509   : > { %v8640_v54 = vunpack.c.l.b16 %v7920_v35  ;;  %v9462_v6 = vsel %vm9254_vm15, %v9461_v39, %v9460_v29  ;;  %v9426_v46 = vrot.slane %v16576_v13, 5  ;;  %v9427_v62 = vrot.slane %v16578_v49, 4 }
 0x50a   : > { %v9392_v24 = vrot.slane %v16576_v13, 4  ;;  %v9393_v52 = vrot.slane %v16578_v49, 3  ;;  %v9128_v23 = vadd.f32 %v16533_v3, %v16408_v2  ;;  %v9133_v61 = vadd.f32 %v16533_v3, %v16497_v36 }
 0x50b   : > { %v8496_v56 = vpack.c.b16 %v8480_v8, %v8479_v40  ;;  %v8656_v27 = vpack.c.b16 %v8640_v54, %v8639_v63  ;;  %v9428_v19 = vsel %vm9254_vm15, %v9427_v62, %v9426_v46  ;;  %v8719_v21 = vunpack.c.l.b16 %v8077_v16 }
 0x50c   : > { %v9394_v26 = vsel %vm9254_vm15, %v9393_v52, %v9392_v24  ;;  %v8720_v28 = vunpack.c.l.b16 %v8080_v12  ;;  %v8998_v47 = vsel %vm5471_vm12, %v8966_v31, %v8678_v59  ;;  %v9253_v2 = vrot.slane %v16578_v49, 7  ;;  %v8282_v17 = vpop.permute.xlu0 %8281  ;;  %v10951_v59 = vld [vmem:[#allocation3 + $0x90] sm:$0xff] }
 0x50d   : > { %8687 = vrot.lane.b32.xlu2 %v8656_v27, %s11209_s17  ;;  %v16642_v36 = vmax.f32 %v9128_v23, 0.0  ;;  %v16644_v40 = vmax.f32 %v9133_v61, 0.0  ;;  %v9030_v34 = vsel %vm5508_vm4, %v8998_v47, %v8758_v14  ;;  %v9136_v48 = vadd.f32 %v16533_v3, %v16524_v30 }
 0x50e   : > { %v9255_v8 = vsel %vm9254_vm15, %v9253_v2, %v16576_v13  ;;  %v8736_v11 = vpack.c.b16 %v8720_v28, %v8719_v21  ;;  %v8600_v13 = vpop.permute.xlu2 %8599  ;;  %vm9257_vm13 = vcmask 1042434   ;;  %v8804_v29 = vsel %vm805_vm1, %v10950_v57, %v16574_v53 }
 0x50f   : > { %v9782_v49 = vrot.slane %v16642_v36, 7  ;;  %v9783_v43 = vrot.slane %v16644_v40, 6  ;;  %v9209_v50 = vmax.f32 %v9136_v48, 0.0  ;;  %v9145_v15 = vpop.f32.mrf.mxu3  ;;  %v8362_v18 = vpop.permute.xlu1 %8361  ;;  %v9138_v63 = vadd.f32 %v16533_v3, %v16572_v51 }
 0x510   : > { %8527 = vrot.lane.b32.xlu0 %v8496_v56, %s11207_s11  ;;  %v9141_v53 = vadd.f32 %v16533_v3, %v16607_v60  ;;  %vm9260_vm6 = vcmask 1043459   ;;  %v9143_v21 = vadd.f32 %v16533_v3, %v9142_v45  ;;  %v9146_v48 = vadd.f32 %v16533_v3, %v9145_v15 }
 0x511   : > { %v9784_v33 = vsel %vm9254_vm15, %v9783_v43, %v9782_v49  ;;  %v9497_v14 = vrot.slane %v9209_v50, 5  ;;  %v9361_v7 = vrot.slane %v9209_v50, 1  ;;  %v16660_v22 = vsel %vm9257_vm13, %v9209_v50, %v9326_v37 }
 0x512   : > { %v9292_v4 = vrot.slane %v9209_v50, 7  ;;  %v9463_v25 = vrot.slane %v9209_v50, 4  ;;  %v9429_v32 = vrot.slane %v9209_v50, 3  ;;  %v9256_v55 = vrot.slane %v9209_v50, 6 }
 0x513   : > { %v16657_v30 = vsel %vm9257_vm13, %v9497_v14, %v9496_v1  ;;  %v16663_v16 = vsel %vm9257_vm13, %v9361_v7, %v9360_v42  ;;  %v9395_v1 = vrot.slane %v9209_v50, 2  ;;  %v8840_v37 = vsel %vm17705_vm7, %v8804_v29, %v16507_v38  ;;  %v10952_v29 = vld [vmem:[#allocation3 + $0x9c] sm:$0xff] }
 0x514   : > { %v16666_v20 = vsel %vm9257_vm13, %v9292_v4, %v9291_v44  ;;  %v16669_v0 = vsel %vm9257_vm13, %v9463_v25, %v9462_v6  ;;  %v16676_v42 = vsel %vm9257_vm13, %v9429_v32, %v9428_v19  ;;  %v9258_v35 = vsel %vm9257_vm13, %v9256_v55, %v9255_v8 }
 0x515   : > { %10838 = vmatmul.msk.bf16.gmra.mxu3 %vm17713_vm10, %v9030_v34  ;;  %v16679_v12 = vsel %vm9257_vm13, %v9395_v1, %v9394_v26  ;;  %v16686_v44 = vmax.f32 %v9138_v63, 0.0  ;;  %v8872_v6 = vsel %vm5323_vm3, %v8840_v37, %v16556_v58  ;;  %v16693_v52 = vmax.f32 %v9141_v53, 0.0  ;;  %vm17720_vm10 = vmmov %vm17716_vm8 }
 0x516   : > { %v16671_v41 = vpop.permute.xlu2 %8283  ;;  %v8807_v26 = vsel %vm805_vm1, %v10951_v59, %v16640_v5  ;;  %v16721_v50 = vmax.f32 %v9146_v48, 0.0  ;;  %vm9263_vm7 = vcmask 1044484   ;;  %v9544_v25 = vrot.slane %v16644_v40, 7 }
 0x517   : > { %v9147_v39 = vpop.f32.mrf.mxu3  ;;  %v8760_v31 = vpop.permute.xlu1 %8759  ;;  %v9785_v38 = vrot.slane %v16686_v44, 5  ;;  %v9259_v58 = vrot.slane %v16693_v52, 5  ;;  %v8842_v47 = vsel %vm17717_vm14, %v8807_v26, %v8282_v17  ;;  %v9613_v57 = vrot.slane %v16644_v40, 1 }
 0x518   : > { %8767 = vrot.lane.b32.xlu0 %v8736_v11, %s11211_s21  ;;  %v8874_v8 = vsel %vm5323_vm3, %v8842_v47, %v8362_v18  ;;  %v16714_v11 = vmax.f32 %v9143_v21, 0.0  ;;  %v9148_v4 = vadd.f32 %v16533_v3, %v9147_v39  ;;  %v9681_v32 = vrot.slane %v16644_v40, 3 }
 0x519   : > { %v8440_v9 = vpop.permute.xlu0 %8439  ;;  %v9786_v23 = vsel %vm9257_vm13, %v9785_v38, %v9784_v33  ;;  %v9647_v1 = vrot.slane %v16644_v40, 2  ;;  %v9578_v39 = vrot.slane %v16642_v36, 1  ;;  %v9612_v37 = vrot.slane %v16642_v36, 2 }
 0x51a   : > { %v8904_v46 = vsel %vm17714_vm5, %v8872_v6, %v8440_v9  ;;  %v9787_v33 = vrot.slane %v16714_v11, 4  ;;  %v9262_v9 = vrot.slane %v16721_v50, 4  ;;  %v9646_v53 = vrot.slane %v16642_v36, 3  ;;  %vm17721_vm5 = vmmov %vm17717_vm14 }
 0x51b   : > { %v8936_v51 = vsel %vm17715_vm2, %v8904_v46, %v16594_v10  ;;  %v9261_v10 = vsel %vm9260_vm6, %v9259_v58, %v9258_v35  ;;  %v9714_v6 = vrot.slane %v16642_v36, 5  ;;  %v9748_v46 = vrot.slane %v16642_v36, 6 }
 0x51c   : > { %v8968_v60 = vsel %vm5434_vm11, %v8936_v51, %v8600_v13  ;;  %v16724_v14 = vsel %vm9260_vm6, %v9787_v33, %v9786_v23  ;;  %v16736_v55 = vsel %vm9263_vm7, %v9262_v9, %v9261_v10  ;;  %v9579_v51 = vsel %vm9254_vm15, %v16644_v40, %v9578_v39 }
 0x51d   : > { %v9749_v38 = vrot.slane %v16644_v40, 5  ;;  %v9648_v58 = vsel %vm9254_vm15, %v9647_v1, %v9646_v53  ;;  %v9499_v47 = vrot.slane %v16693_v52, 4  ;;  %v9363_v48 = vsel %vm9260_vm6, %v16693_v52, %v16663_v16 }
 0x51e   : > { %v8442_v62 = vpop.permute.xlu2 %8441  ;;  %v9294_v33 = vrot.slane %v16693_v52, 6  ;;  %v9397_v16 = vrot.slane %v16693_v52, 1  ;;  %vm9266_vm2 = vcmask 1045509   ;;  %vm9269_vm14 = vcmask 1046534  }
 0x51f   : > { %v8906_v43 = vsel %vm17718_vm0, %v8874_v8, %v8442_v62  ;;  %v16748_v62 = vmax.f32 %v9148_v4, 0.0  ;;  %v9683_v8 = vrot.slane %v16686_v44, 2  ;;  %v9751_v4 = vrot.slane %v16686_v44, 4 }
 0x521   : > { %v9789_v1 = vrot.slane %v16748_v62, 3 }
 0x522   : > { %v8522_v54 = vpop.permute.xlu0 %8521 }
 0x523   : > { %v8938_v5 = vsel %vm17719_vm9, %v8906_v43, %v8522_v54  ;;  %v9680_v54 = vrot.slane %v16642_v36, 4  ;;  %v9649_v43 = vrot.slane %v16686_v44, 1 }
 0x526   : > { %v16708_v28 = vpop.permute.xlu2 %8523 }
 0x52a   : > { %v9150_v24 = vpop.f32.mrf.mxu3 }
 0x52b   : > { %v8204_v61 = vpop.permute.xlu1 %8203  ;;  %v9151_v35 = vadd.f32 %v16533_v3, %v9150_v24 }
 0x52c   : > { %v8810_v24 = vsel %vm805_vm1, %v10952_v29, %v8204_v61  ;;  %v9580_v61 = vrot.slane %v16686_v44, 7 }
 0x52d   : > { %v16761_v59 = vmax.f32 %v9151_v35, 0.0  ;;  %v8844_v26 = vsel %vm17721_vm5, %v8810_v24, %v16671_v41  ;;  %v9295_v35 = vsel %vm9260_vm6, %v9294_v33, %v16666_v20 }
 0x52e   : > { %v8682_v17 = vpop.permute.xlu2 %8681 }
 0x532   : > { %v9152_v2 = vpop.f32.mrf.mxu3 }
 0x533   : > { %v8602_v49 = vpop.permute.xlu1 %8601  ;;  %v9153_v41 = vadd.f32 %v16533_v3, %v9152_v2  ;;  %v9500_v2 = vsel %vm9260_vm6, %v9499_v47, %v16657_v30 }
 0x534   : > { %v8970_v45 = vsel %vm5434_vm11, %v8938_v5, %v8602_v49  ;;  %v9717_v5 = vrot.slane %v16686_v44, 3 }
 0x535   : > { %v8680_v56 = vpop.permute.xlu0 %8679  ;;  %v9002_v18 = vsel %vm5471_vm12, %v8970_v45, %v8682_v17  ;;  %v9328_v45 = vrot.slane %v16693_v52, 7  ;;  %v9465_v17 = vrot.slane %v16693_v52, 3  ;;  %v16808_v29 = vmax.f32 %v9153_v41, 0.0 }
 0x536   : > { %v9000_v27 = vsel %vm5471_vm12, %v8968_v60, %v8680_v56  ;;  %v9545_v56 = vsel %vm9254_vm15, %v9544_v25, %v16642_v36  ;;  %v9614_v60 = vsel %vm9254_vm15, %v9613_v57, %v9612_v37  ;;  %v9501_v57 = vrot.slane %v16721_v50, 3  ;;  %v16818_v37 = vpop.permute.xlu2 %8365 }
 0x537   : > { %v9032_v19 = vsel %vm5508_vm4, %v9000_v27, %v8760_v31  ;;  %v9715_v31 = vrot.slane %v16644_v40, 4  ;;  %v9682_v27 = vsel %vm9254_vm15, %v9681_v32, %v9680_v54  ;;  %v16778_v49 = vsel %vm9257_vm13, %v16686_v44, %v9614_v60 }
 0x538   : > { %10839 = vmatmul.msk.bf16.gmra.mxu3 %vm17716_vm8, %v9032_v19  ;;  %v9546_v19 = vrot.slane %v16686_v44, 6  ;;  %v16799_v9 = vsel %vm9257_vm13, %v9683_v8, %v9682_v27  ;;  %v16805_v32 = vsel %vm9257_vm13, %v9649_v43, %v9648_v58  ;;  %v9329_v30 = vsel %vm9260_vm6, %v9328_v45, %v16660_v22 }
 0x539   : > { %v16766_v10 = vsel %vm9254_vm15, %v9715_v31, %v9714_v6  ;;  %v16816_v39 = vsel %vm9260_vm6, %v9465_v17, %v16669_v0  ;;  %v9503_v31 = vrot.slane %v16761_v59, 2  ;;  %v9330_v54 = vrot.slane %v16721_v50, 6 }
 0x53a   : > { %v16828_v22 = vsel %vm9260_vm6, %v9397_v16, %v16679_v12  ;;  %v9502_v60 = vsel %vm9263_vm7, %v9501_v57, %v9500_v2  ;;  %v9332_v27 = vrot.slane %v16761_v59, 5  ;;  %vm9272_vm8 = vcmask 1047559  }
 0x53b   : > { %v9296_v8 = vrot.slane %v16721_v50, 5  ;;  %v9582_v16 = vrot.slane %v16714_v11, 6 }
 0x53d   : > { %v16712_v34 = vpop.permute.xlu0 %8363  ;;  %v16739_v63 = vpop.permute.xlu1 %8285 }
 0x53e   : > { %v8876_v20 = vsel %vm5323_vm3, %v8844_v26, %v16712_v34 }
 0x544   : > { %v9155_v13 = vpop.f32.mrf.mxu3 }
 0x545   : > { %v8762_v7 = vpop.permute.xlu0 %8761  ;;  %v9156_v21 = vadd.f32 %v16533_v3, %v9155_v13  ;;  %v9431_v13 = vrot.slane %v16693_v52, 2  ;;  %v9364_v52 = vrot.slane %v16721_v50, 7 }
 0x546   : > { %v9034_v15 = vsel %vm5508_vm4, %v9002_v18, %v8762_v7  ;;  %v16789_v7 = vsel %vm9257_vm13, %v9580_v61, %v9579_v51  ;;  %v16792_v18 = vsel %vm9257_vm13, %v9546_v19, %v9545_v56  ;;  %v9366_v51 = vrot.slane %v16761_v59, 6 }
 0x547   : > { %v16824_v53 = vsel %vm9260_vm6, %v9431_v13, %v16676_v42  ;;  %v16838_v56 = vsel %vm9263_vm7, %v9789_v1, %v16724_v14  ;;  %v9365_v12 = vsel %vm9263_vm7, %v9364_v52, %v9363_v48  ;;  %v9504_v14 = vsel %vm9266_vm2, %v9503_v31, %v9502_v60 }
 0x548   : > { %10840 = vmatmul.msk.bf16.gmra.mxu3 %vm17720_vm10, %v9034_v15  ;;  %v16794_v15 = vmax.f32 %v9156_v21, 0.0  ;;  %v9331_v19 = vsel %vm9263_vm7, %v9330_v54, %v9329_v30  ;;  %v9367_v47 = vsel %vm9266_vm2, %v9366_v51, %v9365_v12  ;;  %v9298_v13 = vrot.slane %v16761_v59, 4 }
 0x549   : > { %v9333_v41 = vsel %vm9266_vm2, %v9332_v27, %v9331_v19  ;;  %v9548_v52 = vrot.slane %v16714_v11, 5  ;;  %v9616_v1 = vrot.slane %v16714_v11, 7  ;;  %v9469_v12 = vrot.slane %v16761_v59, 1 }
 0x54a   : > { %v9505_v24 = vrot.slane %v16794_v15, 1  ;;  %v9368_v34 = vrot.slane %v16794_v15, 5  ;;  %v9334_v58 = vrot.slane %v16794_v15, 4 }
 0x54c   : > { %v16754_v23 = vpop.f32.mrf.mxu3  ;;  %v8444_v25 = vpop.permute.xlu1 %8443  ;;  %v9506_v21 = vsel %vm9269_vm14, %v9505_v24, %v9504_v14  ;;  %v9369_v33 = vsel %vm9269_vm14, %v9368_v34, %v9367_v47  ;;  %v9335_v17 = vsel %vm9269_vm14, %v9334_v58, %v9333_v41  ;;  %v9433_v24 = vrot.slane %v16721_v50, 1  ;;  %v10953_v47 = vld [vmem:[#allocation3 + $0xa8] sm:$0xff] }
 0x54d   : > { %v8908_v26 = vsel %vm17718_vm0, %v8876_v20, %v8444_v25  ;;  %v9300_v20 = vrot.slane %v16794_v15, 3  ;;  %v9158_v27 = vadd.f32 %v16533_v3, %v16754_v23  ;;  %v9436_v14 = vrot.slane %v16794_v15, 7 }
 0x54e   : > { %v8940_v31 = vsel %vm17719_vm9, %v8908_v26, %v16708_v28  ;;  %v8764_v28 = vpop.permute.xlu2 %8763 }
 0x554   : > { %v8684_v2 = vpop.permute.xlu1 %8683 }
 0x557   : > { %v16832_v6 = vpop.permute.xlu0 %8205  ;;  %v9160_v0 = vpop.f32.mrf.mxu3 }
 0x558   : > { %v9161_v42 = vadd.f32 %v16533_v3, %v9160_v0  ;;  %v9467_v0 = vrot.slane %v16721_v50, 2 }
 0x55a   : > { %v16846_v61 = vmax.f32 %v9161_v42, 0.0  ;;  %v9297_v42 = vsel %vm9263_vm7, %v9296_v8, %v9295_v35  ;;  %v9468_v23 = vsel %vm9263_vm7, %v9467_v0, %v16816_v39  ;;  %v8813_v39 = vsel %vm805_vm1, %v10953_v47, %v16832_v6 }
 0x55b   : > { %v9299_v58 = vsel %vm9266_vm2, %v9298_v13, %v9297_v42  ;;  %v16906_v13 = vmax.f32 %v9158_v27, 0.0  ;;  %v9402_v6 = vrot.slane %v16794_v15, 6  ;;  %v9399_v0 = vsel %vm9263_vm7, %v16721_v50, %v16828_v22 }
 0x55c   : > { %v9507_v48 = vsel %vm9272_vm8, %v16846_v61, %v9506_v21  ;;  %v9370_v43 = vrot.slane %v16846_v61, 4  ;;  %v9336_v45 = vrot.slane %v16846_v61, 3  ;;  %v9302_v60 = vrot.slane %v16846_v61, 2 }
 0x55d   : > { %9522 = vrot.lane.b32.xlu1 %v9507_v48, %s11209_s17  ;;  %v9472_v35 = vrot.slane %v16846_v61, 7  ;;  %v9438_v21 = vrot.slane %v16846_v61, 6  ;;  %v9301_v8 = vsel %vm9269_vm14, %v9300_v20, %v9299_v58  ;;  %v9434_v48 = vsel %vm9263_vm7, %v9433_v24, %v16824_v53 }
 0x55e   : > { %v9371_v25 = vsel %vm9272_vm8, %v9370_v43, %v9369_v33  ;;  %v9337_v57 = vsel %vm9272_vm8, %v9336_v45, %v9335_v17  ;;  %v9685_v43 = vrot.slane %v16714_v11, 1  ;;  %v9303_v41 = vsel %vm9272_vm8, %v9302_v60, %v9301_v8 }
 0x55f   : > { %v8604_v30 = vpop.permute.xlu0 %8603  ;;  %v9162_v54 = vpop.f32.mrf.mxu3  ;;  %9386 = vrot.lane.b32.xlu2 %v9371_v25, %s11205_s29  ;;  %9352 = vrot.lane.b32.xlu0 %v9337_v57, %s11204_s28  ;;  %v9470_v45 = vsel %vm9266_vm2, %v9469_v12, %v9468_v23  ;;  %v9435_v33 = vsel %vm9266_vm2, %v16761_v59, %v9434_v48  ;;  %v16902_v17 = vsel %vm9260_vm6, %v16714_v11, %v16805_v32  ;;  %v9400_v32 = vrot.slane %v16761_v59, 7 }
 0x560   : > { %v8972_v51 = vsel %vm5434_vm11, %v8940_v31, %v8604_v30  ;;  %v9163_v26 = vadd.f32 %v16533_v3, %v9162_v54  ;;  %v9471_v53 = vsel %vm9269_vm14, %v16794_v15, %v9470_v45  ;;  %v9583_v31 = vsel %vm9260_vm6, %v9582_v16, %v16789_v7  ;;  %v8526_v12 = vpop.permute.xlu1 %8525 }
 0x561   : > { %v9004_v34 = vsel %vm5471_vm12, %v8972_v51, %v8684_v2  ;;  %v9437_v2 = vsel %vm9269_vm14, %v9436_v14, %v9435_v33  ;;  %v9473_v57 = vsel %vm9272_vm8, %v9472_v35, %v9471_v53  ;;  %v9584_v54 = vrot.slane %v16748_v62, 5 }
 0x562   : > { %v9036_v19 = vsel %vm5508_vm4, %v9004_v34, %v8764_v28  ;;  %v16912_v25 = vmax.f32 %v9163_v26, 0.0  ;;  %v9439_v30 = vsel %vm9272_vm8, %v9438_v21, %v9437_v2  ;;  %v9550_v20 = vrot.slane %v16748_v62, 4 }
 0x563   : > { %10841 = vmatmul.msk.bf16.gmra.mxu3 %vm17720_vm10, %v9036_v19  ;;  %v9404_v24 = vrot.slane %v16846_v61, 5  ;;  %v9586_v51 = vrot.slane %v16808_v29, 4  ;;  %v9552_v42 = vrot.slane %v16808_v29, 3  ;;  %v8846_v60 = vsel %vm17721_vm5, %v8813_v39, %v16739_v63 }
 0x564   : > { %v9588_v7 = vrot.slane %v16906_v13, 3  ;;  %v9554_v16 = vrot.slane %v16906_v13, 2  ;;  %v9265_v28 = vrot.slane %v16761_v59, 3  ;;  %v9401_v27 = vsel %vm9266_vm2, %v9400_v32, %v9399_v0  ;;  %v8606_v59 = vpop.permute.xlu2 %8605 }
 0x565   : > { %9318 = vrot.lane.b32.xlu1 %v9303_v41, %s11206_s30  ;;  %v9590_v50 = vrot.slane %v16912_v25, 2  ;;  %v9549_v22 = vsel %vm9260_vm6, %v9548_v52, %v16792_v18  ;;  %v9556_v34 = vrot.slane %v16912_v25, 1  ;;  %v9403_v14 = vsel %vm9269_vm14, %v9402_v6, %v9401_v27 }
 0x566   : > { %v9585_v63 = vsel %vm9263_vm7, %v9584_v54, %v9583_v31  ;;  %v9551_v19 = vsel %vm9263_vm7, %v9550_v20, %v9549_v22  ;;  %v16945_v26 = vsel %vm9266_vm2, %v9265_v28, %v16736_v55  ;;  %v8878_v35 = vsel %vm5323_vm3, %v8846_v60, %v16818_v37 }
 0x567   : > { %9488 = vrot.lane.b32.xlu2 %v9473_v57, %s11210_s18  ;;  %9454 = vrot.lane.b32.xlu0 %v9439_v30, %s11207_s11  ;;  %v9405_v21 = vsel %vm9272_vm8, %v9404_v24, %v9403_v14  ;;  %v9587_v18 = vsel %vm9266_vm2, %v9586_v51, %v9585_v63  ;;  %v9553_v52 = vsel %vm9266_vm2, %v9552_v42, %v9551_v19  ;;  %v9618_v55 = vrot.slane %v16748_v62, 6 }
 0x568   : > { %v9589_v8 = vsel %vm9269_vm14, %v9588_v7, %v9587_v18  ;;  %v9555_v23 = vsel %vm9269_vm14, %v9554_v16, %v9553_v52  ;;  %v9620_v41 = vrot.slane %v16808_v29, 5  ;;  %v9791_v45 = vrot.slane %v16808_v29, 2  ;;  %v8766_v51 = vpop.permute.xlu1 %8765 }
 0x569   : > { %v9591_v48 = vsel %vm9272_vm8, %v9590_v50, %v9589_v8  ;;  %v9557_v37 = vsel %vm9272_vm8, %v9556_v34, %v9555_v23  ;;  %v9617_v33 = vsel %vm9260_vm6, %v9616_v1, %v16778_v49  ;;  %v9622_v39 = vrot.slane %v16906_v13, 4 }
 0x56a   : > { %v8446_v58 = vpop.permute.xlu0 %8445  ;;  %v9624_v53 = vrot.slane %v16912_v25, 3  ;;  %v9652_v2 = vrot.slane %v16748_v62, 7  ;;  %v9688_v30 = vrot.slane %v16808_v29, 7  ;;  %v9654_v32 = vrot.slane %v16808_v29, 6 }
 0x56b   : > { %v8910_v47 = vsel %vm17718_vm0, %v8878_v35, %v8446_v58  ;;  %v16975_v6 = vsel %vm9266_vm2, %v9791_v45, %v16838_v56  ;;  %v9619_v31 = vsel %vm9263_vm7, %v9618_v55, %v9617_v33  ;;  %v9690_v49 = vrot.slane %v16906_v13, 6 }
 0x56c   : > { %v8942_v57 = vsel %vm17719_vm9, %v8910_v47, %v8526_v12  ;;  %v9656_v1 = vrot.slane %v16906_v13, 5  ;;  %v9719_v54 = vrot.slane %v16714_v11, 2  ;;  %v9621_v20 = vsel %vm9266_vm2, %v9620_v41, %v9619_v31 }
 0x56d   : > { %9420 = vrot.lane.b32.xlu1 %v9405_v21, %s11208_s12  ;;  %v9686_v0 = vsel %vm9260_vm6, %v9685_v43, %v16799_v9  ;;  %v9692_v24 = vrot.slane %v16912_v25, 5  ;;  %v9658_v56 = vrot.slane %v16912_v25, 4  ;;  %v8974_v60 = vsel %vm5434_vm11, %v8942_v57, %v8606_v59 }
 0x56e   : > { %v9623_v12 = vsel %vm9269_vm14, %v9622_v39, %v9621_v20  ;;  %v9687_v7 = vsel %vm9263_vm7, %v16748_v62, %v9686_v0  ;;  %v9653_v16 = vsel %vm9263_vm7, %v9652_v2, %v16902_v17  ;;  %v9721_v58 = vrot.slane %v16748_v62, 1  ;;  %v8208_v17 = vpop.permute.xlu2 %8207 }
 0x56f   : > { %9606 = vrot.lane.b32.xlu2 %v9591_v48, %s11213_s26  ;;  %9572 = vrot.lane.b32.xlu0 %v9557_v37, %s11211_s21  ;;  %v9625_v9 = vsel %vm9272_vm8, %v9624_v53, %v9623_v12  ;;  %v9689_v43 = vsel %vm9266_vm2, %v9688_v30, %v9687_v7  ;;  %v9655_v27 = vsel %vm9266_vm2, %v9654_v32, %v9653_v16  ;;  %v9753_v19 = vrot.slane %v16714_v11, 3 }
 0x570   : > { %v9691_v22 = vsel %vm9269_vm14, %v9690_v49, %v9689_v43  ;;  %v9657_v34 = vsel %vm9269_vm14, %v9656_v1, %v9655_v27  ;;  %v9268_v59 = vrot.slane %v16794_v15, 2  ;;  %v9718_v35 = vsel %vm9257_vm13, %v9717_v5, %v16766_v10 }
 0x571   : > { %v9693_v14 = vsel %vm9272_vm8, %v9692_v24, %v9691_v22  ;;  %v9659_v63 = vsel %vm9272_vm8, %v9658_v56, %v9657_v34  ;;  %v9724_v21 = vrot.slane %v16906_v13, 7  ;;  %v9750_v11 = vsel %vm9254_vm15, %v9749_v38, %v9748_v46  ;;  %v10954_v38 = vld [vmem:[#allocation3 + $0xb4] sm:$0xff] }
 0x572   : > { %v8686_v42 = vpop.permute.xlu0 %8685  ;;  %v9755_v15 = vrot.slane %v16748_v62, 2  ;;  %v9720_v18 = vsel %vm9260_vm6, %v9719_v54, %v9718_v35  ;;  %v9726_v52 = vrot.slane %v16912_v25, 6  ;;  %v9757_v47 = vrot.slane %v16808_v29, 1 }
 0x573   : > { %v9006_v28 = vsel %vm5471_vm12, %v8974_v60, %v8686_v42  ;;  %v9270_v8 = vsel %vm9269_vm14, %v9268_v59, %v16945_v26  ;;  %v9722_v10 = vsel %vm9263_vm7, %v9721_v58, %v9720_v18  ;;  %v9752_v36 = vsel %vm9257_vm13, %v9751_v4, %v9750_v11  ;;  %v8368_v4 = vpop.permute.xlu1 %8367 }
 0x574   : > { %v9038_v50 = vsel %vm5508_vm4, %v9006_v28, %v8766_v51  ;;  %v9723_v40 = vsel %vm9266_vm2, %v16808_v29, %v9722_v10  ;;  %v9754_v46 = vsel %vm9260_vm6, %v9753_v19, %v9752_v36  ;;  %v9760_v62 = vrot.slane %v16912_v25, 7 }
 0x575   : > { %9640 = vrot.lane.b32.xlu1 %v9625_v9, %s11214_s19  ;;  %10842 = vmatmul.msk.bf16.gmra.mxu3 %vm17720_vm10, %v9038_v50  ;;  %v9725_v23 = vsel %vm9269_vm14, %v9724_v21, %v9723_v40  ;;  %v9756_v55 = vsel %vm9263_vm7, %v9755_v15, %v9754_v46  ;;  %v8816_v44 = vsel %vm805_vm1, %v10954_v38, %v8208_v17  ;;  %v9793_v45 = vrot.slane %v16906_v13, 1 }
 0x576   : > { %v9727_v26 = vsel %vm9272_vm8, %v9726_v52, %v9725_v23  ;;  %v9758_v48 = vsel %vm9266_vm2, %v9757_v47, %v9756_v55  ;;  %v8448_v33 = vpop.permute.xlu2 %8447  ;;  %v9271_v31 = vrot.slane %v16846_v61, 1 }
 0x577   : > { %9708 = vrot.lane.b32.xlu2 %v9693_v14, %s11215_s27  ;;  %9674 = vrot.lane.b32.xlu0 %v9659_v63, %s11216_s20  ;;  %v9759_v29 = vsel %vm9269_vm14, %v16906_v13, %v9758_v48  ;;  %v9794_v39 = vsel %vm9269_vm14, %v9793_v45, %v16975_v6 }
 0x578   : > { %v9761_v41 = vsel %vm9272_vm8, %v9760_v62, %v9759_v29  ;;  %v9165_v1 = vpop.f32.mrf.mxu3  ;;  %v17054_v54 = vsel %vm9272_vm8, %v9271_v31, %v9270_v8  ;;  %v17061_v24 = vsel %vm9272_vm8, %v16912_v25, %v9794_v39 }
 0x579   : > { %v9166_v42 = vadd.f32 %v16533_v3, %v9165_v1 }
 0x57a   : > { %v8288_v5 = vpop.permute.xlu0 %8287 }
 0x57b   : > { %v8848_v37 = vsel %vm17721_vm5, %v8816_v44, %v8288_v5  ;;  %v8608_v32 = vpop.permute.xlu1 %8607  ;;  %v9221_v12 = vmax.f32 %v9166_v42, 0.0 }
 0x57c   : > { %v8880_v53 = vsel %vm5323_vm3, %v8848_v37, %v8368_v4 }
 0x57d   : > { %9742 = vrot.lane.b32.xlu1 %v9727_v26, %s11217_s23  ;;  %v8912_v57 = vsel %vm17718_vm0, %v8880_v53, %v8448_v33  ;;  %v9508_v43 = vrot.slane %v9221_v12, 7  ;;  %v9372_v27 = vrot.slane %v9221_v12, 3  ;;  %v9304_v50 = vrot.slane %v9221_v12, 1 }
 0x57e   : > { %v8688_v13 = vpop.permute.xlu2 %8687  ;;  %v9338_v22 = vrot.slane %v9221_v12, 2  ;;  %v9474_v25 = vrot.slane %v9221_v12, 6  ;;  %v9440_v34 = vrot.slane %v9221_v12, 5  ;;  %v9406_v58 = vrot.slane %v9221_v12, 4 }
 0x57f   : > { %9776 = vrot.lane.b32.xlu0 %v9761_v41, %s17423_s25 }
 0x580   : > { %v9167_v56 = vpop.f32.mrf.mxu3 }
 0x581   : > { %v9168_v28 = vadd.f32 %v16533_v3, %v9167_v56 }
 0x582   : > { %v8528_v2 = vpop.permute.xlu0 %8527 }
 0x583   : > { %v8944_v30 = vsel %vm17719_vm9, %v8912_v57, %v8528_v2  ;;  %v9222_v15 = vmax.f32 %v9168_v28, 0.0 }
 0x584   : > { %v8976_v49 = vsel %vm5434_vm11, %v8944_v30, %v8608_v32 }
 0x585   : > { %v9008_v20 = vsel %vm5471_vm12, %v8976_v49, %v8688_v13  ;;  %v9592_v5 = vrot.slane %v9222_v15, 1  ;;  %v9626_v23 = vrot.slane %v9222_v15, 2  ;;  %v9694_v55 = vrot.slane %v9222_v15, 4 }
 0x586   : > { %v9660_v26 = vrot.slane %v9222_v15, 3  ;;  %v9728_v48 = vrot.slane %v9222_v15, 5  ;;  %v9796_v37 = vrot.slane %v9222_v15, 7  ;;  %v9762_v57 = vrot.slane %v9222_v15, 6 }
 0x588   : > { %v9170_v61 = vpop.f32.mrf.mxu3 }
 0x589   : > { %v9171_v60 = vadd.f32 %v16533_v3, %v9170_v61 }
 0x58a   : > { %v8768_v6 = vpop.permute.xlu0 %8767 }
 0x58b   : > { %v9040_v0 = vsel %vm5508_vm4, %v9008_v20, %v8768_v6  ;;  %v9223_v16 = vmax.f32 %v9171_v60, 0.0  ;;  %v17087_v6 = vld [vmem:[%s17404_s9] ss:$0 sm:$0xff] }
 0x58c   : > { %10843 = vmatmul.msk.bf16.gmra.mxu3 %vm17720_vm10, %v9040_v0 }
 0x58d   : > { %v9509_v17 = vrot.slane %v9223_v16, 6  ;;  %v9373_v14 = vrot.slane %v9223_v16, 2  ;;  %v9339_v63 = vrot.slane %v9223_v16, 1  ;;  %v9305_v19 = vsel %vm9254_vm15, %v9223_v16, %v9304_v50 }
 0x58e   : > { %v9475_v59 = vrot.slane %v9223_v16, 5  ;;  %v9441_v35 = vrot.slane %v9223_v16, 4  ;;  %v9407_v21 = vrot.slane %v9223_v16, 3  ;;  %v9274_v11 = vrot.slane %v9223_v16, 7 }
 0x58f   : > { %v9510_v18 = vsel %vm9254_vm15, %v9509_v17, %v9508_v43  ;;  %v9374_v52 = vsel %vm9254_vm15, %v9373_v14, %v9372_v27  ;;  %v9340_v47 = vsel %vm9254_vm15, %v9339_v63, %v9338_v22 }
 0x590   : > { %v9172_v51 = vpop.f32.mrf.mxu3  ;;  %v9476_v8 = vsel %vm9254_vm15, %v9475_v59, %v9474_v25  ;;  %v9442_v10 = vsel %vm9254_vm15, %v9441_v35, %v9440_v34  ;;  %v9408_v36 = vsel %vm9254_vm15, %v9407_v21, %v9406_v58  ;;  %v9275_v40 = vsel %vm9254_vm15, %v9274_v11, %v9221_v12 }
 0x591   : > { %v9173_v9 = vadd.f32 %v16533_v3, %v9172_v51 }
 0x593   : > { %v9224_v46 = vmax.f32 %v9173_v9, 0.0 }
 0x595   : > { %v9593_v44 = vsel %vm9254_vm15, %v9224_v46, %v9592_v5  ;;  %v9558_v4 = vrot.slane %v9224_v46, 7  ;;  %v9627_v29 = vrot.slane %v9224_v46, 1  ;;  %v9695_v41 = vrot.slane %v9224_v46, 3 }
 0x596   : > { %v9661_v45 = vrot.slane %v9224_v46, 2  ;;  %v9729_v33 = vrot.slane %v9224_v46, 4  ;;  %v9797_v39 = vrot.slane %v9224_v46, 6 }
 0x597   : > { %v9559_v53 = vsel %vm9254_vm15, %v9558_v4, %v9222_v15  ;;  %v9628_v2 = vsel %vm9254_vm15, %v9627_v29, %v9626_v23  ;;  %v9696_v30 = vsel %vm9254_vm15, %v9695_v41, %v9694_v55 }
 0x598   : > { %v9175_v7 = vpop.f32.mrf.mxu3  ;;  %v9662_v32 = vsel %vm9254_vm15, %v9661_v45, %v9660_v26  ;;  %v9730_v31 = vsel %vm9254_vm15, %v9729_v33, %v9728_v48  ;;  %v9798_v49 = vsel %vm9254_vm15, %v9797_v39, %v9796_v37 }
 0x599   : > { %v9176_v38 = vadd.f32 %v16533_v3, %v9175_v7  ;;  %v9763_v3 = vrot.slane %v9224_v46, 5 }
 0x59b   : > { %v9764_v1 = vsel %vm9254_vm15, %v9763_v3, %v9762_v57  ;;  %v9225_v20 = vmax.f32 %v9176_v38, 0.0  ;;  %vm17723_vm15 = vmmov %vm17721_vm5 }
 0x59d   : > { %v9511_v56 = vrot.slane %v9225_v20, 5  ;;  %v9375_v61 = vrot.slane %v9225_v20, 1  ;;  %v17091_v51 = vsel %vm9257_vm13, %v9225_v20, %v9340_v47  ;;  %v9306_v42 = vrot.slane %v9225_v20, 7 }
 0x59e   : > { %v9477_v60 = vrot.slane %v9225_v20, 4  ;;  %v9443_v12 = vrot.slane %v9225_v20, 3  ;;  %v9409_v7 = vrot.slane %v9225_v20, 2  ;;  %v9276_v16 = vrot.slane %v9225_v20, 6 }
 0x59f   : > { %v17094_v28 = vsel %vm9257_vm13, %v9511_v56, %v9510_v18  ;;  %v17097_v9 = vsel %vm9257_vm13, %v9375_v61, %v9374_v52  ;;  %v17100_v43 = vsel %vm9257_vm13, %v9306_v42, %v9305_v19 }
 0x5a0   : > { %v9177_v62 = vpop.f32.mrf.mxu3  ;;  %v17103_v27 = vsel %vm9257_vm13, %v9477_v60, %v9476_v8  ;;  %v17106_v50 = vsel %vm9257_vm13, %v9443_v12, %v9442_v10  ;;  %v17109_v22 = vsel %vm9257_vm13, %v9409_v7, %v9408_v36  ;;  %v9277_v25 = vsel %vm9257_vm13, %v9276_v16, %v9275_v40 }
 0x5a1   : > { %v9178_v0 = vadd.f32 %v17087_v6, %v9177_v62 }
 0x5a3   : > { %v9226_v34 = vmax.f32 %v9178_v0, 0.0 }
 0x5a5   : > { %v9594_v17 = vrot.slane %v9226_v34, 7  ;;  %v9560_v14 = vrot.slane %v9226_v34, 6  ;;  %v9629_v63 = vsel %vm9257_vm13, %v9226_v34, %v9628_v2  ;;  %v9697_v59 = vrot.slane %v9226_v34, 2 }
 0x5a6   : > { %v9663_v19 = vrot.slane %v9226_v34, 1  ;;  %v9731_v35 = vrot.slane %v9226_v34, 3  ;;  %v9799_v21 = vrot.slane %v9226_v34, 5  ;;  %v9765_v11 = vrot.slane %v9226_v34, 4 }
 0x5a7   : > { %v9595_v15 = vsel %vm9257_vm13, %v9594_v17, %v9593_v44  ;;  %v9561_v18 = vsel %vm9257_vm13, %v9560_v14, %v9559_v53  ;;  %v9698_v52 = vsel %vm9257_vm13, %v9697_v59, %v9696_v30 }
 0x5a8   : > { %v9664_v47 = vsel %vm9257_vm13, %v9663_v19, %v9662_v32  ;;  %v9732_v8 = vsel %vm9257_vm13, %v9731_v35, %v9730_v31  ;;  %v9800_v10 = vsel %vm9257_vm13, %v9799_v21, %v9798_v49  ;;  %v9766_v36 = vsel %vm9257_vm13, %v9765_v11, %v9764_v1  ;;  %vm17724_vm13 = vmmov %vm17718_vm0 }
 0x5a9   : > { %vm9843_vm0 = vcmask 850944  }
 0x5bb   : > { %v9180_v13 = vpop.f32.mrf.mxu3 }
 0x5bc   : > { %v9181_v62 = vadd.f32 %v17087_v6, %v9180_v13 }
 0x5be   : > { %v17121_v38 = vmax.f32 %v9181_v62, 0.0 }
 0x5c0   : > { %v9278_v26 = vrot.slane %v17121_v38, 5  ;;  %v9342_v19 = vrot.slane %v17121_v38, 7  ;;  %v9377_v11 = vsel %vm9260_vm6, %v17121_v38, %v17097_v9  ;;  %v9479_v9 = vrot.slane %v17121_v38, 3 }
 0x5c2   : > { %v9279_v48 = vsel %vm9260_vm6, %v9278_v26, %v9277_v25 }
 0x5c3   : > { %v9182_v58 = vpop.f32.mrf.mxu3 }
 0x5c4   : > { %v9183_v5 = vadd.f32 %v17087_v6, %v9182_v58  ;;  %v9513_v58 = vrot.slane %v17121_v38, 4 }
 0x5c6   : > { %v9228_v23 = vmax.f32 %v9183_v5, 0.0 }
 0x5c8   : > { %v9596_v44 = vrot.slane %v9228_v23, 6  ;;  %v9562_v4 = vrot.slane %v9228_v23, 5  ;;  %v9630_v29 = vrot.slane %v9228_v23, 7  ;;  %v9699_v37 = vrot.slane %v9228_v23, 1 }
 0x5c9   : > { %v17128_v45 = vsel %vm9260_vm6, %v9228_v23, %v9664_v47  ;;  %v9733_v33 = vrot.slane %v9228_v23, 2  ;;  %v9801_v39 = vrot.slane %v9228_v23, 4  ;;  %v9767_v31 = vrot.slane %v9228_v23, 3 }
 0x5ca   : > { %v17131_v53 = vsel %vm9260_vm6, %v9596_v44, %v9595_v15  ;;  %v17134_v2 = vsel %vm9260_vm6, %v9562_v4, %v9561_v18  ;;  %v17137_v57 = vsel %vm9260_vm6, %v9630_v29, %v9629_v63  ;;  %v17140_v3 = vsel %vm9260_vm6, %v9699_v37, %v9698_v52 }
 0x5cb   : > { %v9185_v40 = vpop.f32.mrf.mxu3  ;;  %v17143_v30 = vsel %vm9260_vm6, %v9733_v33, %v9732_v8  ;;  %v17146_v32 = vsel %vm9260_vm6, %v9801_v39, %v9800_v10  ;;  %v17151_v1 = vsel %vm9260_vm6, %v9767_v31, %v9766_v36  ;;  %v9514_v47 = vsel %vm9260_vm6, %v9513_v58, %v17094_v28 }
 0x5cc   : > { %v9186_v41 = vadd.f32 %v17087_v6, %v9185_v40  ;;  %v9308_v10 = vrot.slane %v17121_v38, 6  ;;  %v9343_v28 = vsel %vm9260_vm6, %v9342_v19, %v17091_v51  ;;  %v9445_v44 = vrot.slane %v17121_v38, 2 }
 0x5ce   : > { %v17148_v49 = vmax.f32 %v9186_v41, 0.0  ;;  %v9309_v39 = vsel %vm9260_vm6, %v9308_v10, %v17100_v43  ;;  %v9480_v43 = vsel %vm9260_vm6, %v9479_v9, %v17103_v27  ;;  %v9446_v27 = vsel %vm9260_vm6, %v9445_v44, %v17106_v50 }
 0x5d0   : > { %v9280_v20 = vrot.slane %v17148_v49, 4  ;;  %v9515_v17 = vrot.slane %v17148_v49, 3  ;;  %v9378_v59 = vrot.slane %v17148_v49, 7  ;;  %v9344_v18 = vrot.slane %v17148_v49, 6 }
 0x5d1   : > { %v9310_v31 = vrot.slane %v17148_v49, 5  ;;  %v9447_v58 = vrot.slane %v17148_v49, 1 }
 0x5d2   : > { %v9281_v0 = vsel %vm9263_vm7, %v9280_v20, %v9279_v48  ;;  %v9516_v36 = vsel %vm9263_vm7, %v9515_v17, %v9514_v47  ;;  %v9379_v23 = vsel %vm9263_vm7, %v9378_v59, %v9377_v11  ;;  %v9345_v48 = vsel %vm9263_vm7, %v9344_v18, %v9343_v28 }
 0x5d3   : > { %v9187_v46 = vpop.f32.mrf.mxu3 }
 0x5d4   : > { %v9188_v25 = vadd.f32 %v17087_v6, %v9187_v46 }
 0x5d6   : > { %v17166_v14 = vmax.f32 %v9188_v25, 0.0  ;;  %v9481_v25 = vrot.slane %v17148_v49, 2 }
 0x5d8   : > { %v9482_v47 = vsel %vm9263_vm7, %v9481_v25, %v9480_v43 }
 0x5e6   : > { %v9190_v55 = vpop.f32.mrf.mxu3 }
 0x5e7   : > { %v9191_v61 = vadd.f32 %v17087_v6, %v9190_v55 }
 0x5e9   : > { %v17156_v42 = vmax.f32 %v9191_v61, 0.0 }
 0x5eb   : > { %v9282_v60 = vrot.slane %v17156_v42, 3  ;;  %v9517_v63 = vrot.slane %v17156_v42, 2  ;;  %v9380_v15 = vrot.slane %v17156_v42, 6  ;;  %v9346_v8 = vrot.slane %v17156_v42, 5 }
 0x5ec   : > { %v9483_v59 = vrot.slane %v17156_v42, 1  ;;  %v9414_v28 = vrot.slane %v17156_v42, 7 }
 0x5ed   : > { %v9283_v16 = vsel %vm9266_vm2, %v9282_v60, %v9281_v0  ;;  %v9518_v5 = vsel %vm9266_vm2, %v9517_v63, %v9516_v36  ;;  %v9381_v26 = vsel %vm9266_vm2, %v9380_v15, %v9379_v23  ;;  %v9347_v37 = vsel %vm9266_vm2, %v9346_v8, %v9345_v48 }
 0x5ee   : > { %v9192_v13 = vpop.f32.mrf.mxu3  ;;  %v9411_v8 = vrot.slane %v17121_v38, 1  ;;  %v9564_v48 = vrot.slane %v17166_v14, 4 }
 0x5ef   : > { %v9193_v17 = vadd.f32 %v17087_v6, %v9192_v13 }
 0x5f0   : > { %v9412_v44 = vsel %vm9260_vm6, %v9411_v8, %v17109_v22  ;;  %vm17725_vm6 = vmmov %vm17719_vm9  ;;  %vm9846_vm9 = vcmask 916480  }
 0x5f1   : > { %v17237_v10 = vmax.f32 %v9193_v17, 0.0 }
 0x5f8   : > { %v9195_v56 = vpop.f32.mrf.mxu3 }
 0x5f9   : > { %v9196_v12 = vadd.f32 %v17087_v6, %v9195_v56  ;;  %v9312_v56 = vrot.slane %v17156_v42, 4 }
 0x5fb   : > { %v17162_v34 = vmax.f32 %v9196_v12, 0.0 }
 0x5fd   : > { %v9519_v21 = vrot.slane %v17162_v34, 1  ;;  %v9382_v40 = vrot.slane %v17162_v34, 5  ;;  %v9348_v46 = vrot.slane %v17162_v34, 4  ;;  %v9284_v61 = vrot.slane %v17162_v34, 2 }
 0x5fe   : > { %v9314_v12 = vrot.slane %v17162_v34, 3  ;;  %v9450_v11 = vrot.slane %v17162_v34, 7 }
 0x5ff   : > { %v9520_v55 = vsel %vm9269_vm14, %v9519_v21, %v9518_v5  ;;  %v9383_v51 = vsel %vm9269_vm14, %v9382_v40, %v9381_v26  ;;  %v9349_v33 = vsel %vm9269_vm14, %v9348_v46, %v9347_v37  ;;  %v17222_v19 = vsel %vm9269_vm14, %v9284_v61, %v9283_v16 }
 0x600   : > { %v9197_v7 = vpop.f32.mrf.mxu3  ;;  %v9311_v21 = vsel %vm9263_vm7, %v9310_v31, %v9309_v39  ;;  %v9598_v26 = vrot.slane %v17166_v14, 5  ;;  %v9566_v37 = vrot.slane %v17237_v10, 3 }
 0x601   : > { %v9313_v13 = vsel %vm9266_vm2, %v9312_v56, %v9311_v21 }
 0x602   : > { %v9315_v16 = vsel %vm9269_vm14, %v9314_v12, %v9313_v13  ;;  %v9599_v31 = vsel %vm9263_vm7, %v9598_v26, %v17131_v53  ;;  %v9632_v12 = vrot.slane %v17166_v14, 6 }
 0x60f   : > { %v9200_v35 = vpop.f32.mrf.mxu3 }
 0x610   : > { %v9201_v52 = vadd.f32 %v17087_v6, %v9200_v35  ;;  %v9198_v35 = vadd.f32 %v17087_v6, %v9197_v7  ;;  %v9448_v7 = vsel %vm9263_vm7, %v9447_v58, %v9446_v27  ;;  %v9666_v58 = vrot.slane %v17166_v14, 7 }
 0x611   : > { %v9449_v36 = vsel %vm9266_vm2, %v17156_v42, %v9448_v7  ;;  %v9413_v42 = vsel %vm9263_vm7, %v17148_v49, %v9412_v44 }
 0x612   : > { %v17186_v62 = vmax.f32 %v9201_v52, 0.0  ;;  %v17243_v40 = vmax.f32 %v9198_v35, 0.0  ;;  %v9451_v9 = vsel %vm9269_vm14, %v9450_v11, %v9449_v36  ;;  %v9633_v35 = vsel %vm9263_vm7, %v9632_v12, %v17137_v57 }
 0x613   : > { %v9735_v36 = vrot.slane %v17166_v14, 1 }
 0x614   : > { %v9521_v4 = vsel %vm9272_vm8, %v17186_v62, %v9520_v55  ;;  %v9384_v29 = vrot.slane %v17186_v62, 4  ;;  %v9350_v41 = vrot.slane %v17186_v62, 3  ;;  %v9316_v63 = vrot.slane %v17186_v62, 2 }
 0x615   : > { %9524 = vrot.lane.b32.xlu2 %v9521_v4, %s11209_s17  ;;  %v9486_v18 = vrot.slane %v17186_v62, 7  ;;  %v9452_v52 = vrot.slane %v17186_v62, 6  ;;  %v9416_v55 = vrot.slane %v17162_v34, 6  ;;  %v9418_v4 = vrot.slane %v17186_v62, 5 }
 0x616   : > { %v9385_v20 = vsel %vm9272_vm8, %v9384_v29, %v9383_v51  ;;  %v9351_v0 = vsel %vm9272_vm8, %v9350_v41, %v9349_v33  ;;  %v9317_v50 = vsel %vm9272_vm8, %v9316_v63, %v9315_v16  ;;  %v9600_v29 = vrot.slane %v17237_v10, 4 }
 0x617   : > { %v9202_v60 = vpop.f32.mrf.mxu3  ;;  %9388 = vrot.lane.b32.xlu0 %v9385_v20, %s11205_s29  ;;  %9354 = vrot.lane.b32.xlu1 %v9351_v0, %s11204_s28  ;;  %v9453_v23 = vsel %vm9272_vm8, %v9452_v52, %v9451_v9  ;;  %v9602_v41 = vrot.slane %v17243_v40, 3  ;;  %v9415_v51 = vsel %vm9266_vm2, %v9414_v28, %v9413_v42  ;;  %v9565_v20 = vsel %vm9263_vm7, %v9564_v48, %v17134_v2  ;;  %s17722_s28 = smov 112   ;;  %s10848_s29 = sshll.u32 %s17736_s13, 4 }
 0x618   : > { %v9203_v15 = vadd.f32 %v17087_v6, %v9202_v60  ;;  %v9484_v6 = vsel %vm9266_vm2, %v9483_v59, %v9482_v47  ;;  %v9417_v22 = vsel %vm9269_vm14, %v9416_v55, %v9415_v51  ;;  %v9601_v0 = vsel %vm9266_vm2, %v9600_v29, %v9599_v31 }
 0x619   : > { %v9485_v46 = vsel %vm9269_vm14, %v17162_v34, %v9484_v6  ;;  %v9568_v34 = vrot.slane %v17243_v40, 2  ;;  %v9419_v49 = vsel %vm9272_vm8, %v9418_v4, %v9417_v22  ;;  %v9567_v56 = vsel %vm9266_vm2, %v9566_v37, %v9565_v20 }
 0x61a   : > { %v17249_v5 = vmax.f32 %v9203_v15, 0.0  ;;  %v9487_v38 = vsel %vm9272_vm8, %v9486_v18, %v9485_v46  ;;  %v9603_v61 = vsel %vm9269_vm14, %v9602_v41, %v9601_v0  ;;  %v9634_v2 = vrot.slane %v17237_v10, 5 }
 0x61b   : > { %v9569_v60 = vsel %vm9269_vm14, %v9568_v34, %v9567_v56  ;;  %v9636_v25 = vrot.slane %v17243_v40, 4  ;;  %v9702_v63 = vrot.slane %v17237_v10, 7  ;;  %v9668_v59 = vrot.slane %v17237_v10, 6 }
 0x61c   : > { %v9604_v33 = vrot.slane %v17249_v5, 2  ;;  %v9570_v39 = vrot.slane %v17249_v5, 1  ;;  %v9638_v17 = vrot.slane %v17249_v5, 3  ;;  %v9704_v21 = vrot.slane %v17243_v40, 6 }
 0x61d   : > { %9320 = vrot.lane.b32.xlu2 %v9317_v50, %s11206_s30  ;;  %v9670_v27 = vrot.slane %v17243_v40, 5  ;;  %v9635_v11 = vsel %vm9266_vm2, %v9634_v2, %v9633_v35  ;;  %v9706_v15 = vrot.slane %v17249_v5, 5  ;;  %v9672_v13 = vrot.slane %v17249_v5, 4 }
 0x61e   : > { %v9605_v43 = vsel %vm9272_vm8, %v9604_v33, %v9603_v61  ;;  %v9571_v53 = vsel %vm9272_vm8, %v9570_v39, %v9569_v60  ;;  %v9637_v18 = vsel %vm9269_vm14, %v9636_v25, %v9635_v11  ;;  %v9701_v52 = vsel %vm9263_vm7, %v17166_v14, %v17140_v3  ;;  %v9523_v33 = vpop.permute.xlu1 %9522  ;;  %v9353_v39 = vpop.permute.xlu0 %9352 }
 0x61f   : > { %9490 = vrot.lane.b32.xlu0 %v9487_v38, %s11210_s18  ;;  %9456 = vrot.lane.b32.xlu1 %v9453_v23, %s11207_s11  ;;  %v9667_v16 = vsel %vm9263_vm7, %v9666_v58, %v17128_v45  ;;  %v9639_v57 = vsel %vm9272_vm8, %v9638_v17, %v9637_v18  ;;  %v9703_v47 = vsel %vm9266_vm2, %v9702_v63, %v9701_v52  ;;  %v9286_v8 = vrot.slane %v17186_v62, 1 }
 0x620   : > { %v9669_v7 = vsel %vm9266_vm2, %v9668_v59, %v9667_v16  ;;  %v9705_v50 = vsel %vm9269_vm14, %v9704_v21, %v9703_v47  ;;  %v9738_v62 = vrot.slane %v17243_v40, 7  ;;  %v9803_v9 = vrot.slane %v17166_v14, 3 }
 0x621   : > { %v9671_v6 = vsel %vm9269_vm14, %v9670_v27, %v9669_v7  ;;  %v9707_v3 = vsel %vm9272_vm8, %v9706_v15, %v9705_v50  ;;  %v9287_v46 = vsel %vm9272_vm8, %v9286_v8, %v17222_v19  ;;  %v9769_v38 = vrot.slane %v17166_v14, 2 }
 0x622   : > { %v9673_v45 = vsel %vm9272_vm8, %v9672_v13, %v9671_v6  ;;  %v9740_v23 = vrot.slane %v17249_v5, 6  ;;  %v9805_v28 = vrot.slane %v17237_v10, 2  ;;  %v9771_v55 = vrot.slane %v17237_v10, 1 }
 0x623   : > { %v9736_v26 = vsel %vm9263_vm7, %v9735_v36, %v17143_v30  ;;  %v9807_v19 = vrot.slane %v17243_v40, 1  ;;  %v9774_v44 = vrot.slane %v17249_v5, 7  ;;  %v9804_v14 = vsel %vm9263_vm7, %v9803_v9, %v17146_v32 }
 0x624   : > { %v9737_v48 = vsel %vm9266_vm2, %v17237_v10, %v9736_v26  ;;  %v9770_v29 = vsel %vm9263_vm7, %v9769_v38, %v17151_v1  ;;  %v9806_v42 = vsel %vm9266_vm2, %v9805_v28, %v9804_v14  ;;  %v9387_v1 = vpop.permute.xlu2 %9386  ;;  %vm9834_vm7 = vcmask 654336  }
 0x625   : > { %9422 = vrot.lane.b32.xlu2 %v9419_v49, %s11208_s12  ;;  %v9739_v4 = vsel %vm9269_vm14, %v9738_v62, %v9737_v48  ;;  %v9772_v30 = vsel %vm9266_vm2, %v9771_v55, %v9770_v29  ;;  %v9808_v10 = vsel %vm9269_vm14, %v9807_v19, %v9806_v42  ;;  %vm17726_vm2 = vmmov %vm17720_vm10  ;;  %s401_s12 = scalar_lea.vmem %s17405_s10, %s10848_s29 }
 0x626   : > { %v9741_v37 = vsel %vm9272_vm8, %v9740_v23, %v9739_v4  ;;  %v9773_v41 = vsel %vm9269_vm14, %v17243_v40, %v9772_v30  ;;  %v9809_v34 = vsel %vm9272_vm8, %v17249_v5, %v9808_v10  ;;  %v9319_v31 = vpop.permute.xlu1 %9318  ;;  %v9455_v20 = vpop.permute.xlu0 %9454  ;;  %vm17727_vm14 = vmmov %vm17721_vm5  ;;  %vm9840_vm5 = vcmask 785408  }
 0x627   : > { %9608 = vrot.lane.b32.xlu0 %v9605_v43, %s11213_s26  ;;  %9574 = vrot.lane.b32.xlu1 %v9571_v53, %s11211_s21  ;;  %v9775_v32 = vsel %vm9272_vm8, %v9774_v44, %v9773_v41  ;;  %v9816_v56 = vsel %vm805_vm1, %v17054_v54, %v9319_v31  ;;  %vm9837_vm8 = vcmask 719872   ;;  %vm17728_vm10 = vmmov %vm17724_vm13 }
 0x628   : > { %v9818_v43 = vsel %vm17723_vm15, %v9816_v56, %v9353_v39  ;;  %vm9849_vm15 = vcmask 982016  }
 0x62c   : > { %v9489_v51 = vpop.permute.xlu2 %9488 }
 0x62d   : > { %9642 = vrot.lane.b32.xlu2 %v9639_v57, %s11214_s19 }
 0x62e   : > { %v9421_v49 = vpop.permute.xlu1 %9420  ;;  %v9573_v0 = vpop.permute.xlu0 %9572 }
 0x62f   : > { %9710 = vrot.lane.b32.xlu0 %v9707_v3, %s11215_s27  ;;  %9676 = vrot.lane.b32.xlu1 %v9673_v45, %s11216_s20 }
 0x634   : > { %v9607_v22 = vpop.permute.xlu2 %9606 }
 0x635   : > { %9744 = vrot.lane.b32.xlu2 %v9741_v37, %s11217_s23 }
 0x636   : > { %v9641_v61 = vpop.permute.xlu1 %9640  ;;  %v9675_v60 = vpop.permute.xlu0 %9674 }
 0x637   : > { %9812 = vrot.lane.b32.xlu0 %v9809_v34, %s11212_s22  ;;  %9778 = vrot.lane.b32.xlu1 %v9775_v32, %s17722_s28 }
 0x63c   : > { %v9709_v40 = vpop.permute.xlu2 %9708 }
 0x63d   : > { %9810 = vrot.lane.b32.xlu2 %v17061_v24, %s11212_s22  ;;  %v9820_v24 = vsel %vm5323_vm3, %v9818_v43, %v9387_v1 }
 0x63e   : > { %v9822_v53 = vsel %vm17724_vm13, %v9820_v24, %v9421_v49  ;;  %v9743_v58 = vpop.permute.xlu1 %9742  ;;  %v9777_v17 = vpop.permute.xlu0 %9776 }
 0x63f   : > { %v9824_v25 = vsel %vm17725_vm6, %v9822_v53, %v9455_v20 }
 0x640   : > { %v9826_v63 = vsel %vm5434_vm11, %v9824_v25, %v9489_v51 }
 0x641   : > { %v9828_v59 = vsel %vm5471_vm12, %v9826_v63, %v9523_v33 }
 0x642   : > { %v9830_v54 = vsel %vm5508_vm4, %v9828_v59, %v9573_v0 }
 0x643   : > { %v9832_v11 = vsel %vm17726_vm2, %v9830_v54, %v9607_v22 }
 0x644   : > { %v9835_v15 = vsel %vm9834_vm7, %v9832_v11, %v9641_v61 }
 0x645   : > { %v9838_v16 = vsel %vm9837_vm8, %v9835_v15, %v9675_v60 }
 0x646   : > { %v9841_v8 = vsel %vm9840_vm5, %v9838_v16, %v9709_v40 }
 0x647   : > { %v9844_v50 = vsel %vm9843_vm0, %v9841_v8, %v9743_v58 }
 0x648   : > { %v9847_v3 = vsel %vm9846_vm9, %v9844_v50, %v9777_v17 }
 0x66f   : > { %v9525_v5 = vpop.permute.xlu2 %9524 }
 0x677   : > { %v9321_v12 = vpop.permute.xlu2 %9320 }
 0x678   : > { %v9817_v13 = vsel %vm805_vm1, %v9287_v46, %v9321_v12  ;;  %vm17729_vm1 = vmmov %vm17725_vm6 }
 0x67f   : > { %v9423_v2 = vpop.permute.xlu2 %9422 }
 0x687   : > { %v9643_v35 = vpop.permute.xlu2 %9642 }
 0x689   : > { %v9389_v21 = vpop.permute.xlu0 %9388  ;;  %v9355_v27 = vpop.permute.xlu1 %9354 }
 0x68a   : > { %v9819_v18 = vsel %vm17727_vm14, %v9817_v13, %v9355_v27 }
 0x68b   : > { %v9821_v57 = vsel %vm5323_vm3, %v9819_v18, %v9389_v21  ;;  %vm17730_vm3 = vmmov %vm17726_vm2 }
 0x68c   : > { %v9823_v6 = vsel %vm17728_vm10, %v9821_v57, %v9423_v2 }
 0x68f   : > { %v9745_v52 = vpop.permute.xlu2 %9744 }
 0x691   : > { %v9491_v47 = vpop.permute.xlu0 %9490  ;;  %v9457_v7 = vpop.permute.xlu1 %9456 }
 0x692   : > { %v9825_v36 = vsel %vm17729_vm1, %v9823_v6, %v9457_v7 }
 0x693   : > { %v9827_v46 = vsel %vm5434_vm11, %v9825_v36, %v9491_v47 }
 0x694   : > { %v9829_v23 = vsel %vm5471_vm12, %v9827_v46, %v9525_v5 }
 0x697   : > { %v9811_v45 = vpop.permute.xlu2 %9810 }
 0x698   : > { %v9850_v62 = vsel %vm9849_vm15, %v9847_v3, %v9811_v45 }
 0x699   : > { %9852 = vst [vmem:[%s401_s12] sm:$0xff] %v9850_v62  ;;  %v9609_v9 = vpop.permute.xlu0 %9608  ;;  %v9575_v38 = vpop.permute.xlu1 %9574 }
 0x69a   : > { %v9831_v28 = vsel %vm5508_vm4, %v9829_v23, %v9575_v38 }
 0x69b   : > { %v9833_v55 = vsel %vm17730_vm3, %v9831_v28, %v9609_v9 }
 0x69c   : > { %v9836_v48 = vsel %vm9834_vm7, %v9833_v55, %v9643_v35 }
 0x6a1   : > { %v9711_v26 = vpop.permute.xlu0 %9710  ;;  %v9677_v19 = vpop.permute.xlu1 %9676 }
 0x6a2   : > { %v9839_v44 = vsel %vm9837_vm8, %v9836_v48, %v9677_v19 }
 0x6a3   : > { %v9842_v4 = vsel %vm9840_vm5, %v9839_v44, %v9711_v26 }
 0x6a4   : > { %v9845_v29 = vsel %vm9843_vm0, %v9842_v4, %v9745_v52 }
 0x6a9   : > { %v9813_v14 = vpop.permute.xlu0 %9812  ;;  %v9779_v37 = vpop.permute.xlu1 %9778 }
 0x6aa   : > { %v9848_v42 = vsel %vm9846_vm9, %v9845_v29, %v9779_v37 }
 0x6ab   : > { %v9851_v30 = vsel %vm9849_vm15, %v9848_v42, %v9813_v14 }
 0x6ac   : > { %9853 = vst [vmem:[%s401_s12 + $0x8] sm:$0xff] %v9851_v30 }
 0x6ad PF: > { %s20_s15 = sadd.s32 1, %s11201_s15   ;;  %s17731_s13 = smov %s11197_s14 }
 0x6ae   : > { %p17_p5 = scmp.ge.s32.totalorder %s20_s15, 4   ;;  %s17732_s14 = smov %s17734_s16 }
 0x6b0   :  { %19 = sbr.rel (!%p17_p5) target bundleno = 2 (0x2), region = 109 }

</bundles_post_ra>
